<compile_context>
chip_gen: v7x
topology: tpu7x:2x2x1
jax: 0.10.0
libtpu: 0.0.40
codegen_flags: <defaults>
</compile_context>

<pallas_src>
from functools import partial

import numpy as np
import jax
import jax.numpy as jnp
from jax.experimental import pallas as pl
from jax.experimental.pallas import tpu as pltpu

# ----- the deterministic "parameters" of Conv2d(1, 8, 3, padding=1) ---------
# (kept only for the pure-JAX reference; the kernel exploits their structure)
filter_0   = np.array([[0, 0, 0], [0, 1, -1], [0, 0, 0]])
filter_45  = np.array([[0, 0, 0], [0, 1, 0], [0, 0, -1]])
filter_90  = np.array([[0, 0, 0], [0, 1, 0], [0, -1, 0]])
filter_135 = np.array([[0, 0, 0], [0, 1, 0], [-1, 0, 0]])
filter_180 = np.array([[0, 0, 0], [-1, 1, 0], [0, 0, 0]])
filter_225 = np.array([[-1, 0, 0], [0, 1, 0], [0, 0, 0]])
filter_270 = np.array([[0, -1, 0], [0, 1, 0], [0, 0, 0]])
filter_315 = np.array([[0, 0, -1], [0, 1, 0], [0, 0, 0]])

ALL_FILTERS = np.stack(
    [filter_0, filter_45, filter_90, filter_135,
     filter_180, filter_225, filter_270, filter_315]
).astype(np.float32)                       # (8, 3, 3)
BIAS = np.zeros((8,), np.float32)          # zero bias, as in init_parameter


def _round_up(x, m):
    return ((x + m - 1) // m) * m


def _vmem_capacity_bytes():
    """Best-effort VMEM capacity query; conservative fallback if unavailable."""
    try:
        return int(pltpu.get_tpu_info().vmem_capacity_bytes)
    except Exception:
        return 64 * 1024 * 1024


_VMEM_CAP = _vmem_capacity_bytes()
_BIG_VMEM = _VMEM_CAP >= 96 * 1024 * 1024        # v5e / v6e (128 MiB) vs v7x (64 MiB)
_TILE_BUDGET = (4 if _BIG_VMEM else 2) * 1024 * 1024   # bytes per f32 block
_VMEM_LIMIT = (96 if _BIG_VMEM else 48) * 1024 * 1024


def _pick_tile_h(H, W_pad):
    """Row-tile height: generation-aware block budget, multiple of 32 (int8
    direction tiling), >= 2 grid steps for megacore when the image allows it,
    and -- when possible -- a divisor of H so no row padding is needed."""
    t = _TILE_BUDGET // (4 * W_pad)
    t = min(t, 1024)
    if H >= 64:
        t = min(t, _round_up(H, 32) // 2)    # keep >= 2 grid steps (v7x megacore)
    t = max(32, (t // 32) * 32)              # int8 block needs th % 32 == 0
    if H % 32 == 0 and H >= 32:
        cand = min(t, H)
        while cand >= 32 and H % cand:
            cand -= 32
        if cand >= 32:
            t = cand                         # exact divisor -> no H pad / out slice
    return t


def _nms_kernel(mag_ref, dir_ref, halo_ref, out_ref):
    """mag_ref:  VMEM f32[TH, W]   magnitude tile
       dir_ref:  VMEM i8 [TH, W]   direction class in {0,1,2,3}
       halo_ref: VMEM f32[1,8,W]   sublane 0 = image row above tile, 1 = row below
       out_ref:  VMEM f32[TH, W]   thinned edges."""
    m = mag_ref[...]
    d = dir_ref[...].astype(jnp.int32)
    TH, W = m.shape
    zero = jnp.float32(0.0)

    halo = halo_ref[0]                               # (8, W)

    row = jax.lax.broadcasted_iota(jnp.int32, (TH, W), 0)
    col = jax.lax.broadcasted_iota(jnp.int32, (TH, W), 1)
    first_row, last_row = row == 0, row == TH - 1
    first_col, last_col = col == 0, col == W - 1

    # --- lane (x) shifts: XLU roll + one edge fix-up (no concat/unaligned slices)
    left  = jnp.where(first_col, zero, pltpu.roll(m, 1,     axis=1))   # m[y, x-1]
    right = jnp.where(last_col,  zero, pltpu.roll(m, W - 1, axis=1))   # m[y, x+1]

    hcol = jax.lax.broadcasted_iota(jnp.int32, halo.shape, 1)
    halo_l = jnp.where(hcol == 0,     zero, pltpu.roll(halo, 1,     axis=1))
    halo_r = jnp.where(hcol == W - 1, zero, pltpu.roll(halo, W - 1, axis=1))

    top,   bot   = halo[0:1, :],   halo[1:2, :]
    top_l, bot_l = halo_l[0:1, :], halo_l[1:2, :]
    top_r, bot_r = halo_r[0:1, :], halo_r[1:2, :]

    # --- sublane (y) shifts: XLU roll + inject the single halo row at the edge
    def shift_up(a, top_row):        # value at (y-1, .)
        return jnp.where(first_row, top_row, pltpu.roll(a, 1, axis=0))

    def shift_down(a, bot_row):      # value at (y+1, .)
        return jnp.where(last_row, bot_row, pltpu.roll(a, TH - 1, axis=0))

    up   = shift_up(m, top)
    down = shift_down(m, bot)
    dr   = shift_down(right, bot_r)  # (y+1, x+1)
    ul   = shift_up(left,  top_l)    # (y-1, x-1)
    dl   = shift_down(left, bot_l)   # (y+1, x-1)
    ur   = shift_up(right, top_r)    # (y-1, x+1)

    # class 0 -> {right,left}, 1 -> {dr,ul}, 2 -> {down,up}, 3 -> {dl,ur}
    nbr_a = jnp.where(d == 0, right, jnp.where(d == 1, dr, jnp.where(d == 2, down, dl)))
    nbr_b = jnp.where(d == 0, left,  jnp.where(d == 1, ul, jnp.where(d == 2, up,   ur)))

    is_max = (m > nbr_a) & (m > nbr_b)   # == min(m - nbr_a, m - nbr_b) > 0
    out_ref[...] = jnp.where(is_max, m, zero)


@partial(jax.jit, static_argnames=("tile_h",))
def non_max_suppression(grad_magnitude, grad_orientation, tile_h=None):
    """grad_magnitude, grad_orientation: (1, 1, H, W) -> (1, 1, H, W) float32."""
    n, c, H, W = grad_magnitude.shape
    assert n == 1 and c == 1, "module semantics assume batch=1, channels=1"

    mag = grad_magnitude.reshape(H, W).astype(jnp.float32)
    ori = grad_orientation.reshape(H, W).astype(jnp.float32)

    # Direction class in {0,1,2,3}: the positive/negative channels are always
    # (c, (c+4) % 8) and the min() > 0 test is symmetric in that pair, so only
    # channel mod 4 matters.  Shipped as int8 (1 B/px instead of 4).
    dir4 = (((ori / 45.0) % 8.0).astype(jnp.int32) % 4).astype(jnp.int8)

    W_pad = max(128, _round_up(W, 128))              # lane-dense last dim
    if tile_h is None:
        th = _pick_tile_h(H, W_pad)
    else:
        th = max(32, _round_up(int(tile_h), 32))     # int8 block needs th % 32 == 0
    nt = -(-H // th)
    H_pad = nt * th

    pad_h, pad_w = H_pad - H, W_pad - W
    if pad_h or pad_w:                               # static check: skip when aligned
        mag_p = jnp.pad(mag, ((0, pad_h), (0, pad_w)))
        dir_p = jnp.pad(dir4, ((0, pad_h), (0, pad_w)))
    else:
        mag_p, dir_p = mag, dir4

    # Per-tile 1-row halos built from strided row slices (no full-image pad),
    # packed into an 8-sublane slab: sublane 0 = row above tile, 1 = row below.
    zrow = jnp.zeros((1, W_pad), jnp.float32)
    top_rows = jnp.concatenate([zrow, mag_p[th - 1::th][: nt - 1]], axis=0)   # (nt, W_pad)
    bot_rows = jnp.concatenate([mag_p[th::th], zrow], axis=0)                 # (nt, W_pad)
    halos = jnp.concatenate(
        [top_rows[:, None, :], bot_rows[:, None, :],
         jnp.zeros((nt, 6, W_pad), jnp.float32)], axis=1)                     # (nt, 8, W_pad)

    out = pl.pallas_call(
        _nms_kernel,
        out_shape=jax.ShapeDtypeStruct((H_pad, W_pad), jnp.float32),
        grid=(nt,),
        in_specs=[
            pl.BlockSpec((th, W_pad), lambda i: (i, 0)),        # magnitude (f32)
            pl.BlockSpec((th, W_pad), lambda i: (i, 0)),        # direction class (i8)
            pl.BlockSpec((1, 8, W_pad), lambda i: (i, 0, 0)),   # row halos
        ],
        out_specs=pl.BlockSpec((th, W_pad), lambda i: (i, 0)),
        compiler_params=pltpu.CompilerParams(
            dimension_semantics=("parallel",),                  # megacore on v7x
            vmem_limit_bytes=_VMEM_LIMIT,
        ),
    )(mag_p, dir_p, halos)

    if pad_h or pad_w:
        out = out[:H, :W]
    return out.reshape(1, 1, H, W)


def _reference(grad_magnitude, grad_orientation):
    """Pure-JAX reference matching the PyTorch forward (batch=1, quantized angles)."""
    H, W = grad_magnitude.shape[2], grad_magnitude.shape[3]
    mag = grad_magnitude.reshape(H, W).astype(jnp.float32)
    ori = grad_orientation.reshape(H, W).astype(jnp.float32)
    mpad = jnp.pad(mag, ((1, 1), (1, 1)))
    conv = jnp.stack([
        sum(ALL_FILTERS[c, ki, kj] * mpad[ki:ki + H, kj:kj + W]
            for ki in range(3) for kj in range(3)) + BIAS[c]
        for c in range(8)
    ])                                                   # (8, H, W)
    pos = ((ori / 45.0) % 8.0).astype(jnp.int32)
    neg = ((ori / 45.0 + 4.0) % 8.0).astype(jnp.int32)
    sel_pos = jnp.take_along_axis(conv, pos[None], axis=0)[0]
    sel_neg = jnp.take_along_axis(conv, neg[None], axis=0)[0]
    is_max = jnp.minimum(sel_pos, sel_neg) > 0.0
    return jnp.where(is_max, mag, 0.0).reshape(1, 1, H, W)


if __name__ == "__main__":
    key = jax.random.PRNGKey(0)
    k1, k2, k3, k4, k5, k6 = jax.random.split(key, 6)

    # Case 1: small square image, single row tile, width padded to 128.
    H, W = 16, 16
    grad_magnitude = jax.random.uniform(k1, (1, 1, H, W), dtype=jnp.float32)
    grad_orientation = (jax.random.randint(k2, (1, 1, H, W), 0, 8) * 45).astype(jnp.float32)
    out = non_max_suppression(grad_magnitude, grad_orientation)
    jax.block_until_ready(out)
    ref = _reference(grad_magnitude, grad_orientation)
    assert out.shape == (1, 1, H, W) and out.dtype == jnp.float32
    assert jnp.allclose(out, ref, atol=1e-5), "mismatch vs reference (case 1)"

    # Case 2: non-128-aligned width, multiple row tiles (exercises halos + pads).
    H2, W2 = 80, 200
    gm2 = jax.random.uniform(k3, (1, 1, H2, W2), dtype=jnp.float32)
    go2 = (jax.random.randint(k4, (1, 1, H2, W2), 0, 8) * 45).astype(jnp.float32)
    out2 = non_max_suppression(gm2, go2, tile_h=32)
    jax.block_until_ready(out2)
    ref2 = _reference(gm2, go2)
    assert out2.shape == (1, 1, H2, W2)
    assert jnp.allclose(out2, ref2, atol=1e-5), "mismatch vs reference (case 2)"

    # Case 3: fully aligned shape -> no pads / output slice, >=2 tiles (megacore path).
    H3, W3 = 64, 256
    gm3 = jax.random.uniform(k5, (1, 1, H3, W3), dtype=jnp.float32)
    go3 = (jax.random.randint(k6, (1, 1, H3, W3), 0, 8) * 45).astype(jnp.float32)
    out3 = non_max_suppression(gm3, go3)
    jax.block_until_ready(out3)
    ref3 = _reference(gm3, go3)
    assert out3.shape == (1, 1, H3, W3)
    assert jnp.allclose(out3, ref3, atol=1e-5), "mismatch vs reference (case 3)"

    print("KERNEL_OK")
</pallas_src>

<mosaic_0001>
module attributes {stable_mosaic.version = 11 : i64} {
  func.func @_nms_kernel(%arg0: i32, %arg1: memref<1024x128xf32, #tpu.memory_space<vmem>>, %arg2: memref<1024x128xi8, #tpu.memory_space<vmem>>, %arg3: memref<1x8x128xf32, #tpu.memory_space<vmem>>, %arg4: memref<1024x128xf32, #tpu.memory_space<vmem>>) attributes {dimension_semantics = [#tpu.dimension_semantics<parallel>], iteration_bounds = array<i64: 1>, scalar_prefetch = 0 : i64, scratch_operands = 0 : i64, tpu.core_type = #tpu.core_type<tc>, window_params = [{transform_indices = @transform_0, window_bounds = array<i64: 1024, 128>}, {transform_indices = @transform_1, window_bounds = array<i64: 1024, 128>}, {transform_indices = @transform_2, window_bounds = array<i64: 1, 8, 128>}, {transform_indices = @transform_3, window_bounds = array<i64: 1024, 128>}]} {
    %c0 = arith.constant 0 : index
    %c0_0 = arith.constant 0 : index
    %0 = vector.load %arg1[%c0, %c0_0] : memref<1024x128xf32, #tpu.memory_space<vmem>>, vector<1024x128xf32>
    %c0_1 = arith.constant 0 : index
    %c0_2 = arith.constant 0 : index
    %1 = vector.load %arg2[%c0_1, %c0_2] : memref<1024x128xi8, #tpu.memory_space<vmem>>, vector<1024x128xi8>
    %2 = arith.extsi %1 : vector<1024x128xi8> to vector<1024x128xi32>
    %c0_3 = arith.constant 0 : index
    %c0_4 = arith.constant 0 : index
    %c0_5 = arith.constant 0 : index
    %3 = vector.load %arg3[%c0_3, %c0_4, %c0_5] : memref<1x8x128xf32, #tpu.memory_space<vmem>>, vector<1x8x128xf32>
    %4 = vector.shape_cast %3 : vector<1x8x128xf32> to vector<8x128xf32>
    %5 = tpu.iota {dimensions = array<i32: 0>} : vector<1024x128xi32>
    %6 = tpu.iota {dimensions = array<i32: 1>} : vector<1024x128xi32>
    %c0_i32 = arith.constant 0 : i32
    %7 = vector.broadcast %c0_i32 : i32 to vector<1024x128xi32>
    %8 = arith.cmpi eq, %5, %7 : vector<1024x128xi32>
    %c1023_i32 = arith.constant 1023 : i32
    %9 = vector.broadcast %c1023_i32 : i32 to vector<1024x128xi32>
    %10 = arith.cmpi eq, %5, %9 : vector<1024x128xi32>
    %c0_i32_6 = arith.constant 0 : i32
    %11 = vector.broadcast %c0_i32_6 : i32 to vector<1024x128xi32>
    %12 = arith.cmpi eq, %6, %11 : vector<1024x128xi32>
    %c127_i32 = arith.constant 127 : i32
    %13 = vector.broadcast %c127_i32 : i32 to vector<1024x128xi32>
    %14 = arith.cmpi eq, %6, %13 : vector<1024x128xi32>
    %c1_i32 = arith.constant 1 : i32
    %15 = tpu.dynamic_rotate %0 by %c1_i32 dim 1 : vector<1024x128xf32>, i32 -> vector<1024x128xf32>
    %cst = arith.constant 0.000000e+00 : f32
    %16 = vector.broadcast %cst : f32 to vector<1024x128xf32>
    %17 = arith.select %12, %16, %15 : vector<1024x128xi1>, vector<1024x128xf32>
    %c127_i32_7 = arith.constant 127 : i32
    %18 = tpu.dynamic_rotate %0 by %c127_i32_7 dim 1 : vector<1024x128xf32>, i32 -> vector<1024x128xf32>
    %cst_8 = arith.constant 0.000000e+00 : f32
    %19 = vector.broadcast %cst_8 : f32 to vector<1024x128xf32>
    %20 = arith.select %14, %19, %18 : vector<1024x128xi1>, vector<1024x128xf32>
    %21 = tpu.iota {dimensions = array<i32: 1>} : vector<8x128xi32>
    %c0_i32_9 = arith.constant 0 : i32
    %22 = vector.broadcast %c0_i32_9 : i32 to vector<8x128xi32>
    %23 = arith.cmpi eq, %21, %22 : vector<8x128xi32>
    %c1_i32_10 = arith.constant 1 : i32
    %24 = tpu.dynamic_rotate %4 by %c1_i32_10 dim 1 : vector<8x128xf32>, i32 -> vector<8x128xf32>
    %cst_11 = arith.constant 0.000000e+00 : f32
    %25 = vector.broadcast %cst_11 : f32 to vector<8x128xf32>
    %26 = arith.select %23, %25, %24 : vector<8x128xi1>, vector<8x128xf32>
    %c127_i32_12 = arith.constant 127 : i32
    %27 = vector.broadcast %c127_i32_12 : i32 to vector<8x128xi32>
    %28 = arith.cmpi eq, %21, %27 : vector<8x128xi32>
    %c127_i32_13 = arith.constant 127 : i32
    %29 = tpu.dynamic_rotate %4 by %c127_i32_13 dim 1 : vector<8x128xf32>, i32 -> vector<8x128xf32>
    %cst_14 = arith.constant 0.000000e+00 : f32
    %30 = vector.broadcast %cst_14 : f32 to vector<8x128xf32>
    %31 = arith.select %28, %30, %29 : vector<8x128xi1>, vector<8x128xf32>
    %32 = vector.extract_strided_slice %4 {offsets = [0, 0], sizes = [1, 128], strides = [1, 1]} : vector<8x128xf32> to vector<1x128xf32>
    %33 = vector.extract_strided_slice %4 {offsets = [1, 0], sizes = [1, 128], strides = [1, 1]} : vector<8x128xf32> to vector<1x128xf32>
    %34 = vector.extract_strided_slice %26 {offsets = [0, 0], sizes = [1, 128], strides = [1, 1]} : vector<8x128xf32> to vector<1x128xf32>
    %35 = vector.extract_strided_slice %26 {offsets = [1, 0], sizes = [1, 128], strides = [1, 1]} : vector<8x128xf32> to vector<1x128xf32>
    %36 = vector.extract_strided_slice %31 {offsets = [0, 0], sizes = [1, 128], strides = [1, 1]} : vector<8x128xf32> to vector<1x128xf32>
    %37 = vector.extract_strided_slice %31 {offsets = [1, 0], sizes = [1, 128], strides = [1, 1]} : vector<8x128xf32> to vector<1x128xf32>
    %c1_i32_15 = arith.constant 1 : i32
    %38 = tpu.dynamic_rotate %0 by %c1_i32_15 dim 0 : vector<1024x128xf32>, i32 -> vector<1024x128xf32>
    %39 = vector.shape_cast %32 : vector<1x128xf32> to vector<1x128xf32>
    %40 = vector.broadcast %39 : vector<1x128xf32> to vector<1024x128xf32>
    %41 = arith.select %8, %40, %38 : vector<1024x128xi1>, vector<1024x128xf32>
    %c1023_i32_16 = arith.constant 1023 : i32
    %42 = tpu.dynamic_rotate %0 by %c1023_i32_16 dim 0 : vector<1024x128xf32>, i32 -> vector<1024x128xf32>
    %43 = vector.shape_cast %33 : vector<1x128xf32> to vector<1x128xf32>
    %44 = vector.broadcast %43 : vector<1x128xf32> to vector<1024x128xf32>
    %45 = arith.select %10, %44, %42 : vector<1024x128xi1>, vector<1024x128xf32>
    %c1023_i32_17 = arith.constant 1023 : i32
    %46 = tpu.dynamic_rotate %20 by %c1023_i32_17 dim 0 : vector<1024x128xf32>, i32 -> vector<1024x128xf32>
    %47 = vector.shape_cast %37 : vector<1x128xf32> to vector<1x128xf32>
    %48 = vector.broadcast %47 : vector<1x128xf32> to vector<1024x128xf32>
    %49 = arith.select %10, %48, %46 : vector<1024x128xi1>, vector<1024x128xf32>
    %c1_i32_18 = arith.constant 1 : i32
    %50 = tpu.dynamic_rotate %17 by %c1_i32_18 dim 0 : vector<1024x128xf32>, i32 -> vector<1024x128xf32>
    %51 = vector.shape_cast %34 : vector<1x128xf32> to vector<1x128xf32>
    %52 = vector.broadcast %51 : vector<1x128xf32> to vector<1024x128xf32>
    %53 = arith.select %8, %52, %50 : vector<1024x128xi1>, vector<1024x128xf32>
    %c1023_i32_19 = arith.constant 1023 : i32
    %54 = tpu.dynamic_rotate %17 by %c1023_i32_19 dim 0 : vector<1024x128xf32>, i32 -> vector<1024x128xf32>
    %55 = vector.shape_cast %35 : vector<1x128xf32> to vector<1x128xf32>
    %56 = vector.broadcast %55 : vector<1x128xf32> to vector<1024x128xf32>
    %57 = arith.select %10, %56, %54 : vector<1024x128xi1>, vector<1024x128xf32>
    %c1_i32_20 = arith.constant 1 : i32
    %58 = tpu.dynamic_rotate %20 by %c1_i32_20 dim 0 : vector<1024x128xf32>, i32 -> vector<1024x128xf32>
    %59 = vector.shape_cast %36 : vector<1x128xf32> to vector<1x128xf32>
    %60 = vector.broadcast %59 : vector<1x128xf32> to vector<1024x128xf32>
    %61 = arith.select %8, %60, %58 : vector<1024x128xi1>, vector<1024x128xf32>
    %c0_i32_21 = arith.constant 0 : i32
    %62 = vector.broadcast %c0_i32_21 : i32 to vector<1024x128xi32>
    %63 = arith.cmpi eq, %2, %62 : vector<1024x128xi32>
    %c1_i32_22 = arith.constant 1 : i32
    %64 = vector.broadcast %c1_i32_22 : i32 to vector<1024x128xi32>
    %65 = arith.cmpi eq, %2, %64 : vector<1024x128xi32>
    %c2_i32 = arith.constant 2 : i32
    %66 = vector.broadcast %c2_i32 : i32 to vector<1024x128xi32>
    %67 = arith.cmpi eq, %2, %66 : vector<1024x128xi32>
    %68 = arith.select %67, %45, %57 : vector<1024x128xi1>, vector<1024x128xf32>
    %69 = arith.select %65, %49, %68 : vector<1024x128xi1>, vector<1024x128xf32>
    %70 = arith.select %63, %20, %69 : vector<1024x128xi1>, vector<1024x128xf32>
    %c0_i32_23 = arith.constant 0 : i32
    %71 = vector.broadcast %c0_i32_23 : i32 to vector<1024x128xi32>
    %72 = arith.cmpi eq, %2, %71 : vector<1024x128xi32>
    %c1_i32_24 = arith.constant 1 : i32
    %73 = vector.broadcast %c1_i32_24 : i32 to vector<1024x128xi32>
    %74 = arith.cmpi eq, %2, %73 : vector<1024x128xi32>
    %c2_i32_25 = arith.constant 2 : i32
    %75 = vector.broadcast %c2_i32_25 : i32 to vector<1024x128xi32>
    %76 = arith.cmpi eq, %2, %75 : vector<1024x128xi32>
    %77 = arith.select %76, %41, %61 : vector<1024x128xi1>, vector<1024x128xf32>
    %78 = arith.select %74, %53, %77 : vector<1024x128xi1>, vector<1024x128xf32>
    %79 = arith.select %72, %17, %78 : vector<1024x128xi1>, vector<1024x128xf32>
    %80 = arith.cmpf ogt, %0, %70 : vector<1024x128xf32>
    %81 = arith.cmpf ogt, %0, %79 : vector<1024x128xf32>
    %82 = arith.andi %80, %81 : vector<1024x128xi1>
    %cst_26 = arith.constant 0.000000e+00 : f32
    %83 = vector.broadcast %cst_26 : f32 to vector<1024x128xf32>
    %84 = arith.select %82, %0, %83 : vector<1024x128xi1>, vector<1024x128xf32>
    %c0_27 = arith.constant 0 : index
    %c0_28 = arith.constant 0 : index
    %85 = vector.load %arg4[%c0_27, %c0_28] : memref<1024x128xf32, #tpu.memory_space<vmem>>, vector<1024x128xf32>
    tpu.vector_store %arg4[%c0_27, %c0_28], %84 {strides = array<i32>} : memref<1024x128xf32, #tpu.memory_space<vmem>>, vector<1024x128xf32>,
    return
  }
  func.func @transform_0(%arg0: i32) -> (i32, i32) {
    %c0_i32 = arith.constant 0 : i32
    %c0_i32_0 = arith.constant 0 : i32
    return %arg0, %c0_i32 : i32, i32
  }
  func.func @transform_1(%arg0: i32) -> (i32, i32) {
    %c0_i32 = arith.constant 0 : i32
    %c0_i32_0 = arith.constant 0 : i32
    return %arg0, %c0_i32 : i32, i32
  }
  func.func @transform_2(%arg0: i32) -> (i32, i32, i32) {
    %c0_i32 = arith.constant 0 : i32
    %c0_i32_0 = arith.constant 0 : i32
    %c0_i32_1 = arith.constant 0 : i32
    return %arg0, %c0_i32, %c0_i32_0 : i32, i32, i32
  }
  func.func @transform_3(%arg0: i32) -> (i32, i32) {
    %c0_i32 = arith.constant 0 : i32
    %c0_i32_0 = arith.constant 0 : i32
    return %arg0, %c0_i32 : i32, i32
  }
}

</mosaic_0001>

<bundles_post_ra>
// kernel: non_max_suppression.1
= control target key start
LH: loop header
LB: loop body
LE: loop exit
PB: predicated region body
PF: predicated region fallthrough
CT: control target
= control target key end

     0   :  { %s5883_s16 = smov 1   ;;  %v303_v54 = vlaneseq  ;;  %s5884_s21 = smov 127   ;;  %s17057_s0 = inlined_call_operand.vmem [shape: f32[1024,128], index: 0, kind: input, shape index: {}]   ;;  %s17058_s1 = inlined_call_operand.vmem [shape: s8[1024,128], index: 1, kind: input, shape index: {}]   ;;  %s17059_s3 = inlined_call_operand.vmem [shape: f32[1024,128], index: 3, kind: output, shape index: {}]   ;;  %s17060_s2 = inlined_call_operand.vmem [shape: f32[1,8,128], index: 2, kind: input, shape index: {}]  }
   0x1   :  { %v5908_v0 = vld [vmem:[%s17057_s0 + $0x10] sm:$0xff]  ;;  %v5913_v1 = vld [vmem:[%s17057_s0] sm:$0xff]  ;;  %v5922_v2 = vld [vmem:[%s17057_s0 + $0x18] sm:$0xff] }
   0x2   :  { %17548 = vst [vmem:[#allocation2_spill] sm:$0xff] %v5908_v0  ;;  %17549 = vst [vmem:[#allocation3_spill] sm:$0xff] %v5913_v1  ;;  %696 = vrot.lane.b32.xlu1 %v5908_v0, %s5883_s16  ;;  %692 = vrot.lane.b32.xlu0 %v5913_v1, %s5883_s16  ;;  %v5927_v3 = vld [vmem:[%s17057_s0 + $0x8] sm:$0xff]  ;;  %v5941_v5 = vld [vmem:[%s17057_s0 + $0x20] sm:$0xff]  ;;  %v6293_v57 = vshrl.u32 %v303_v54, 7 }
   0x3   :  { %17550 = vst [vmem:[#allocation4_spill] sm:$0xff] %v5922_v2  ;;  %v5936_v4 = vld [vmem:[%s17057_s0 + $0x28] sm:$0xff]  ;;  %17552 = vst [vmem:[#allocation6_spill] sm:$0xff] %v5941_v5  ;;  %v5950_v6 = vld [vmem:[%s17057_s0 + $0x38] sm:$0xff]  ;;  %v1856_v58 = vrot.slane %v5927_v3, 1  ;;  %v17075_v63 = vrot.slane %v5941_v5, 1 }
   0x4   :  { %17551 = vst [vmem:[#allocation5_spill] sm:$0xff] %v5936_v4  ;;  %17553 = vst [vmem:[#allocation7_spill] sm:$0xff] %v5950_v6  ;;  %v5955_v7 = vld [vmem:[%s17057_s0 + $0x30] sm:$0xff]  ;;  %v5964_v8 = vld [vmem:[%s17057_s0 + $0x48] sm:$0xff]  ;;  %vm1983_vm0 = vcmp.lt.s32.totalorder %v6293_v57, 7  ;;  %vm1594_vm2 = vcmp.lt.s32.totalorder %v6293_v57, 1 }
   0x5   :  { %17554 = vst [vmem:[#allocation8_spill] sm:$0xff] %v5955_v7  ;;  %17555 = vst [vmem:[#allocation9_spill] sm:$0xff] %v5964_v8  ;;  %v5969_v9 = vld [vmem:[%s17057_s0 + $0x40] sm:$0xff]  ;;  %v5978_v10 = vld [vmem:[%s17057_s0 + $0x58] sm:$0xff] }
   0x6   :  { %698 = vrot.lane.b32.xlu1 %v5922_v2, %s5883_s16  ;;  %694 = vrot.lane.b32.xlu0 %v5927_v3, %s5883_s16  ;;  %17556 = vst [vmem:[#allocation10_spill] sm:$0xff] %v5969_v9  ;;  %17557 = vst [vmem:[#allocation11_spill] sm:$0xff] %v5978_v10  ;;  %v5983_v11 = vld [vmem:[%s17057_s0 + $0x50] sm:$0xff]  ;;  %v5992_v12 = vld [vmem:[%s17057_s0 + $0x68] sm:$0xff]  ;;  %v17076_v3 = vrot.slane %v5922_v2, 1 }
   0x7   :  { %17558 = vst [vmem:[#allocation12_spill] sm:$0xff] %v5983_v11  ;;  %17559 = vst [vmem:[#allocation13_spill] sm:$0xff] %v5992_v12  ;;  %v5997_v13 = vld [vmem:[%s17057_s0 + $0x60] sm:$0xff]  ;;  %v6006_v14 = vld [vmem:[%s17057_s0 + $0x78] sm:$0xff] }
   0x8   :  { %17560 = vst [vmem:[#allocation14_spill] sm:$0xff] %v5997_v13  ;;  %17561 = vst [vmem:[#allocation15_spill] sm:$0xff] %v6006_v14  ;;  %v6011_v15 = vld [vmem:[%s17057_s0 + $0x70] sm:$0xff]  ;;  %v6020_v16 = vld [vmem:[%s17057_s0 + $0x88] sm:$0xff] }
   0x9   :  { %17562 = vst [vmem:[#allocation16_spill] sm:$0xff] %v6011_v15  ;;  %17563 = vst [vmem:[#allocation17_spill] sm:$0xff] %v6020_v16  ;;  %v6025_v17 = vld [vmem:[%s17057_s0 + $0x80] sm:$0xff]  ;;  %v6034_v18 = vld [vmem:[%s17057_s0 + $0x98] sm:$0xff] }
   0xa   :  { %702 = vrot.lane.b32.xlu1 %v5936_v4, %s5883_s16  ;;  %700 = vrot.lane.b32.xlu0 %v5941_v5, %s5883_s16  ;;  %17564 = vst [vmem:[#allocation18_spill] sm:$0xff] %v6025_v17  ;;  %17565 = vst [vmem:[#allocation19_spill] sm:$0xff] %v6034_v18  ;;  %v6039_v19 = vld [vmem:[%s17057_s0 + $0x90] sm:$0xff]  ;;  %v6048_v20 = vld [vmem:[%s17057_s0 + $0xa8] sm:$0xff]  ;;  %v17612_v5 = vrot.slane %v5936_v4, 1  ;;  %v17617_v4 = vrot.slane %v5964_v8, 1 }
   0xb   :  { %17566 = vst [vmem:[#allocation20_spill] sm:$0xff] %v6039_v19  ;;  %17567 = vst [vmem:[#allocation21_spill] sm:$0xff] %v6048_v20  ;;  %v6053_v21 = vld [vmem:[%s17057_s0 + $0xa0] sm:$0xff]  ;;  %v6062_v22 = vld [vmem:[%s17057_s0 + $0xb8] sm:$0xff] }
   0xc   :  { %17568 = vst [vmem:[#allocation22_spill] sm:$0xff] %v6053_v21  ;;  %17569 = vst [vmem:[#allocation23_spill] sm:$0xff] %v6062_v22  ;;  %v6067_v23 = vld [vmem:[%s17057_s0 + $0xb0] sm:$0xff]  ;;  %v6076_v24 = vld [vmem:[%s17057_s0 + $0xc8] sm:$0xff] }
   0xd   :  { %17570 = vst [vmem:[#allocation24_spill] sm:$0xff] %v6067_v23  ;;  %17571 = vst [vmem:[#allocation25_spill] sm:$0xff] %v6076_v24  ;;  %v6081_v25 = vld [vmem:[%s17057_s0 + $0xc0] sm:$0xff]  ;;  %v6090_v26 = vld [vmem:[%s17057_s0 + $0xd8] sm:$0xff] }
   0xe   :  { %706 = vrot.lane.b32.xlu1 %v5950_v6, %s5883_s16  ;;  %704 = vrot.lane.b32.xlu0 %v5955_v7, %s5883_s16  ;;  %17572 = vst [vmem:[#allocation26_spill] sm:$0xff] %v6081_v25  ;;  %17573 = vst [vmem:[#allocation27_spill] sm:$0xff] %v6090_v26  ;;  %v6095_v27 = vld [vmem:[%s17057_s0 + $0xd0] sm:$0xff]  ;;  %v6104_v28 = vld [vmem:[%s17057_s0 + $0xe8] sm:$0xff] }
   0xf   :  { %17574 = vst [vmem:[#allocation28_spill] sm:$0xff] %v6095_v27  ;;  %17575 = vst [vmem:[#allocation29_spill] sm:$0xff] %v6104_v28  ;;  %v6109_v29 = vld [vmem:[%s17057_s0 + $0xe0] sm:$0xff]  ;;  %v6118_v30 = vld [vmem:[%s17057_s0 + $0xf8] sm:$0xff] }
  0x10   :  { %17576 = vst [vmem:[#allocation30_spill] sm:$0xff] %v6109_v29  ;;  %17577 = vst [vmem:[#allocation31_spill] sm:$0xff] %v6118_v30  ;;  %v6123_v31 = vld [vmem:[%s17057_s0 + $0xf0] sm:$0xff]  ;;  %v6132_v32 = vld [vmem:[%s17057_s0 + $0x108] sm:$0xff] }
  0x11   :  { %17578 = vst [vmem:[#allocation32_spill] sm:$0xff] %v6123_v31  ;;  %17579 = vst [vmem:[#allocation33_spill] sm:$0xff] %v6132_v32  ;;  %v6137_v33 = vld [vmem:[%s17057_s0 + $0x100] sm:$0xff]  ;;  %v6146_v34 = vld [vmem:[%s17057_s0 + $0x118] sm:$0xff] }
  0x12   :  { %710 = vrot.lane.b32.xlu1 %v5964_v8, %s5883_s16  ;;  %708 = vrot.lane.b32.xlu0 %v5969_v9, %s5883_s16  ;;  %17580 = vst [vmem:[#allocation34_spill] sm:$0xff] %v6137_v33  ;;  %17581 = vst [vmem:[#allocation35_spill] sm:$0xff] %v6146_v34  ;;  %v6151_v35 = vld [vmem:[%s17057_s0 + $0x110] sm:$0xff]  ;;  %v6160_v36 = vld [vmem:[%s17057_s0 + $0x128] sm:$0xff] }
  0x13   :  { %17582 = vst [vmem:[#allocation36_spill] sm:$0xff] %v6151_v35  ;;  %17583 = vst [vmem:[#allocation37_spill] sm:$0xff] %v6160_v36  ;;  %v6165_v37 = vld [vmem:[%s17057_s0 + $0x120] sm:$0xff]  ;;  %v6174_v38 = vld [vmem:[%s17057_s0 + $0x138] sm:$0xff] }
  0x14   :  { %17584 = vst [vmem:[#allocation38_spill] sm:$0xff] %v6165_v37  ;;  %17585 = vst [vmem:[#allocation39_spill] sm:$0xff] %v6174_v38  ;;  %v6179_v39 = vld [vmem:[%s17057_s0 + $0x130] sm:$0xff]  ;;  %v6188_v40 = vld [vmem:[%s17057_s0 + $0x148] sm:$0xff] }
  0x15   :  { %17586 = vst [vmem:[#allocation40_spill] sm:$0xff] %v6179_v39  ;;  %17587 = vst [vmem:[#allocation41_spill] sm:$0xff] %v6188_v40  ;;  %v6193_v41 = vld [vmem:[%s17057_s0 + $0x140] sm:$0xff]  ;;  %v6202_v42 = vld [vmem:[%s17057_s0 + $0x158] sm:$0xff] }
  0x16   :  { %714 = vrot.lane.b32.xlu1 %v5978_v10, %s5883_s16  ;;  %712 = vrot.lane.b32.xlu0 %v5983_v11, %s5883_s16  ;;  %17588 = vst [vmem:[#allocation42_spill] sm:$0xff] %v6193_v41  ;;  %17589 = vst [vmem:[#allocation43_spill] sm:$0xff] %v6202_v42  ;;  %v6207_v43 = vld [vmem:[%s17057_s0 + $0x150] sm:$0xff]  ;;  %v6216_v44 = vld [vmem:[%s17057_s0 + $0x168] sm:$0xff] }
  0x17   :  { %17590 = vst [vmem:[#allocation44_spill] sm:$0xff] %v6207_v43  ;;  %17591 = vst [vmem:[#allocation45_spill] sm:$0xff] %v6216_v44  ;;  %v6221_v45 = vld [vmem:[%s17057_s0 + $0x160] sm:$0xff]  ;;  %v6230_v46 = vld [vmem:[%s17057_s0 + $0x178] sm:$0xff] }
  0x18   :  { %17592 = vst [vmem:[#allocation46_spill] sm:$0xff] %v6221_v45  ;;  %17593 = vst [vmem:[#allocation47_spill] sm:$0xff] %v6230_v46  ;;  %v6235_v47 = vld [vmem:[%s17057_s0 + $0x170] sm:$0xff]  ;;  %v6244_v48 = vld [vmem:[%s17057_s0 + $0x188] sm:$0xff] }
  0x19   :  { %17594 = vst [vmem:[#allocation48_spill] sm:$0xff] %v6235_v47  ;;  %17595 = vst [vmem:[#allocation49_spill] sm:$0xff] %v6244_v48  ;;  %v6249_v49 = vld [vmem:[%s17057_s0 + $0x180] sm:$0xff]  ;;  %v6258_v50 = vld [vmem:[%s17057_s0 + $0x198] sm:$0xff] }
  0x1a   :  { %718 = vrot.lane.b32.xlu1 %v5992_v12, %s5883_s16  ;;  %716 = vrot.lane.b32.xlu0 %v5997_v13, %s5883_s16  ;;  %17596 = vst [vmem:[#allocation50_spill] sm:$0xff] %v6249_v49  ;;  %17597 = vst [vmem:[#allocation51_spill] sm:$0xff] %v6258_v50  ;;  %v6263_v51 = vld [vmem:[%s17057_s0 + $0x190] sm:$0xff]  ;;  %v6272_v52 = vld [vmem:[%s17057_s0 + $0x1a8] sm:$0xff] }
  0x1b   :  { %17598 = vst [vmem:[#allocation52_spill] sm:$0xff] %v6263_v51  ;;  %17599 = vst [vmem:[#allocation53_spill] sm:$0xff] %v6272_v52  ;;  %v6277_v53 = vld [vmem:[%s17057_s0 + $0x1a0] sm:$0xff]  ;;  %v6286_v55 = vld [vmem:[%s17057_s0 + $0x1b8] sm:$0xff] }
  0x1c   :  { %17600 = vst [vmem:[#allocation54_spill] sm:$0xff] %v6277_v53  ;;  %17601 = vst [vmem:[#allocation55_spill] sm:$0xff] %v6286_v55  ;;  %v6291_v56 = vld [vmem:[%s17057_s0 + $0x1b0] sm:$0xff]  ;;  %v6305_v61 = vld [vmem:[%s17057_s0 + $0x1c8] sm:$0xff] }
  0x1d   :  { %17602 = vst [vmem:[#allocation56_spill] sm:$0xff] %v6291_v56  ;;  %17603 = vst [vmem:[#allocation57_spill] sm:$0xff] %v6305_v61  ;;  %v6310_v62 = vld [vmem:[%s17057_s0 + $0x1c0] sm:$0xff] }
  0x1e   :  { %722 = vrot.lane.b32.xlu1 %v6006_v14, %s5883_s16  ;;  %720 = vrot.lane.b32.xlu0 %v6011_v15, %s5883_s16  ;;  %17604 = vst [vmem:[#allocation58_spill] sm:$0xff] %v6310_v62 }
  0x22   :  { %726 = vrot.lane.b32.xlu1 %v6020_v16, %s5883_s16  ;;  %724 = vrot.lane.b32.xlu0 %v6025_v17, %s5883_s16 }
  0x26   :  { %730 = vrot.lane.b32.xlu1 %v6034_v18, %s5883_s16  ;;  %728 = vrot.lane.b32.xlu0 %v6039_v19, %s5883_s16 }
  0x2a   :  { %734 = vrot.lane.b32.xlu1 %v6048_v20, %s5883_s16  ;;  %732 = vrot.lane.b32.xlu0 %v6053_v21, %s5883_s16 }
  0x2e   :  { %738 = vrot.lane.b32.xlu1 %v6062_v22, %s5883_s16  ;;  %736 = vrot.lane.b32.xlu0 %v6067_v23, %s5883_s16 }
  0x32   :  { %742 = vrot.lane.b32.xlu1 %v6076_v24, %s5883_s16  ;;  %740 = vrot.lane.b32.xlu0 %v6081_v25, %s5883_s16 }
  0x36   :  { %746 = vrot.lane.b32.xlu1 %v6090_v26, %s5883_s16  ;;  %744 = vrot.lane.b32.xlu0 %v6095_v27, %s5883_s16 }
  0x3a   :  { %750 = vrot.lane.b32.xlu1 %v6104_v28, %s5883_s16  ;;  %748 = vrot.lane.b32.xlu0 %v6109_v29, %s5883_s16 }
  0x3e   :  { %754 = vrot.lane.b32.xlu1 %v6118_v30, %s5883_s16  ;;  %752 = vrot.lane.b32.xlu0 %v6123_v31, %s5883_s16 }
  0x42   :  { %758 = vrot.lane.b32.xlu1 %v6132_v32, %s5883_s16  ;;  %756 = vrot.lane.b32.xlu0 %v6137_v33, %s5883_s16 }
  0x46   :  { %762 = vrot.lane.b32.xlu1 %v6146_v34, %s5883_s16  ;;  %760 = vrot.lane.b32.xlu0 %v6151_v35, %s5883_s16 }
  0x4a   :  { %766 = vrot.lane.b32.xlu1 %v6160_v36, %s5883_s16  ;;  %764 = vrot.lane.b32.xlu0 %v6165_v37, %s5883_s16 }
  0x4e   :  { %770 = vrot.lane.b32.xlu1 %v6174_v38, %s5883_s16  ;;  %768 = vrot.lane.b32.xlu0 %v6179_v39, %s5883_s16 }
  0x52   :  { %774 = vrot.lane.b32.xlu1 %v6188_v40, %s5883_s16  ;;  %772 = vrot.lane.b32.xlu0 %v6193_v41, %s5883_s16 }
  0x56   :  { %778 = vrot.lane.b32.xlu1 %v6202_v42, %s5883_s16  ;;  %776 = vrot.lane.b32.xlu0 %v6207_v43, %s5883_s16 }
  0x5a   :  { %782 = vrot.lane.b32.xlu1 %v6216_v44, %s5883_s16  ;;  %780 = vrot.lane.b32.xlu0 %v6221_v45, %s5883_s16 }
  0x5e   :  { %786 = vrot.lane.b32.xlu1 %v6230_v46, %s5883_s16  ;;  %784 = vrot.lane.b32.xlu0 %v6235_v47, %s5883_s16 }
  0x62   :  { %790 = vrot.lane.b32.xlu1 %v6244_v48, %s5883_s16  ;;  %788 = vrot.lane.b32.xlu0 %v6249_v49, %s5883_s16 }
  0x66   :  { %794 = vrot.lane.b32.xlu1 %v6258_v50, %s5883_s16  ;;  %792 = vrot.lane.b32.xlu0 %v6263_v51, %s5883_s16  ;;  %v6354_v50 = vld [vmem:[%s17058_s1] sm:$0xff] }
  0x6a   :  { %798 = vrot.lane.b32.xlu1 %v6272_v52, %s5883_s16  ;;  %796 = vrot.lane.b32.xlu0 %v6277_v53, %s5883_s16  ;;  %v6344_v52 = vld [vmem:[%s17057_s0 + $0x1d8] sm:$0xff] }
  0x6b   :  { %17609 = vst [vmem:[#allocation61_spill] sm:$0xff] %v6344_v52 }
  0x6e   :  { %802 = vrot.lane.b32.xlu1 %v6286_v55, %s5883_s16  ;;  %800 = vrot.lane.b32.xlu0 %v6291_v56, %s5883_s16  ;;  %v6314_v55 = vand.u32 127, %v303_v54  ;;  %v17605_v54 = vrot.slane %v5908_v0, 1  ;;  %v17607_v56 = vrot.slane %v5913_v1, 1  ;;  %v17611_v0 = vrot.slane %v5955_v7, 1 }
  0x6f   :  { %v17616_v7 = vrot.slane %v5983_v11, 1  ;;  %v6455_v11 = vunpack.c.0.s8 %v6354_v50 }
  0x70   :  { %v6331_v60 = vsel %vm1983_vm0, %v1856_v58, %v17605_v54  ;;  %v6339_v48 = vsel %vm1983_vm0, %v17607_v56, %v1856_v58  ;;  %v6349_v54 = vld [vmem:[%s17057_s0 + $0x1d0] sm:$0xff]  ;;  %v6362_v56 = vsel %vm1983_vm0, %v17076_v3, %v17075_v63  ;;  %v6377_v2 = vsel %vm1983_vm0, %v17612_v5, %v17611_v0 }
  0x71   :  { %17606 = vst [vmem:[#allocation59_spill] sm:$0xff] %v6331_v60  ;;  %17608 = vst [vmem:[#allocation60_spill] sm:$0xff] %v6339_v48  ;;  %v17613_v63 = vrot.slane %v5969_v9, 1  ;;  %v17614_v3 = vrot.slane %v5950_v6, 1  ;;  %v6395_v0 = vsel %vm1983_vm0, %v17617_v4, %v17616_v7  ;;  %v17619_v5 = vrot.slane %v5997_v13, 1  ;;  %v6444_v13 = vld [vmem:[%s17057_s0 + $0x1e0] sm:$0xff] }
  0x72   :  { %806 = vrot.lane.b32.xlu1 %v6305_v61, %s5883_s16  ;;  %804 = vrot.lane.b32.xlu0 %v6310_v62, %s5883_s16  ;;  %17610 = vst [vmem:[#allocation62_spill] sm:$0xff] %v6349_v54  ;;  %17618 = vst [vmem:[#allocation64_spill] sm:$0xff] %v6395_v0  ;;  %v17620_v9 = vrot.slane %v5978_v10, 1  ;;  %v17623_v58 = vrot.slane %v5992_v12, 1  ;;  %v6419_v4 = vunpack.c.1.s8 %v6354_v50  ;;  %v6422_v7 = vunpack.c.3.s8 %v6354_v50 }
  0x73   :  { %v6385_v59 = vsel %vm1983_vm0, %v17614_v3, %v17613_v63  ;;  %v17622_v3 = vrot.slane %v6011_v15, 1  ;;  %v6439_v15 = vld [vmem:[%s17057_s0 + $0x1e8] sm:$0xff]  ;;  %17631 = vst [vmem:[#allocation71_spill] sm:$0xff] %v6444_v13  ;;  %17634 = vst [vmem:[#allocation74_spill] sm:$0xff] %v6455_v11  ;;  %v17093_v11 = vrot.slane %v6034_v18, 1  ;;  %vm17532_vm1 = vcmp.eq.s32.totalorder %v6314_v55, 0 }
  0x74   :  { %v6367_v48 = vpop.permute.xlu1 %696  ;;  %v6369_v60 = vpop.permute.xlu0 %692  ;;  %17615 = vst [vmem:[#allocation63_spill] sm:$0xff] %v6385_v59  ;;  %v6403_v63 = vsel %vm1983_vm0, %v17620_v9, %v17619_v5  ;;  %17625 = vst [vmem:[#allocation67_spill] sm:$0xff] %v6419_v4  ;;  %v143_v9 = vld [vmem:[%s17058_s1 + $0x8] sm:$0xff]  ;;  %v17628_v5 = vrot.slane %v6006_v14, 1  ;;  %v17102_v59 = vrot.slane %v6062_v22, 1  ;;  %vm4053_vm3 = vcmp.eq.s32.totalorder %v6419_v4, 2 }
  0x75   :  { %17621 = vst [vmem:[#allocation65_spill] sm:$0xff] %v6403_v63  ;;  %v6411_v1 = vsel %vm1983_vm0, %v17623_v58, %v17622_v3  ;;  %17626 = vst [vmem:[#allocation68_spill] sm:$0xff] %v6422_v7  ;;  %v17627_v58 = vrot.slane %v6025_v17, 1  ;;  %v6446_v12 = vunpack.c.1.s8 %v143_v9  ;;  %v6448_v17 = vunpack.c.3.s8 %v143_v9  ;;  %v145_v9 = vld [vmem:[%s17058_s1 + $0x18] sm:$0xff] }
  0x76   :  { %17624 = vst [vmem:[#allocation66_spill] sm:$0xff] %v6411_v1  ;;  %810 = vrot.lane.b32.xlu1 %v6344_v52, %s5883_s16  ;;  %808 = vrot.lane.b32.xlu0 %v6349_v54, %s5883_s16  ;;  %17630 = vst [vmem:[#allocation70_spill] sm:$0xff] %v6439_v15  ;;  %v17638_v1 = vrot.slane %v6020_v16, 1  ;;  %v6477_v63 = vunpack.c.1.s8 %v145_v9  ;;  %v6479_v0 = vunpack.c.3.s8 %v145_v9  ;;  %v17644_v9 = vrot.slane %v6053_v21, 1 }
  0x77   :  { %v6433_v3 = vsel %vm1983_vm0, %v17628_v5, %v17627_v58  ;;  %17632 = vst [vmem:[#allocation72_spill] sm:$0xff] %v6446_v12  ;;  %17633 = vst [vmem:[#allocation73_spill] sm:$0xff] %v6448_v17  ;;  %v144_v58 = vld [vmem:[%s17058_s1 + $0x10] sm:$0xff]  ;;  %vm4055_vm4 = vcmp.eq.s32.totalorder %v6422_v7, 2  ;;  %vm17520_vm5 = vcmp.eq.s32.totalorder %v6446_v12, 2  ;;  %vm17516_vm6 = vcmp.eq.s32.totalorder %v6448_v17, 2 }
  0x78   :  { %17629 = vst [vmem:[#allocation69_spill] sm:$0xff] %v6433_v3  ;;  %v6457_v14 = vpop.permute.xlu1 %698  ;;  %v6459_v10 = vpop.permute.xlu0 %694  ;;  %v6461_v8 = vunpack.c.1.s8 %v144_v58  ;;  %v6463_v6 = vunpack.c.3.s8 %v144_v58  ;;  %v17637_v3 = vrot.slane %v6039_v19, 1  ;;  %17640 = vst [vmem:[#allocation78_spill] sm:$0xff] %v6477_v63  ;;  %v146_v58 = vld [vmem:[%s17058_s1 + $0x20] sm:$0xff]  ;;  %v6500_v16 = vsel %vm1983_vm0, %v17093_v11, %v17644_v9  ;;  %v147_v19 = vld [vmem:[%s17058_s1 + $0x28] sm:$0xff] }
  0x79   :  { %17641 = vst [vmem:[#allocation79_spill] sm:$0xff] %v6479_v0  ;;  %17645 = vst [vmem:[#allocation82_spill] sm:$0xff] %v6500_v16  ;;  %v6516_v21 = vunpack.c.1.s8 %v147_v19  ;;  %v17649_v9 = vrot.slane %v6067_v23, 1  ;;  %v17650_v11 = vrot.slane %v6048_v20, 1  ;;  %v6532_v0 = vunpack.c.3.s8 %v147_v19  ;;  %v148_v23 = vld [vmem:[%s17058_s1 + $0x30] sm:$0xff] }
  0x7a   :  { %17635 = vst [vmem:[#allocation75_spill] sm:$0xff] %v6461_v8  ;;  %17636 = vst [vmem:[#allocation76_spill] sm:$0xff] %v6463_v6  ;;  %v6474_v5 = vsel %vm1983_vm0, %v17638_v1, %v17637_v3  ;;  %814 = vrot.lane.b32.xlu1 %v6439_v15, %s5883_s16  ;;  %812 = vrot.lane.b32.xlu0 %v6444_v13, %s5883_s16  ;;  %v6490_v1 = vunpack.c.1.s8 %v146_v58  ;;  %v6492_v3 = vunpack.c.3.s8 %v146_v58  ;;  %v6514_v58 = vld [vmem:[%s17057_s0 + $0x1f0] sm:$0xff]  ;;  %v17104_v20 = vrot.slane %v6076_v24, 1 }
  0x7b   :  { %17639 = vst [vmem:[#allocation77_spill] sm:$0xff] %v6474_v5  ;;  %v6509_v5 = vld [vmem:[%s17057_s0 + $0x1f8] sm:$0xff]  ;;  %17647 = vst [vmem:[#allocation84_spill] sm:$0xff] %v6514_v58  ;;  %v6524_v18 = vsel %vm1983_vm0, %v17650_v11, %v17649_v9  ;;  %v17653_v9 = vrot.slane %v6081_v25, 1  ;;  %v6548_v19 = vunpack.c.1.s8 %v148_v23  ;;  %v17656_v11 = vrot.slane %v6095_v27, 1  ;;  %v6574_v27 = vld [vmem:[%s17057_s0 + $0x208] sm:$0xff] }
  0x7c   :  { %17642 = vst [vmem:[#allocation80_spill] sm:$0xff] %v6490_v1  ;;  %17643 = vst [vmem:[#allocation81_spill] sm:$0xff] %v6492_v3  ;;  %v6528_v3 = vpop.permute.xlu1 %702  ;;  %v6530_v1 = vpop.permute.xlu0 %700  ;;  %vm17448_vm7 = vcmp.eq.s32.totalorder %v6461_v8, 2  ;;  %vm17419_vm8 = vcmp.eq.s32.totalorder %v6463_v6, 2  ;;  %vm17409_vm9 = vcmp.eq.s32.totalorder %v6477_v63, 2 }
  0x7d   :  { %17646 = vst [vmem:[#allocation83_spill] sm:$0xff] %v6509_v5  ;;  %17648 = vst [vmem:[#allocation85_spill] sm:$0xff] %v6516_v21  ;;  %v6546_v16 = vsel %vm1983_vm0, %v17102_v59, %v17653_v9  ;;  %v6562_v9 = vsel %vm1983_vm0, %v17104_v20, %v17656_v11  ;;  %v6564_v59 = vunpack.c.3.s8 %v148_v23  ;;  %v6579_v11 = vld [vmem:[%s17057_s0 + $0x200] sm:$0xff]  ;;  %v17661_v23 = vrot.slane %v6109_v29, 1 }
  0x7e   :  { %17651 = vst [vmem:[#allocation86_spill] sm:$0xff] %v6524_v18  ;;  %17652 = vst [vmem:[#allocation87_spill] sm:$0xff] %v6532_v0  ;;  %818 = vrot.lane.b32.xlu1 %v6509_v5, %s5883_s16  ;;  %816 = vrot.lane.b32.xlu0 %v6514_v58, %s5883_s16  ;;  %v149_v0 = vld [vmem:[%s17058_s1 + $0x38] sm:$0xff]  ;;  %v17662_v20 = vrot.slane %v6090_v26, 1  ;;  %v17666_v29 = vrot.slane %v6104_v28, 1  ;;  %v17669_v18 = vrot.slane %v6118_v30, 1 }
  0x7f   :  { %17654 = vst [vmem:[#allocation88_spill] sm:$0xff] %v6546_v16  ;;  %17655 = vst [vmem:[#allocation89_spill] sm:$0xff] %v6548_v19  ;;  %v6589_v21 = vunpack.c.1.s8 %v149_v0  ;;  %v17665_v16 = vrot.slane %v6123_v31, 1  ;;  %v150_v31 = vld [vmem:[%s17058_s1 + $0x40] sm:$0xff]  ;;  %v151_v28 = vld [vmem:[%s17058_s1 + $0x48] sm:$0xff]  ;;  %v17124_v30 = vrot.slane %v6188_v40, 1 }
  0x80   :  { %17657 = vst [vmem:[#allocation90_spill] sm:$0xff] %v6562_v9  ;;  %17658 = vst [vmem:[#allocation91_spill] sm:$0xff] %v6564_v59  ;;  %v6587_v25 = vsel %vm1983_vm0, %v17662_v20, %v17661_v23  ;;  %v6593_v22 = vpop.permute.xlu1 %706  ;;  %v6595_v9 = vpop.permute.xlu0 %704  ;;  %v6605_v20 = vunpack.c.3.s8 %v149_v0  ;;  %v17668_v23 = vrot.slane %v6137_v33, 1  ;;  %v17678_v33 = vrot.slane %v6165_v37, 1 }
  0x81   :  { %17659 = vst [vmem:[#allocation92_spill] sm:$0xff] %v6574_v27  ;;  %17660 = vst [vmem:[#allocation93_spill] sm:$0xff] %v6579_v11  ;;  %v6603_v26 = vsel %vm1983_vm0, %v17666_v29, %v17665_v16  ;;  %v17672_v16 = vrot.slane %v6151_v35, 1  ;;  %v17673_v29 = vrot.slane %v6132_v32, 1  ;;  %v17679_v35 = vrot.slane %v6146_v34, 1 }
  0x82   :  { %17663 = vst [vmem:[#allocation94_spill] sm:$0xff] %v6587_v25  ;;  %17664 = vst [vmem:[#allocation95_spill] sm:$0xff] %v6589_v21  ;;  %v6613_v24 = vsel %vm1983_vm0, %v17669_v18, %v17668_v23  ;;  %v6619_v25 = vunpack.c.1.s8 %v150_v31  ;;  %822 = vrot.lane.b32.xlu1 %v6574_v27, %s5883_s16  ;;  %820 = vrot.lane.b32.xlu0 %v6579_v11, %s5883_s16  ;;  %v6635_v23 = vunpack.c.3.s8 %v150_v31  ;;  %v6647_v18 = vld [vmem:[%s17057_s0 + $0x218] sm:$0xff]  ;;  %v6652_v31 = vld [vmem:[%s17057_s0 + $0x210] sm:$0xff]  ;;  %v17683_v37 = vrot.slane %v6160_v36, 1 }
  0x83   :  { %17667 = vst [vmem:[#allocation96_spill] sm:$0xff] %v6605_v20  ;;  %17670 = vst [vmem:[#allocation97_spill] sm:$0xff] %v6613_v24  ;;  %v6627_v0 = vsel %vm1983_vm0, %v17673_v29, %v17672_v16  ;;  %v6660_v16 = vsel %vm1983_vm0, %v17679_v35, %v17678_v33  ;;  %v6662_v29 = vunpack.c.1.s8 %v151_v28  ;;  %v6678_v33 = vunpack.c.3.s8 %v151_v28  ;;  %v152_v35 = vld [vmem:[%s17058_s1 + $0x50] sm:$0xff] }
  0x84   :  { %17671 = vst [vmem:[#allocation98_spill] sm:$0xff] %v6619_v25  ;;  %17674 = vst [vmem:[#allocation99_spill] sm:$0xff] %v6627_v0  ;;  %v6666_v0 = vpop.permute.xlu1 %710  ;;  %v6668_v24 = vpop.permute.xlu0 %708  ;;  %v17690_v32 = vrot.slane %v6207_v43, 1  ;;  %v17693_v28 = vrot.slane %v6221_v45, 1  ;;  %v153_v43 = vld [vmem:[%s17058_s1 + $0x58] sm:$0xff]  ;;  %v17133_v40 = vrot.slane %v6230_v46, 1 }
  0x85   :  { %17675 = vst [vmem:[#allocation100_spill] sm:$0xff] %v6635_v23  ;;  %17676 = vst [vmem:[#allocation101_spill] sm:$0xff] %v6647_v18  ;;  %v17682_v23 = vrot.slane %v6179_v39, 1  ;;  %v17687_v39 = vrot.slane %v6174_v38, 1  ;;  %vm17246_vm15 = vcmp.eq.s32.totalorder %v6548_v19, 2 }
  0x86   :  { %17677 = vst [vmem:[#allocation102_spill] sm:$0xff] %v6652_v31  ;;  %17680 = vst [vmem:[#allocation103_spill] sm:$0xff] %v6660_v16  ;;  %v17686_v16 = vrot.slane %v6193_v41, 1  ;;  %826 = vrot.lane.b32.xlu1 %v6647_v18, %s5883_s16  ;;  %824 = vrot.lane.b32.xlu0 %v6652_v31, %s5883_s16 }
  0x87   :  { %17681 = vst [vmem:[#allocation104_spill] sm:$0xff] %v6662_v29  ;;  %v6676_v34 = vsel %vm1983_vm0, %v17683_v37, %v17682_v23  ;;  %17685 = vst [vmem:[#allocation106_spill] sm:$0xff] %v6678_v33  ;;  %v6693_v37 = vunpack.c.1.s8 %v152_v35  ;;  %v17694_v23 = vrot.slane %v6202_v42, 1 }
  0x88   :  { %17684 = vst [vmem:[#allocation105_spill] sm:$0xff] %v6676_v34  ;;  %v6691_v36 = vsel %vm1983_vm0, %v17687_v39, %v17686_v16  ;;  %v6707_v39 = vsel %vm1983_vm0, %v17124_v30, %v17690_v32  ;;  %v6709_v16 = vunpack.c.3.s8 %v152_v35  ;;  %v6726_v32 = vld [vmem:[%s17057_s0 + $0x228] sm:$0xff]  ;;  %v6731_v35 = vld [vmem:[%s17057_s0 + $0x220] sm:$0xff]  ;;  %v6733_v30 = vunpack.c.1.s8 %v153_v43  ;;  %v6745_v38 = vpop.permute.xlu1 %714 }
  0x89   :  { %17688 = vst [vmem:[#allocation107_spill] sm:$0xff] %v6691_v36  ;;  %17689 = vst [vmem:[#allocation108_spill] sm:$0xff] %v6693_v37  ;;  %v6717_v41 = vsel %vm1983_vm0, %v17694_v23, %v17693_v28  ;;  %v17699_v28 = vrot.slane %v6235_v47, 1  ;;  %v17700_v23 = vrot.slane %v6216_v44, 1  ;;  %v154_v47 = vld [vmem:[%s17058_s1 + $0x60] sm:$0xff]  ;;  %v17703_v36 = vld [vmem:[#allocation49_spill] sm:$0xff] }
  0x8a   :  { %17691 = vst [vmem:[#allocation109_spill] sm:$0xff] %v6707_v39  ;;  %17692 = vst [vmem:[#allocation110_spill] sm:$0xff] %v6709_v16  ;;  %v6749_v39 = vunpack.c.3.s8 %v153_v43  ;;  %v17137_v44 = vrot.slane %v17703_v36, 1  ;;  %v6765_v43 = vunpack.c.1.s8 %v154_v47  ;;  %830 = vrot.lane.b32.xlu1 %v6726_v32, %s5883_s16  ;;  %828 = vrot.lane.b32.xlu0 %v6731_v35, %s5883_s16  ;;  %v155_v34 = vld [vmem:[%s17058_s1 + $0x68] sm:$0xff]  ;;  %v17712_v16 = vld [vmem:[#allocation53_spill] sm:$0xff] }
  0x8b   :  { %17695 = vst [vmem:[#allocation111_spill] sm:$0xff] %v6717_v41  ;;  %17696 = vst [vmem:[#allocation112_spill] sm:$0xff] %v6726_v32  ;;  %v6741_v45 = vsel %vm1983_vm0, %v17700_v23, %v17699_v28  ;;  %v6747_v41 = vpop.permute.xlu0 %712  ;;  %v17705_v23 = vrot.slane %v6249_v49, 1  ;;  %v17709_v28 = vrot.slane %v6263_v51, 1  ;;  %v17713_v49 = vld [vmem:[#allocation55_spill] sm:$0xff]  ;;  %v6792_v51 = vld [vmem:[%s17057_s0 + $0x238] sm:$0xff]  ;;  %v6807_v46 = vunpack.c.1.s8 %v155_v34 }
  0x8c   :  { %17697 = vst [vmem:[#allocation113_spill] sm:$0xff] %v6731_v35  ;;  %17698 = vst [vmem:[#allocation114_spill] sm:$0xff] %v6733_v30  ;;  %v17704_v30 = vld [vmem:[#allocation56_spill] sm:$0xff] }
  0x8d   :  { %17701 = vst [vmem:[#allocation115_spill] sm:$0xff] %v6741_v45  ;;  %17702 = vst [vmem:[#allocation116_spill] sm:$0xff] %v6749_v39  ;;  %v6763_v42 = vsel %vm1983_vm0, %v17133_v40, %v17705_v23  ;;  %v17708_v45 = vld [vmem:[#allocation51_spill] sm:$0xff]  ;;  %v6779_v23 = vsel %vm1983_vm0, %v17137_v44, %v17709_v28  ;;  %v6781_v40 = vunpack.c.3.s8 %v154_v47  ;;  %v6797_v47 = vld [vmem:[%s17057_s0 + $0x230] sm:$0xff]  ;;  %v17716_v28 = vrot.slane %v6277_v53, 1 }
  0x8e   :  { %17706 = vst [vmem:[#allocation117_spill] sm:$0xff] %v6763_v42  ;;  %17707 = vst [vmem:[#allocation118_spill] sm:$0xff] %v6765_v43  ;;  %v17717_v44 = vrot.slane %v17708_v45, 1  ;;  %v156_v36 = vld [vmem:[%s17058_s1 + $0x70] sm:$0xff]  ;;  %v17720_v53 = vrot.slane %v17704_v30, 1  ;;  %v17721_v45 = vrot.slane %v17712_v16, 1  ;;  %834 = vrot.lane.b32.xlu1 %v6792_v51, %s5883_s16  ;;  %832 = vrot.lane.b32.xlu0 %v6797_v47, %s5883_s16 }
  0x8f   :  { %17710 = vst [vmem:[#allocation119_spill] sm:$0xff] %v6779_v23  ;;  %17711 = vst [vmem:[#allocation120_spill] sm:$0xff] %v6781_v40  ;;  %v6814_v40 = vpop.permute.xlu1 %718  ;;  %v6816_v43 = vpop.permute.xlu0 %716  ;;  %v17725_v23 = vrot.slane %v17713_v49, 1  ;;  %v6842_v30 = vsel %vm17532_vm1, 0.0, %v6459_v10  ;;  %v6862_v10 = vsel %vm17532_vm1, 0.0, %v6457_v14  ;;  %v6882_v14 = vld [vmem:[%s17057_s0 + $0x240] sm:$0xff]  ;;  %v6896_v49 = vunpack.c.2.s8 %v6354_v50 }
  0x90   :  { %17714 = vst [vmem:[#allocation121_spill] sm:$0xff] %v6792_v51  ;;  %17715 = vst [vmem:[#allocation122_spill] sm:$0xff] %v6797_v47  ;;  %v6805_v39 = vsel %vm1983_vm0, %v17717_v44, %v17716_v28  ;;  %v6824_v44 = vsel %vm1983_vm0, %v17721_v45, %v17720_v53  ;;  %v6826_v28 = vunpack.c.3.s8 %v155_v34  ;;  %v17729_v34 = vrot.slane %v6349_v54, 1 }
  0x91   :  { %17718 = vst [vmem:[#allocation123_spill] sm:$0xff] %v6805_v39  ;;  %17719 = vst [vmem:[#allocation124_spill] sm:$0xff] %v6807_v46  ;;  %v17724_v39 = vrot.slane %v6310_v62, 1  ;;  %v6836_v46 = vunpack.c.1.s8 %v156_v36  ;;  %v17730_v45 = vrot.slane %v6305_v61, 1  ;;  %v6857_v62 = vsel %vm17532_vm1, 0.0, %v6367_v48 }
  0x92   :  { %17722 = vst [vmem:[#allocation125_spill] sm:$0xff] %v6824_v44  ;;  %17723 = vst [vmem:[#allocation126_spill] sm:$0xff] %v6826_v28  ;;  %v6901_v16 = vsel %vm17532_vm1, 0.0, %v6369_v60  ;;  %v3022_v60 = vrot.slane %v6857_v62, 1  ;;  %836 = vrot.lane.b32.xlu0 %v6882_v14, %s5883_s16  ;;  %v17808_v17 = vrot.slane %v6882_v14, 1 }
  0x93   :  { %v6834_v42 = vsel %vm1983_vm0, %v17725_v23, %v17724_v39  ;;  %17727 = vst [vmem:[#allocation128_spill] sm:$0xff] %v6836_v46  ;;  %17728 = vst [vmem:[#allocation129_spill] sm:$0xff] %v6842_v30  ;;  %v6850_v53 = vsel %vm1983_vm0, %v17730_v45, %v17729_v34  ;;  %v6868_v34 = vunpack.c.3.s8 %v156_v36  ;;  %v157_v45 = vld [vmem:[%s17058_s1 + $0x78] sm:$0xff]  ;;  %v6877_v23 = vld [vmem:[%s17057_s0 + $0x248] sm:$0xff]  ;;  %v17737_v39 = vrot.slane %v6444_v13, 1 }
  0x94   :  { %17726 = vst [vmem:[#allocation127_spill] sm:$0xff] %v6834_v42  ;;  %17731 = vst [vmem:[#allocation130_spill] sm:$0xff] %v6850_v53  ;;  %v17738_v36 = vrot.slane %v6344_v52, 1  ;;  %v6892_v61 = vunpack.c.1.s8 %v157_v45  ;;  %v3021_v13 = vrot.slane %v6842_v30, 1  ;;  %v6904_v53 = vpop.permute.xlu1 %722  ;;  %v6906_v52 = vpop.permute.xlu0 %720  ;;  %v17745_v42 = vld [vmem:[#allocation2_spill] sm:$0xff]  ;;  %838 = vrot.lane.b32.xlu1 %v6877_v23, %s5883_s16 }
  0x95   :  { %17732 = vst [vmem:[#allocation131_spill] sm:$0xff] %v6857_v62  ;;  %17733 = vst [vmem:[#allocation132_spill] sm:$0xff] %v6862_v10  ;;  %v17746_v48 = vrot.slane %v17745_v42, 1  ;;  %v3023_v42 = vrot.slane %v6862_v10, 1 }
  0x96   :  { %17734 = vst [vmem:[#allocation133_spill] sm:$0xff] %v6868_v34  ;;  %17735 = vst [vmem:[#allocation134_spill] sm:$0xff] %v6877_v23  ;;  %v6890_v54 = vsel %vm1983_vm0, %v17738_v36, %v17737_v39  ;;  %v17743_v36 = vld [vmem:[#allocation4_spill] sm:$0xff]  ;;  %v17748_v34 = vrot.slane %v6514_v58, 1  ;;  %v17749_v39 = vrot.slane %v6439_v15, 1  ;;  %v6957_v58 = vunpack.c.3.s8 %v157_v45  ;;  %v158_v15 = vld [vmem:[%s17058_s1 + $0x80] sm:$0xff] }
  0x97   :  { %17736 = vst [vmem:[#allocation135_spill] sm:$0xff] %v6882_v14  ;;  %17739 = vst [vmem:[#allocation136_spill] sm:$0xff] %v6890_v54  ;;  %v17744_v54 = vrot.slane %v17743_v36, 1  ;;  %v17757_v45 = vrot.slane %v6509_v5, 1  ;;  %v7270_v14 = vsel %vm17532_vm1, 0.0, %v6904_v53  ;;  %v17816_v53 = vld [vmem:[#allocation64_spill] sm:$0xff] }
  0x98   :  { %17740 = vst [vmem:[#allocation137_spill] sm:$0xff] %v6892_v61  ;;  %17741 = vst [vmem:[#allocation138_spill] sm:$0xff] %v6896_v49  ;;  %v2634_v49 = vrot.slane %v6857_v62, 7  ;;  %v2635_v61 = vrot.slane %v6862_v10, 7  ;;  %v6927_v36 = vsel %vm1983_vm0, %v17749_v39, %v17748_v34  ;;  %v6939_v62 = vsel %vm17532_vm1, 0.0, %v6530_v1  ;;  %v6955_v1 = vld [vmem:[%s17057_s0 + $0x250] sm:$0xff]  ;;  %v6966_v10 = vpop.permute.xlu1 %726 }
  0x99   :  { %17742 = vst [vmem:[#allocation139_spill] sm:$0xff] %v6901_v16  ;;  %v6915_v50 = vsel %vm1983_vm0, %v17746_v48, %v17744_v54  ;;  %17750 = vst [vmem:[#allocation2_spill] sm:$0xff] %v6927_v36  ;;  %v2633_v54 = vrot.slane %v6842_v30, 7  ;;  %v6934_v48 = vsel %vm17532_vm1, 0.0, %v6528_v3  ;;  %v6950_v3 = vld [vmem:[%s17057_s0 + $0x258] sm:$0xff]  ;;  %v3273_v39 = vsel %vm1983_vm0, %v3021_v13, %v3022_v60  ;;  %v6968_v30 = vpop.permute.xlu0 %724  ;;  %840 = vrot.lane.b32.xlu0 %v6955_v1, %s5883_s16 }
  0x9a   :  { %17747 = vst [vmem:[#allocation4_spill] sm:$0xff] %v6915_v50  ;;  %17751 = vst [vmem:[#allocation140_spill] sm:$0xff] %v6934_v48  ;;  %v17756_v50 = vrot.slane %v6579_v11, 1  ;;  %v2637_v44 = vrot.slane %v6934_v48, 7  ;;  %v2636_v46 = vrot.slane %v6939_v62, 7  ;;  %v3024_v28 = vrot.slane %v6939_v62, 1  ;;  %842 = vrot.lane.b32.xlu1 %v6950_v3, %s5883_s16 }
  0x9b   :  { %17752 = vst [vmem:[#allocation141_spill] sm:$0xff] %v6939_v62  ;;  %17753 = vst [vmem:[#allocation142_spill] sm:$0xff] %v6950_v3  ;;  %v6987_v11 = vsel %vm17532_vm1, 0.0, %v6595_v9  ;;  %v6991_v5 = vsel %vm1594_vm2, %v2634_v49, %v2635_v61  ;;  %v17763_v34 = vrot.slane %v6901_v16, 7  ;;  %v7027_v9 = vld [vmem:[%s17057_s0 + $0x268] sm:$0xff]  ;;  %v7318_v8 = vsel %vm17532_vm1, 0.0, %v6968_v30 }
  0x9c   :  { %17754 = vst [vmem:[#allocation143_spill] sm:$0xff] %v6955_v1  ;;  %17755 = vst [vmem:[#allocation144_spill] sm:$0xff] %v6957_v58  ;;  %v6976_v36 = vsel %vm1983_vm0, %v17757_v45, %v17756_v50  ;;  %v6978_v58 = vunpack.c.1.s8 %v158_v15  ;;  %v6995_v50 = vsel %vm1983_vm0, %v3022_v60, %v3023_v42  ;;  %v6999_v45 = vsel %vm1594_vm2, %v2633_v54, %v2634_v49 }
  0x9d   :  { %17759 = vst [vmem:[#allocation146_spill] sm:$0xff] %v6987_v11  ;;  %17760 = vst [vmem:[#allocation147_spill] sm:$0xff] %v6991_v5  ;;  %v7010_v62 = vsel %vm1594_vm2, %v17763_v34, %v2633_v54  ;;  %v17765_v60 = vrot.slane %v6901_v16, 1  ;;  %v3025_v5 = vrot.slane %v6934_v48, 1  ;;  %v7032_v54 = vld [vmem:[%s17057_s0 + $0x260] sm:$0xff]  ;;  %v17769_v34 = vld [vmem:[#allocation59_spill] sm:$0xff]  ;;  %v7043_v16 = vpop.permute.xlu0 %728 }
  0x9e   :  { %17758 = vst [vmem:[#allocation145_spill] sm:$0xff] %v6978_v58  ;;  %17761 = vst [vmem:[#allocation148_spill] sm:$0xff] %v6995_v50  ;;  %v17771_v48 = vrot.slane %v6652_v31, 1  ;;  %v7065_v31 = vunpack.c.3.s8 %v158_v15  ;;  %v2638_v4 = vrot.slane %v6987_v11, 7  ;;  %846 = vrot.lane.b32.xlu1 %v7027_v9, %s5883_s16  ;;  %844 = vrot.lane.b32.xlu0 %v7032_v54, %s5883_s16  ;;  %v17839_v6 = vrot.slane %v6950_v3, 1  ;;  %v17844_v3 = vld [vmem:[#allocation66_spill] sm:$0xff] }
  0x9f   :  { %17762 = vst [vmem:[#allocation149_spill] sm:$0xff] %v6999_v45  ;;  %17764 = vst [vmem:[#allocation150_spill] sm:$0xff] %v7010_v62  ;;  %v7016_v49 = vsel %vm1983_vm0, %v17765_v60, %v3021_v13  ;;  %v7022_v45 = vsel %vm17532_vm1, 0.0, %v6593_v22  ;;  %v7037_v13 = vsel %vm4053_vm3, %v17769_v34, %v3273_v39  ;;  %v3026_v60 = vrot.slane %v6987_v11, 1  ;;  %v7041_v22 = vpop.permute.xlu1 %730 }
  0xa0   :  { %17766 = vst [vmem:[#allocation151_spill] sm:$0xff] %v7022_v45  ;;  %17767 = vst [vmem:[#allocation152_spill] sm:$0xff] %v7027_v9  ;;  %v17772_v62 = vrot.slane %v6574_v27, 1  ;;  %v7056_v39 = vsel %vm1594_vm2, %v2636_v46, %v2637_v44  ;;  %v3271_v34 = vsel %vm1983_vm0, %v3023_v42, %v3024_v28  ;;  %v7076_v27 = vsel %vm17532_vm1, 0.0, %v6666_v0 }
  0xa1   :  { %17768 = vst [vmem:[#allocation153_spill] sm:$0xff] %v7032_v54  ;;  %17770 = vst [vmem:[#allocation59_spill] sm:$0xff] %v7037_v13  ;;  %v7063_v13 = vsel %vm17532_vm1, 0.0, %v6668_v24  ;;  %v7084_v15 = vsel %vm1983_vm0, %v3024_v28, %v3025_v5  ;;  %v3027_v24 = vrot.slane %v7022_v45, 1  ;;  %v7102_v28 = vsel %vm4055_vm4, %v6362_v56, %v3271_v34  ;;  %v159_v56 = vld [vmem:[%s17058_s1 + $0x88] sm:$0xff] }
  0xa2   :  { %v7051_v50 = vsel %vm1983_vm0, %v17772_v62, %v17771_v48  ;;  %17773 = vst [vmem:[#allocation154_spill] sm:$0xff] %v7056_v39  ;;  %17774 = vst [vmem:[#allocation155_spill] sm:$0xff] %v7063_v13  ;;  %v7069_v62 = vsel %vm1594_vm2, %v2635_v61, %v2636_v46  ;;  %v2639_v48 = vrot.slane %v7022_v45, 7  ;;  %v7090_v46 = vld [vmem:[%s17057_s0 + $0x278] sm:$0xff]  ;;  %v7095_v61 = vld [vmem:[%s17057_s0 + $0x270] sm:$0xff]  ;;  %v3269_v11 = vsel %vm1983_vm0, %v3025_v5, %v3026_v60 }
  0xa3   :  { %17775 = vst [vmem:[#allocation156_spill] sm:$0xff] %v7065_v31  ;;  %17776 = vst [vmem:[#allocation157_spill] sm:$0xff] %v7069_v62  ;;  %v3028_v45 = vrot.slane %v7063_v13, 1  ;;  %v7108_v39 = vpop.permute.xlu1 %734  ;;  %v7110_v62 = vpop.permute.xlu0 %732  ;;  %v17782_v0 = vrot.slane %v6731_v35, 1  ;;  %v17783_v42 = vrot.slane %v6647_v18, 1  ;;  %v2641_v5 = vrot.slane %v7076_v27, 7  ;;  %850 = vrot.lane.b32.xlu1 %v7090_v46, %s5883_s16  ;;  %848 = vrot.lane.b32.xlu0 %v7095_v61, %s5883_s16 }
  0xa4   :  { %17777 = vst [vmem:[#allocation158_spill] sm:$0xff] %v7076_v27  ;;  %17778 = vst [vmem:[#allocation159_spill] sm:$0xff] %v7084_v15  ;;  %v2640_v34 = vrot.slane %v7063_v13, 7  ;;  %v7130_v35 = vunpack.c.1.s8 %v159_v56  ;;  %v7134_v18 = vsel %vm1594_vm2, %v2638_v4, %v2639_v48  ;;  %v7152_v13 = vsel %vm1983_vm0, %v3026_v60, %v3027_v24 }
  0xa5   :  { %17779 = vst [vmem:[#allocation160_spill] sm:$0xff] %v7090_v46  ;;  %17780 = vst [vmem:[#allocation161_spill] sm:$0xff] %v7095_v61  ;;  %v7118_v7 = vsel %vm1983_vm0, %v17783_v42, %v17782_v0  ;;  %v7138_v0 = vsel %vm1594_vm2, %v2637_v44, %v2638_v4  ;;  %v7143_v42 = vsel %vm17532_vm1, 0.0, %v6745_v38  ;;  %v7157_v4 = vsel %vm17520_vm5, %v6377_v2, %v3269_v11  ;;  %v7164_v44 = vld [vmem:[%s17057_s0 + $0x288] sm:$0xff] }
  0xa6   :  { %17781 = vst [vmem:[#allocation162_spill] sm:$0xff] %v7102_v28  ;;  %17784 = vst [vmem:[#allocation163_spill] sm:$0xff] %v7118_v7  ;;  %v7128_v28 = vsel %vm17532_vm1, 0.0, %v6747_v41  ;;  %v3029_v38 = vrot.slane %v7076_v27, 1  ;;  %v7169_v41 = vld [vmem:[%s17057_s0 + $0x280] sm:$0xff]  ;;  %v17794_v60 = vrot.slane %v6797_v47, 1  ;;  %v3267_v11 = vsel %vm1983_vm0, %v3027_v24, %v3028_v45 }
  0xa7   :  { %17785 = vst [vmem:[#allocation164_spill] sm:$0xff] %v7128_v28  ;;  %17786 = vst [vmem:[#allocation165_spill] sm:$0xff] %v7130_v35  ;;  %v3030_v27 = vrot.slane %v7128_v28, 1  ;;  %v7189_v12 = vpop.permute.xlu0 %736  ;;  %v2642_v24 = vrot.slane %v7128_v28, 7  ;;  %v7208_v47 = vsel %vm17532_vm1, 0.0, %v6814_v40  ;;  %854 = vrot.lane.b32.xlu1 %v7164_v44, %s5883_s16  ;;  %852 = vrot.lane.b32.xlu0 %v7169_v41, %s5883_s16  ;;  %v3035_v7 = vrot.slane %v7270_v14, 1 }
  0xa8   :  { %17787 = vst [vmem:[#allocation166_spill] sm:$0xff] %v7134_v18  ;;  %17788 = vst [vmem:[#allocation167_spill] sm:$0xff] %v7138_v0  ;;  %v17795_v0 = vrot.slane %v6726_v32, 1  ;;  %v7185_v18 = vsel %vm17532_vm1, 0.0, %v6816_v43  ;;  %v7198_v32 = vunpack.c.3.s8 %v159_v56  ;;  %v7202_v43 = vsel %vm1594_vm2, %v2639_v48, %v2640_v34  ;;  %v17803_v48 = vld [vmem:[#allocation63_spill] sm:$0xff]  ;;  %v7234_v56 = vld [vmem:[%s17057_s0 + $0x290] sm:$0xff] }
  0xa9   :  { %17789 = vst [vmem:[#allocation168_spill] sm:$0xff] %v7143_v42  ;;  %17790 = vst [vmem:[#allocation169_spill] sm:$0xff] %v7152_v13  ;;  %v3031_v13 = vrot.slane %v7143_v42, 1  ;;  %v7217_v28 = vsel %vm1983_vm0, %v3028_v45, %v3029_v38  ;;  %v3032_v40 = vrot.slane %v7185_v18, 1  ;;  %v160_v45 = vld [vmem:[%s17058_s1 + $0x90] sm:$0xff] }
  0xaa   :  { %17791 = vst [vmem:[#allocation170_spill] sm:$0xff] %v7157_v4  ;;  %17792 = vst [vmem:[#allocation171_spill] sm:$0xff] %v7164_v44  ;;  %v7177_v2 = vsel %vm1983_vm0, %v17795_v0, %v17794_v60  ;;  %v7187_v4 = vpop.permute.xlu1 %738  ;;  %v7194_v0 = vsel %vm1594_vm2, %v2640_v34, %v2641_v5  ;;  %v2643_v60 = vrot.slane %v7143_v42, 7  ;;  %v7222_v34 = vsel %vm17516_vm6, %v17803_v48, %v3267_v11  ;;  %v7229_v42 = vld [vmem:[%s17057_s0 + $0x298] sm:$0xff] }
  0xab   :  { %17793 = vst [vmem:[#allocation172_spill] sm:$0xff] %v7169_v41  ;;  %17796 = vst [vmem:[#allocation173_spill] sm:$0xff] %v7177_v2  ;;  %v3265_v48 = vsel %vm1983_vm0, %v3029_v38, %v3030_v27  ;;  %v7259_v11 = vunpack.c.1.s8 %v160_v45  ;;  %v2644_v2 = vrot.slane %v7185_v18, 7  ;;  %858 = vrot.lane.b32.xlu1 %v7229_v42, %s5883_s16  ;;  %856 = vrot.lane.b32.xlu0 %v7234_v56, %s5883_s16 }
  0xac   :  { %17797 = vst [vmem:[#allocation174_spill] sm:$0xff] %v7185_v18  ;;  %17798 = vst [vmem:[#allocation175_spill] sm:$0xff] %v7194_v0  ;;  %v7263_v38 = vsel %vm1594_vm2, %v2642_v24, %v2643_v60  ;;  %v7303_v18 = vld [vmem:[%s17057_s0 + $0x2a0] sm:$0xff] }
  0xad   :  { %17799 = vst [vmem:[#allocation176_spill] sm:$0xff] %v7198_v32  ;;  %17800 = vst [vmem:[#allocation177_spill] sm:$0xff] %v7202_v43  ;;  %v7245_v43 = vsel %vm17532_vm1, 0.0, %v6906_v52  ;;  %v2645_v52 = vrot.slane %v7208_v47, 7 }
  0xae   :  { %17801 = vst [vmem:[#allocation178_spill] sm:$0xff] %v7208_v47  ;;  %17802 = vst [vmem:[#allocation179_spill] sm:$0xff] %v7217_v28  ;;  %v7247_v0 = vpop.permute.xlu1 %742  ;;  %v17809_v28 = vrot.slane %v6792_v51, 1  ;;  %v7274_v51 = vsel %vm1594_vm2, %v2641_v5, %v2642_v24  ;;  %v3263_v5 = vsel %vm1983_vm0, %v3031_v13, %v3032_v40  ;;  %v17818_v24 = vld [vmem:[#allocation79_spill] sm:$0xff] }
  0xaf   :  { %17804 = vst [vmem:[#allocation63_spill] sm:$0xff] %v7222_v34  ;;  %17805 = vst [vmem:[#allocation180_spill] sm:$0xff] %v7229_v42  ;;  %v7249_v34 = vpop.permute.xlu0 %740  ;;  %vm17396_vm10 = vcmp.eq.s32.totalorder %v17818_v24, 2  ;;  %860 = vrot.lane.b32.xlu0 %v7303_v18, %s5883_s16  ;;  %v17867_v24 = vrot.slane %v7090_v46, 1  ;;  %v17871_v46 = vld [vmem:[#allocation77_spill] sm:$0xff] }
  0xb0   :  { %17806 = vst [vmem:[#allocation181_spill] sm:$0xff] %v7234_v56  ;;  %17807 = vst [vmem:[#allocation182_spill] sm:$0xff] %v7245_v43  ;;  %v7257_v15 = vsel %vm1983_vm0, %v17809_v28, %v17808_v17  ;;  %v7278_v17 = vsel %vm1983_vm0, %v3030_v27, %v3031_v13  ;;  %v3033_v28 = vrot.slane %v7208_v47, 1  ;;  %v3034_v27 = vrot.slane %v7245_v43, 1  ;;  %v7298_v47 = vld [vmem:[%s17057_s0 + $0x2a8] sm:$0xff] }
  0xb1   :  { %17810 = vst [vmem:[#allocation183_spill] sm:$0xff] %v7257_v15  ;;  %17811 = vst [vmem:[#allocation184_spill] sm:$0xff] %v7259_v11  ;;  %862 = vrot.lane.b32.xlu1 %v7298_v47, %s5883_s16 }
  0xb2   :  { %17812 = vst [vmem:[#allocation185_spill] sm:$0xff] %v7263_v38  ;;  %17813 = vst [vmem:[#allocation186_spill] sm:$0xff] %v7270_v14  ;;  %v7289_v38 = vsel %vm17448_vm7, %v17816_v53, %v3265_v48  ;;  %v17821_v48 = vrot.slane %v6955_v1, 1  ;;  %v17822_v53 = vrot.slane %v6877_v23, 1  ;;  %v7327_v23 = vsel %vm1594_vm2, %v2644_v2, %v2645_v52 }
  0xb3   :  { %17814 = vst [vmem:[#allocation187_spill] sm:$0xff] %v7274_v51  ;;  %17815 = vst [vmem:[#allocation188_spill] sm:$0xff] %v7278_v17  ;;  %v2647_v51 = vrot.slane %v7270_v14, 7  ;;  %v7320_v17 = vpop.permute.xlu1 %746  ;;  %v7322_v15 = vpop.permute.xlu0 %744  ;;  %v7338_v30 = vsel %vm1983_vm0, %v3032_v40, %v3033_v28  ;;  %v3036_v40 = vrot.slane %v7318_v8, 1 }
  0xb4   :  { %17817 = vst [vmem:[#allocation64_spill] sm:$0xff] %v7289_v38  ;;  %17819 = vst [vmem:[#allocation189_spill] sm:$0xff] %v7298_v47  ;;  %v7311_v13 = vsel %vm1983_vm0, %v17822_v53, %v17821_v48  ;;  %v2646_v38 = vrot.slane %v7245_v43, 7  ;;  %v7331_v48 = vsel %vm1594_vm2, %v2643_v60, %v2644_v2  ;;  %v7333_v53 = vunpack.c.3.s8 %v160_v45  ;;  %v17832_v45 = vld [vmem:[#allocation80_spill] sm:$0xff] }
  0xb5   :  { %17820 = vst [vmem:[#allocation190_spill] sm:$0xff] %v7303_v18  ;;  %17823 = vst [vmem:[#allocation191_spill] sm:$0xff] %v7311_v13  ;;  %v17829_v13 = vld [vmem:[#allocation65_spill] sm:$0xff]  ;;  %v7349_v2 = vsel %vm17532_vm1, 0.0, %v6966_v10  ;;  %v3261_v60 = vsel %vm1983_vm0, %v3033_v28, %v3034_v27  ;;  %vm17322_vm11 = vcmp.eq.s32.totalorder %v17832_v45, 2 }
  0xb6   :  { %17824 = vst [vmem:[#allocation192_spill] sm:$0xff] %v7318_v8  ;;  %17825 = vst [vmem:[#allocation193_spill] sm:$0xff] %v7327_v23  ;;  %v7343_v1 = vsel %vm17419_vm8, %v17829_v13, %v3263_v5  ;;  %v7362_v5 = vsel %vm17532_vm1, 0.0, %v7043_v16  ;;  %v7367_v10 = vld [vmem:[%s17057_s0 + $0x2b8] sm:$0xff]  ;;  %v7372_v13 = vld [vmem:[%s17057_s0 + $0x2b0] sm:$0xff]  ;;  %v7380_v16 = vsel %vm1594_vm2, %v2646_v38, %v2647_v51  ;;  %v7384_v14 = vsel %vm1594_vm2, %v2645_v52, %v2646_v38 }
  0xb7   :  { %17826 = vst [vmem:[#allocation194_spill] sm:$0xff] %v7331_v48  ;;  %17827 = vst [vmem:[#allocation195_spill] sm:$0xff] %v7333_v53  ;;  %v161_v28 = vld [vmem:[%s17058_s1 + $0x98] sm:$0xff]  ;;  %v7386_v23 = vpop.permute.xlu1 %750  ;;  %v7388_v48 = vpop.permute.xlu0 %748  ;;  %v2648_v53 = vrot.slane %v7318_v8, 7  ;;  %v7405_v38 = vsel %vm17532_vm1, 0.0, %v7041_v22  ;;  %v3038_v8 = vrot.slane %v7362_v5, 1  ;;  %866 = vrot.lane.b32.xlu1 %v7367_v10, %s5883_s16  ;;  %864 = vrot.lane.b32.xlu0 %v7372_v13, %s5883_s16  ;;  %v3259_v22 = vsel %vm1983_vm0, %v3035_v7, %v3036_v40 }
  0xb8   :  { %17828 = vst [vmem:[#allocation196_spill] sm:$0xff] %v7338_v30  ;;  %17830 = vst [vmem:[#allocation65_spill] sm:$0xff] %v7343_v1  ;;  %v17838_v1 = vrot.slane %v7032_v54, 1  ;;  %v7398_v43 = vunpack.c.1.s8 %v161_v28  ;;  %v7410_v54 = vsel %vm1983_vm0, %v3034_v27, %v3035_v7  ;;  %v17846_v27 = vld [vmem:[#allocation81_spill] sm:$0xff]  ;;  %v17849_v52 = vrot.slane %v7095_v61, 1 }
  0xb9   :  { %17831 = vst [vmem:[#allocation197_spill] sm:$0xff] %v7349_v2  ;;  %17833 = vst [vmem:[#allocation198_spill] sm:$0xff] %v7362_v5  ;;  %vm17228_vm12 = vcmp.eq.s32.totalorder %v17846_v27, 2  ;;  %v7444_v7 = vunpack.c.3.s8 %v161_v28  ;;  %v2651_v63 = vrot.slane %v7405_v38, 7  ;;  %v7457_v61 = vsel %vm17532_vm1, 0.0, %v7110_v62 }
  0xba   :  { %17834 = vst [vmem:[#allocation199_spill] sm:$0xff] %v7367_v10  ;;  %17835 = vst [vmem:[#allocation200_spill] sm:$0xff] %v7372_v13  ;;  %v7396_v30 = vsel %vm1983_vm0, %v17839_v6, %v17838_v1  ;;  %v7415_v6 = vsel %vm17409_vm9, %v17844_v3, %v3261_v60  ;;  %v3037_v1 = vrot.slane %v7349_v2, 1  ;;  %v7429_v3 = vld [vmem:[%s17057_s0 + $0x2c8] sm:$0xff]  ;;  %v7434_v60 = vld [vmem:[%s17057_s0 + $0x2c0] sm:$0xff] }
  0xbb   :  { %17836 = vst [vmem:[#allocation201_spill] sm:$0xff] %v7380_v16  ;;  %17837 = vst [vmem:[#allocation202_spill] sm:$0xff] %v7384_v14  ;;  %v2649_v16 = vrot.slane %v7349_v2, 7  ;;  %v17850_v2 = vrot.slane %v7027_v9, 1  ;;  %v7461_v28 = vpop.permute.xlu0 %752  ;;  %870 = vrot.lane.b32.xlu1 %v7429_v3, %s5883_s16  ;;  %868 = vrot.lane.b32.xlu0 %v7434_v60, %s5883_s16  ;;  %v7506_v9 = vld [vmem:[%s17057_s0 + $0x2d0] sm:$0xff] }
  0xbc   :  { %17840 = vst [vmem:[#allocation203_spill] sm:$0xff] %v7396_v30  ;;  %17841 = vst [vmem:[#allocation204_spill] sm:$0xff] %v7398_v43  ;;  %v7452_v30 = vsel %vm17532_vm1, 0.0, %v7108_v39  ;;  %v3039_v39 = vrot.slane %v7405_v38, 1  ;;  %v7475_v62 = vsel %vm1983_vm0, %v3036_v40, %v3037_v1 }
  0xbd   :  { %17842 = vst [vmem:[#allocation205_spill] sm:$0xff] %v7405_v38  ;;  %17843 = vst [vmem:[#allocation206_spill] sm:$0xff] %v7410_v54  ;;  %v7442_v14 = vsel %vm1983_vm0, %v17850_v2, %v17849_v52  ;;  %v2650_v54 = vrot.slane %v7362_v5, 7  ;;  %v7459_v2 = vpop.permute.xlu1 %754  ;;  %v7465_v52 = vsel %vm1594_vm2, %v2648_v53, %v2649_v16  ;;  %v17858_v5 = vld [vmem:[#allocation69_spill] sm:$0xff]  ;;  %v2653_v40 = vrot.slane %v7452_v30, 7 }
  0xbe   :  { %17845 = vst [vmem:[#allocation66_spill] sm:$0xff] %v7415_v6  ;;  %17847 = vst [vmem:[#allocation207_spill] sm:$0xff] %v7429_v3  ;;  %v7469_v6 = vsel %vm1594_vm2, %v2647_v51, %v2648_v53  ;;  %v7492_v51 = vld [vmem:[%s17057_s0 + $0x2d8] sm:$0xff]  ;;  %v162_v53 = vld [vmem:[%s17058_s1 + $0xa0] sm:$0xff] }
  0xbf   :  { %17848 = vst [vmem:[#allocation208_spill] sm:$0xff] %v7434_v60  ;;  %17851 = vst [vmem:[#allocation209_spill] sm:$0xff] %v7442_v14  ;;  %v7480_v14 = vsel %vm17396_vm10, %v17858_v5, %v3259_v22  ;;  %v2652_v5 = vrot.slane %v7457_v61, 7  ;;  %v7501_v22 = vsel %vm17532_vm1, 0.0, %v7189_v12  ;;  %v7513_v38 = vsel %vm1594_vm2, %v2650_v54, %v2651_v63  ;;  %v7521_v12 = vpop.permute.xlu0 %756  ;;  %874 = vrot.lane.b32.xlu1 %v7492_v51, %s5883_s16 }
  0xc0   :  { %17852 = vst [vmem:[#allocation210_spill] sm:$0xff] %v7444_v7  ;;  %17853 = vst [vmem:[#allocation211_spill] sm:$0xff] %v7452_v30  ;;  %v17860_v7 = vld [vmem:[#allocation85_spill] sm:$0xff]  ;;  %v7531_v43 = vunpack.c.1.s8 %v162_v53  ;;  %872 = vrot.lane.b32.xlu0 %v7506_v9, %s5883_s16 }
  0xc1   :  { %17854 = vst [vmem:[#allocation212_spill] sm:$0xff] %v7457_v61  ;;  %17855 = vst [vmem:[#allocation213_spill] sm:$0xff] %v7465_v52  ;;  %v3257_v52 = vsel %vm1983_vm0, %v3037_v1, %v3038_v8  ;;  %vm17234_vm13 = vcmp.eq.s32.totalorder %v17860_v7, 2  ;;  %v3040_v1 = vrot.slane %v7457_v61, 1  ;;  %v7517_v61 = vsel %vm1594_vm2, %v2649_v16, %v2650_v54 }
  0xc2   :  { %17856 = vst [vmem:[#allocation214_spill] sm:$0xff] %v7469_v6  ;;  %17857 = vst [vmem:[#allocation215_spill] sm:$0xff] %v7475_v62  ;;  %v7519_v6 = vpop.permute.xlu1 %758  ;;  %v3041_v54 = vrot.slane %v7452_v30, 1  ;;  %v7541_v16 = vsel %vm17532_vm1, 0.0, %v7187_v4  ;;  %v17875_v4 = vrot.slane %v7164_v44, 1  ;;  %v7596_v44 = vsel %vm17532_vm1, 0.0, %v7247_v0 }
  0xc3   :  { %17859 = vst [vmem:[#allocation69_spill] sm:$0xff] %v7480_v14  ;;  %17861 = vst [vmem:[#allocation216_spill] sm:$0xff] %v7492_v51  ;;  %v17866_v14 = vrot.slane %v7169_v41, 1  ;;  %v3255_v30 = vsel %vm1983_vm0, %v3039_v39, %v3040_v1  ;;  %v7600_v45 = vpop.permute.xlu0 %760 }
  0xc4   :  { %17862 = vst [vmem:[#allocation217_spill] sm:$0xff] %v7501_v22  ;;  %17863 = vst [vmem:[#allocation218_spill] sm:$0xff] %v7506_v9 }
  0xc5   :  { %17864 = vst [vmem:[#allocation219_spill] sm:$0xff] %v7513_v38  ;;  %17865 = vst [vmem:[#allocation220_spill] sm:$0xff] %v7517_v61  ;;  %v7529_v62 = vsel %vm1983_vm0, %v17867_v24, %v17866_v14  ;;  %v7535_v38 = vsel %vm1983_vm0, %v3038_v8, %v3039_v39  ;;  %v7547_v14 = vsel %vm17322_vm11, %v17871_v46, %v3257_v52  ;;  %v3042_v24 = vrot.slane %v7501_v22, 1  ;;  %v17873_v61 = vld [vmem:[#allocation87_spill] sm:$0xff] }
  0xc6   :  { %17868 = vst [vmem:[#allocation221_spill] sm:$0xff] %v7531_v43  ;;  %17869 = vst [vmem:[#allocation222_spill] sm:$0xff] %v7535_v38  ;;  %vm17241_vm14 = vcmp.eq.s32.totalorder %v17873_v61, 2  ;;  %v17874_v8 = vrot.slane %v7234_v56, 1  ;;  %v7566_v52 = vsel %vm1594_vm2, %v2652_v5, %v2653_v40  ;;  %v7578_v56 = vld [vmem:[%s17057_s0 + $0x2e8] sm:$0xff]  ;;  %v7589_v39 = vsel %vm1594_vm2, %v2651_v63, %v2652_v5 }
  0xc7   :  { %17870 = vst [vmem:[#allocation223_spill] sm:$0xff] %v7541_v16  ;;  %17872 = vst [vmem:[#allocation77_spill] sm:$0xff] %v7547_v14  ;;  %v7573_v14 = vsel %vm17532_vm1, 0.0, %v7249_v34  ;;  %v2655_v46 = vrot.slane %v7541_v16, 7  ;;  %v2654_v34 = vrot.slane %v7501_v22, 7  ;;  %v3043_v63 = vrot.slane %v7541_v16, 1  ;;  %878 = vrot.lane.b32.xlu1 %v7578_v56, %s5883_s16  ;;  %v7667_v27 = vpop.permute.xlu0 %764 }
  0xc8   :  { %v7561_v41 = vsel %vm1983_vm0, %v17875_v4, %v17874_v8  ;;  %17877 = vst [vmem:[#allocation225_spill] sm:$0xff] %v7566_v52  ;;  %17878 = vst [vmem:[#allocation226_spill] sm:$0xff] %v7573_v14  ;;  %v7583_v8 = vld [vmem:[%s17057_s0 + $0x2e0] sm:$0xff]  ;;  %v7585_v4 = vunpack.c.3.s8 %v162_v53  ;;  %v7598_v52 = vpop.permute.xlu1 %762  ;;  %v7604_v53 = vsel %vm1983_vm0, %v3040_v1, %v3041_v54  ;;  %v3253_v0 = vsel %vm1983_vm0, %v3041_v54, %v3042_v24 }
  0xc9   :  { %17876 = vst [vmem:[#allocation224_spill] sm:$0xff] %v7561_v41  ;;  %17879 = vst [vmem:[#allocation227_spill] sm:$0xff] %v7578_v56  ;;  %v17885_v22 = vld [vmem:[#allocation82_spill] sm:$0xff]  ;;  %v3044_v41 = vrot.slane %v7573_v14, 1  ;;  %876 = vrot.lane.b32.xlu0 %v7583_v8, %s5883_s16  ;;  %v17887_v1 = vrot.slane %v7303_v18, 1  ;;  %v17888_v5 = vrot.slane %v7229_v42, 1  ;;  %v7654_v42 = vsel %vm1594_vm2, %v2654_v34, %v2655_v46 }
  0xca   :  { %17880 = vst [vmem:[#allocation228_spill] sm:$0xff] %v7583_v8  ;;  %17881 = vst [vmem:[#allocation229_spill] sm:$0xff] %v7585_v4  ;;  %v7612_v38 = vsel %vm17228_vm12, %v17885_v22, %v3255_v30  ;;  %v163_v22 = vld [vmem:[%s17058_s1 + $0xa8] sm:$0xff]  ;;  %v2657_v54 = vrot.slane %v7596_v44, 7  ;;  %v7638_v16 = vsel %vm17532_vm1, 0.0, %v7322_v15  ;;  %v7643_v18 = vld [vmem:[%s17057_s0 + $0x2f8] sm:$0xff]  ;;  %v7658_v15 = vsel %vm1594_vm2, %v2653_v40, %v2654_v34 }
  0xcb   :  { %17882 = vst [vmem:[#allocation230_spill] sm:$0xff] %v7589_v39  ;;  %17883 = vst [vmem:[#allocation231_spill] sm:$0xff] %v7596_v44  ;;  %v7628_v30 = vsel %vm1983_vm0, %v17888_v5, %v17887_v1  ;;  %v2656_v39 = vrot.slane %v7573_v14, 7  ;;  %v7648_v5 = vld [vmem:[%s17057_s0 + $0x2f0] sm:$0xff]  ;;  %v7650_v1 = vunpack.c.1.s8 %v163_v22  ;;  %v7663_v14 = vsel %vm17532_vm1, 0.0, %v7320_v17  ;;  %882 = vrot.lane.b32.xlu1 %v7643_v18, %s5883_s16 }
  0xcc   :  { %17884 = vst [vmem:[#allocation232_spill] sm:$0xff] %v7604_v53  ;;  %17886 = vst [vmem:[#allocation82_spill] sm:$0xff] %v7612_v38  ;;  %v7665_v38 = vpop.permute.xlu1 %766  ;;  %v3045_v34 = vrot.slane %v7596_v44, 1  ;;  %vm17255_vm12 = vcmp.eq.s32.totalorder %v6564_v59, 2  ;;  %v17900_v17 = vrot.slane %v7372_v13, 1  ;;  %v7716_v13 = vld [vmem:[%s17057_s0 + $0x300] sm:$0xff] }
  0xcd   :  { %17889 = vst [vmem:[#allocation233_spill] sm:$0xff] %v7628_v30  ;;  %17890 = vst [vmem:[#allocation234_spill] sm:$0xff] %v7638_v16  ;;  %v7672_v30 = vsel %vm1983_vm0, %v3042_v24, %v3043_v63  ;;  %v3251_v24 = vsel %vm1983_vm0, %v3043_v63, %v3044_v41  ;;  %880 = vrot.lane.b32.xlu0 %v7648_v5, %s5883_s16  ;;  %v2659_v63 = vrot.slane %v7663_v14, 7  ;;  %v3047_v44 = vrot.slane %v7663_v14, 1 }
  0xce   :  { %17891 = vst [vmem:[#allocation235_spill] sm:$0xff] %v7643_v18  ;;  %17892 = vst [vmem:[#allocation236_spill] sm:$0xff] %v7648_v5 }
  0xcf   :  { %17893 = vst [vmem:[#allocation237_spill] sm:$0xff] %v7650_v1  ;;  %17894 = vst [vmem:[#allocation238_spill] sm:$0xff] %v7654_v42  ;;  %v17898_v42 = vld [vmem:[#allocation86_spill] sm:$0xff] }
  0xd0   :  { %17895 = vst [vmem:[#allocation239_spill] sm:$0xff] %v7658_v15  ;;  %17896 = vst [vmem:[#allocation240_spill] sm:$0xff] %v7663_v14  ;;  %v7677_v40 = vsel %vm17234_vm13, %v17898_v42, %v3253_v0  ;;  %v17901_v15 = vrot.slane %v7298_v47, 1  ;;  %v7695_v42 = vsel %vm17532_vm1, 0.0, %v7388_v48  ;;  %v7711_v48 = vld [vmem:[%s17057_s0 + $0x308] sm:$0xff]  ;;  %v7718_v47 = vunpack.c.3.s8 %v163_v22 }
  0xd1   :  { %17897 = vst [vmem:[#allocation241_spill] sm:$0xff] %v7672_v30  ;;  %17899 = vst [vmem:[#allocation86_spill] sm:$0xff] %v7677_v40  ;;  %v3046_v30 = vrot.slane %v7638_v16, 1  ;;  %v7722_v0 = vsel %vm1594_vm2, %v2655_v46, %v2656_v39  ;;  %v7732_v40 = vpop.permute.xlu0 %768  ;;  %v7737_v22 = vsel %vm1983_vm0, %v3044_v41, %v3045_v34  ;;  %vm17262_vm13 = vcmp.eq.s32.totalorder %v6589_v21, 2  ;;  %886 = vrot.lane.b32.xlu1 %v7711_v48, %s5883_s16 }
  0xd2   :  { %v7687_v53 = vsel %vm1983_vm0, %v17901_v15, %v17900_v17  ;;  %17903 = vst [vmem:[#allocation243_spill] sm:$0xff] %v7695_v42  ;;  %v7704_v15 = vsel %vm1594_vm2, %v2656_v39, %v2657_v54  ;;  %v2658_v17 = vrot.slane %v7638_v16, 7  ;;  %17905 = vst [vmem:[#allocation245_spill] sm:$0xff] %v7711_v48  ;;  %v7728_v16 = vsel %vm17532_vm1, 0.0, %v7386_v23  ;;  %v164_v23 = vld [vmem:[%s17058_s1 + $0xb0] sm:$0xff]  ;;  %884 = vrot.lane.b32.xlu0 %v7716_v13, %s5883_s16 }
  0xd3   :  { %17902 = vst [vmem:[#allocation242_spill] sm:$0xff] %v7687_v53  ;;  %17904 = vst [vmem:[#allocation244_spill] sm:$0xff] %v7704_v15  ;;  %v7730_v15 = vpop.permute.xlu1 %770  ;;  %v17910_v53 = vld [vmem:[#allocation88_spill] sm:$0xff]  ;;  %v3048_v39 = vrot.slane %v7695_v42, 1  ;;  %v3249_v7 = vsel %vm1983_vm0, %v3045_v34, %v3046_v30  ;;  %v7755_v41 = vsel %vm17532_vm1, 0.0, %v7461_v28  ;;  %v7769_v34 = vunpack.c.1.s8 %v164_v23 }
  0xd4   :  { %17906 = vst [vmem:[#allocation246_spill] sm:$0xff] %v7718_v47  ;;  %17907 = vst [vmem:[#allocation247_spill] sm:$0xff] %v7722_v0  ;;  %v7742_v46 = vsel %vm17241_vm14, %v17910_v53, %v3251_v24  ;;  %v17913_v53 = vrot.slane %v7434_v60, 1  ;;  %v17914_v24 = vrot.slane %v7367_v10, 1  ;;  %v7773_v28 = vsel %vm1594_vm2, %v2658_v17, %v2659_v63 }
  0xd5   :  { %17908 = vst [vmem:[#allocation248_spill] sm:$0xff] %v7728_v16  ;;  %17909 = vst [vmem:[#allocation249_spill] sm:$0xff] %v7737_v22  ;;  %v2661_v0 = vrot.slane %v7728_v16, 7  ;;  %v7780_v60 = vsel %vm17532_vm1, 0.0, %v7459_v2  ;;  %v7794_v10 = vsel %vm1594_vm2, %v2657_v54, %v2658_v17  ;;  %v3049_v2 = vrot.slane %v7728_v16, 1  ;;  %v7803_v61 = vpop.permute.xlu0 %772 }
  0xd6   :  { %17911 = vst [vmem:[#allocation88_spill] sm:$0xff] %v7742_v46  ;;  %17912 = vst [vmem:[#allocation250_spill] sm:$0xff] %v7755_v41  ;;  %v7767_v14 = vsel %vm1983_vm0, %v17914_v24, %v17913_v53  ;;  %v2660_v46 = vrot.slane %v7695_v42, 7  ;;  %v7785_v53 = vld [vmem:[%s17057_s0 + $0x318] sm:$0xff]  ;;  %v7790_v24 = vld [vmem:[%s17057_s0 + $0x310] sm:$0xff]  ;;  %v7798_v42 = vsel %vm1983_vm0, %v3046_v30, %v3047_v44  ;;  %v3247_v54 = vsel %vm1983_vm0, %v3047_v44, %v3048_v39 }
  0xd7   :  { %17915 = vst [vmem:[#allocation251_spill] sm:$0xff] %v7767_v14  ;;  %17916 = vst [vmem:[#allocation252_spill] sm:$0xff] %v7769_v34  ;;  %v17923_v14 = vld [vmem:[#allocation90_spill] sm:$0xff]  ;;  %v3050_v17 = vrot.slane %v7755_v41, 1  ;;  %vm17273_vm14 = vcmp.eq.s32.totalorder %v6605_v20, 2  ;;  %v17925_v30 = vrot.slane %v7506_v9, 1  ;;  %890 = vrot.lane.b32.xlu1 %v7785_v53, %s5883_s16  ;;  %888 = vrot.lane.b32.xlu0 %v7790_v24, %s5883_s16 }
  0xd8   :  { %17917 = vst [vmem:[#allocation253_spill] sm:$0xff] %v7773_v28  ;;  %17918 = vst [vmem:[#allocation254_spill] sm:$0xff] %v7780_v60  ;;  %v7801_v28 = vpop.permute.xlu1 %774  ;;  %v7809_v34 = vsel %vm17246_vm15, %v17923_v14, %v3249_v7  ;;  %v17926_v16 = vrot.slane %v7429_v3, 1  ;;  %v2663_v22 = vrot.slane %v7780_v60, 7  ;;  %v2662_v7 = vrot.slane %v7755_v41, 7  ;;  %v7851_v9 = vld [vmem:[%s17057_s0 + $0x320] sm:$0xff] }
  0xd9   :  { %17919 = vst [vmem:[#allocation255_spill] sm:$0xff] %v7785_v53  ;;  %17920 = vst [vmem:[#allocation256_spill] sm:$0xff] %v7790_v24  ;;  %v7828_v44 = vsel %vm17532_vm1, 0.0, %v7521_v12  ;;  %v7846_v12 = vld [vmem:[%s17057_s0 + $0x328] sm:$0xff]  ;;  %v7853_v3 = vunpack.c.3.s8 %v164_v23  ;;  %v7858_v41 = vsel %vm1983_vm0, %v3048_v39, %v3049_v2  ;;  %vm17271_vm15 = vcmp.eq.s32.totalorder %v6619_v25, 2  ;;  %v7874_v14 = vpop.permute.xlu0 %776 }
  0xda   :  { %17921 = vst [vmem:[#allocation257_spill] sm:$0xff] %v7794_v10  ;;  %17922 = vst [vmem:[#allocation258_spill] sm:$0xff] %v7798_v42  ;;  %v7821_v10 = vsel %vm1983_vm0, %v17926_v16, %v17925_v30  ;;  %v7837_v16 = vsel %vm1594_vm2, %v2660_v46, %v2661_v0  ;;  %v7841_v30 = vsel %vm1594_vm2, %v2659_v63, %v2660_v46  ;;  %v17934_v63 = vld [vmem:[#allocation94_spill] sm:$0xff]  ;;  %v1951_v21 = vrot.slane %v7716_v13, 1 }
  0xdb   :  { %17924 = vst [vmem:[#allocation90_spill] sm:$0xff] %v7809_v34  ;;  %17927 = vst [vmem:[#allocation259_spill] sm:$0xff] %v7828_v44  ;;  %v7863_v46 = vsel %vm17255_vm12, %v17934_v63, %v3247_v54  ;;  %v3245_v39 = vsel %vm1983_vm0, %v3049_v2, %v3050_v17  ;;  %v7882_v54 = vsel %vm17532_vm1, 0.0, %v7600_v45  ;;  %v7894_v2 = vsel %vm1594_vm2, %v2661_v0, %v2662_v7 }
  0xdc   :  { %17928 = vst [vmem:[#allocation260_spill] sm:$0xff] %v7837_v16  ;;  %17929 = vst [vmem:[#allocation261_spill] sm:$0xff] %v7841_v30  ;;  %v3051_v16 = vrot.slane %v7780_v60, 1  ;;  %v7869_v30 = vsel %vm17532_vm1, 0.0, %v7519_v6  ;;  %v7872_v23 = vpop.permute.xlu1 %778  ;;  %v165_v6 = vld [vmem:[%s17058_s1 + $0xb8] sm:$0xff]  ;;  %v7890_v60 = vsel %vm1594_vm2, %v2662_v7, %v2663_v22  ;;  %894 = vrot.lane.b32.xlu1 %v7846_v12, %s5883_s16  ;;  %892 = vrot.lane.b32.xlu0 %v7851_v9, %s5883_s16  ;;  %v17940_v45 = vrot.slane %v7583_v8, 1 }
  0xdd   :  { %17930 = vst [vmem:[#allocation262_spill] sm:$0xff] %v7846_v12  ;;  %17931 = vst [vmem:[#allocation263_spill] sm:$0xff] %v7851_v9  ;;  %v7908_v34 = vunpack.c.1.s8 %v165_v6  ;;  %v2664_v0 = vrot.slane %v7828_v44, 7  ;;  %v7915_v7 = vsel %vm17532_vm1, 0.0, %v7598_v52  ;;  %v7920_v8 = vld [vmem:[%s17057_s0 + $0x338] sm:$0xff]  ;;  %v7935_v52 = vsel %vm17262_vm13, %v6603_v26, %v3245_v39  ;;  %v7941_v19 = vpop.permute.xlu0 %780 }
  0xde   :  { %17932 = vst [vmem:[#allocation264_spill] sm:$0xff] %v7853_v3  ;;  %17933 = vst [vmem:[#allocation265_spill] sm:$0xff] %v7858_v41  ;;  %v3052_v41 = vrot.slane %v7828_v44, 1  ;;  %v3053_v44 = vrot.slane %v7869_v30, 1  ;;  %v17950_v26 = vrot.slane %v7648_v5, 1  ;;  %v17951_v39 = vrot.slane %v7578_v56, 1 }
  0xdf   :  { %17935 = vst [vmem:[#allocation94_spill] sm:$0xff] %v7863_v46  ;;  %17936 = vst [vmem:[#allocation266_spill] sm:$0xff] %v7869_v30  ;;  %v17941_v46 = vrot.slane %v7492_v51, 1  ;;  %v7930_v51 = vsel %vm1983_vm0, %v3050_v17, %v3051_v16  ;;  %v2667_v42 = vrot.slane %v7915_v7, 7  ;;  %v7970_v5 = vsel %vm17532_vm1, 0.0, %v7667_v27  ;;  %v7988_v27 = vld [vmem:[%s17057_s0 + $0x348] sm:$0xff] }
  0xe0   :  { %17937 = vst [vmem:[#allocation267_spill] sm:$0xff] %v7882_v54  ;;  %17938 = vst [vmem:[#allocation268_spill] sm:$0xff] %v7890_v60  ;;  %v2665_v60 = vrot.slane %v7869_v30, 7  ;;  %v7939_v59 = vpop.permute.xlu1 %782  ;;  %v3243_v17 = vsel %vm1983_vm0, %v3051_v16, %v3052_v41  ;;  %v7955_v30 = vsel %vm1983_vm0, %v17951_v39, %v17950_v26  ;;  %v7965_v16 = vsel %vm17532_vm1, 0.0, %v7665_v38  ;;  %898 = vrot.lane.b32.xlu1 %v7920_v8, %s5883_s16  ;;  %v7993_v26 = vld [vmem:[%s17057_s0 + $0x340] sm:$0xff] }
  0xe1   :  { %17939 = vst [vmem:[#allocation269_spill] sm:$0xff] %v7894_v2  ;;  %v7906_v63 = vsel %vm1983_vm0, %v17941_v46, %v17940_v45  ;;  %17943 = vst [vmem:[#allocation271_spill] sm:$0xff] %v7908_v34  ;;  %v7925_v46 = vld [vmem:[%s17057_s0 + $0x330] sm:$0xff]  ;;  %v3054_v2 = vrot.slane %v7882_v54, 1  ;;  %v166_v45 = vld [vmem:[%s17058_s1 + $0xc0] sm:$0xff]  ;;  %v3055_v38 = vrot.slane %v7915_v7, 1  ;;  %v7999_v56 = vsel %vm1983_vm0, %v3052_v41, %v3053_v44 }
  0xe2   :  { %17942 = vst [vmem:[#allocation270_spill] sm:$0xff] %v7906_v63  ;;  %17944 = vst [vmem:[#allocation272_spill] sm:$0xff] %v7915_v7  ;;  %v2666_v63 = vrot.slane %v7882_v54, 7  ;;  %896 = vrot.lane.b32.xlu0 %v7925_v46, %s5883_s16  ;;  %v7978_v13 = vsel %vm1594_vm2, %v2664_v0, %v2665_v60  ;;  %v7995_v39 = vunpack.c.0.s8 %v166_v45  ;;  %vm17285_vm13 = vcmp.eq.s32.totalorder %v6662_v29, 2 }
  0xe3   :  { %17945 = vst [vmem:[#allocation273_spill] sm:$0xff] %v7920_v8  ;;  %17946 = vst [vmem:[#allocation274_spill] sm:$0xff] %v7925_v46  ;;  %v3241_v7 = vsel %vm1983_vm0, %v3053_v44, %v3054_v2  ;;  %v2668_v41 = vrot.slane %v7970_v5, 7  ;;  %vm17439_vm8 = vcmp.eq.s32.totalorder %v7718_v47, 2 }
  0xe4   :  { %17947 = vst [vmem:[#allocation275_spill] sm:$0xff] %v7930_v51  ;;  %17948 = vst [vmem:[#allocation276_spill] sm:$0xff] %v7935_v52  ;;  %v17949_v51 = vld [vmem:[#allocation100_spill] sm:$0xff]  ;;  %v7957_v52 = vunpack.c.3.s8 %v165_v6  ;;  %v7982_v6 = vsel %vm1594_vm2, %v2663_v22, %v2664_v0  ;;  %v17962_v22 = vld [vmem:[#allocation97_spill] sm:$0xff]  ;;  %v8009_v54 = vpop.permute.xlu1 %786  ;;  %v8024_v44 = vsel %vm1594_vm2, %v2666_v63, %v2667_v42  ;;  %902 = vrot.lane.b32.xlu1 %v7988_v27, %s5883_s16 }
  0xe5   :  { %vm17287_vm12 = vcmp.eq.s32.totalorder %v17949_v51, 2  ;;  %17952 = vst [vmem:[#allocation277_spill] sm:$0xff] %v7955_v30  ;;  %17954 = vst [vmem:[#allocation279_spill] sm:$0xff] %v7965_v16  ;;  %v8004_v0 = vsel %vm17273_vm14, %v17962_v22, %v3243_v17  ;;  %v2669_v30 = vrot.slane %v7965_v16, 7  ;;  %v8020_v17 = vsel %vm17532_vm1, 0.0, %v7732_v40 }
  0xe6   :  { %17953 = vst [vmem:[#allocation278_spill] sm:$0xff] %v7957_v52  ;;  %17955 = vst [vmem:[#allocation280_spill] sm:$0xff] %v7970_v5  ;;  %v8028_v22 = vsel %vm1594_vm2, %v2665_v60, %v2666_v63  ;;  %900 = vrot.lane.b32.xlu0 %v7993_v26, %s5883_s16  ;;  %v8047_v60 = vsel %vm1983_vm0, %v3054_v2, %v3055_v38  ;;  %v17971_v63 = vld [vmem:[#allocation99_spill] sm:$0xff]  ;;  %v8068_v2 = vld [vmem:[%s17057_s0 + $0x350] sm:$0xff]  ;;  %v8089_v20 = vsel %vm1594_vm2, %v2667_v42, %v2668_v41 }
  0xe7   :  { %17956 = vst [vmem:[#allocation281_spill] sm:$0xff] %v7978_v13  ;;  %17957 = vst [vmem:[#allocation282_spill] sm:$0xff] %v7982_v6  ;;  %v8011_v13 = vpop.permute.xlu0 %784  ;;  %v17967_v6 = vrot.slane %v7643_v18, 1  ;;  %v3057_v18 = vrot.slane %v7965_v16, 1  ;;  %v8085_v25 = vsel %vm1594_vm2, %v2668_v41, %v2669_v30  ;;  %v8106_v42 = vsel %vm17532_vm1, 0.0, %v7803_v61  ;;  %v8126_v61 = vld [vmem:[%s17057_s0 + $0x360] sm:$0xff] }
  0xe8   :  { %17958 = vst [vmem:[#allocation283_spill] sm:$0xff] %v7988_v27  ;;  %17959 = vst [vmem:[#allocation284_spill] sm:$0xff] %v7993_v26  ;;  %vm17303_vm14 = vcmp.eq.s32.totalorder %v6693_v37, 2  ;;  %v18047_v52 = vrot.slane %v8068_v2, 1 }
  0xe9   :  { %17960 = vst [vmem:[#allocation285_spill] sm:$0xff] %v7995_v39  ;;  %17961 = vst [vmem:[#allocation286_spill] sm:$0xff] %v7999_v56  ;;  %v3056_v56 = vrot.slane %v7970_v5, 1  ;;  %v8038_v40 = vsel %vm1983_vm0, %v17967_v6, %v1951_v21  ;;  %v8040_v5 = vunpack.c.2.s8 %v166_v45  ;;  %v8058_v45 = vsel %vm17532_vm1, 0.0, %v7730_v15  ;;  %v8063_v6 = vld [vmem:[%s17057_s0 + $0x358] sm:$0xff] }
  0xea   :  { %17963 = vst [vmem:[#allocation97_spill] sm:$0xff] %v8004_v0  ;;  %17964 = vst [vmem:[#allocation287_spill] sm:$0xff] %v8020_v17  ;;  %906 = vrot.lane.b32.xlu1 %v8063_v6, %s5883_s16  ;;  %904 = vrot.lane.b32.xlu0 %v8068_v2, %s5883_s16  ;;  %v3059_v41 = vrot.slane %v8058_v45, 1  ;;  %v17989_v0 = vrot.slane %v7785_v53, 1  ;;  %v18046_v39 = vrot.slane %v8063_v6, 1 }
  0xeb   :  { %17965 = vst [vmem:[#allocation288_spill] sm:$0xff] %v8024_v44  ;;  %17966 = vst [vmem:[#allocation289_spill] sm:$0xff] %v8028_v22  ;;  %v167_v44 = vld [vmem:[%s17058_s1 + $0xc8] sm:$0xff]  ;;  %v8052_v22 = vsel %vm17271_vm15, %v17971_v63, %v3241_v7  ;;  %v3058_v7 = vrot.slane %v8020_v17, 1  ;;  %v8071_v63 = vpop.permute.xlu1 %790  ;;  %v8073_v16 = vpop.permute.xlu0 %788  ;;  %vm17294_vm15 = vcmp.eq.s32.totalorder %v6678_v33, 2 }
  0xec   :  { %17968 = vst [vmem:[#allocation290_spill] sm:$0xff] %v8038_v40  ;;  %17969 = vst [vmem:[#allocation291_spill] sm:$0xff] %v8040_v5  ;;  %v3239_v40 = vsel %vm1983_vm0, %v3055_v38, %v3056_v56  ;;  %v8114_v38 = vsel %vm1983_vm0, %v3056_v56, %v3057_v18  ;;  %v17986_v56 = vld [vmem:[#allocation103_spill] sm:$0xff] }
  0xed   :  { %17970 = vst [vmem:[#allocation292_spill] sm:$0xff] %v8047_v60  ;;  %17972 = vst [vmem:[#allocation99_spill] sm:$0xff] %v8052_v22  ;;  %v17976_v22 = vrot.slane %v7711_v48, 1  ;;  %v8094_v48 = vunpack.c.0.s8 %v167_v44  ;;  %v8101_v60 = vsel %vm17532_vm1, 0.0, %v7801_v28  ;;  %v8121_v28 = vld [vmem:[%s17057_s0 + $0x368] sm:$0xff] }
  0xee   :  { %17973 = vst [vmem:[#allocation293_spill] sm:$0xff] %v8058_v45  ;;  %17974 = vst [vmem:[#allocation294_spill] sm:$0xff] %v8063_v6  ;;  %910 = vrot.lane.b32.xlu1 %v8121_v28, %s5883_s16  ;;  %908 = vrot.lane.b32.xlu0 %v8126_v61, %s5883_s16  ;;  %v18051_v6 = vld [vmem:[#allocation74_spill] sm:$0xff] }
  0xef   :  { %17975 = vst [vmem:[#allocation295_spill] sm:$0xff] %v8068_v2  ;;  %v8079_v15 = vsel %vm1983_vm0, %v1951_v21, %v17976_v22  ;;  %17978 = vst [vmem:[#allocation297_spill] sm:$0xff] %v8085_v25  ;;  %v2671_v21 = vrot.slane %v8058_v45, 7  ;;  %v2670_v22 = vrot.slane %v8020_v17, 7  ;;  %v8133_v45 = vsel %vm17287_vm12, %v17986_v56, %v3239_v40 }
  0xf0   :  { %17977 = vst [vmem:[#allocation296_spill] sm:$0xff] %v8079_v15  ;;  %17979 = vst [vmem:[#allocation298_spill] sm:$0xff] %v8089_v20  ;;  %v3237_v25 = vsel %vm1983_vm0, %v3057_v18, %v3058_v7  ;;  %v8140_v20 = vsel %vm17532_vm1, 0.0, %v7874_v14  ;;  %v8144_v15 = vpop.permute.xlu0 %792  ;;  %v17990_v17 = vrot.slane %v7790_v24, 1  ;;  %v2673_v56 = vrot.slane %v8101_v60, 7 }
  0xf1   :  { %17980 = vst [vmem:[#allocation299_spill] sm:$0xff] %v8094_v48  ;;  %17981 = vst [vmem:[#allocation300_spill] sm:$0xff] %v8101_v60  ;;  %v2672_v18 = vrot.slane %v8106_v42, 7  ;;  %v8160_v14 = vsel %vm17532_vm1, 0.0, %v7872_v23  ;;  %v8164_v53 = vsel %vm1594_vm2, %v2670_v22, %v2671_v21  ;;  %v8168_v24 = vsel %vm1594_vm2, %v2669_v30, %v2670_v22  ;;  %v168_v23 = vld [vmem:[%s17058_s1 + $0xd0] sm:$0xff]  ;;  %v17997_v30 = vld [vmem:[#allocation105_spill] sm:$0xff] }
  0xf2   :  { %17982 = vst [vmem:[#allocation301_spill] sm:$0xff] %v8106_v42  ;;  %17983 = vst [vmem:[#allocation302_spill] sm:$0xff] %v8114_v38  ;;  %v8142_v38 = vpop.permute.xlu1 %794  ;;  %v8152_v40 = vsel %vm1983_vm0, %v17990_v17, %v17989_v0  ;;  %v3061_v0 = vrot.slane %v8101_v60, 1  ;;  %v8175_v17 = vunpack.c.2.s8 %v167_v44  ;;  %v8187_v22 = vsel %vm17285_vm13, %v17997_v30, %v3237_v25  ;;  %v8193_v44 = vld [vmem:[%s17057_s0 + $0x378] sm:$0xff] }
  0xf3   :  { %17984 = vst [vmem:[#allocation303_spill] sm:$0xff] %v8121_v28  ;;  %17985 = vst [vmem:[#allocation304_spill] sm:$0xff] %v8126_v61  ;;  %v3062_v60 = vrot.slane %v8140_v20, 1  ;;  %v2675_v30 = vrot.slane %v8160_v14, 7  ;;  %914 = vrot.lane.b32.xlu1 %v8193_v44, %s5883_s16 }
  0xf4   :  { %17987 = vst [vmem:[#allocation103_spill] sm:$0xff] %v8133_v45  ;;  %17988 = vst [vmem:[#allocation305_spill] sm:$0xff] %v8140_v20  ;;  %v3060_v45 = vrot.slane %v8106_v42, 1  ;;  %v8182_v42 = vsel %vm1983_vm0, %v3058_v7, %v3059_v41  ;;  %v18001_v7 = vrot.slane %v7846_v12, 1  ;;  %v8212_v29 = vpop.permute.xlu0 %796  ;;  %v8218_v12 = vsel %vm1594_vm2, %v2672_v18, %v2673_v56 }
  0xf5   :  { %17991 = vst [vmem:[#allocation306_spill] sm:$0xff] %v8152_v40  ;;  %17992 = vst [vmem:[#allocation307_spill] sm:$0xff] %v8160_v14  ;;  %v3063_v40 = vrot.slane %v8160_v14, 1  ;;  %v18019_v14 = vrot.slane %v7920_v8, 1  ;;  %v18024_v8 = vld [vmem:[#allocation109_spill] sm:$0xff] }
  0xf6   :  { %17993 = vst [vmem:[#allocation308_spill] sm:$0xff] %v8164_v53  ;;  %17994 = vst [vmem:[#allocation309_spill] sm:$0xff] %v8168_v24  ;;  %v8198_v53 = vld [vmem:[%s17057_s0 + $0x370] sm:$0xff]  ;;  %v18002_v24 = vrot.slane %v7851_v9, 1  ;;  %v18006_v9 = vld [vmem:[#allocation110_spill] sm:$0xff]  ;;  %v8231_v51 = vsel %vm1983_vm0, %v3060_v45, %v3061_v0 }
  0xf7   :  { %17995 = vst [vmem:[#allocation310_spill] sm:$0xff] %v8175_v17  ;;  %17996 = vst [vmem:[#allocation311_spill] sm:$0xff] %v8182_v42  ;;  %v8210_v42 = vpop.permute.xlu1 %798  ;;  %vm17313_vm13 = vcmp.eq.s32.totalorder %v18006_v9, 2  ;;  %912 = vrot.lane.b32.xlu0 %v8198_v53, %s5883_s16  ;;  %v18068_v9 = vld [vmem:[#allocation124_spill] sm:$0xff] }
  0xf8   :  { %17998 = vst [vmem:[#allocation105_spill] sm:$0xff] %v8187_v22  ;;  %17999 = vst [vmem:[#allocation312_spill] sm:$0xff] %v8193_v44  ;;  %v8206_v25 = vsel %vm1983_vm0, %v18002_v24, %v18001_v7  ;;  %v2674_v22 = vrot.slane %v8140_v20, 7  ;;  %v8222_v24 = vsel %vm1594_vm2, %v2671_v21, %v2672_v18  ;;  %v3235_v7 = vsel %vm1983_vm0, %v3059_v41, %v3060_v45  ;;  %v18011_v41 = vld [vmem:[#allocation114_spill] sm:$0xff]  ;;  %v8283_v17 = vpop.permute.xlu0 %800 }
  0xf9   :  { %18000 = vst [vmem:[#allocation313_spill] sm:$0xff] %v8198_v53  ;;  %18003 = vst [vmem:[#allocation314_spill] sm:$0xff] %v8206_v25  ;;  %v8227_v20 = vunpack.c.0.s8 %v168_v23  ;;  %v8242_v21 = vsel %vm17532_vm1, 0.0, %v7941_v19  ;;  %v3233_v45 = vsel %vm1983_vm0, %v3061_v0, %v3062_v60  ;;  %vm17318_vm12 = vcmp.eq.s32.totalorder %v18011_v41, 2  ;;  %v8259_v19 = vld [vmem:[%s17057_s0 + $0x388] sm:$0xff]  ;;  %v8264_v18 = vld [vmem:[%s17057_s0 + $0x380] sm:$0xff] }
  0xfa   :  { %18004 = vst [vmem:[#allocation315_spill] sm:$0xff] %v8218_v12  ;;  %18005 = vst [vmem:[#allocation316_spill] sm:$0xff] %v8222_v24  ;;  %v8237_v12 = vsel %vm17532_vm1, 0.0, %v7939_v59  ;;  %v8254_v59 = vsel %vm17532_vm1, 0.0, %v8011_v13  ;;  %v18015_v24 = vld [vmem:[#allocation107_spill] sm:$0xff]  ;;  %v8275_v13 = vsel %vm1594_vm2, %v2674_v22, %v2675_v30  ;;  %v8279_v25 = vsel %vm1594_vm2, %v2673_v56, %v2674_v22  ;;  %918 = vrot.lane.b32.xlu1 %v8259_v19, %s5883_s16 }
  0xfb   :  { %18007 = vst [vmem:[#allocation317_spill] sm:$0xff] %v8227_v20  ;;  %18008 = vst [vmem:[#allocation318_spill] sm:$0xff] %v8231_v51  ;;  %v8271_v51 = vsel %vm17294_vm15, %v18015_v24, %v3235_v7  ;;  %v8281_v20 = vpop.permute.xlu1 %802  ;;  %v18020_v0 = vrot.slane %v7925_v46, 1  ;;  %v2677_v7 = vrot.slane %v8237_v12, 7  ;;  %v8299_v56 = vsel %vm17532_vm1, 0.0, %v8009_v54  ;;  %916 = vrot.lane.b32.xlu0 %v8264_v18, %s5883_s16  ;;  %v169_v54 = vld [vmem:[%s17058_s1 + $0xd8] sm:$0xff] }
  0xfc   :  { %18009 = vst [vmem:[#allocation319_spill] sm:$0xff] %v8237_v12  ;;  %18010 = vst [vmem:[#allocation320_spill] sm:$0xff] %v8242_v21  ;;  %v8303_v22 = vsel %vm1983_vm0, %v3062_v60, %v3063_v40  ;;  %v8315_v46 = vunpack.c.2.s8 %v168_v23  ;;  %v3065_v60 = vrot.slane %v8237_v12, 1  ;;  %v18030_v23 = vrot.slane %v7988_v27, 1 }
  0xfd   :  { %18012 = vst [vmem:[#allocation321_spill] sm:$0xff] %v8254_v59  ;;  %18013 = vst [vmem:[#allocation322_spill] sm:$0xff] %v8259_v19  ;;  %v8291_v24 = vsel %vm1983_vm0, %v18020_v0, %v18019_v14  ;;  %v8308_v14 = vsel %vm17303_vm14, %v18024_v8, %v3233_v45  ;;  %v3066_v0 = vrot.slane %v8254_v59, 1  ;;  %v8325_v8 = vld [vmem:[%s17057_s0 + $0x398] sm:$0xff]  ;;  %v8330_v45 = vld [vmem:[%s17057_s0 + $0x390] sm:$0xff]  ;;  %v2679_v37 = vrot.slane %v8299_v56, 7 }
  0xfe   :  { %18014 = vst [vmem:[#allocation323_spill] sm:$0xff] %v8264_v18  ;;  %18016 = vst [vmem:[#allocation107_spill] sm:$0xff] %v8271_v51  ;;  %v3064_v51 = vrot.slane %v8242_v21, 1  ;;  %v2678_v33 = vrot.slane %v8254_v59, 7  ;;  %v8352_v27 = vsel %vm17532_vm1, 0.0, %v8073_v16  ;;  %v3067_v16 = vrot.slane %v8299_v56, 1  ;;  %922 = vrot.lane.b32.xlu1 %v8325_v8, %s5883_s16 }
  0xff   :  { %18017 = vst [vmem:[#allocation324_spill] sm:$0xff] %v8275_v13  ;;  %18018 = vst [vmem:[#allocation325_spill] sm:$0xff] %v8279_v25  ;;  %v2676_v13 = vrot.slane %v8242_v21, 7  ;;  %v18027_v21 = vld [vmem:[#allocation116_spill] sm:$0xff]  ;;  %v18031_v25 = vrot.slane %v7993_v26, 1  ;;  %v8368_v26 = vunpack.c.0.s8 %v169_v54  ;;  %v3229_v59 = vsel %vm1983_vm0, %v3065_v60, %v3066_v0  ;;  %920 = vrot.lane.b32.xlu0 %v8330_v45, %s5883_s16 }
 0x100   :  { %18021 = vst [vmem:[#allocation326_spill] sm:$0xff] %v8291_v24  ;;  %18022 = vst [vmem:[#allocation327_spill] sm:$0xff] %v8299_v56  ;;  %vm17334_vm15 = vcmp.eq.s32.totalorder %v18027_v21, 2  ;;  %v8347_v24 = vsel %vm17532_vm1, 0.0, %v8071_v63  ;;  %v3231_v63 = vsel %vm1983_vm0, %v3063_v40, %v3064_v51  ;;  %v3068_v56 = vrot.slane %v8352_v27, 1 }
 0x101   :  { %18023 = vst [vmem:[#allocation328_spill] sm:$0xff] %v8303_v22  ;;  %18025 = vst [vmem:[#allocation109_spill] sm:$0xff] %v8308_v14  ;;  %v8338_v14 = vsel %vm1983_vm0, %v18031_v25, %v18030_v23  ;;  %v8354_v25 = vpop.permute.xlu1 %806  ;;  %v8356_v23 = vpop.permute.xlu0 %804  ;;  %v8360_v12 = vsel %vm1594_vm2, %v2676_v13, %v2677_v7  ;;  %v8364_v22 = vsel %vm1594_vm2, %v2675_v30, %v2676_v13  ;;  %v2681_v40 = vrot.slane %v8347_v24, 7  ;;  %v8396_v30 = vld [vmem:[%s17057_s0 + $0x3a0] sm:$0xff] }
 0x102   :  { %18026 = vst [vmem:[#allocation329_spill] sm:$0xff] %v8315_v46  ;;  %18028 = vst [vmem:[#allocation330_spill] sm:$0xff] %v8325_v8  ;;  %v8400_v13 = vsel %vm1983_vm0, %v3064_v51, %v3065_v60  ;;  %v8421_v51 = vsel %vm1983_vm0, %v18047_v52, %v18046_v39  ;;  %v3069_v60 = vrot.slane %v8347_v24, 1  ;;  %v8438_v2 = vsel %vm1983_vm0, %v3066_v0, %v3067_v16  ;;  %v18053_v52 = vld [vmem:[#allocation115_spill] sm:$0xff] }
 0x103   :  { %18029 = vst [vmem:[#allocation331_spill] sm:$0xff] %v8330_v45  ;;  %18032 = vst [vmem:[#allocation332_spill] sm:$0xff] %v8338_v14  ;;  %v18038_v14 = vld [vmem:[#allocation118_spill] sm:$0xff]  ;;  %924 = vrot.lane.b32.xlu0 %v8396_v30, %s5883_s16  ;;  %vm17347_vm11 = vcmp.eq.s32.totalorder %v18068_v9, 2 }
 0x104   :  { %18033 = vst [vmem:[#allocation333_spill] sm:$0xff] %v8347_v24  ;;  %18034 = vst [vmem:[#allocation334_spill] sm:$0xff] %v8352_v27  ;;  %vm17330_vm14 = vcmp.eq.s32.totalorder %v18038_v14, 2  ;;  %v18086_v14 = vld [vmem:[#allocation126_spill] sm:$0xff] }
 0x105   :  { %18035 = vst [vmem:[#allocation335_spill] sm:$0xff] %v8360_v12  ;;  %18036 = vst [vmem:[#allocation336_spill] sm:$0xff] %v8364_v22  ;;  %v2680_v12 = vrot.slane %v8352_v27, 7  ;;  %v8386_v22 = vsel %vm17532_vm1, 0.0, %v8144_v15  ;;  %v18043_v27 = vld [vmem:[#allocation111_spill] sm:$0xff]  ;;  %v8409_v15 = vsel %vm1594_vm2, %v2678_v33, %v2679_v37  ;;  %v8411_v48 = vpop.permute.xlu1 %810  ;;  %v8413_v5 = vpop.permute.xlu0 %808 }
 0x106   :  { %18037 = vst [vmem:[#allocation337_spill] sm:$0xff] %v8368_v26  ;;  %18039 = vst [vmem:[#allocation338_spill] sm:$0xff] %v8386_v22  ;;  %v8391_v26 = vld [vmem:[%s17057_s0 + $0x3a8] sm:$0xff]  ;;  %v8405_v46 = vsel %vm17313_vm13, %v18043_v27, %v3231_v63  ;;  %v8425_v27 = vsel %vm1594_vm2, %v2677_v7, %v2678_v33  ;;  %v8431_v63 = vsel %vm17532_vm1, 0.0, %v8142_v38  ;;  %vm17344_vm13 = vcmp.eq.s32.totalorder %v18051_v6, 2 }
 0x107   :  { %18040 = vst [vmem:[#allocation339_spill] sm:$0xff] %v8391_v26  ;;  %18041 = vst [vmem:[#allocation340_spill] sm:$0xff] %v8396_v30  ;;  %v8443_v33 = vsel %vm17318_vm12, %v18053_v52, %v3229_v59  ;;  %v3070_v39 = vrot.slane %v8386_v22, 1  ;;  %926 = vrot.lane.b32.xlu1 %v8391_v26, %s5883_s16  ;;  %v18055_v38 = vrot.slane %v8121_v28, 1  ;;  %v18056_v7 = vrot.slane %v8126_v61, 1  ;;  %v170_v59 = vld [vmem:[%s17058_s1 + $0xe0] sm:$0xff] }
 0x108   :  { %18042 = vst [vmem:[#allocation341_spill] sm:$0xff] %v8400_v13  ;;  %18044 = vst [vmem:[#allocation111_spill] sm:$0xff] %v8405_v46  ;;  %v3227_v52 = vsel %vm1983_vm0, %v3067_v16, %v3068_v56  ;;  %v8470_v28 = vld [vmem:[%s17057_s0 + $0x3b8] sm:$0xff]  ;;  %v2683_v24 = vrot.slane %v8431_v63, 7  ;;  %v8484_v16 = vsel %vm17532_vm1, 0.0, %v8210_v42  ;;  %v8498_v61 = vsel %vm1594_vm2, %v2679_v37, %v2680_v12  ;;  %v8536_v37 = vld [vmem:[%s17057_s0 + $0x3c0] sm:$0xff] }
 0x109   :  { %18045 = vst [vmem:[#allocation342_spill] sm:$0xff] %v8409_v15  ;;  %18048 = vst [vmem:[#allocation343_spill] sm:$0xff] %v8425_v27  ;;  %v8433_v15 = vunpack.c.2.s8 %v169_v54  ;;  %v8456_v0 = vsel %vm1983_vm0, %v18056_v7, %v18055_v38  ;;  %v8463_v54 = vsel %vm1594_vm2, %v2680_v12, %v2681_v40  ;;  %v8475_v38 = vld [vmem:[%s17057_s0 + $0x3b0] sm:$0xff]  ;;  %v8494_v7 = vpop.permute.xlu0 %812  ;;  %v3071_v42 = vrot.slane %v8431_v63, 1  ;;  %v18066_v13 = vld [vmem:[#allocation117_spill] sm:$0xff] }
 0x10a   :  { %18049 = vst [vmem:[#allocation344_spill] sm:$0xff] %v8431_v63  ;;  %18052 = vst [vmem:[#allocation346_spill] sm:$0xff] %v8438_v2  ;;  %v18061_v27 = vld [vmem:[#allocation120_spill] sm:$0xff]  ;;  %v8492_v2 = vpop.permute.xlu1 %814  ;;  %v8505_v46 = vunpack.c.0.s8 %v170_v59  ;;  %v3225_v41 = vsel %vm1983_vm0, %v3069_v60, %v3070_v39  ;;  %928 = vrot.lane.b32.xlu0 %v8475_v38, %s5883_s16  ;;  %v18072_v12 = vrot.slane %v8193_v44, 1  ;;  %v18073_v63 = vrot.slane %v8198_v53, 1 }
 0x10b   :  { %18050 = vst [vmem:[#allocation345_spill] sm:$0xff] %v8433_v15  ;;  %18054 = vst [vmem:[#allocation115_spill] sm:$0xff] %v8443_v33  ;;  %vm17366_vm12 = vcmp.eq.s32.totalorder %v18061_v27, 2  ;;  %v8490_v33 = vsel %vm17532_vm1, 0.0, %v8212_v29  ;;  %v8510_v29 = vsel %vm17334_vm15, %v18066_v13, %v3227_v52  ;;  %930 = vrot.lane.b32.xlu1 %v8470_v28, %s5883_s16  ;;  %v8531_v52 = vld [vmem:[%s17057_s0 + $0x3c8] sm:$0xff]  ;;  %v8558_v44 = vsel %vm17532_vm1, 0.0, %v8281_v20 }
 0x10c   :  { %18057 = vst [vmem:[#allocation347_spill] sm:$0xff] %v8463_v54  ;;  %18058 = vst [vmem:[#allocation348_spill] sm:$0xff] %v8470_v28  ;;  %v2682_v54 = vrot.slane %v8386_v22, 7  ;;  %v8502_v22 = vsel %vm1983_vm0, %v3068_v56, %v3069_v60  ;;  %v2685_v56 = vrot.slane %v8484_v16, 7  ;;  %v2684_v13 = vrot.slane %v8490_v33, 7  ;;  %v171_v20 = vld [vmem:[%s17058_s1 + $0xe8] sm:$0xff] }
 0x10d   :  { %18059 = vst [vmem:[#allocation349_spill] sm:$0xff] %v8475_v38  ;;  %18060 = vst [vmem:[#allocation350_spill] sm:$0xff] %v8484_v16  ;;  %v8526_v60 = vsel %vm17532_vm1, 0.0, %v8283_v17  ;;  %v8562_v21 = vpop.permute.xlu0 %816  ;;  %v8717_v27 = vld [vmem:[%s17058_s1 + $0xf0] sm:$0xff]  ;;  %v8740_v9 = vsel %vm17532_vm1, 0.0, %v8492_v2 }
 0x10e   :  { %18062 = vst [vmem:[#allocation351_spill] sm:$0xff] %v8490_v33  ;;  %18063 = vst [vmem:[#allocation352_spill] sm:$0xff] %v8498_v61  ;;  %v8544_v61 = vsel %vm1983_vm0, %v18073_v63, %v18072_v12  ;;  %v8548_v17 = vsel %vm1594_vm2, %v2682_v54, %v2683_v24  ;;  %v8560_v53 = vpop.permute.xlu1 %818  ;;  %v8566_v63 = vsel %vm1983_vm0, %v3070_v39, %v3071_v42  ;;  %v18079_v12 = vld [vmem:[#allocation119_spill] sm:$0xff]  ;;  %932 = vrot.lane.b32.xlu0 %v8536_v37, %s5883_s16 }
 0x10f   :  { %18064 = vst [vmem:[#allocation353_spill] sm:$0xff] %v8502_v22  ;;  %18065 = vst [vmem:[#allocation354_spill] sm:$0xff] %v8505_v46  ;;  %v3072_v22 = vrot.slane %v8490_v33, 1  ;;  %v8574_v33 = vunpack.c.2.s8 %v170_v59  ;;  %934 = vrot.lane.b32.xlu1 %v8531_v52, %s5883_s16  ;;  %v18082_v39 = vrot.slane %v8259_v19, 1  ;;  %v8604_v19 = vsel %vm17532_vm1, 0.0, %v8356_v23 }
 0x110   :  { %18067 = vst [vmem:[#allocation117_spill] sm:$0xff] %v8510_v29  ;;  %18069 = vst [vmem:[#allocation355_spill] sm:$0xff] %v8526_v60  ;;  %v8552_v29 = vsel %vm1594_vm2, %v2681_v40, %v2682_v54  ;;  %v8571_v40 = vsel %vm17330_vm14, %v18079_v12, %v3225_v41  ;;  %v3073_v54 = vrot.slane %v8484_v16, 1  ;;  %v18083_v41 = vrot.slane %v8264_v18, 1 }
 0x111   :  { %18070 = vst [vmem:[#allocation356_spill] sm:$0xff] %v8531_v52  ;;  %18071 = vst [vmem:[#allocation357_spill] sm:$0xff] %v8536_v37  ;;  %vm17352_vm14 = vcmp.eq.s32.totalorder %v18086_v14, 2  ;;  %v8618_v12 = vsel %vm1594_vm2, %v2683_v24, %v2684_v13  ;;  %v3223_v16 = vsel %vm1983_vm0, %v3071_v42, %v3072_v22  ;;  %v8624_v23 = vpop.permute.xlu0 %820  ;;  %v3075_v24 = vrot.slane %v8558_v44, 1 }
 0x112   :  { %18074 = vst [vmem:[#allocation358_spill] sm:$0xff] %v8544_v61  ;;  %18075 = vst [vmem:[#allocation359_spill] sm:$0xff] %v8548_v17  ;;  %v3074_v17 = vrot.slane %v8526_v60, 1  ;;  %v8590_v59 = vsel %vm1983_vm0, %v18083_v41, %v18082_v39  ;;  %v8609_v39 = vld [vmem:[%s17057_s0 + $0x3d8] sm:$0xff]  ;;  %v8614_v41 = vld [vmem:[%s17057_s0 + $0x3d0] sm:$0xff]  ;;  %v8622_v18 = vpop.permute.xlu1 %822  ;;  %v8636_v61 = vsel %vm1983_vm0, %v3072_v22, %v3073_v54  ;;  %v8642_v42 = vsel %vm17532_vm1, 0.0, %v8354_v25 }
 0x113   :  { %18076 = vst [vmem:[#allocation360_spill] sm:$0xff] %v8552_v29  ;;  %18077 = vst [vmem:[#allocation361_spill] sm:$0xff] %v8558_v44  ;;  %v8596_v29 = vsel %vm1594_vm2, %v2684_v13, %v2685_v56  ;;  %v18096_v13 = vld [vmem:[#allocation128_spill] sm:$0xff]  ;;  %v8652_v22 = vsel %vm17532_vm1, 0.0, %v8413_v5  ;;  %938 = vrot.lane.b32.xlu1 %v8609_v39, %s5883_s16  ;;  %936 = vrot.lane.b32.xlu0 %v8614_v41, %s5883_s16  ;;  %v8680_v25 = vld [vmem:[%s17057_s0 + $0x3e0] sm:$0xff] }
 0x114   :  { %18078 = vst [vmem:[#allocation362_spill] sm:$0xff] %v8566_v63  ;;  %18080 = vst [vmem:[#allocation119_spill] sm:$0xff] %v8571_v40  ;;  %v2687_v40 = vrot.slane %v8558_v44, 7  ;;  %v2686_v63 = vrot.slane %v8526_v60, 7  ;;  %v8626_v60 = vunpack.c.0.s8 %v171_v20  ;;  %vm17357_vm15 = vcmp.eq.s32.totalorder %v18096_v13, 2  ;;  %v8675_v44 = vld [vmem:[%s17057_s0 + $0x3e8] sm:$0xff] }
 0x115   :  { %18081 = vst [vmem:[#allocation363_spill] sm:$0xff] %v8574_v33  ;;  %18084 = vst [vmem:[#allocation364_spill] sm:$0xff] %v8590_v59  ;;  %v3221_v6 = vsel %vm1983_vm0, %v3073_v54, %v3074_v17  ;;  %v9171_v13 = vld [vmem:[%s17057_s0 + $0x58] sm:$0xff] }
 0x116   :  { %18085 = vst [vmem:[#allocation365_spill] sm:$0xff] %v8596_v29  ;;  %18087 = vst [vmem:[#allocation366_spill] sm:$0xff] %v8604_v19  ;;  %v18092_v29 = vld [vmem:[#allocation60_spill] sm:$0xff]  ;;  %v8666_v54 = vsel %vm1594_vm2, %v2686_v63, %v2687_v40  ;;  %v8670_v5 = vsel %vm1594_vm2, %v2685_v56, %v2686_v63  ;;  %v2689_v56 = vrot.slane %v8642_v42, 7  ;;  %v2688_v63 = vrot.slane %v8604_v19, 7 }
 0x117   :  { %18088 = vst [vmem:[#allocation367_spill] sm:$0xff] %v8609_v39  ;;  %18089 = vst [vmem:[#allocation368_spill] sm:$0xff] %v8614_v41  ;;  %v8632_v59 = vsel %vm17344_vm13, %v18092_v29, %v7016_v49  ;;  %v3076_v49 = vrot.slane %v8604_v19, 1  ;;  %v18098_v29 = vld [vmem:[#allocation123_spill] sm:$0xff]  ;;  %v3077_v19 = vrot.slane %v8642_v42, 1  ;;  %942 = vrot.lane.b32.xlu1 %v8675_v44, %s5883_s16  ;;  %940 = vrot.lane.b32.xlu0 %v8680_v25, %s5883_s16 }
 0x118   :  { %18090 = vst [vmem:[#allocation369_spill] sm:$0xff] %v8618_v12  ;;  %18091 = vst [vmem:[#allocation370_spill] sm:$0xff] %v8626_v60  ;;  %v8662_v12 = vsel %vm17366_vm12, %v18098_v29, %v3223_v16  ;;  %v18104_v16 = vrot.slane %v8325_v8, 1  ;;  %v18105_v29 = vrot.slane %v8330_v45, 1  ;;  %v8701_v8 = vunpack.c.2.s8 %v171_v20 }
 0x119   :  { %18093 = vst [vmem:[#allocation60_spill] sm:$0xff] %v8632_v59  ;;  %18094 = vst [vmem:[#allocation371_spill] sm:$0xff] %v8636_v61  ;;  %v8699_v61 = vpop.permute.xlu0 %824  ;;  %v8705_v45 = vsel %vm1983_vm0, %v3074_v17, %v3075_v24  ;;  %v3219_v20 = vsel %vm1983_vm0, %v3075_v24, %v3076_v49  ;;  %v18113_v17 = vrot.slane %v8396_v30, 1  ;;  %v8760_v2 = vsel %vm1594_vm2, %v2687_v40, %v2688_v63 }
 0x11a   :  { %18095 = vst [vmem:[#allocation372_spill] sm:$0xff] %v8642_v42  ;;  %18097 = vst [vmem:[#allocation373_spill] sm:$0xff] %v8652_v22  ;;  %v140_v42 = vld [vmem:[%s17057_s0 + $0x3f0] sm:$0xff]  ;;  %v8768_v59 = vunpack.c.0.s8 %v8717_v27  ;;  %v18128_v40 = vrot.slane %v8470_v28, 1 }
 0x11b   :  { %18099 = vst [vmem:[#allocation123_spill] sm:$0xff] %v8662_v12  ;;  %18100 = vst [vmem:[#allocation374_spill] sm:$0xff] %v8666_v54  ;;  %v8688_v54 = vsel %vm1983_vm0, %v18105_v29, %v18104_v16  ;;  %v8697_v12 = vpop.permute.xlu1 %826  ;;  %v18110_v16 = vld [vmem:[#allocation125_spill] sm:$0xff]  ;;  %944 = vrot.lane.b32.xlu0 %v140_v42, %s5883_s16  ;;  %v18134_v28 = vld [vmem:[#allocation144_spill] sm:$0xff] }
 0x11c   :  { %18101 = vst [vmem:[#allocation375_spill] sm:$0xff] %v8670_v5  ;;  %18102 = vst [vmem:[#allocation376_spill] sm:$0xff] %v8675_v44  ;;  %v8695_v5 = vsel %vm17532_vm1, 0.0, %v8411_v48  ;;  %v8710_v29 = vsel %vm17347_vm11, %v18110_v16, %v3221_v6  ;;  %v3078_v48 = vrot.slane %v8652_v22, 1  ;;  %v18112_v6 = vrot.slane %v8391_v26, 1  ;;  %v18116_v26 = vld [vmem:[#allocation133_spill] sm:$0xff] }
 0x11d   :  { %18103 = vst [vmem:[#allocation377_spill] sm:$0xff] %v8680_v25  ;;  %18106 = vst [vmem:[#allocation378_spill] sm:$0xff] %v8688_v54  ;;  %v2691_v24 = vrot.slane %v8695_v5, 7  ;;  %vm17364_vm13 = vcmp.eq.s32.totalorder %v18116_v26, 2  ;;  %v3079_v30 = vrot.slane %v8695_v5, 1  ;;  %v18122_v54 = vld [vmem:[#allocation137_spill] sm:$0xff] }
 0x11e   :  { %18107 = vst [vmem:[#allocation379_spill] sm:$0xff] %v8695_v5  ;;  %18108 = vst [vmem:[#allocation380_spill] sm:$0xff] %v8701_v8  ;;  %v8731_v16 = vsel %vm1983_vm0, %v18113_v17, %v18112_v6  ;;  %v8746_v6 = vsel %vm17532_vm1, 0.0, %v8494_v7  ;;  %v141_v17 = vld [vmem:[%s17057_s0 + $0x3f8] sm:$0xff]  ;;  %vm17370_vm11 = vcmp.eq.s32.totalorder %v18122_v54, 2  ;;  %v18123_v5 = vld [vmem:[#allocation127_spill] sm:$0xff] }
 0x11f   :  { %18109 = vst [vmem:[#allocation381_spill] sm:$0xff] %v8705_v45  ;;  %18111 = vst [vmem:[#allocation125_spill] sm:$0xff] %v8710_v29  ;;  %v2690_v45 = vrot.slane %v8652_v22, 7  ;;  %v8756_v29 = vsel %vm1594_vm2, %v2688_v63, %v2689_v56  ;;  %v8763_v7 = vpop.permute.xlu1 %830  ;;  %v8765_v22 = vpop.permute.xlu0 %828  ;;  %v2692_v8 = vrot.slane %v8746_v6, 7  ;;  %946 = vrot.lane.b32.xlu1 %v141_v17, %s5883_s16  ;;  %v18129_v63 = vrot.slane %v8475_v38, 1  ;;  %v18131_v17 = vld [vmem:[#allocation130_spill] sm:$0xff] }
 0x120   :  { %18114 = vst [vmem:[#allocation382_spill] sm:$0xff] %v8731_v16  ;;  %18115 = vst [vmem:[#allocation383_spill] sm:$0xff] %v8740_v9  ;;  %v8772_v16 = vsel %vm1983_vm0, %v3076_v49, %v3077_v19  ;;  %v8789_v49 = vsel %vm17532_vm1, 0.0, %v8562_v21  ;;  %v8812_v42 = vsel %vm1983_vm0, %v3078_v48, %v3079_v30  ;;  %v18137_v38 = vrot.slane %v8536_v37, 1 }
 0x121   :  { %18117 = vst [vmem:[#allocation384_spill] sm:$0xff] %v8746_v6  ;;  %18118 = vst [vmem:[#allocation385_spill] sm:$0xff] %v8756_v29  ;;  %v3217_v29 = vsel %vm1983_vm0, %v3077_v19, %v3078_v48  ;;  %v8795_v19 = vsel %vm1594_vm2, %v2690_v45, %v2691_v24  ;;  %v8808_v21 = vsel %vm1983_vm0, %v18129_v63, %v18128_v40  ;;  %v3082_v48 = vrot.slane %v8789_v49, 1 }
 0x122   :  { %18119 = vst [vmem:[#allocation386_spill] sm:$0xff] %v8760_v2  ;;  %18120 = vst [vmem:[#allocation387_spill] sm:$0xff] %v8768_v59  ;;  %v8782_v2 = vsel %vm17352_vm14, %v18123_v5, %v3219_v20  ;;  %v2693_v59 = vrot.slane %v8740_v9, 7  ;;  %v8799_v5 = vsel %vm1594_vm2, %v2689_v56, %v2690_v45  ;;  %v3080_v20 = vrot.slane %v8746_v6, 1 }
 0x123   :  { %18121 = vst [vmem:[#allocation388_spill] sm:$0xff] %v8772_v16  ;;  %18124 = vst [vmem:[#allocation127_spill] sm:$0xff] %v8782_v2  ;;  %v3081_v45 = vrot.slane %v8740_v9, 1  ;;  %v8823_v56 = vsel %vm17532_vm1, 0.0, %v8560_v53  ;;  %vm17372_vm14 = vcmp.eq.s32.totalorder %v18134_v28, 2  ;;  %v8826_v40 = vpop.permute.xlu1 %834  ;;  %v8828_v63 = vpop.permute.xlu0 %832 }
 0x124   :  { %18125 = vst [vmem:[#allocation389_spill] sm:$0xff] %v8789_v49  ;;  %18126 = vst [vmem:[#allocation390_spill] sm:$0xff] %v8795_v19  ;;  %v8817_v19 = vsel %vm17357_vm15, %v18131_v17, %v3217_v29  ;;  %v8834_v29 = vsel %vm17532_vm1, 0.0, %v8624_v23  ;;  %v18136_v17 = vrot.slane %v8531_v52, 1  ;;  %v8847_v6 = vsel %vm1594_vm2, %v2692_v8, %v2693_v59 }
 0x125   :  { %18127 = vst [vmem:[#allocation391_spill] sm:$0xff] %v8799_v5  ;;  %18130 = vst [vmem:[#allocation392_spill] sm:$0xff] %v8812_v42  ;;  %v8851_v5 = vsel %vm1594_vm2, %v2691_v24, %v2692_v8  ;;  %v8856_v23 = vsel %vm17532_vm1, 0.0, %v8622_v18  ;;  %v3215_v8 = vsel %vm1983_vm0, %v3079_v30, %v3080_v20  ;;  %v2695_v24 = vrot.slane %v8823_v56, 7 }
 0x126   :  { %18132 = vst [vmem:[#allocation130_spill] sm:$0xff] %v8817_v19  ;;  %18133 = vst [vmem:[#allocation393_spill] sm:$0xff] %v8823_v56  ;;  %v8842_v53 = vsel %vm1983_vm0, %v18137_v38, %v18136_v17  ;;  %v8861_v38 = vld [vmem:[%s17057_s0 + $0x8] sm:$0xff]  ;;  %v8868_v17 = vld [vmem:[%s17057_s0] sm:$0xff]  ;;  %v3083_v9 = vrot.slane %v8823_v56, 1  ;;  %v2694_v52 = vrot.slane %v8789_v49, 7  ;;  %v8891_v56 = vsel %vm1983_vm0, %v3080_v20, %v3081_v45 }
 0x127   :  { %18135 = vst [vmem:[#allocation394_spill] sm:$0xff] %v8834_v29  ;;  %18138 = vst [vmem:[#allocation395_spill] sm:$0xff] %v8847_v6  ;;  %1078 = vrot.lane.b32.xlu1 %v8861_v38, %s5884_s21  ;;  %1076 = vrot.lane.b32.xlu0 %v8868_v17, %s5884_s21  ;;  %vm17379_vm15 = vcmp.eq.s32.totalorder %v6978_v58, 2  ;;  %v3084_v37 = vrot.slane %v8834_v29, 1  ;;  %v8883_v6 = vsel %vm17532_vm1, 0.0, %v8699_v61  ;;  %v837_v18 = vpop.permute.xlu0 %836  ;;  %v3213_v49 = vsel %vm1983_vm0, %v3081_v45, %v3082_v48  ;;  %v18144_v61 = vld [vmem:[#allocation136_spill] sm:$0xff] }
 0x128   :  { %18139 = vst [vmem:[#allocation396_spill] sm:$0xff] %v8851_v5  ;;  %18140 = vst [vmem:[#allocation397_spill] sm:$0xff] %v8856_v23  ;;  %v8885_v5 = vpop.permute.xlu1 %838  ;;  %v2697_v42 = vrot.slane %v8856_v23, 7  ;;  %v2696_v2 = vrot.slane %v8834_v29, 7  ;;  %v8900_v16 = vsel %vm17364_vm13, %v18144_v61, %v3215_v8  ;;  %v3085_v30 = vrot.slane %v8856_v23, 1  ;;  %v8911_v20 = vld [vmem:[%s17057_s0 + $0x18] sm:$0xff] }
 0x129   :  { %18141 = vst [vmem:[#allocation398_spill] sm:$0xff] %v8868_v17  ;;  %18142 = vst [vmem:[#allocation399_spill] sm:$0xff] %v8883_v6  ;;  %v8906_v19 = vsel %vm17532_vm1, 0.0, %v8697_v12  ;;  %v5597_v45 = vld [vmem:[%s17057_s0 + $0x10] sm:$0xff]  ;;  %v18147_v8 = vrot.slane %v8609_v39, 1  ;;  %v18148_v61 = vrot.slane %v8614_v41, 1  ;;  %v8929_v23 = vsel %vm1594_vm2, %v2694_v52, %v2695_v24 }
 0x12a   :  { %18143 = vst [vmem:[#allocation400_spill] sm:$0xff] %v8891_v56  ;;  %18145 = vst [vmem:[#allocation136_spill] sm:$0xff] %v8900_v16  ;;  %v8933_v29 = vsel %vm1594_vm2, %v2693_v59, %v2694_v52  ;;  %v8937_v16 = vsel %vm1983_vm0, %v3082_v48, %v3083_v9  ;;  %v3086_v39 = vrot.slane %v8883_v6, 1  ;;  %vm17386_vm13 = vcmp.eq.s32.totalorder %v7065_v31, 2  ;;  %v18152_v41 = vld [vmem:[#allocation138_spill] sm:$0xff] }
 0x12b   :  { %18146 = vst [vmem:[#allocation401_spill] sm:$0xff] %v8906_v19  ;;  %1082 = vrot.lane.b32.xlu1 %v8911_v20, %s5884_s21  ;;  %1080 = vrot.lane.b32.xlu0 %v5597_v45, %s5884_s21  ;;  %v8925_v12 = vsel %vm1983_vm0, %v18148_v61, %v18147_v8  ;;  %18149 = vst [vmem:[#allocation402_spill] sm:$0xff] %v8929_v23  ;;  %vm4054_vm12 = vcmp.eq.s32.totalorder %v18152_v41, 2  ;;  %v18153_v8 = vld [vmem:[#allocation2_spill] sm:$0xff]  ;;  %v3211_v23 = vsel %vm1983_vm0, %v3083_v9, %v3084_v37  ;;  %v841_v48 = vpop.permute.xlu0 %840 }
 0x12c   :  { %18150 = vst [vmem:[#allocation403_spill] sm:$0xff] %v8933_v29  ;;  %18151 = vst [vmem:[#allocation404_spill] sm:$0xff] %v8937_v16  ;;  %v8945_v61 = vsel %vm17370_vm11, %v18153_v8, %v3213_v49  ;;  %v8952_v52 = vsel %vm17532_vm1, 0.0, %v8765_v22  ;;  %v8954_v59 = vpop.permute.xlu1 %842  ;;  %v18156_v29 = vrot.slane %v8675_v44, 1  ;;  %v18157_v16 = vrot.slane %v8680_v25, 1  ;;  %v8988_v25 = vld [vmem:[%s17057_s0 + $0x28] sm:$0xff] }
 0x12d   :  { %18154 = vst [vmem:[#allocation138_spill] sm:$0xff] %v8945_v61  ;;  %18155 = vst [vmem:[#allocation2_spill] sm:$0xff] %v8952_v52  ;;  %v8966_v49 = vsel %vm1594_vm2, %v2696_v2, %v2697_v42  ;;  %v2699_v9 = vrot.slane %v8906_v19, 7  ;;  %v2698_v22 = vrot.slane %v8883_v6, 7  ;;  %v1467_v8 = vrot.slane %v8861_v38, 7 }
 0x12e   :  { %v8962_v56 = vsel %vm1983_vm0, %v18157_v16, %v18156_v29  ;;  %18159 = vst [vmem:[#allocation406_spill] sm:$0xff] %v8966_v49  ;;  %v8973_v61 = vsel %vm1594_vm2, %v2695_v24, %v2696_v2  ;;  %v8977_v44 = vsel %vm1983_vm0, %v3084_v37, %v3085_v30  ;;  %v3087_v16 = vrot.slane %v8906_v19, 1  ;;  %v8995_v37 = vld [vmem:[%s17057_s0 + $0x20] sm:$0xff] }
 0x12f   :  { %18158 = vst [vmem:[#allocation405_spill] sm:$0xff] %v8962_v56  ;;  %18160 = vst [vmem:[#allocation407_spill] sm:$0xff] %v8973_v61  ;;  %v8983_v29 = vsel %vm17532_vm1, 0.0, %v8763_v7  ;;  %1086 = vrot.lane.b32.xlu1 %v8988_v25, %s5884_s21  ;;  %1084 = vrot.lane.b32.xlu0 %v8995_v37, %s5884_s21  ;;  %v9002_v2 = vsel %vm17372_vm14, %v6976_v36, %v3211_v23  ;;  %v3209_v7 = vsel %vm1983_vm0, %v3085_v30, %v3086_v39  ;;  %v845_v23 = vpop.permute.xlu0 %844 }
 0x130   :  { %18161 = vst [vmem:[#allocation408_spill] sm:$0xff] %v8977_v44  ;;  %18162 = vst [vmem:[#allocation409_spill] sm:$0xff] %v8983_v29  ;;  %v3088_v38 = vrot.slane %v8952_v52, 1  ;;  %v9011_v19 = vsel %vm17532_vm1, 0.0, %v8826_v40  ;;  %vm17392_vm11 = vcmp.eq.s32.totalorder %v7130_v35, 2  ;;  %v9017_v6 = vsel %vm17532_vm1, 0.0, %v8828_v63  ;;  %v9019_v36 = vpop.permute.xlu1 %846 }
 0x131   :  { %18163 = vst [vmem:[#allocation410_spill] sm:$0xff] %v9002_v2  ;;  %18164 = vst [vmem:[#allocation411_spill] sm:$0xff] %v9011_v19  ;;  %v1468_v30 = vrot.slane %v5597_v45, 7  ;;  %v9024_v24 = vsel %vm1594_vm2, %v2698_v22, %v2699_v9  ;;  %v2701_v40 = vrot.slane %v8983_v29, 7  ;;  %v3089_v61 = vrot.slane %v8983_v29, 1 }
 0x132   :  { %18165 = vst [vmem:[#allocation412_spill] sm:$0xff] %v9017_v6  ;;  %18166 = vst [vmem:[#allocation413_spill] sm:$0xff] %v9024_v24  ;;  %v2700_v2 = vrot.slane %v8952_v52, 7  ;;  %vm17394_vm14 = vcmp.eq.s32.totalorder %v7198_v32, 2  ;;  %v9032_v63 = vsel %vm1594_vm2, %v2697_v42, %v2698_v22  ;;  %v9036_v45 = vsel %vm1983_vm0, %v3086_v39, %v3087_v16  ;;  %v9050_v52 = vld [vmem:[%s17057_s0 + $0x38] sm:$0xff]  ;;  %v9057_v39 = vld [vmem:[%s17057_s0 + $0x30] sm:$0xff] }
 0x133   :  { %18167 = vst [vmem:[#allocation414_spill] sm:$0xff] %v9032_v63  ;;  %18168 = vst [vmem:[#allocation415_spill] sm:$0xff] %v9036_v45  ;;  %v9041_v49 = vsel %vm17379_vm15, %v7051_v50, %v3209_v7  ;;  %v9045_v29 = vsel %vm17532_vm1, 0.0, %v837_v18  ;;  %1090 = vrot.lane.b32.xlu1 %v9050_v52, %s5884_s21  ;;  %1088 = vrot.lane.b32.xlu0 %v9057_v39, %s5884_s21  ;;  %v3207_v50 = vsel %vm1983_vm0, %v3087_v16, %v3088_v38  ;;  %v849_v16 = vpop.permute.xlu0 %848  ;;  %v18224_v32 = vld [vmem:[#allocation8_spill] sm:$0xff] }
 0x134   :  { %18169 = vst [vmem:[#allocation416_spill] sm:$0xff] %v9041_v49  ;;  %18170 = vst [vmem:[#allocation417_spill] sm:$0xff] %v9045_v29  ;;  %v2703_v42 = vrot.slane %v9011_v19, 7  ;;  %v2702_v18 = vrot.slane %v9017_v6, 7  ;;  %v18171_v22 = vrot.slane %v8868_v17, 7  ;;  %v3090_v24 = vrot.slane %v9017_v6, 1  ;;  %v9077_v49 = vpop.permute.xlu1 %850 }
 0x135   :  { %v9075_v63 = vsel %vm17532_vm1, 0.0, %v8885_v5  ;;  %v18174_v45 = vrot.slane %v8911_v20, 7  ;;  %v9091_v17 = vsel %vm1594_vm2, %v2700_v2, %v2701_v40  ;;  %v9095_v5 = vsel %vm1594_vm2, %v2699_v9, %v2700_v2  ;;  %v9116_v9 = vld [vmem:[%s17057_s0 + $0x48] sm:$0xff]  ;;  %v9123_v2 = vld [vmem:[%s17057_s0 + $0x40] sm:$0xff] }
 0x136   :  { %v9069_v7 = vsel %vm1594_vm2, %v18171_v22, %v1467_v8  ;;  %18173 = vst [vmem:[#allocation419_spill] sm:$0xff] %v9075_v63  ;;  %v9087_v22 = vsel %vm1594_vm2, %v1467_v8, %v1468_v30  ;;  %18177 = vst [vmem:[#allocation422_spill] sm:$0xff] %v9091_v17  ;;  %v9099_v6 = vsel %vm1983_vm0, %v3088_v38, %v3089_v61  ;;  %v3092_v58 = vrot.slane %v9045_v29, 1  ;;  %v18183_v38 = vld [vmem:[#allocation148_spill] sm:$0xff] }
 0x137   :  { %18172 = vst [vmem:[#allocation418_spill] sm:$0xff] %v9069_v7  ;;  %v9083_v44 = vsel %vm1594_vm2, %v1468_v30, %v18174_v45  ;;  %18176 = vst [vmem:[#allocation421_spill] sm:$0xff] %v9087_v22  ;;  %vm17406_vm15 = vcmp.eq.s32.totalorder %v7259_v11, 2  ;;  %v18180_v45 = vld [vmem:[#allocation163_spill] sm:$0xff]  ;;  %v3091_v30 = vrot.slane %v9011_v19, 1  ;;  %v9111_v17 = vsel %vm17532_vm1, 0.0, %v841_v48  ;;  %1094 = vrot.lane.b32.xlu1 %v9116_v9, %s5884_s21  ;;  %1092 = vrot.lane.b32.xlu0 %v9123_v2, %s5884_s21 }
 0x138   :  { %18175 = vst [vmem:[#allocation420_spill] sm:$0xff] %v9083_v44  ;;  %18178 = vst [vmem:[#allocation423_spill] sm:$0xff] %v9095_v5  ;;  %v9106_v8 = vsel %vm17386_vm13, %v18180_v45, %v3207_v50  ;;  %v18184_v50 = vld [vmem:[#allocation4_spill] sm:$0xff]  ;;  %v9135_v45 = vsel %vm1594_vm2, %v2702_v18, %v2703_v42  ;;  %v2705_v19 = vrot.slane %v9075_v63, 7  ;;  %v2704_v5 = vrot.slane %v9045_v29, 7  ;;  %v855_v31 = vpop.permute.xlu1 %854  ;;  %v5604_v29 = vld [vmem:[%s17058_s1 + $0x8] sm:$0xff] }
 0x139   :  { %18179 = vst [vmem:[#allocation424_spill] sm:$0xff] %v9099_v6  ;;  %18181 = vst [vmem:[#allocation163_spill] sm:$0xff] %v9106_v8  ;;  %v9131_v48 = vsel %vm4054_vm12, %v18184_v50, %v18183_v38  ;;  %v9142_v8 = vsel %vm17532_vm1, 0.0, %v8954_v59  ;;  %v9146_v6 = vsel %vm1594_vm2, %v2701_v40, %v2702_v18  ;;  %v3205_v38 = vsel %vm1983_vm0, %v3089_v61, %v3090_v24  ;;  %v18189_v40 = vld [vmem:[#allocation195_spill] sm:$0xff]  ;;  %v18191_v61 = vld [vmem:[#allocation5_spill] sm:$0xff] }
 0x13a   :  { %18182 = vst [vmem:[#allocation425_spill] sm:$0xff] %v9111_v17  ;;  %18185 = vst [vmem:[#allocation148_spill] sm:$0xff] %v9131_v48  ;;  %v3093_v50 = vrot.slane %v9075_v63, 1  ;;  %v9154_v28 = vunpack.c.0.s8 %v5604_v29  ;;  %v3203_v59 = vsel %vm1983_vm0, %v3091_v30, %v3092_v58  ;;  %v3094_v54 = vrot.slane %v9111_v17, 1  ;;  %v18196_v48 = vld [vmem:[#allocation173_spill] sm:$0xff] }
 0x13b   :  { %18186 = vst [vmem:[#allocation4_spill] sm:$0xff] %v9135_v45  ;;  %18187 = vst [vmem:[#allocation426_spill] sm:$0xff] %v9142_v8  ;;  %v853_v45 = vpop.permute.xlu0 %852  ;;  %vm17408_vm13 = vcmp.eq.s32.totalorder %v18189_v40, 2  ;;  %v1470_v18 = vrot.slane %v8995_v37, 7  ;;  %v2707_v63 = vrot.slane %v9142_v8, 7  ;;  %v9166_v26 = vsel %vm17532_vm1, 0.0, %v845_v23  ;;  %1098 = vrot.lane.b32.xlu1 %v9171_v13, %s5884_s21 }
 0x13c   :  { %18188 = vst [vmem:[#allocation427_spill] sm:$0xff] %v9146_v6  ;;  %v2706_v6 = vrot.slane %v9111_v17, 7  ;;  %18190 = vst [vmem:[#allocation428_spill] sm:$0xff] %v9166_v26  ;;  %v9178_v37 = vld [vmem:[%s17057_s0 + $0x50] sm:$0xff]  ;;  %v18192_v17 = vrot.slane %v18191_v61, 1  ;;  %v18193_v23 = vld [vmem:[#allocation6_spill] sm:$0xff]  ;;  %v9190_v22 = vsel %vm1983_vm0, %v3090_v24, %v3091_v30  ;;  %v9195_v7 = vsel %vm17392_vm11, %v18196_v48, %v3205_v38 }
 0x13d   :  { %1096 = vrot.lane.b32.xlu0 %v9178_v37, %s5884_s21  ;;  %v18194_v14 = vrot.slane %v18193_v23, 1  ;;  %18195 = vst [vmem:[#allocation5_spill] sm:$0xff] %v9190_v22  ;;  %18197 = vst [vmem:[#allocation6_spill] sm:$0xff] %v9195_v7  ;;  %v9199_v56 = vsel %vm1594_vm2, %v2704_v5, %v2705_v19  ;;  %v9203_v61 = vsel %vm1594_vm2, %v2703_v42, %v2704_v5  ;;  %v3095_v30 = vrot.slane %v9142_v8, 1  ;;  %v18204_v38 = vld [vmem:[#allocation204_spill] sm:$0xff]  ;;  %v859_v42 = vpop.permute.xlu1 %858 }
 0x13e   :  { %18198 = vst [vmem:[#allocation173_spill] sm:$0xff] %v9199_v56  ;;  %18199 = vst [vmem:[#allocation429_spill] sm:$0xff] %v9203_v61  ;;  %v9218_v48 = vsel %vm17532_vm1, 0.0, %v9019_v36  ;;  %vm17413_vm11 = vcmp.eq.s32.totalorder %v18204_v38, 2  ;;  %v3096_v23 = vrot.slane %v9166_v26, 1  ;;  %v9236_v36 = vsel %vm1594_vm2, %v2706_v6, %v2707_v63 }
 0x13f   :  { %v2106_v44 = vsel %vm1983_vm0, %v18194_v14, %v18192_v17  ;;  %v9207_v14 = vsel %vm1983_vm0, %v3092_v58, %v3093_v50  ;;  %v18201_v17 = vld [vmem:[#allocation183_spill] sm:$0xff]  ;;  %18203 = vst [vmem:[#allocation431_spill] sm:$0xff] %v9218_v48  ;;  %v857_v5 = vpop.permute.xlu0 %856  ;;  %v3201_v58 = vsel %vm1983_vm0, %v3093_v50, %v3094_v54  ;;  %18208 = vst [vmem:[#allocation434_spill] sm:$0xff] %v9236_v36  ;;  %v2708_v36 = vrot.slane %v9166_v26, 7 }
 0x140   :  { %18200 = vst [vmem:[#allocation430_spill] sm:$0xff] %v9207_v14  ;;  %v9212_v24 = vsel %vm17394_vm14, %v18201_v17, %v3203_v59  ;;  %v9226_v59 = vsel %vm17532_vm1, 0.0, %v849_v16  ;;  %v18206_v17 = vrot.slane %v8988_v25, 7  ;;  %v9240_v56 = vsel %vm1594_vm2, %v2705_v19, %v2706_v6  ;;  %v9245_v50 = vld [vmem:[%s17057_s0 + $0x68] sm:$0xff]  ;;  %v9252_v16 = vld [vmem:[%s17057_s0 + $0x60] sm:$0xff] }
 0x141   :  { %18202 = vst [vmem:[#allocation183_spill] sm:$0xff] %v9212_v24  ;;  %18205 = vst [vmem:[#allocation432_spill] sm:$0xff] %v9226_v59  ;;  %1102 = vrot.lane.b32.xlu1 %v9245_v50, %s5884_s21  ;;  %1100 = vrot.lane.b32.xlu0 %v9252_v16, %s5884_s21  ;;  %vm17525_vm14 = vcmp.eq.s32.totalorder %v9154_v28, 2  ;;  %v2709_v19 = vrot.slane %v9218_v48, 7  ;;  %v9270_v61 = vunpack.c.2.s8 %v5604_v29  ;;  %v18214_v24 = vld [vmem:[#allocation191_spill] sm:$0xff]  ;;  %v3098_v26 = vrot.slane %v9226_v59, 1  ;;  %v863_v7 = vpop.permute.xlu1 %862 }
 0x142   :  { %v9232_v8 = vsel %vm1594_vm2, %v1470_v18, %v18206_v17  ;;  %18209 = vst [vmem:[#allocation435_spill] sm:$0xff] %v9240_v56  ;;  %v18210_v17 = vrot.slane %v8911_v20, 7  ;;  %v9268_v56 = vsel %vm17532_vm1, 0.0, %v9077_v49  ;;  %v9274_v20 = vsel %vm1983_vm0, %v3094_v54, %v3095_v30  ;;  %v18216_v14 = vld [vmem:[#allocation210_spill] sm:$0xff] }
 0x143   :  { %18207 = vst [vmem:[#allocation433_spill] sm:$0xff] %v9232_v8  ;;  %18212 = vst [vmem:[#allocation437_spill] sm:$0xff] %v9268_v56  ;;  %vm17418_vm10 = vcmp.eq.s32.totalorder %v18216_v14, 2  ;;  %v861_v49 = vpop.permute.xlu0 %860  ;;  %v3199_v29 = vsel %vm1983_vm0, %v3095_v30, %v3096_v23  ;;  %v9288_v54 = vsel %vm17532_vm1, 0.0, %v853_v45  ;;  %v9297_v11 = vsel %vm17532_vm1, 0.0, %v855_v31  ;;  %v9302_v30 = vld [vmem:[%s17057_s0 + $0x78] sm:$0xff] }
 0x144   :  { %v9260_v6 = vsel %vm1594_vm2, %v18210_v17, %v1470_v18  ;;  %18213 = vst [vmem:[#allocation438_spill] sm:$0xff] %v9274_v20  ;;  %v9279_v18 = vsel %vm17406_vm15, %v18214_v24, %v3201_v58  ;;  %v3097_v17 = vrot.slane %v9218_v48, 1  ;;  %18217 = vst [vmem:[#allocation439_spill] sm:$0xff] %v9288_v54  ;;  %v1472_v20 = vrot.slane %v9057_v39, 7  ;;  %v9309_v39 = vld [vmem:[%s17057_s0 + $0x70] sm:$0xff]  ;;  %v18221_v24 = vld [vmem:[#allocation159_spill] sm:$0xff] }
 0x145   :  { %18211 = vst [vmem:[#allocation436_spill] sm:$0xff] %v9260_v6  ;;  %18215 = vst [vmem:[#allocation191_spill] sm:$0xff] %v9279_v18  ;;  %v2711_v58 = vrot.slane %v9268_v56, 7  ;;  %v3099_v48 = vrot.slane %v9268_v56, 1  ;;  %v2710_v18 = vrot.slane %v9226_v59, 7  ;;  %1106 = vrot.lane.b32.xlu1 %v9302_v30, %s5884_s21  ;;  %1104 = vrot.lane.b32.xlu0 %v9309_v39, %s5884_s21  ;;  %v9315_v31 = vsel %vm1594_vm2, %v2708_v36, %v2709_v19  ;;  %v18222_v59 = vld [vmem:[#allocation7_spill] sm:$0xff] }
 0x146   :  { %18218 = vst [vmem:[#allocation440_spill] sm:$0xff] %v9297_v11  ;;  %18219 = vst [vmem:[#allocation441_spill] sm:$0xff] %v9315_v31  ;;  %v9319_v45 = vsel %vm1594_vm2, %v2707_v63, %v2708_v36  ;;  %v9324_v56 = vsel %vm17525_vm14, %v2106_v44, %v18221_v24  ;;  %v18223_v22 = vrot.slane %v18222_v59, 1  ;;  %v18225_v35 = vrot.slane %v18224_v32, 1  ;;  %v18227_v31 = vld [vmem:[#allocation203_spill] sm:$0xff]  ;;  %v867_v59 = vpop.permute.xlu1 %866 }
 0x147   :  { %18220 = vst [vmem:[#allocation442_spill] sm:$0xff] %v9319_v45  ;;  %v9334_v6 = vsel %vm1983_vm0, %v3096_v23, %v3097_v17  ;;  %v9339_v63 = vsel %vm17408_vm13, %v18227_v31, %v3199_v29  ;;  %v3197_v44 = vsel %vm1983_vm0, %v3097_v17, %v3098_v26  ;;  %v3100_v36 = vrot.slane %v9288_v54, 1  ;;  %v865_v24 = vpop.permute.xlu0 %864 }
 0x148   :  { %v2104_v8 = vsel %vm1983_vm0, %v18225_v35, %v18223_v22  ;;  %18226 = vst [vmem:[#allocation159_spill] sm:$0xff] %v9334_v6  ;;  %18228 = vst [vmem:[#allocation7_spill] sm:$0xff] %v9339_v63  ;;  %v2713_v32 = vrot.slane %v9297_v11, 7  ;;  %v2712_v35 = vrot.slane %v9288_v54, 7  ;;  %vm17421_vm15 = vcmp.eq.s32.totalorder %v7531_v43, 2  ;;  %v9432_v63 = vld [vmem:[%s17057_s0 + $0x98] sm:$0xff] }
 0x149   :  { %v18229_v22 = vrot.slane %v9050_v52, 7  ;;  %v18231_v29 = vrot.slane %v8988_v25, 7  ;;  %v9361_v31 = vsel %vm1594_vm2, %v2710_v18, %v2711_v58  ;;  %v9365_v54 = vsel %vm1594_vm2, %v2709_v19, %v2710_v18  ;;  %v9378_v25 = vld [vmem:[%s17057_s0 + $0x88] sm:$0xff]  ;;  %v9385_v19 = vld [vmem:[%s17057_s0 + $0x80] sm:$0xff] }
 0x14a   :  { %18233 = vst [vmem:[#allocation443_spill] sm:$0xff] %v9361_v31  ;;  %18234 = vst [vmem:[#allocation444_spill] sm:$0xff] %v9365_v54  ;;  %v9369_v45 = vsel %vm1983_vm0, %v3098_v26, %v3099_v48  ;;  %1110 = vrot.lane.b32.xlu1 %v9378_v25, %s5884_s21  ;;  %1108 = vrot.lane.b32.xlu0 %v9385_v19, %s5884_s21  ;;  %v18237_v26 = vld [vmem:[#allocation209_spill] sm:$0xff]  ;;  %v9397_v18 = vsel %vm17532_vm1, 0.0, %v859_v42  ;;  %vm17432_vm13 = vcmp.eq.s32.totalorder %v7585_v4, 2  ;;  %vm17514_vm9 = vcmp.eq.s32.totalorder %v9270_v61, 2  ;;  %v871_v54 = vpop.permute.xlu1 %870 }
 0x14b   :  { %v9351_v23 = vsel %vm1594_vm2, %v1472_v20, %v18229_v22  ;;  %v9357_v17 = vsel %vm1594_vm2, %v18231_v29, %v1472_v20  ;;  %18235 = vst [vmem:[#allocation445_spill] sm:$0xff] %v9369_v45  ;;  %v9373_v22 = vsel %vm17532_vm1, 0.0, %v857_v5  ;;  %v9392_v5 = vsel %vm17413_vm11, %v18237_v26, %v3197_v44  ;;  %18239 = vst [vmem:[#allocation447_spill] sm:$0xff] %v9397_v18  ;;  %v869_v44 = vpop.permute.xlu0 %868 }
 0x14c   :  { %18230 = vst [vmem:[#allocation8_spill] sm:$0xff] %v9351_v23  ;;  %18232 = vst [vmem:[#allocation203_spill] sm:$0xff] %v9357_v17  ;;  %v3101_v20 = vrot.slane %v9297_v11, 1  ;;  %v3195_v29 = vsel %vm1983_vm0, %v3099_v48, %v3100_v36  ;;  %v9405_v31 = vsel %vm17532_vm1, 0.0, %v861_v49  ;;  %v1474_v26 = vrot.slane %v9123_v2, 7  ;;  %v5613_v48 = vld [vmem:[%s17058_s1 + $0x10] sm:$0xff] }
 0x14d   :  { %18236 = vst [vmem:[#allocation446_spill] sm:$0xff] %v9373_v22  ;;  %18238 = vst [vmem:[#allocation209_spill] sm:$0xff] %v9392_v5  ;;  %v9411_v42 = vsel %vm1594_vm2, %v2712_v35, %v2713_v32  ;;  %v3102_v5 = vrot.slane %v9373_v22, 1  ;;  %v9416_v45 = vsel %vm17532_vm1, 0.0, %v863_v7  ;;  %v9421_v49 = vunpack.c.0.s8 %v5613_v48  ;;  %v9439_v7 = vld [vmem:[%s17057_s0 + $0x90] sm:$0xff]  ;;  %v18255_v17 = vld [vmem:[#allocation10_spill] sm:$0xff] }
 0x14e   :  { %18240 = vst [vmem:[#allocation448_spill] sm:$0xff] %v9405_v31  ;;  %18241 = vst [vmem:[#allocation449_spill] sm:$0xff] %v9411_v42  ;;  %v9425_v2 = vsel %vm1594_vm2, %v2711_v58, %v2712_v35  ;;  %v2715_v11 = vrot.slane %v9397_v18, 7  ;;  %v2714_v42 = vrot.slane %v9373_v22, 7  ;;  %1114 = vrot.lane.b32.xlu1 %v9432_v63, %s5884_s21  ;;  %1112 = vrot.lane.b32.xlu0 %v9439_v7, %s5884_s21  ;;  %v18244_v58 = vld [vmem:[#allocation169_spill] sm:$0xff]  ;;  %v3103_v6 = vrot.slane %v9397_v18, 1 }
 0x14f   :  { %18242 = vst [vmem:[#allocation450_spill] sm:$0xff] %v9416_v45  ;;  %18243 = vst [vmem:[#allocation451_spill] sm:$0xff] %v9425_v2  ;;  %v9446_v35 = vsel %vm17514_vm9, %v2104_v8, %v18244_v58  ;;  %v9450_v22 = vsel %vm1983_vm0, %v3100_v36, %v3101_v20  ;;  %v9455_v2 = vsel %vm17418_vm10, %v7529_v62, %v3195_v29  ;;  %v3104_v38 = vrot.slane %v9405_v31, 1  ;;  %v875_v36 = vpop.permute.xlu1 %874 }
 0x150   :  { %18245 = vst [vmem:[#allocation169_spill] sm:$0xff] %v9446_v35  ;;  %18246 = vst [vmem:[#allocation452_spill] sm:$0xff] %v9450_v22  ;;  %vm17429_vm11 = vcmp.eq.s32.totalorder %v7650_v1, 2  ;;  %v2717_v40 = vrot.slane %v9416_v45, 7  ;;  %v2716_v8 = vrot.slane %v9405_v31, 7  ;;  %v9464_v58 = vsel %vm17532_vm1, 0.0, %v865_v24  ;;  %v873_v22 = vpop.permute.xlu0 %872 }
 0x151   :  { %18247 = vst [vmem:[#allocation453_spill] sm:$0xff] %v9455_v2  ;;  %18248 = vst [vmem:[#allocation454_spill] sm:$0xff] %v9464_v58  ;;  %v18249_v14 = vrot.slane %v9116_v9, 7  ;;  %v3193_v29 = vsel %vm1983_vm0, %v3101_v20, %v3102_v5  ;;  %v18251_v18 = vrot.slane %v9050_v52, 7  ;;  %v18253_v2 = vld [vmem:[#allocation9_spill] sm:$0xff]  ;;  %v18256_v23 = vrot.slane %v18255_v17, 1 }
 0x152   :  { %v18254_v24 = vrot.slane %v18253_v2, 1  ;;  %vm17433_vm10 = vcmp.eq.s32.totalorder %v9421_v49, 2  ;;  %v9493_v52 = vsel %vm1594_vm2, %v2713_v32, %v2714_v42  ;;  %v3105_v20 = vrot.slane %v9416_v45, 1  ;;  %v9511_v32 = vld [vmem:[%s17057_s0 + $0xa0] sm:$0xff]  ;;  %v18262_v2 = vld [vmem:[#allocation224_spill] sm:$0xff] }
 0x153   :  { %v9470_v62 = vsel %vm1594_vm2, %v1474_v26, %v18249_v14  ;;  %v9478_v31 = vsel %vm1594_vm2, %v18251_v18, %v1474_v26  ;;  %v9489_v14 = vsel %vm1594_vm2, %v2714_v42, %v2715_v11  ;;  %18258 = vst [vmem:[#allocation10_spill] sm:$0xff] %v9493_v52  ;;  %v9498_v18 = vsel %vm17532_vm1, 0.0, %v867_v59  ;;  %1116 = vrot.lane.b32.xlu0 %v9511_v32, %s5884_s21  ;;  %v18266_v52 = vld [vmem:[#allocation179_spill] sm:$0xff] }
 0x154   :  { %18250 = vst [vmem:[#allocation455_spill] sm:$0xff] %v9470_v62  ;;  %18252 = vst [vmem:[#allocation456_spill] sm:$0xff] %v9478_v31  ;;  %v2102_v35 = vsel %vm1983_vm0, %v18256_v23, %v18254_v24  ;;  %v9504_v23 = vld [vmem:[%s17057_s0 + $0xa8] sm:$0xff]  ;;  %v9517_v59 = vsel %vm1983_vm0, %v3102_v5, %v3103_v6  ;;  %v3191_v17 = vsel %vm1983_vm0, %v3103_v6, %v3104_v38  ;;  %v3106_v26 = vrot.slane %v9464_v58, 1  ;;  %v879_v6 = vpop.permute.xlu1 %878  ;;  %v18278_v62 = vld [vmem:[#allocation12_spill] sm:$0xff] }
 0x155   :  { %18257 = vst [vmem:[#allocation9_spill] sm:$0xff] %v9489_v14  ;;  %18259 = vst [vmem:[#allocation457_spill] sm:$0xff] %v9498_v18  ;;  %1118 = vrot.lane.b32.xlu1 %v9504_v23, %s5884_s21  ;;  %v9524_v42 = vsel %vm17532_vm1, 0.0, %v869_v44  ;;  %v9529_v24 = vsel %vm17421_vm15, %v18262_v2, %v3193_v29  ;;  %v9533_v45 = vsel %vm1594_vm2, %v2716_v8, %v2717_v40  ;;  %v877_v14 = vpop.permute.xlu0 %876  ;;  %v3107_v29 = vrot.slane %v9498_v18, 1  ;;  %v18276_v31 = vld [vmem:[#allocation11_spill] sm:$0xff] }
 0x156   :  { %18260 = vst [vmem:[#allocation458_spill] sm:$0xff] %v9517_v59  ;;  %18261 = vst [vmem:[#allocation459_spill] sm:$0xff] %v9524_v42  ;;  %v9537_v5 = vsel %vm1594_vm2, %v2715_v11, %v2716_v8  ;;  %v9542_v44 = vsel %vm17433_vm10, %v2102_v35, %v18266_v52  ;;  %v2719_v59 = vrot.slane %v9498_v18, 7  ;;  %v2718_v2 = vrot.slane %v9464_v58, 7  ;;  %v18270_v8 = vld [vmem:[#allocation233_spill] sm:$0xff]  ;;  %v18272_v52 = vld [vmem:[#allocation252_spill] sm:$0xff] }
 0x157   :  { %18263 = vst [vmem:[#allocation224_spill] sm:$0xff] %v9529_v24  ;;  %18264 = vst [vmem:[#allocation460_spill] sm:$0xff] %v9533_v45  ;;  %v9549_v45 = vsel %vm17532_vm1, 0.0, %v871_v54  ;;  %v9553_v11 = vsel %vm1983_vm0, %v3104_v38, %v3105_v20  ;;  %v3108_v35 = vrot.slane %v9524_v42, 1  ;;  %vm17446_vm15 = vcmp.eq.s32.totalorder %v18272_v52, 2  ;;  %v9565_v18 = vld [vmem:[%s17057_s0 + $0xb8] sm:$0xff] }
 0x158   :  { %18265 = vst [vmem:[#allocation461_spill] sm:$0xff] %v9537_v5  ;;  %18267 = vst [vmem:[#allocation179_spill] sm:$0xff] %v9542_v44  ;;  %v9558_v5 = vsel %vm17432_vm13, %v18270_v8, %v3191_v17  ;;  %v9572_v38 = vld [vmem:[%s17057_s0 + $0xb0] sm:$0xff]  ;;  %v9576_v54 = vunpack.c.2.s8 %v5613_v48  ;;  %v3189_v17 = vsel %vm1983_vm0, %v3105_v20, %v3106_v26  ;;  %v9582_v8 = vsel %vm17532_vm1, 0.0, %v873_v22  ;;  %v883_v48 = vpop.permute.xlu1 %882 }
 0x159   :  { %18268 = vst [vmem:[#allocation462_spill] sm:$0xff] %v9549_v45  ;;  %18269 = vst [vmem:[#allocation463_spill] sm:$0xff] %v9553_v11  ;;  %1122 = vrot.lane.b32.xlu1 %v9565_v18, %s5884_s21  ;;  %1120 = vrot.lane.b32.xlu0 %v9572_v38, %s5884_s21  ;;  %v1476_v58 = vrot.slane %v9178_v37, 7  ;;  %v2721_v11 = vrot.slane %v9549_v45, 7  ;;  %v2720_v24 = vrot.slane %v9524_v42, 7  ;;  %v9590_v4 = vsel %vm17532_vm1, 0.0, %v875_v36  ;;  %v881_v43 = vpop.permute.xlu0 %880 }
 0x15a   :  { %18271 = vst [vmem:[#allocation233_spill] sm:$0xff] %v9558_v5  ;;  %18273 = vst [vmem:[#allocation464_spill] sm:$0xff] %v9576_v54  ;;  %v18277_v20 = vrot.slane %v18276_v31, 1  ;;  %v18279_v44 = vrot.slane %v18278_v62, 1  ;;  %v9600_v37 = vsel %vm1594_vm2, %v2718_v2, %v2719_v59  ;;  %v9604_v5 = vsel %vm1594_vm2, %v2717_v40, %v2718_v2  ;;  %v18283_v31 = vld [vmem:[#allocation242_spill] sm:$0xff]  ;;  %v9622_v40 = vld [vmem:[%s17057_s0 + $0xc8] sm:$0xff] }
 0x15b   :  { %18274 = vst [vmem:[#allocation465_spill] sm:$0xff] %v9582_v8  ;;  %18275 = vst [vmem:[#allocation466_spill] sm:$0xff] %v9590_v4  ;;  %v9608_v36 = vsel %vm1983_vm0, %v3106_v26, %v3107_v29  ;;  %v3109_v42 = vrot.slane %v9549_v45, 1  ;;  %v9614_v62 = vsel %vm17429_vm11, %v18283_v31, %v3189_v17  ;;  %v9629_v26 = vld [vmem:[%s17057_s0 + $0xc0] sm:$0xff]  ;;  %vm17441_vm11 = vcmp.eq.s32.totalorder %v9576_v54, 2 }
 0x15c   :  { %v2100_v22 = vsel %vm1983_vm0, %v18279_v44, %v18277_v20  ;;  %18280 = vst [vmem:[#allocation11_spill] sm:$0xff] %v9600_v37  ;;  %18281 = vst [vmem:[#allocation12_spill] sm:$0xff] %v9604_v5  ;;  %v3187_v44 = vsel %vm1983_vm0, %v3107_v29, %v3108_v35  ;;  %v3110_v20 = vrot.slane %v9582_v8, 1  ;;  %v2723_v29 = vrot.slane %v9590_v4, 7 }
 0x15d   :  { %18282 = vst [vmem:[#allocation467_spill] sm:$0xff] %v9608_v36  ;;  %18284 = vst [vmem:[#allocation242_spill] sm:$0xff] %v9614_v62  ;;  %1126 = vrot.lane.b32.xlu1 %v9622_v40, %s5884_s21  ;;  %1124 = vrot.lane.b32.xlu0 %v9629_v26, %s5884_s21  ;;  %v2722_v2 = vrot.slane %v9582_v8, 7  ;;  %v18285_v17 = vrot.slane %v9171_v13, 7  ;;  %v18287_v45 = vrot.slane %v9116_v9, 7  ;;  %v9650_v5 = vsel %vm1594_vm2, %v2720_v24, %v2721_v11 }
 0x15e   :  { %18289 = vst [vmem:[#allocation470_spill] sm:$0xff] %v9650_v5  ;;  %v9654_v62 = vsel %vm1594_vm2, %v2719_v59, %v2720_v24  ;;  %v9658_v8 = vsel %vm17532_vm1, 0.0, %v879_v6  ;;  %vm17457_vm13 = vcmp.eq.s32.totalorder %v7853_v3, 2  ;;  %v9663_v9 = vsel %vm17532_vm1, 0.0, %v877_v14  ;;  %v18294_v5 = vld [vmem:[#allocation251_spill] sm:$0xff]  ;;  %v18296_v6 = vld [vmem:[#allocation188_spill] sm:$0xff] }
 0x15f   :  { %v9640_v31 = vsel %vm1594_vm2, %v1476_v58, %v18285_v17  ;;  %v9646_v37 = vsel %vm1594_vm2, %v18287_v45, %v1476_v58  ;;  %18290 = vst [vmem:[#allocation471_spill] sm:$0xff] %v9654_v62  ;;  %18291 = vst [vmem:[#allocation472_spill] sm:$0xff] %v9658_v8  ;;  %v887_v45 = vpop.permute.xlu1 %886  ;;  %v885_v58 = vpop.permute.xlu0 %884  ;;  %v9667_v17 = vsel %vm1983_vm0, %v3108_v35, %v3109_v42  ;;  %v3111_v24 = vrot.slane %v9590_v4, 1 }
 0x160   :  { %18286 = vst [vmem:[#allocation468_spill] sm:$0xff] %v9640_v31  ;;  %18288 = vst [vmem:[#allocation469_spill] sm:$0xff] %v9646_v37  ;;  %v9672_v59 = vsel %vm17439_vm8, %v18294_v5, %v3187_v44  ;;  %vm17453_vm10 = vcmp.eq.s32.totalorder %v7908_v34, 2  ;;  %v9679_v14 = vsel %vm17441_vm11, %v2100_v22, %v18296_v6  ;;  %v3185_v62 = vsel %vm1983_vm0, %v3109_v42, %v3110_v20  ;;  %v9690_v5 = vld [vmem:[%s17057_s0 + $0xd8] sm:$0xff]  ;;  %v9697_v22 = vld [vmem:[%s17057_s0 + $0xd0] sm:$0xff] }
 0x161   :  { %18292 = vst [vmem:[#allocation473_spill] sm:$0xff] %v9663_v9  ;;  %18293 = vst [vmem:[#allocation474_spill] sm:$0xff] %v9667_v17  ;;  %v9685_v35 = vsel %vm17532_vm1, 0.0, %v881_v43  ;;  %1130 = vrot.lane.b32.xlu1 %v9690_v5, %s5884_s21  ;;  %1128 = vrot.lane.b32.xlu0 %v9697_v22, %s5884_s21  ;;  %v1478_v42 = vrot.slane %v9252_v16, 7  ;;  %v9705_v44 = vsel %vm1594_vm2, %v2722_v2, %v2723_v29  ;;  %v2725_v6 = vrot.slane %v9658_v8, 7 }
 0x162   :  { %18295 = vst [vmem:[#allocation251_spill] sm:$0xff] %v9672_v59  ;;  %18297 = vst [vmem:[#allocation188_spill] sm:$0xff] %v9679_v14  ;;  %v2724_v4 = vrot.slane %v9663_v9, 7  ;;  %v5624_v59 = vld [vmem:[%s17058_s1 + $0x18] sm:$0xff]  ;;  %v9716_v36 = vsel %vm1594_vm2, %v2721_v11, %v2722_v2  ;;  %v3113_v16 = vrot.slane %v9658_v8, 1  ;;  %v3112_v43 = vrot.slane %v9663_v9, 1 }
 0x163   :  { %18298 = vst [vmem:[#allocation475_spill] sm:$0xff] %v9685_v35  ;;  %18299 = vst [vmem:[#allocation476_spill] sm:$0xff] %v9705_v44  ;;  %v9712_v17 = vunpack.c.0.s8 %v5624_v59  ;;  %v9722_v44 = vsel %vm17532_vm1, 0.0, %v883_v48  ;;  %v891_v47 = vpop.permute.xlu1 %890  ;;  %v889_v1 = vpop.permute.xlu0 %888  ;;  %v9726_v31 = vsel %vm1983_vm0, %v3110_v20, %v3111_v24  ;;  %v9731_v37 = vsel %vm17446_vm15, %v7821_v10, %v3185_v62  ;;  %v18304_v2 = vld [vmem:[#allocation278_spill] sm:$0xff]  ;;  %v18305_v8 = vld [vmem:[#allocation285_spill] sm:$0xff] }
 0x164   :  { %18300 = vst [vmem:[#allocation477_spill] sm:$0xff] %v9716_v36  ;;  %18301 = vst [vmem:[#allocation478_spill] sm:$0xff] %v9722_v44  ;;  %v3114_v11 = vrot.slane %v9685_v35, 1  ;;  %vm17462_vm8 = vcmp.eq.s32.totalorder %v18304_v2, 2  ;;  %vm17459_vm11 = vcmp.eq.s32.totalorder %v18305_v8, 2  ;;  %v18306_v9 = vld [vmem:[#allocation13_spill] sm:$0xff] }
 0x165   :  { %18302 = vst [vmem:[#allocation479_spill] sm:$0xff] %v9726_v31  ;;  %18303 = vst [vmem:[#allocation480_spill] sm:$0xff] %v9731_v37  ;;  %v18307_v48 = vrot.slane %v18306_v9, 1  ;;  %v18308_v36 = vld [vmem:[#allocation14_spill] sm:$0xff]  ;;  %v9744_v20 = vsel %vm17532_vm1, 0.0, %v887_v45  ;;  %v9748_v10 = vsel %vm17532_vm1, 0.0, %v885_v58  ;;  %v9782_v37 = vsel %vm1594_vm2, %v2723_v29, %v2724_v4 }
 0x166   :  { %v18309_v14 = vrot.slane %v18308_v36, 1  ;;  %18310 = vst [vmem:[#allocation13_spill] sm:$0xff] %v9744_v20  ;;  %18311 = vst [vmem:[#allocation14_spill] sm:$0xff] %v9748_v10  ;;  %v9753_v62 = vld [vmem:[%s17057_s0 + $0xe8] sm:$0xff]  ;;  %v9760_v36 = vld [vmem:[%s17057_s0 + $0xe0] sm:$0xff]  ;;  %v18312_v9 = vrot.slane %v9245_v50, 7 }
 0x167   :  { %1134 = vrot.lane.b32.xlu1 %v9753_v62, %s5884_s21  ;;  %1132 = vrot.lane.b32.xlu0 %v9760_v36, %s5884_s21  ;;  %v18314_v58 = vrot.slane %v9171_v13, 7  ;;  %18317 = vst [vmem:[#allocation484_spill] sm:$0xff] %v9782_v37  ;;  %v2727_v31 = vrot.slane %v9722_v44, 7  ;;  %v2726_v52 = vrot.slane %v9685_v35, 7  ;;  %v3183_v13 = vsel %vm1983_vm0, %v3111_v24, %v3112_v43  ;;  %v18322_v29 = vld [vmem:[#allocation270_spill] sm:$0xff] }
 0x168   :  { %v2098_v54 = vsel %vm1983_vm0, %v18309_v14, %v18307_v48  ;;  %v9768_v45 = vsel %vm1594_vm2, %v1478_v42, %v18312_v9  ;;  %v9778_v48 = vsel %vm1594_vm2, %v2724_v4, %v2725_v6  ;;  %v9788_v9 = vsel %vm1983_vm0, %v3112_v43, %v3113_v16 }
 0x169   :  { %18313 = vst [vmem:[#allocation481_spill] sm:$0xff] %v9768_v45  ;;  %v9774_v14 = vsel %vm1594_vm2, %v18314_v58, %v1478_v42  ;;  %18316 = vst [vmem:[#allocation483_spill] sm:$0xff] %v9778_v48  ;;  %v3115_v42 = vrot.slane %v9722_v44, 1  ;;  %v895_v58 = vpop.permute.xlu1 %894  ;;  %v893_v45 = vpop.permute.xlu0 %892  ;;  %vm17512_vm15 = vcmp.eq.s32.totalorder %v9712_v17, 2  ;;  %v3181_v4 = vsel %vm1983_vm0, %v3113_v16, %v3114_v11  ;;  %v18319_v48 = vld [vmem:[#allocation291_spill] sm:$0xff]  ;;  %v5627_v16 = vld [vmem:[%s17057_s0 + $0xf8] sm:$0xff] }
 0x16a   :  { %18315 = vst [vmem:[#allocation482_spill] sm:$0xff] %v9774_v14  ;;  %18318 = vst [vmem:[#allocation485_spill] sm:$0xff] %v9788_v9  ;;  %v3116_v35 = vrot.slane %v9748_v10, 1  ;;  %vm17468_vm7 = vcmp.eq.s32.totalorder %v18319_v48, 2  ;;  %v1480_v37 = vrot.slane %v9309_v39, 7  ;;  %v2729_v9 = vrot.slane %v9744_v20, 7 }
 0x16b   :  { %v2728_v24 = vrot.slane %v9748_v10, 7  ;;  %v9804_v43 = vsel %vm17532_vm1, 0.0, %v891_v47  ;;  %v9808_v44 = vsel %vm17532_vm1, 0.0, %v889_v1  ;;  %1138 = vrot.lane.b32.xlu1 %v5627_v16, %s5884_s21  ;;  %v5628_v39 = vld [vmem:[%s17057_s0 + $0xf0] sm:$0xff]  ;;  %v9821_v47 = vsel %vm17457_vm13, %v18322_v29, %v3183_v13 }
 0x16c   :  { %18320 = vst [vmem:[#allocation486_spill] sm:$0xff] %v9804_v43  ;;  %18321 = vst [vmem:[#allocation487_spill] sm:$0xff] %v9808_v44  ;;  %1136 = vrot.lane.b32.xlu0 %v5628_v39, %s5884_s21  ;;  %v9825_v1 = vsel %vm1594_vm2, %v2726_v52, %v2727_v31  ;;  %v9829_v10 = vsel %vm1594_vm2, %v2725_v6, %v2726_v52  ;;  %v9831_v16 = vunpack.c.2.s8 %v5624_v59  ;;  %v18327_v39 = vld [vmem:[#allocation277_spill] sm:$0xff]  ;;  %v1481_v52 = vrot.slane %v9302_v30, 7  ;;  %v5629_v30 = vld [vmem:[%s17057_s0 + $0x108] sm:$0xff] }
 0x16d   :  { %18323 = vst [vmem:[#allocation270_spill] sm:$0xff] %v9821_v47  ;;  %18324 = vst [vmem:[#allocation488_spill] sm:$0xff] %v9825_v1  ;;  %v9835_v14 = vsel %vm1983_vm0, %v3114_v11, %v3115_v42  ;;  %v9840_v3 = vsel %vm17453_vm10, %v18327_v39, %v3181_v4  ;;  %v899_v13 = vpop.permute.xlu1 %898  ;;  %v897_v29 = vpop.permute.xlu0 %896  ;;  %v18329_v47 = vld [vmem:[#allocation196_spill] sm:$0xff]  ;;  %v18331_v59 = vrot.slane %v9744_v20, 1  ;;  %v3179_v11 = vsel %vm1983_vm0, %v3115_v42, %v3116_v35 }
 0x16e   :  { %18325 = vst [vmem:[#allocation489_spill] sm:$0xff] %v9829_v10  ;;  %18326 = vst [vmem:[#allocation490_spill] sm:$0xff] %v9835_v14  ;;  %v9845_v1 = vsel %vm17512_vm15, %v2098_v54, %v18329_v47  ;;  %v3119_v4 = vrot.slane %v9804_v43, 1  ;;  %v3118_v39 = vrot.slane %v9808_v44, 1  ;;  %v9858_v10 = vsel %vm1594_vm2, %v2728_v24, %v2729_v9  ;;  %v18333_v54 = vld [vmem:[#allocation299_spill] sm:$0xff]  ;;  %v18339_v14 = vld [vmem:[#allocation16_spill] sm:$0xff] }
 0x16f   :  { %18328 = vst [vmem:[#allocation277_spill] sm:$0xff] %v9840_v3  ;;  %18330 = vst [vmem:[#allocation196_spill] sm:$0xff] %v9845_v1  ;;  %v3178_v6 = vsel %vm1983_vm0, %v3116_v35, %v18331_v59  ;;  %vm17473_vm10 = vcmp.eq.s32.totalorder %v18333_v54, 2  ;;  %1142 = vrot.lane.b32.xlu1 %v5629_v30, %s5884_s21  ;;  %v5630_v35 = vld [vmem:[%s17057_s0 + $0x100] sm:$0xff]  ;;  %v9870_v42 = vunpack.c.2.s8 %v8717_v27  ;;  %v18335_v47 = vrot.slane %v9245_v50, 7 }
 0x170   :  { %18332 = vst [vmem:[#allocation491_spill] sm:$0xff] %v9858_v10  ;;  %1140 = vrot.lane.b32.xlu0 %v5630_v35, %s5884_s21  ;;  %v18337_v10 = vld [vmem:[#allocation15_spill] sm:$0xff]  ;;  %v18340_v34 = vrot.slane %v18339_v14, 1  ;;  %v2731_v1 = vrot.slane %v9804_v43, 7  ;;  %v2730_v35 = vrot.slane %v9808_v44, 7  ;;  %v9888_v27 = vsel %vm17532_vm1, 0.0, %v895_v58 }
 0x171   :  { %18334 = vst [vmem:[#allocation492_spill] sm:$0xff] %v9870_v42  ;;  %v9876_v59 = vsel %vm1594_vm2, %v18335_v47, %v1480_v37  ;;  %v18338_v3 = vrot.slane %v18337_v10, 1  ;;  %18341 = vst [vmem:[#allocation15_spill] sm:$0xff] %v9888_v27  ;;  %v9892_v50 = vsel %vm17532_vm1, 0.0, %v893_v45  ;;  %v9896_v10 = vsel %vm1594_vm2, %v2727_v31, %v2728_v24  ;;  %v18344_v14 = vld [vmem:[#allocation290_spill] sm:$0xff]  ;;  %v903_v58 = vpop.permute.xlu1 %902  ;;  %v901_v43 = vpop.permute.xlu0 %900 }
 0x172   :  { %18336 = vst [vmem:[#allocation493_spill] sm:$0xff] %v9876_v59  ;;  %18342 = vst [vmem:[#allocation16_spill] sm:$0xff] %v9892_v50  ;;  %v9910_v45 = vsel %vm1594_vm2, %v1480_v37, %v1481_v52  ;;  %v3176_v31 = vsel %vm1983_vm0, %v3118_v39, %v3119_v4  ;;  %vm17470_vm13 = vcmp.eq.s32.totalorder %v9831_v16, 2  ;;  %v9918_v24 = vld [vmem:[%s17058_s1 + $0x20] sm:$0xff]  ;;  %v3120_v37 = vrot.slane %v9892_v50, 1 }
 0x173   :  { %v2096_v30 = vsel %vm1983_vm0, %v18340_v34, %v18338_v3  ;;  %18343 = vst [vmem:[#allocation494_spill] sm:$0xff] %v9896_v10  ;;  %v9901_v3 = vsel %vm17462_vm8, %v18344_v14, %v3179_v11  ;;  %v18346_v34 = vld [vmem:[#allocation296_spill] sm:$0xff]  ;;  %18348 = vst [vmem:[#allocation495_spill] sm:$0xff] %v9910_v45  ;;  %v9921_v11 = vunpack.c.0.s8 %v9918_v24  ;;  %v3121_v14 = vrot.slane %v9888_v27, 1  ;;  %v18350_v44 = vld [vmem:[#allocation310_spill] sm:$0xff] }
 0x174   :  { %18345 = vst [vmem:[#allocation290_spill] sm:$0xff] %v9901_v3  ;;  %v9906_v47 = vsel %vm17459_vm11, %v18346_v34, %v3178_v6  ;;  %v1482_v6 = vrot.slane %v9385_v19, 7  ;;  %v9928_v34 = vsel %vm17532_vm1, 0.0, %v899_v13  ;;  %vm17478_vm11 = vcmp.eq.s32.totalorder %v18350_v44, 2  ;;  %v5632_v10 = vld [vmem:[%s17057_s0 + $0x118] sm:$0xff]  ;;  %v5633_v19 = vld [vmem:[%s17057_s0 + $0x110] sm:$0xff] }
 0x175   :  { %18347 = vst [vmem:[#allocation296_spill] sm:$0xff] %v9906_v47  ;;  %18349 = vst [vmem:[#allocation496_spill] sm:$0xff] %v9928_v34  ;;  %v9933_v47 = vsel %vm17532_vm1, 0.0, %v897_v29  ;;  %1146 = vrot.lane.b32.xlu1 %v5632_v10, %s5884_s21  ;;  %1144 = vrot.lane.b32.xlu0 %v5633_v19, %s5884_s21  ;;  %v9945_v13 = vsel %vm1594_vm2, %v2730_v35, %v2731_v1  ;;  %v9949_v29 = vsel %vm1594_vm2, %v2729_v9, %v2730_v35  ;;  %v18356_v59 = vld [vmem:[#allocation306_spill] sm:$0xff]  ;;  %v907_v45 = vpop.permute.xlu1 %906  ;;  %v905_v9 = vpop.permute.xlu0 %904 }
 0x176   :  { %18351 = vst [vmem:[#allocation497_spill] sm:$0xff] %v9933_v47  ;;  %18352 = vst [vmem:[#allocation498_spill] sm:$0xff] %v9945_v13  ;;  %v2733_v3 = vrot.slane %v9888_v27, 7  ;;  %v2732_v8 = vrot.slane %v9892_v50, 7  ;;  %v18354_v10 = vrot.slane %v9744_v20, 1  ;;  %v9962_v19 = vsel %vm17468_vm7, %v18356_v59, %v3176_v31  ;;  %v18358_v13 = vld [vmem:[#allocation317_spill] sm:$0xff] }
 0x177   :  { %18353 = vst [vmem:[#allocation499_spill] sm:$0xff] %v9949_v29  ;;  %18357 = vst [vmem:[#allocation306_spill] sm:$0xff] %v9962_v19  ;;  %vm17476_vm8 = vcmp.eq.s32.totalorder %v18358_v13, 2  ;;  %v18359_v35 = vld [vmem:[#allocation206_spill] sm:$0xff]  ;;  %v2735_v20 = vrot.slane %v9928_v34, 7  ;;  %v9979_v59 = vsel %vm17532_vm1, 0.0, %v901_v43  ;;  %v3174_v31 = vsel %vm1983_vm0, %v3120_v37, %v3121_v14 }
 0x178   :  { %v9957_v2 = vsel %vm1983_vm0, %v18354_v10, %v3118_v39  ;;  %v9968_v27 = vsel %vm17470_vm13, %v2096_v30, %v18359_v35  ;;  %v2734_v39 = vrot.slane %v9933_v47, 7  ;;  %v9975_v10 = vsel %vm17532_vm1, 0.0, %v903_v58  ;;  %18361 = vst [vmem:[#allocation501_spill] sm:$0xff] %v9979_v59  ;;  %v5634_v50 = vld [vmem:[%s17057_s0 + $0x128] sm:$0xff]  ;;  %v5635_v58 = vld [vmem:[%s17057_s0 + $0x120] sm:$0xff]  ;;  %v18366_v19 = vld [vmem:[#allocation329_spill] sm:$0xff] }
 0x179   :  { %18355 = vst [vmem:[#allocation500_spill] sm:$0xff] %v9957_v2  ;;  %18360 = vst [vmem:[#allocation206_spill] sm:$0xff] %v9975_v10  ;;  %v3123_v30 = vrot.slane %v9928_v34, 1  ;;  %v3122_v35 = vrot.slane %v9933_v47, 1  ;;  %1150 = vrot.lane.b32.xlu1 %v5634_v50, %s5884_s21  ;;  %1148 = vrot.lane.b32.xlu0 %v5635_v58, %s5884_s21  ;;  %v9995_v43 = vsel %vm1594_vm2, %v1481_v52, %v1482_v6  ;;  %vm17482_vm7 = vcmp.eq.s32.totalorder %v18366_v19, 2  ;;  %v18367_v29 = vld [vmem:[#allocation17_spill] sm:$0xff] }
 0x17a   :  { %18362 = vst [vmem:[#allocation502_spill] sm:$0xff] %v9995_v43  ;;  %v9999_v34 = vsel %vm1594_vm2, %v2732_v8, %v2733_v3  ;;  %v10003_v47 = vsel %vm1594_vm2, %v2731_v1, %v2732_v8  ;;  %v10007_v50 = vsel %vm1983_vm0, %v3119_v4, %v3120_v37  ;;  %v18368_v58 = vrot.slane %v18367_v29, 1  ;;  %v18369_v2 = vld [vmem:[#allocation18_spill] sm:$0xff]  ;;  %v911_v4 = vpop.permute.xlu1 %910  ;;  %v909_v37 = vpop.permute.xlu0 %908 }
 0x17b   :  { %18363 = vst [vmem:[#allocation503_spill] sm:$0xff] %v9999_v34  ;;  %18364 = vst [vmem:[#allocation504_spill] sm:$0xff] %v10003_v47  ;;  %v18370_v48 = vrot.slane %v18369_v2, 1  ;;  %v3125_v43 = vrot.slane %v9975_v10, 1  ;;  %v3124_v34 = vrot.slane %v9979_v59, 1  ;;  %v10020_v8 = vsel %vm17532_vm1, 0.0, %v907_v45 }
 0x17c   :  { %18365 = vst [vmem:[#allocation505_spill] sm:$0xff] %v10007_v50  ;;  %18371 = vst [vmem:[#allocation17_spill] sm:$0xff] %v10020_v8  ;;  %v10024_v1 = vsel %vm17532_vm1, 0.0, %v905_v9  ;;  %v18373_v29 = vld [vmem:[#allocation314_spill] sm:$0xff]  ;;  %vm17479_vm13 = vcmp.eq.s32.totalorder %v9921_v11, 2  ;;  %v10044_v9 = vsel %vm1594_vm2, %v2733_v3, %v2734_v39 }
 0x17d   :  { %v2094_v52 = vsel %vm1983_vm0, %v18370_v48, %v18368_v58  ;;  %18372 = vst [vmem:[#allocation18_spill] sm:$0xff] %v10024_v1  ;;  %v10029_v2 = vsel %vm17473_vm10, %v18373_v29, %v3174_v31  ;;  %v10033_v48 = vsel %vm1594_vm2, %v2734_v39, %v2735_v20  ;;  %v18376_v58 = vrot.slane %v9378_v25, 7  ;;  %18377 = vst [vmem:[#allocation507_spill] sm:$0xff] %v10044_v9  ;;  %v18380_v54 = vld [vmem:[#allocation326_spill] sm:$0xff] }
 0x17e   :  { %18374 = vst [vmem:[#allocation314_spill] sm:$0xff] %v10029_v2  ;;  %18375 = vst [vmem:[#allocation506_spill] sm:$0xff] %v10033_v48  ;;  %v3172_v31 = vsel %vm1983_vm0, %v3122_v35, %v3123_v30  ;;  %v2737_v29 = vrot.slane %v9975_v10, 7  ;;  %v2736_v2 = vrot.slane %v9979_v59, 7  ;;  %v5636_v48 = vld [vmem:[%s17057_s0 + $0x138] sm:$0xff]  ;;  %v3126_v39 = vrot.slane %v10024_v1, 1  ;;  %v915_v3 = vpop.permute.xlu1 %914  ;;  %v913_v50 = vpop.permute.xlu0 %912 }
 0x17f   :  { %v10039_v45 = vsel %vm1594_vm2, %v1482_v6, %v18376_v58  ;;  %1154 = vrot.lane.b32.xlu1 %v5636_v48, %s5884_s21  ;;  %v5637_v6 = vld [vmem:[%s17057_s0 + $0x130] sm:$0xff]  ;;  %v1484_v58 = vrot.slane %v9439_v7, 7  ;;  %v10064_v59 = vsel %vm1983_vm0, %v3121_v14, %v3122_v35  ;;  %v3170_v48 = vsel %vm1983_vm0, %v3124_v34, %v3125_v43  ;;  %v18384_v10 = vld [vmem:[#allocation215_spill] sm:$0xff]  ;;  %v18419_v44 = vld [vmem:[#allocation22_spill] sm:$0xff] }
 0x180   :  { %1152 = vrot.lane.b32.xlu0 %v5637_v6, %s5884_s21  ;;  %18378 = vst [vmem:[#allocation508_spill] sm:$0xff] %v10064_v59  ;;  %v2739_v9 = vrot.slane %v10020_v8, 7  ;;  %v2738_v47 = vrot.slane %v10024_v1, 7  ;;  %v18379_v6 = vld [vmem:[#allocation337_spill] sm:$0xff]  ;;  %v10074_v7 = vsel %vm17478_vm11, %v18380_v54, %v3172_v31  ;;  %v10078_v14 = vsel %vm17532_vm1, 0.0, %v911_v4  ;;  %v5638_v4 = vld [vmem:[%s17057_s0 + $0x148] sm:$0xff] }
 0x181   :  { %vm17490_vm10 = vcmp.eq.s32.totalorder %v18379_v6, 2  ;;  %18381 = vst [vmem:[#allocation326_spill] sm:$0xff] %v10074_v7  ;;  %18382 = vst [vmem:[#allocation509_spill] sm:$0xff] %v10078_v14  ;;  %v10082_v35 = vsel %vm17532_vm1, 0.0, %v909_v37  ;;  %v10087_v1 = vsel %vm17479_vm13, %v2094_v52, %v18384_v10  ;;  %v10091_v59 = vsel %vm1594_vm2, %v2736_v2, %v2737_v29  ;;  %v5639_v37 = vld [vmem:[%s17057_s0 + $0x140] sm:$0xff]  ;;  %v18387_v52 = vld [vmem:[#allocation19_spill] sm:$0xff] }
 0x182   :  { %18383 = vst [vmem:[#allocation510_spill] sm:$0xff] %v10082_v35  ;;  %18385 = vst [vmem:[#allocation215_spill] sm:$0xff] %v10091_v59  ;;  %v10095_v54 = vsel %vm1594_vm2, %v2735_v20, %v2736_v2  ;;  %v10106_v10 = vunpack.c.2.s8 %v9918_v24  ;;  %v18388_v31 = vrot.slane %v18387_v52, 1  ;;  %v18389_v59 = vld [vmem:[#allocation20_spill] sm:$0xff]  ;;  %v18395_v52 = vrot.slane %v9432_v63, 7  ;;  %v18417_v6 = vld [vmem:[#allocation21_spill] sm:$0xff] }
 0x183   :  { %18386 = vst [vmem:[#allocation511_spill] sm:$0xff] %v10095_v54  ;;  %1158 = vrot.lane.b32.xlu1 %v5638_v4, %s5884_s21  ;;  %v18390_v20 = vrot.slane %v18389_v59, 1  ;;  %v10116_v54 = vsel %vm1983_vm0, %v3123_v30, %v3124_v34  ;;  %v18392_v4 = vld [vmem:[#allocation332_spill] sm:$0xff]  ;;  %v10135_v34 = vsel %vm1594_vm2, %v2738_v47, %v2739_v9  ;;  %v3129_v30 = vrot.slane %v10078_v14, 1 }
 0x184   :  { %1156 = vrot.lane.b32.xlu0 %v5639_v37, %s5884_s21  ;;  %18391 = vst [vmem:[#allocation19_spill] sm:$0xff] %v10116_v54  ;;  %v10121_v7 = vsel %vm17476_vm8, %v18392_v4, %v3170_v48  ;;  %v18394_v37 = vrot.slane %v10020_v8, 1  ;;  %v10131_v59 = vsel %vm1594_vm2, %v1484_v58, %v18395_v52  ;;  %18396 = vst [vmem:[#allocation332_spill] sm:$0xff] %v10135_v34  ;;  %v3128_v48 = vrot.slane %v10082_v35, 1 }
 0x185   :  { %v2092_v2 = vsel %vm1983_vm0, %v18390_v20, %v18388_v31  ;;  %18393 = vst [vmem:[#allocation20_spill] sm:$0xff] %v10121_v7  ;;  %vm17493_vm8 = vcmp.eq.s32.totalorder %v8433_v15, 2  ;;  %v919_v31 = vpop.permute.xlu1 %918  ;;  %v917_v20 = vpop.permute.xlu0 %916  ;;  %v18397_v4 = vrot.slane %v9378_v25, 7  ;;  %v2741_v52 = vrot.slane %v10078_v14, 7 }
 0x186   :  { %v3168_v24 = vsel %vm1983_vm0, %v3126_v39, %v18394_v37  ;;  %v2740_v7 = vrot.slane %v10082_v35, 7  ;;  %v10150_v34 = vsel %vm17532_vm1, 0.0, %v915_v3  ;;  %v10154_v54 = vsel %vm17532_vm1, 0.0, %v913_v50  ;;  %v5640_v50 = vld [vmem:[%s17057_s0 + $0x158] sm:$0xff] }
 0x187   :  { %v10144_v37 = vsel %vm1594_vm2, %v18397_v4, %v1484_v58  ;;  %18398 = vst [vmem:[#allocation512_spill] sm:$0xff] %v10150_v34  ;;  %18399 = vst [vmem:[#allocation513_spill] sm:$0xff] %v10154_v54  ;;  %v10158_v13 = vsel %vm1594_vm2, %v2737_v29, %v2738_v47  ;;  %v10162_v25 = vsel %vm1983_vm0, %v3125_v43, %v3126_v39  ;;  %vm17499_vm11 = vcmp.eq.s32.totalorder %v8505_v46, 2  ;;  %v5641_v47 = vld [vmem:[%s17057_s0 + $0x150] sm:$0xff] }
 0x188   :  { %18400 = vst [vmem:[#allocation514_spill] sm:$0xff] %v10158_v13  ;;  %18401 = vst [vmem:[#allocation515_spill] sm:$0xff] %v10162_v25  ;;  %v10167_v58 = vsel %vm17482_vm7, %v8421_v51, %v3168_v24  ;;  %1162 = vrot.lane.b32.xlu1 %v5640_v50, %s5884_s21  ;;  %1160 = vrot.lane.b32.xlu0 %v5641_v47, %s5884_s21  ;;  %vm17491_vm13 = vcmp.eq.s32.totalorder %v10106_v10, 2  ;;  %v10181_v51 = vsel %vm17532_vm1, 0.0, %v919_v31  ;;  %v10185_v43 = vsel %vm17532_vm1, 0.0, %v917_v20  ;;  %v5642_v31 = vld [vmem:[%s17058_s1 + $0x28] sm:$0xff] }
 0x189   :  { %18402 = vst [vmem:[#allocation516_spill] sm:$0xff] %v10167_v58  ;;  %18403 = vst [vmem:[#allocation517_spill] sm:$0xff] %v10181_v51  ;;  %v1486_v29 = vrot.slane %v9511_v32, 7  ;;  %v3166_v39 = vsel %vm1983_vm0, %v3128_v48, %v3129_v30  ;;  %v3131_v24 = vrot.slane %v10150_v34, 1  ;;  %v3130_v4 = vrot.slane %v10154_v54, 1  ;;  %v923_v50 = vpop.permute.xlu1 %922  ;;  %v921_v47 = vpop.permute.xlu0 %920  ;;  %v18440_v46 = vld [vmem:[#allocation232_spill] sm:$0xff] }
 0x18a   :  { %18404 = vst [vmem:[#allocation518_spill] sm:$0xff] %v10185_v43  ;;  %v10196_v14 = vunpack.c.0.s8 %v5642_v31  ;;  %v10200_v32 = vsel %vm1594_vm2, %v2740_v7, %v2741_v52  ;;  %v10204_v20 = vsel %vm1594_vm2, %v2739_v9, %v2740_v7  ;;  %v2743_v3 = vrot.slane %v10150_v34, 7  ;;  %v5643_v9 = vld [vmem:[%s17057_s0 + $0x168] sm:$0xff]  ;;  %v5644_v7 = vld [vmem:[%s17057_s0 + $0x160] sm:$0xff] }
 0x18b   :  { %18405 = vst [vmem:[#allocation519_spill] sm:$0xff] %v10200_v32  ;;  %18406 = vst [vmem:[#allocation520_spill] sm:$0xff] %v10204_v20  ;;  %v2742_v35 = vrot.slane %v10154_v54, 7  ;;  %v3132_v13 = vrot.slane %v10185_v43, 1  ;;  %v10212_v25 = vsel %vm17532_vm1, 0.0, %v923_v50  ;;  %vm17498_vm7 = vcmp.eq.s32.totalorder %v8574_v33, 2 }
 0x18c   :  { %18407 = vst [vmem:[#allocation521_spill] sm:$0xff] %v10212_v25  ;;  %v10217_v32 = vsel %vm17532_vm1, 0.0, %v921_v47  ;;  %1166 = vrot.lane.b32.xlu1 %v5643_v9, %s5884_s21  ;;  %1164 = vrot.lane.b32.xlu0 %v5644_v7, %s5884_s21  ;;  %v18409_v50 = vrot.slane %v10020_v8, 1  ;;  %v10236_v47 = vsel %vm17490_vm10, %v8456_v0, %v3166_v39  ;;  %v173_v9 = vld [vmem:[%s17058_s1 + $0xf8] sm:$0xff]  ;;  %v18412_v34 = vld [vmem:[#allocation222_spill] sm:$0xff]  ;;  %v18413_v7 = vrot.slane %v9504_v23, 7 }
 0x18d   :  { %18408 = vst [vmem:[#allocation522_spill] sm:$0xff] %v10217_v32  ;;  %18411 = vst [vmem:[#allocation524_spill] sm:$0xff] %v10236_v47  ;;  %v10244_v54 = vsel %vm17491_vm13, %v2092_v2, %v18412_v34  ;;  %v2745_v0 = vrot.slane %v10181_v51, 7  ;;  %v2744_v39 = vrot.slane %v10185_v43, 7  ;;  %v927_v47 = vpop.permute.xlu1 %926  ;;  %v925_v8 = vpop.permute.xlu0 %924  ;;  %v18415_v20 = vrot.slane %v9432_v63, 7 }
 0x18e   :  { %v10231_v58 = vsel %vm1983_vm0, %v18409_v50, %v3128_v48  ;;  %v10250_v48 = vsel %vm1594_vm2, %v1486_v29, %v18413_v7  ;;  %v3164_v50 = vsel %vm1983_vm0, %v3130_v4, %v3131_v24  ;;  %v10264_v34 = vsel %vm1594_vm2, %v2742_v35, %v2743_v3 }
 0x18f   :  { %18410 = vst [vmem:[#allocation523_spill] sm:$0xff] %v10231_v58  ;;  %18414 = vst [vmem:[#allocation222_spill] sm:$0xff] %v10250_v48  ;;  %v10260_v2 = vsel %vm1594_vm2, %v18415_v20, %v1486_v29  ;;  %v3134_v58 = vrot.slane %v10217_v32, 1  ;;  %v18418_v19 = vrot.slane %v18417_v6, 1  ;;  %v18420_v43 = vrot.slane %v18419_v44, 1  ;;  %v5645_v44 = vld [vmem:[%s17057_s0 + $0x178] sm:$0xff] }
 0x190   :  { %18416 = vst [vmem:[#allocation525_spill] sm:$0xff] %v10264_v34  ;;  %v10276_v63 = vsel %vm1594_vm2, %v2741_v52, %v2742_v35  ;;  %v10280_v29 = vsel %vm1983_vm0, %v3129_v30, %v3130_v4  ;;  %v18423_v20 = vrot.slane %v10181_v51, 1  ;;  %vm17503_vm10 = vcmp.eq.s32.totalorder %v8626_v60, 2  ;;  %1170 = vrot.lane.b32.xlu1 %v5645_v44, %s5884_s21  ;;  %v18425_v35 = vld [vmem:[#allocation358_spill] sm:$0xff] }
 0x191   :  { %v2090_v48 = vsel %vm1983_vm0, %v18420_v43, %v18418_v19  ;;  %18421 = vst [vmem:[#allocation21_spill] sm:$0xff] %v10276_v63  ;;  %18422 = vst [vmem:[#allocation22_spill] sm:$0xff] %v10280_v29  ;;  %v5646_v19 = vld [vmem:[%s17057_s0 + $0x170] sm:$0xff]  ;;  %v10295_v6 = vunpack.c.0.s8 %v173_v9  ;;  %v10300_v30 = vsel %vm17493_vm8, %v18425_v35, %v3164_v50  ;;  %v10304_v52 = vsel %vm17532_vm1, 0.0, %v927_v47  ;;  %v931_v50 = vpop.permute.xlu1 %930  ;;  %v929_v44 = vpop.permute.xlu0 %928 }
 0x192   :  { %v3162_v7 = vsel %vm1983_vm0, %v3132_v13, %v18423_v20  ;;  %1168 = vrot.lane.b32.xlu0 %v5646_v19, %s5884_s21  ;;  %18426 = vst [vmem:[#allocation358_spill] sm:$0xff] %v10300_v30  ;;  %18427 = vst [vmem:[#allocation527_spill] sm:$0xff] %v10304_v52  ;;  %v10308_v43 = vsel %vm17532_vm1, 0.0, %v925_v8  ;;  %vm17500_vm13 = vcmp.eq.s32.totalorder %v10196_v14, 2  ;;  %v10313_v4 = vsel %vm1594_vm2, %v2744_v39, %v2745_v0  ;;  %v18432_v35 = vld [vmem:[#allocation364_spill] sm:$0xff] }
 0x193   :  { %18424 = vst [vmem:[#allocation526_spill] sm:$0xff] %v10295_v6  ;;  %18428 = vst [vmem:[#allocation528_spill] sm:$0xff] %v10308_v43  ;;  %v2747_v9 = vrot.slane %v10212_v25, 7  ;;  %v2746_v20 = vrot.slane %v10217_v32, 7  ;;  %v10317_v19 = vunpack.c.2.s8 %v5642_v31  ;;  %v10321_v47 = vsel %vm1594_vm2, %v2743_v3, %v2744_v39  ;;  %v18435_v31 = vld [vmem:[#allocation380_spill] sm:$0xff]  ;;  %v5647_v39 = vld [vmem:[%s17057_s0 + $0x188] sm:$0xff] }
 0x194   :  { %18429 = vst [vmem:[#allocation529_spill] sm:$0xff] %v10313_v4  ;;  %18430 = vst [vmem:[#allocation530_spill] sm:$0xff] %v10321_v47  ;;  %v10325_v8 = vsel %vm1983_vm0, %v3131_v24, %v3132_v13  ;;  %v10330_v4 = vsel %vm17499_vm11, %v18432_v35, %v3162_v7  ;;  %v18434_v34 = vrot.slane %v10212_v25, 1  ;;  %vm17511_vm8 = vcmp.eq.s32.totalorder %v18435_v31, 2  ;;  %1174 = vrot.lane.b32.xlu1 %v5647_v39, %s5884_s21  ;;  %v18471_v31 = vld [vmem:[#allocation26_spill] sm:$0xff] }
 0x195   :  { %18431 = vst [vmem:[#allocation531_spill] sm:$0xff] %v10325_v8  ;;  %18433 = vst [vmem:[#allocation364_spill] sm:$0xff] %v10330_v4  ;;  %v3137_v30 = vrot.slane %v10304_v52, 1  ;;  %v3136_v3 = vrot.slane %v10308_v43, 1  ;;  %v10341_v13 = vsel %vm17532_vm1, 0.0, %v931_v50  ;;  %v10345_v24 = vsel %vm17532_vm1, 0.0, %v929_v44  ;;  %v935_v47 = vpop.permute.xlu1 %934  ;;  %v933_v8 = vpop.permute.xlu0 %932 }
 0x196   :  { %v3160_v32 = vsel %vm1983_vm0, %v3134_v58, %v18434_v34  ;;  %18436 = vst [vmem:[#allocation532_spill] sm:$0xff] %v10341_v13  ;;  %18437 = vst [vmem:[#allocation533_spill] sm:$0xff] %v10345_v24  ;;  %v5648_v34 = vld [vmem:[%s17057_s0 + $0x180] sm:$0xff]  ;;  %v2749_v7 = vrot.slane %v10304_v52, 7  ;;  %v2748_v50 = vrot.slane %v10308_v43, 7  ;;  %v1488_v35 = vrot.slane %v9572_v38, 7 }
 0x197   :  { %1172 = vrot.lane.b32.xlu0 %v5648_v34, %s5884_s21  ;;  %v1489_v44 = vrot.slane %v9565_v18, 7  ;;  %v10361_v4 = vsel %vm1594_vm2, %v2746_v20, %v2747_v9  ;;  %v10365_v39 = vsel %vm1594_vm2, %v2745_v0, %v2746_v20  ;;  %v10370_v34 = vsel %vm17500_vm13, %v2090_v48, %v18440_v46  ;;  %v18441_v52 = vld [vmem:[#allocation23_spill] sm:$0xff]  ;;  %v18443_v38 = vld [vmem:[#allocation24_spill] sm:$0xff]  ;;  %v18447_v20 = vld [vmem:[#allocation378_spill] sm:$0xff] }
 0x198   :  { %18438 = vst [vmem:[#allocation534_spill] sm:$0xff] %v10361_v4  ;;  %18439 = vst [vmem:[#allocation535_spill] sm:$0xff] %v10365_v39  ;;  %v18442_v43 = vrot.slane %v18441_v52, 1  ;;  %v18444_v63 = vrot.slane %v18443_v38, 1  ;;  %v18445_v4 = vrot.slane %v10181_v51, 1  ;;  %v10387_v39 = vsel %vm17498_vm7, %v18447_v20, %v3160_v32  ;;  %v5650_v32 = vld [vmem:[%s17057_s0 + $0x190] sm:$0xff] }
 0x199   :  { %18448 = vst [vmem:[#allocation23_spill] sm:$0xff] %v10387_v39  ;;  %v3138_v48 = vrot.slane %v10345_v24, 1  ;;  %v3158_v52 = vsel %vm1983_vm0, %v3136_v3, %v3137_v30  ;;  %vm17504_vm7 = vcmp.eq.s32.totalorder %v10317_v19, 2  ;;  %v10410_v38 = vsel %vm1594_vm2, %v2747_v9, %v2748_v50  ;;  %v18451_v20 = vld [vmem:[#allocation387_spill] sm:$0xff]  ;;  %v18460_v51 = vld [vmem:[#allocation241_spill] sm:$0xff] }
 0x19a   :  { %v2088_v18 = vsel %vm1983_vm0, %v18444_v63, %v18442_v43  ;;  %v10382_v0 = vsel %vm1983_vm0, %v18445_v4, %v3134_v58  ;;  %v2750_v43 = vrot.slane %v10345_v24, 7  ;;  %v5649_v58 = vld [vmem:[%s17057_s0 + $0x198] sm:$0xff]  ;;  %v10406_v4 = vsel %vm1594_vm2, %v2748_v50, %v2749_v7  ;;  %18450 = vst [vmem:[#allocation378_spill] sm:$0xff] %v10410_v38  ;;  %v939_v50 = vpop.permute.xlu1 %938  ;;  %v937_v24 = vpop.permute.xlu0 %936 }
 0x19b   :  { %18446 = vst [vmem:[#allocation232_spill] sm:$0xff] %v10382_v0  ;;  %1178 = vrot.lane.b32.xlu1 %v5649_v58, %s5884_s21  ;;  %1176 = vrot.lane.b32.xlu0 %v5650_v32, %s5884_s21  ;;  %18449 = vst [vmem:[#allocation24_spill] sm:$0xff] %v10406_v4  ;;  %vm17523_vm11 = vcmp.eq.s32.totalorder %v18451_v20, 2  ;;  %v10415_v58 = vsel %vm1594_vm2, %v1488_v35, %v1489_v44  ;;  %v18452_v63 = vrot.slane %v9504_v23, 7  ;;  %v10425_v46 = vsel %vm17532_vm1, 0.0, %v935_v47  ;;  %v18457_v47 = vld [vmem:[#allocation382_spill] sm:$0xff] }
 0x19c   :  { %18453 = vst [vmem:[#allocation536_spill] sm:$0xff] %v10425_v46  ;;  %v10429_v9 = vsel %vm17532_vm1, 0.0, %v933_v8  ;;  %vm17524_vm13 = vcmp.eq.s32.totalorder %v9870_v42, 2  ;;  %v1490_v4 = vrot.slane %v9629_v26, 7  ;;  %v18455_v38 = vrot.slane %v10212_v25, 1  ;;  %v18533_v20 = vld [vmem:[#allocation436_spill] sm:$0xff] }
 0x19d   :  { %v10421_v32 = vsel %vm1594_vm2, %v18452_v63, %v1488_v35  ;;  %18454 = vst [vmem:[#allocation537_spill] sm:$0xff] %v10429_v9  ;;  %v10443_v63 = vsel %vm17503_vm10, %v18457_v47, %v3158_v52  ;;  %v18459_v8 = vrot.slane %v10341_v13, 1  ;;  %v10452_v26 = vsel %vm17504_vm7, %v2088_v18, %v18460_v51  ;;  %v5651_v47 = vld [vmem:[%s17057_s0 + $0x1a8] sm:$0xff]  ;;  %v5652_v51 = vld [vmem:[%s17057_s0 + $0x1a0] sm:$0xff]  ;;  %v5653_v18 = vld [vmem:[%s17058_s1 + $0x30] sm:$0xff] }
 0x19e   :  { %v10438_v35 = vsel %vm1983_vm0, %v18455_v38, %v3136_v3  ;;  %18458 = vst [vmem:[#allocation382_spill] sm:$0xff] %v10443_v63  ;;  %v18461_v23 = vrot.slane %v10341_v13, 7  ;;  %v10462_v52 = vsel %vm17532_vm1, 0.0, %v939_v50  ;;  %v10466_v38 = vsel %vm17532_vm1, 0.0, %v937_v24 }
 0x19f   :  { %18456 = vst [vmem:[#allocation538_spill] sm:$0xff] %v10438_v35  ;;  %v3156_v39 = vsel %vm1983_vm0, %v3138_v48, %v18459_v8  ;;  %18463 = vst [vmem:[#allocation539_spill] sm:$0xff] %v10462_v52  ;;  %1182 = vrot.lane.b32.xlu1 %v5651_v47, %s5884_s21  ;;  %1180 = vrot.lane.b32.xlu0 %v5652_v51, %s5884_s21  ;;  %vm17540_vm10 = vcmp.eq.s32.totalorder %v10295_v6, 2  ;;  %v10480_v24 = vunpack.c.0.s8 %v5653_v18  ;;  %v3141_v8 = vrot.slane %v10425_v46, 1  ;;  %v18503_v6 = vld [vmem:[#allocation60_spill] sm:$0xff] }
 0x1a0   :  { %v10458_v3 = vsel %vm1594_vm2, %v2750_v43, %v18461_v23  ;;  %18464 = vst [vmem:[#allocation540_spill] sm:$0xff] %v10466_v38  ;;  %v10484_v50 = vsel %vm1594_vm2, %v2749_v7, %v2750_v43  ;;  %v10488_v23 = vsel %vm1983_vm0, %v3137_v30, %v3138_v48  ;;  %v3140_v47 = vrot.slane %v10429_v9, 1  ;;  %v943_v43 = vpop.permute.xlu1 %942 }
 0x1a1   :  { %18462 = vst [vmem:[#allocation241_spill] sm:$0xff] %v10458_v3  ;;  %18465 = vst [vmem:[#allocation541_spill] sm:$0xff] %v10484_v50  ;;  %vm17546_vm7 = vcmp.eq.s32.totalorder %v6314_v55, 127  ;;  %v10496_v51 = vsel %vm17511_vm8, %v8808_v21, %v3156_v39  ;;  %v3143_v3 = vrot.slane %v10462_v52, 1  ;;  %v3142_v7 = vrot.slane %v10466_v38, 1  ;;  %v941_v50 = vpop.permute.xlu0 %940  ;;  %v18469_v39 = vld [vmem:[#allocation25_spill] sm:$0xff] }
 0x1a2   :  { %18466 = vst [vmem:[#allocation542_spill] sm:$0xff] %v10488_v23  ;;  %18467 = vst [vmem:[#allocation543_spill] sm:$0xff] %v10496_v51  ;;  %v18468_v30 = vrot.slane %v9622_v40, 7  ;;  %v2753_v63 = vrot.slane %v10425_v46, 7  ;;  %v2752_v23 = vrot.slane %v10429_v9, 7  ;;  %v10510_v21 = vsel %vm1594_vm2, %v1489_v44, %v1490_v4  ;;  %v5654_v44 = vld [vmem:[%s17057_s0 + $0x1b8] sm:$0xff] }
 0x1a3   :  { %v18470_v51 = vrot.slane %v18469_v39, 1  ;;  %v18472_v25 = vrot.slane %v18471_v31, 1  ;;  %v2755_v60 = vrot.slane %v10462_v52, 7  ;;  %v10522_v46 = vsel %vm17532_vm1, 0.0, %v943_v43  ;;  %1186 = vrot.lane.b32.xlu1 %v5654_v44, %s5884_s21 }
 0x1a4   :  { %v10504_v48 = vsel %vm1594_vm2, %v1490_v4, %v18468_v30  ;;  %v2754_v30 = vrot.slane %v10466_v38, 7  ;;  %v10526_v9 = vsel %vm17532_vm1, 0.0, %v941_v50  ;;  %v3154_v31 = vsel %vm1983_vm0, %v3140_v47, %v3141_v8  ;;  %v947_v52 = vpop.permute.xlu1 %946  ;;  %v18475_v38 = vld [vmem:[#allocation67_spill] sm:$0xff] }
 0x1a5   :  { %v2086_v35 = vsel %vm1983_vm0, %v18472_v25, %v18470_v51  ;;  %18473 = vst [vmem:[#allocation25_spill] sm:$0xff] %v10526_v9  ;;  %v5655_v25 = vld [vmem:[%s17057_s0 + $0x1b0] sm:$0xff]  ;;  %v3144_v50 = vrot.slane %v10526_v9, 1  ;;  %v18474_v51 = vld [vmem:[#allocation74_spill] sm:$0xff]  ;;  %vm17526_vm15 = vcmp.eq.s32.totalorder %v10480_v24, 2  ;;  %v3152_v43 = vsel %vm1983_vm0, %v3142_v7, %v3143_v3 }
 0x1a6   :  { %1184 = vrot.lane.b32.xlu0 %v5655_v25, %s5884_s21  ;;  %vm17531_vm8 = vcmp.eq.s32.totalorder %v18474_v51, 1  ;;  %v2756_v44 = vrot.slane %v10526_v9, 7  ;;  %v945_v25 = vpop.permute.xlu0 %944  ;;  %vm17539_vm9 = vcmp.eq.s32.totalorder %v18474_v51, 0  ;;  %vm3925_vm6 = vcmp.eq.s32.totalorder %v18475_v38, 1 }
 0x1a7   :  { %v1492_v4 = vrot.slane %v9697_v22, 7  ;;  %v10551_v0 = vsel %vm1594_vm2, %v2752_v23, %v2753_v63  ;;  %v18477_v33 = vrot.slane %v10341_v13, 7  ;;  %v18479_v39 = vrot.slane %v10341_v13, 1 }
 0x1a8   :  { %18476 = vst [vmem:[#allocation26_spill] sm:$0xff] %v10551_v0  ;;  %vm3797_vm5 = vcmp.eq.s32.totalorder %v18475_v38, 0  ;;  %v10566_v15 = vunpack.c.2.s8 %v5653_v18  ;;  %v10571_v22 = vsel %vm17523_vm11, %v8842_v53, %v3154_v31  ;;  %v10575_v0 = vsel %vm1594_vm2, %v2754_v30, %v2755_v60  ;;  %v5657_v53 = vld [vmem:[%s17057_s0 + $0x1c0] sm:$0xff] }
 0x1a9   :  { %v10557_v29 = vsel %vm1594_vm2, %v18477_v33, %v2752_v23  ;;  %v10563_v9 = vsel %vm1983_vm0, %v18479_v39, %v3140_v47  ;;  %18481 = vst [vmem:[#allocation545_spill] sm:$0xff] %v10571_v22  ;;  %18482 = vst [vmem:[#allocation546_spill] sm:$0xff] %v10575_v0  ;;  %v18483_v33 = vrot.slane %v10522_v46, 1  ;;  %v5656_v47 = vld [vmem:[%s17057_s0 + $0x1c8] sm:$0xff]  ;;  %v10592_v31 = vsel %vm1594_vm2, %v2753_v63, %v2754_v30  ;;  %v18491_v30 = vld [vmem:[#allocation68_spill] sm:$0xff] }
 0x1aa   :  { %18478 = vst [vmem:[#allocation67_spill] sm:$0xff] %v10557_v29  ;;  %18480 = vst [vmem:[#allocation544_spill] sm:$0xff] %v10563_v9  ;;  %1190 = vrot.lane.b32.xlu1 %v5656_v47, %s5884_s21  ;;  %1188 = vrot.lane.b32.xlu0 %v5657_v53, %s5884_s21  ;;  %v10596_v39 = vsel %vm1983_vm0, %v3141_v8, %v3142_v7  ;;  %vm3926_vm11 = vcmp.eq.s32.totalorder %v18152_v41, 1  ;;  %v18487_v47 = vld [vmem:[#allocation249_spill] sm:$0xff]  ;;  %v18488_v18 = vrot.slane %v10522_v46, 7  ;;  %v1079_v7 = vpop.permute.xlu1 %1078  ;;  %vm17541_vm14 = vcmp.eq.s32.totalorder %v10566_v15, 2 }
 0x1ab   :  { %v3150_v23 = vsel %vm1983_vm0, %v3144_v50, %v18483_v33  ;;  %18484 = vst [vmem:[#allocation547_spill] sm:$0xff] %v10592_v31  ;;  %18485 = vst [vmem:[#allocation548_spill] sm:$0xff] %v10596_v39  ;;  %v10601_v33 = vsel %vm17524_vm13, %v8925_v12, %v3152_v43  ;;  %v10607_v53 = vsel %vm17526_vm15, %v2086_v35, %v18487_v47  ;;  %v1077_v12 = vpop.permute.xlu0 %1076  ;;  %vm3798_vm13 = vcmp.eq.s32.totalorder %v18152_v41, 0  ;;  %v18493_v47 = vld [vmem:[#allocation27_spill] sm:$0xff]  ;;  %v18504_v31 = vld [vmem:[#allocation418_spill] sm:$0xff] }
 0x1ac   :  { %18486 = vst [vmem:[#allocation549_spill] sm:$0xff] %v10601_v33  ;;  %v10613_v63 = vsel %vm1594_vm2, %v2756_v44, %v18488_v18  ;;  %v10617_v8 = vsel %vm1594_vm2, %v2755_v60, %v2756_v44  ;;  %v18492_v43 = vrot.slane %v9622_v40, 7  ;;  %v18494_v0 = vrot.slane %v18493_v47, 1  ;;  %v18495_v18 = vld [vmem:[#allocation28_spill] sm:$0xff]  ;;  %v18517_v9 = vld [vmem:[#allocation421_spill] sm:$0xff] }
 0x1ad   :  { %18489 = vst [vmem:[#allocation249_spill] sm:$0xff] %v10613_v63  ;;  %18490 = vst [vmem:[#allocation550_spill] sm:$0xff] %v10617_v8  ;;  %v18496_v63 = vrot.slane %v18495_v18, 1  ;;  %v10635_v44 = vsel %vm1983_vm0, %v3143_v3, %v3144_v50  ;;  %v18498_v8 = vld [vmem:[#allocation405_spill] sm:$0xff]  ;;  %v10644_v40 = vsel %vm17532_vm1, 0.0, %v947_v52  ;;  %vm3799_vm15 = vcmp.eq.s32.totalorder %v18491_v30, 0 }
 0x1ae   :  { %v10625_v35 = vsel %vm1594_vm2, %v18492_v43, %v1492_v4  ;;  %18497 = vst [vmem:[#allocation68_spill] sm:$0xff] %v10635_v44  ;;  %v10640_v33 = vsel %vm17540_vm10, %v18498_v8, %v3150_v23  ;;  %v1333_v3 = vsel %vm17546_vm7, 0.0, %v1079_v7  ;;  %v10656_v50 = vsel %vm17546_vm7, 0.0, %v1077_v12  ;;  %v5658_v52 = vld [vmem:[%s17057_s0 + $0x1d8] sm:$0xff]  ;;  %v5659_v23 = vld [vmem:[%s17057_s0 + $0x1d0] sm:$0xff]  ;;  %v18502_v44 = vld [vmem:[#allocation258_spill] sm:$0xff] }
 0x1af   :  { %v2084_v60 = vsel %vm1983_vm0, %v18496_v63, %v18494_v0  ;;  %18499 = vst [vmem:[#allocation27_spill] sm:$0xff] %v10640_v33  ;;  %v10650_v0 = vsel %vm17532_vm1, 0.0, %v945_v25  ;;  %18500 = vst [vmem:[#allocation28_spill] sm:$0xff] %v10656_v50  ;;  %1194 = vrot.lane.b32.xlu1 %v5658_v52, %s5884_s21  ;;  %1192 = vrot.lane.b32.xlu0 %v5659_v23, %s5884_s21  ;;  %v18501_v25 = vrot.slane %v9690_v5, 7  ;;  %v2245_v8 = vrot.slane %v1333_v3, 1  ;;  %v1083_v52 = vpop.permute.xlu1 %1082  ;;  %v1081_v33 = vpop.permute.xlu0 %1080 }
 0x1b0   :  { %v3409_v7 = vrot.slane %v1333_v3, 7  ;;  %v17529_v12 = vrot.slane %v10656_v50, 1  ;;  %v17530_v43 = vrot.slane %v10656_v50, 7  ;;  %v10679_v23 = vsel %vm17541_vm14, %v2084_v60, %v18502_v44 }
 0x1b1   :  { %v10670_v63 = vsel %vm1594_vm2, %v1492_v4, %v18501_v25  ;;  %v5660_v4 = vld [vmem:[%s17058_s1 + $0x38] sm:$0xff]  ;;  %v10696_v60 = vsel %vm17546_vm7, 0.0, %v1083_v52  ;;  %v1334_v44 = vsel %vm17546_vm7, 0.0, %v1081_v33  ;;  %v5661_v52 = vld [vmem:[%s17057_s0 + $0x1e8] sm:$0xff]  ;;  %v5662_v33 = vld [vmem:[%s17057_s0 + $0x1e0] sm:$0xff]  ;;  %vm3802_vm10 = vcmp.eq.s32.totalorder %v9270_v61, 0 }
 0x1b2   :  { %v10684_v25 = vunpack.c.0.s8 %v5660_v4  ;;  %v2498_v47 = vsel %vm1983_vm0, %v17529_v12, %v2245_v8  ;;  %v3662_v18 = vsel %vm1594_vm2, %v17530_v43, %v3409_v7  ;;  %v3410_v43 = vrot.slane %v1334_v44, 7 }
 0x1b3   :  { %v4308_v4 = vsel %vm17531_vm8, %v2498_v47, %v18503_v6  ;;  %v4565_v12 = vsel %vm4053_vm3, %v18504_v31, %v3662_v18  ;;  %1198 = vrot.lane.b32.xlu1 %v5661_v52, %s5884_s21  ;;  %1196 = vrot.lane.b32.xlu0 %v5662_v33, %s5884_s21  ;;  %v18506_v31 = vld [vmem:[#allocation150_spill] sm:$0xff]  ;;  %v2246_v18 = vrot.slane %v1334_v44, 1  ;;  %vm3928_vm3 = vcmp.eq.s32.totalorder %v9154_v28, 1  ;;  %v18507_v52 = vld [vmem:[#allocation129_spill] sm:$0xff]  ;;  %v1087_v22 = vpop.permute.xlu1 %1086  ;;  %v18508_v33 = vld [vmem:[#allocation72_spill] sm:$0xff]  ;;  %v1085_v51 = vpop.permute.xlu0 %1084 }
 0x1b4   :  { %v10719_v6 = vsel %vm17539_vm9, %v10656_v50, %v4308_v4  ;;  %v4693_v47 = vsel %vm3925_vm6, %v18506_v31, %v4565_v12  ;;  %vm3800_vm8 = vcmp.eq.s32.totalorder %v9154_v28, 0  ;;  %vm3929_vm1 = vcmp.eq.s32.totalorder %v18508_v33, 1  ;;  %v18509_v50 = vld [vmem:[#allocation29_spill] sm:$0xff]  ;;  %v18511_v31 = vld [vmem:[#allocation30_spill] sm:$0xff] }
 0x1b5   :  { %18505 = vst [vmem:[#allocation405_spill] sm:$0xff] %v10719_v6  ;;  %v4821_v39 = vsel %vm3797_vm5, %v18507_v52, %v4693_v47  ;;  %v18510_v12 = vrot.slane %v18509_v50, 1  ;;  %v18512_v42 = vrot.slane %v18511_v31, 1  ;;  %v18513_v47 = vrot.slane %v10696_v60, 1  ;;  %v18516_v31 = vld [vmem:[#allocation148_spill] sm:$0xff] }
 0x1b6   :  { %v2497_v29 = vsel %vm1983_vm0, %v2245_v8, %v2246_v18  ;;  %v18514_v4 = vrot.slane %v10696_v60, 7  ;;  %v3661_v50 = vsel %vm1594_vm2, %v3409_v7, %v3410_v43  ;;  %vm3801_vm9 = vcmp.eq.s32.totalorder %v18508_v33, 0  ;;  %v5663_v7 = vld [vmem:[%s17057_s0 + $0x1f8] sm:$0xff] }
 0x1b7   :  { %v10738_v13 = vsel %vm1983_vm0, %v18512_v42, %v18510_v12  ;;  %v2496_v52 = vsel %vm1983_vm0, %v2246_v18, %v18513_v47  ;;  %v18515_v42 = vld [vmem:[#allocation59_spill] sm:$0xff]  ;;  %v4566_v8 = vsel %vm4054_vm12, %v18517_v9, %v3661_v50  ;;  %v18518_v18 = vld [vmem:[#allocation420_spill] sm:$0xff]  ;;  %1202 = vrot.lane.b32.xlu1 %v5663_v7, %s5884_s21  ;;  %v10799_v41 = vsel %vm17546_vm7, 0.0, %v1087_v22 }
 0x1b8   :  { %v3660_v6 = vsel %vm1594_vm2, %v3410_v43, %v18514_v4  ;;  %v4309_v12 = vsel %vm3925_vm6, %v2497_v29, %v18515_v42  ;;  %v4310_v47 = vsel %vm3926_vm11, %v2496_v52, %v18516_v31  ;;  %v18519_v52 = vld [vmem:[#allocation149_spill] sm:$0xff]  ;;  %v18520_v50 = vld [vmem:[#allocation147_spill] sm:$0xff]  ;;  %vm18521_vm6 = vcmp.eq.s32.totalorder %v18491_v30, 1  ;;  %v5664_v42 = vld [vmem:[%s17057_s0 + $0x1f0] sm:$0xff] }
 0x1b9   :  { %v4567_v4 = vsel %vm4055_vm4, %v18518_v18, %v3660_v6  ;;  %v4437_v29 = vsel %vm3797_vm5, %v1333_v3, %v4309_v12  ;;  %v4438_v43 = vsel %vm3798_vm13, %v1334_v44, %v4310_v47  ;;  %v4694_v9 = vsel %vm3926_vm11, %v18519_v52, %v4566_v8  ;;  %1200 = vrot.lane.b32.xlu0 %v5664_v42, %s5884_s21  ;;  %v18522_v31 = vld [vmem:[#allocation131_spill] sm:$0xff]  ;;  %v18523_v3 = vld [vmem:[#allocation132_spill] sm:$0xff]  ;;  %v1091_v8 = vpop.permute.xlu1 %1090  ;;  %v1089_v18 = vpop.permute.xlu0 %1088 }
 0x1ba   :  { %v4695_v6 = vsel %vm18521_vm6, %v18520_v50, %v4567_v4  ;;  %v4822_v38 = vsel %vm3798_vm13, %v18522_v31, %v4694_v9  ;;  %v5665_v12 = vld [vmem:[%s17057_s0 + $0x8] sm:$0xff]  ;;  %v5666_v47 = vld [vmem:[%s17057_s0 + $0x10] sm:$0xff]  ;;  %vm3930_vm13 = vcmp.eq.s32.totalorder %v9270_v61, 1  ;;  %v18524_v4 = vrot.slane %v9753_v62, 7 }
 0x1bb   :  { %v10789_v44 = vsel %vm3799_vm15, %v18523_v3, %v4695_v6  ;;  %vm4949_vm4 = vcmp.gt.f32.partialorder %v5665_v12, %v4437_v29  ;;  %vm4950_vm5 = vcmp.gt.f32.partialorder %v5666_v47, %v4438_v43  ;;  %vm5077_vm11 = vcmp.gt.f32.partialorder %v5665_v12, %v4821_v39  ;;  %v18528_v6 = vld [vmem:[#allocation73_spill] sm:$0xff]  ;;  %v5667_v42 = vld [vmem:[%s17057_s0 + $0x208] sm:$0xff] }
 0x1bc   :  { %vm5078_vm12 = vcmp.gt.f32.partialorder %v5666_v47, %v4822_v38  ;;  %v18525_v7 = vrot.slane %v9760_v36, 7  ;;  %vm10810_vm6 = vmand %vm4949_vm4, %vm5077_vm11  ;;  %v17542_v39 = vrot.slane %v10799_v41, 1  ;;  %v17544_v22 = vrot.slane %v10799_v41, 7  ;;  %1206 = vrot.lane.b32.xlu1 %v5667_v42, %s5884_s21 }
 0x1bd   :  { %v1336_v9 = vsel %vm17546_vm7, 0.0, %v1085_v51  ;;  %v10820_v50 = vsel %vm17546_vm7, 0.0, %v1091_v8  ;;  %vm5206_vm4 = vmand %vm4950_vm5, %vm5078_vm12  ;;  %v5333_v31 = vsel %vm10810_vm6, %v5665_v12, 0.0  ;;  %v5668_v51 = vld [vmem:[%s17057_s0 + $0x18] sm:$0xff]  ;;  %v5669_v8 = vld [vmem:[%s17057_s0 + $0x200] sm:$0xff]  ;;  %v1095_v52 = vpop.permute.xlu1 %1094  ;;  %v18529_v42 = vrot.slane %v10696_v60, 1 }
 0x1be   :  { %v10808_v29 = vsel %vm1594_vm2, %v18525_v7, %v18524_v4  ;;  %vm5079_vm11 = vcmp.gt.f32.partialorder %v5668_v51, %v10789_v44  ;;  %v2248_v38 = vrot.slane %v1336_v9, 1  ;;  %v3412_v3 = vrot.slane %v1336_v9, 7  ;;  %1204 = vrot.lane.b32.xlu0 %v5669_v8, %s5884_s21  ;;  %5461 = vst [vmem:[%s17059_s3 + $0x8] sm:$0xff] %v5333_v31  ;;  %v18531_v4 = vld [vmem:[#allocation162_spill] sm:$0xff] }
 0x1bf   :  { %v5334_v43 = vsel %vm5206_vm4, %v5666_v47, 0.0  ;;  %v1338_v7 = vsel %vm17546_vm7, 0.0, %v1089_v18  ;;  %v18530_v8 = vrot.slane %v10696_v60, 7  ;;  %vm18532_vm5 = vcmp.eq.s32.totalorder %v18491_v30, 1  ;;  %v18539_v30 = vld [vmem:[#allocation141_spill] sm:$0xff] }
 0x1c0   :  { %5462 = vst [vmem:[%s17059_s3 + $0x10] sm:$0xff] %v5334_v43  ;;  %v2494_v47 = vsel %vm1983_vm0, %v2248_v38, %v17542_v39  ;;  %v2495_v31 = vsel %vm1983_vm0, %v18529_v42, %v2248_v38  ;;  %v3658_v18 = vsel %vm1594_vm2, %v3412_v3, %v17544_v22  ;;  %vm18534_vm12 = vcmp.eq.s32.totalorder %v9154_v28, 2  ;;  %v18535_v42 = vld [vmem:[#allocation433_spill] sm:$0xff]  ;;  %v5673_v28 = vld [vmem:[%s17057_s0 + $0x28] sm:$0xff] }
 0x1c1   :  { %v3659_v43 = vsel %vm1594_vm2, %v18530_v8, %v3412_v3  ;;  %v4311_v12 = vsel %vm18532_vm5, %v2495_v31, %v18531_v4  ;;  %v4312_v39 = vsel %vm3928_vm3, %v2494_v47, %v9324_v56  ;;  %vm18536_vm6 = vcmp.eq.s32.totalorder %v18508_v33, 2  ;;  %v5670_v3 = vld [vmem:[%s17057_s0 + $0x218] sm:$0xff]  ;;  %v18538_v31 = vld [vmem:[#allocation154_spill] sm:$0xff]  ;;  %v1093_v8 = vpop.permute.xlu0 %1092 }
 0x1c2   :  { %v4568_v38 = vsel %vm18534_vm12, %v18533_v20, %v3659_v43  ;;  %v4569_v22 = vsel %vm18536_vm6, %v18535_v42, %v3658_v18  ;;  %1210 = vrot.lane.b32.xlu1 %v5670_v3, %s5884_s21  ;;  %v4439_v4 = vsel %vm3799_vm15, %v10696_v60, %v4311_v12  ;;  %v4440_v56 = vsel %vm3800_vm8, %v1336_v9, %v4312_v39  ;;  %v18537_v47 = vld [vmem:[#allocation157_spill] sm:$0xff]  ;;  %v5671_v43 = vld [vmem:[%s17057_s0 + $0x210] sm:$0xff]  ;;  %v1099_v12 = vpop.permute.xlu1 %1098 }
 0x1c3   :  { %v4696_v20 = vsel %vm3928_vm3, %v18537_v47, %v4568_v38  ;;  %v4697_v18 = vsel %vm3929_vm1, %v18538_v31, %v4569_v22  ;;  %1208 = vrot.lane.b32.xlu0 %v5671_v43, %s5884_s21  ;;  %v18540_v39 = vld [vmem:[#allocation140_spill] sm:$0xff]  ;;  %vm4951_vm15 = vcmp.gt.f32.partialorder %v5668_v51, %v4439_v4  ;;  %v5672_v22 = vld [vmem:[%s17057_s0 + $0x20] sm:$0xff]  ;;  %v2250_v42 = vrot.slane %v1338_v7, 1  ;;  %v18543_v4 = vld [vmem:[#allocation75_spill] sm:$0xff] }
 0x1c4   :  { %v4824_v60 = vsel %vm3800_vm8, %v18539_v30, %v4696_v20  ;;  %v4825_v9 = vsel %vm3801_vm9, %v18540_v39, %v4697_v18  ;;  %vm4952_vm3 = vcmp.gt.f32.partialorder %v5672_v22, %v4440_v56  ;;  %vm10909_vm12 = vmand %vm4951_vm15, %vm5079_vm11  ;;  %v3414_v3 = vrot.slane %v1338_v7, 7  ;;  %v5674_v31 = vld [vmem:[%s17057_s0 + $0x228] sm:$0xff]  ;;  %v5675_v39 = vld [vmem:[%s17057_s0 + $0x220] sm:$0xff] }
 0x1c5   :  { %vm5080_vm5 = vcmp.gt.f32.partialorder %v5672_v22, %v4824_v60  ;;  %vm5081_vm8 = vcmp.gt.f32.partialorder %v5673_v28, %v4825_v9  ;;  %vm3804_vm6 = vcmp.eq.s32.totalorder %v9421_v49, 0  ;;  %vm3933_vm14 = vcmp.eq.s32.totalorder %v18543_v4, 1  ;;  %v18548_v38 = vld [vmem:[#allocation170_spill] sm:$0xff] }
 0x1c6   :  { %vm5208_vm4 = vmand %vm4952_vm3, %vm5080_vm5  ;;  %v5335_v56 = vsel %vm10909_vm12, %v5668_v51, 0.0  ;;  %v10922_v44 = vsel %vm17546_vm7, 0.0, %v1095_v52  ;;  %vm3805_vm11 = vcmp.eq.s32.totalorder %v18543_v4, 0  ;;  %v10927_v47 = vsel %vm17546_vm7, 0.0, %v1093_v8  ;;  %1214 = vrot.lane.b32.xlu1 %v5674_v31, %s5884_s21 }
 0x1c7   :  { %v10931_v20 = vsel %vm17546_vm7, 0.0, %v1099_v12  ;;  %v5336_v51 = vsel %vm5208_vm4, %v5672_v22, 0.0  ;;  %5463 = vst [vmem:[%s17059_s3 + $0x18] sm:$0xff] %v5335_v56  ;;  %v18544_v52 = vrot.slane %v10820_v50, 1  ;;  %v18545_v8 = vrot.slane %v10799_v41, 1  ;;  %1212 = vrot.lane.b32.xlu0 %v5675_v39, %s5884_s21  ;;  %v18549_v56 = vld [vmem:[#allocation169_spill] sm:$0xff] }
 0x1c8   :  { %v18546_v30 = vrot.slane %v10820_v50, 7  ;;  %5464 = vst [vmem:[%s17059_s3 + $0x20] sm:$0xff] %v5336_v51  ;;  %v18547_v22 = vrot.slane %v10799_v41, 7  ;;  %vm18551_vm15 = vcmp.eq.s32.totalorder %v18528_v6, 2  ;;  %vm18553_vm3 = vcmp.eq.s32.totalorder %v9270_v61, 2 }
 0x1c9   :  { %v2492_v18 = vsel %vm1983_vm0, %v2250_v42, %v18544_v52  ;;  %v2493_v43 = vsel %vm1983_vm0, %v18545_v8, %v2250_v42  ;;  %v18550_v52 = vld [vmem:[#allocation8_spill] sm:$0xff]  ;;  %vm18558_vm4 = vcmp.eq.s32.totalorder %v18528_v6, 0  ;;  %v2252_v9 = vrot.slane %v10927_v47, 1 }
 0x1ca   :  { %v3656_v60 = vsel %vm1594_vm2, %v3414_v3, %v18546_v30  ;;  %v3657_v12 = vsel %vm1594_vm2, %v18547_v22, %v3414_v3  ;;  %v4313_v42 = vsel %vm3929_vm1, %v2493_v43, %v18548_v38  ;;  %v4314_v31 = vsel %vm3930_vm13, %v2492_v18, %v18549_v56  ;;  %v18552_v3 = vld [vmem:[#allocation203_spill] sm:$0xff]  ;;  %v18554_v43 = vld [vmem:[#allocation166_spill] sm:$0xff]  ;;  %v5677_v56 = vld [vmem:[%s17057_s0 + $0x238] sm:$0xff] }
 0x1cb   :  { %v4571_v8 = vsel %vm18551_vm15, %v18550_v52, %v3656_v60  ;;  %v4441_v51 = vsel %vm3801_vm9, %v10799_v41, %v4313_v42  ;;  %v4442_v30 = vsel %vm3802_vm10, %v1338_v7, %v4314_v31  ;;  %v4570_v39 = vsel %vm18553_vm3, %v18552_v3, %v3657_v12  ;;  %v18556_v18 = vld [vmem:[#allocation167_spill] sm:$0xff]  ;;  %v5676_v41 = vld [vmem:[%s17057_s0 + $0x30] sm:$0xff]  ;;  %v1097_v12 = vpop.permute.xlu0 %1096  ;;  %v1103_v42 = vpop.permute.xlu1 %1102  ;;  %1218 = vrot.lane.b32.xlu1 %v5677_v56, %s5884_s21  ;;  %v18560_v31 = vld [vmem:[#allocation146_spill] sm:$0xff] }
 0x1cc   :  { %vm18555_vm1 = vcmp.eq.s32.totalorder %v18528_v6, 1  ;;  %v4698_v38 = vsel %vm3930_vm13, %v18556_v18, %v4570_v39  ;;  %v18557_v60 = vld [vmem:[#allocation151_spill] sm:$0xff]  ;;  %vm4953_vm9 = vcmp.gt.f32.partialorder %v5673_v28, %v4441_v51  ;;  %vm4954_vm5 = vcmp.gt.f32.partialorder %v5676_v41, %v4442_v30  ;;  %v18559_v7 = vld [vmem:[#allocation464_spill] sm:$0xff]  ;;  %v5678_v3 = vld [vmem:[%s17057_s0 + $0x38] sm:$0xff] }
 0x1cd   :  { %v4699_v22 = vsel %vm18555_vm1, %v18554_v43, %v4571_v8  ;;  %vm3934_vm12 = vcmp.eq.s32.totalorder %v18559_v7, 1  ;;  %v4826_v52 = vsel %vm3802_vm10, %v18560_v31, %v4698_v38  ;;  %vm5209_vm13 = vmand %vm4953_vm9, %vm5081_vm8  ;;  %v2253_v8 = vrot.slane %v10922_v44, 1  ;;  %v5679_v39 = vld [vmem:[%s17057_s0 + $0x230] sm:$0xff]  ;;  %v18568_v38 = vld [vmem:[#allocation455_spill] sm:$0xff] }
 0x1ce   :  { %v4827_v33 = vsel %vm18558_vm4, %v18557_v60, %v4699_v22  ;;  %v17545_v51 = vrot.slane %v10922_v44, 7  ;;  %vm3806_vm3 = vcmp.eq.s32.totalorder %v18559_v7, 0  ;;  %1216 = vrot.lane.b32.xlu0 %v5679_v39, %s5884_s21  ;;  %vm5082_vm10 = vcmp.gt.f32.partialorder %v5676_v41, %v4826_v52  ;;  %v18561_v22 = vld [vmem:[#allocation76_spill] sm:$0xff] }
 0x1cf   :  { %vm5083_vm15 = vcmp.gt.f32.partialorder %v5678_v3, %v4827_v33  ;;  %v5337_v61 = vsel %vm5209_vm13, %v5673_v28, 0.0  ;;  %v3416_v43 = vrot.slane %v10927_v47, 7  ;;  %vm3935_vm8 = vcmp.eq.s32.totalorder %v18561_v22, 1  ;;  %vm5210_vm1 = vmand %vm4954_vm5, %vm5082_vm10 }
 0x1d0   :  { %5465 = vst [vmem:[%s17059_s3 + $0x28] sm:$0xff] %v5337_v61  ;;  %v17547_v18 = vrot.slane %v10931_v20, 1  ;;  %vm3807_vm4 = vcmp.eq.s32.totalorder %v18561_v22, 0  ;;  %v1342_v28 = vsel %vm17546_vm7, 0.0, %v1097_v12  ;;  %v11025_v60 = vsel %vm17546_vm7, 0.0, %v1103_v42  ;;  %v5680_v42 = vld [vmem:[%s17057_s0 + $0x248] sm:$0xff] }
 0x1d1   :  { %v5338_v56 = vsel %vm5210_vm1, %v5676_v41, 0.0  ;;  %v2490_v30 = vsel %vm1983_vm0, %v2252_v9, %v2253_v8  ;;  %v18562_v31 = vrot.slane %v10820_v50, 1  ;;  %v3654_v12 = vsel %vm1594_vm2, %v3416_v43, %v17545_v51  ;;  %1222 = vrot.lane.b32.xlu1 %v5680_v42, %s5884_s21  ;;  %v18564_v61 = vld [vmem:[#allocation63_spill] sm:$0xff] }
 0x1d2   :  { %5466 = vst [vmem:[%s17059_s3 + $0x30] sm:$0xff] %v5338_v56  ;;  %v18563_v41 = vrot.slane %v10820_v50, 7  ;;  %vm18565_vm9 = vcmp.eq.s32.totalorder %v18528_v6, 1  ;;  %vm18567_vm5 = vcmp.eq.s32.totalorder %v9421_v49, 1  ;;  %vm18569_vm13 = vcmp.eq.s32.totalorder %v18543_v4, 2  ;;  %v5681_v56 = vld [vmem:[%s17057_s0 + $0x240] sm:$0xff] }
 0x1d3   :  { %v2491_v52 = vsel %vm1983_vm0, %v18562_v31, %v2252_v9  ;;  %v18566_v31 = vld [vmem:[#allocation179_spill] sm:$0xff]  ;;  %v4573_v42 = vsel %vm18569_vm13, %v18568_v38, %v3654_v12  ;;  %1220 = vrot.lane.b32.xlu0 %v5681_v56, %s5884_s21  ;;  %vm18570_vm10 = vcmp.eq.s32.totalorder %v18528_v6, 0  ;;  %vm18572_vm1 = vcmp.eq.s32.totalorder %v9421_v49, 2  ;;  %v18574_v12 = vld [vmem:[#allocation177_spill] sm:$0xff]  ;;  %v18576_v56 = vld [vmem:[#allocation158_spill] sm:$0xff] }
 0x1d4   :  { %v3655_v39 = vsel %vm1594_vm2, %v18563_v41, %v3416_v43  ;;  %v4315_v9 = vsel %vm18565_vm9, %v2491_v52, %v18564_v61  ;;  %v4316_v51 = vsel %vm18567_vm5, %v2490_v30, %v18566_v31  ;;  %v18571_v41 = vld [vmem:[#allocation456_spill] sm:$0xff]  ;;  %v18573_v61 = vld [vmem:[#allocation175_spill] sm:$0xff]  ;;  %vm18575_vm9 = vmmov %vm18567_vm5 }
 0x1d5   :  { %v4443_v43 = vsel %vm18570_vm10, %v10820_v50, %v4315_v9  ;;  %v4444_v52 = vsel %vm3804_vm6, %v10927_v47, %v4316_v51  ;;  %v4572_v30 = vsel %vm18572_vm1, %v18571_v41, %v3655_v39  ;;  %v4701_v38 = vsel %vm3933_vm14, %v18573_v61, %v4573_v42  ;;  %v5682_v6 = vld [vmem:[%s17057_s0 + $0x40] sm:$0xff]  ;;  %v1101_v47 = vpop.permute.xlu0 %1100  ;;  %v1107_v51 = vpop.permute.xlu1 %1106  ;;  %v18577_v39 = vld [vmem:[#allocation155_spill] sm:$0xff]  ;;  %v5684_v49 = vld [vmem:[%s17057_s0 + $0x258] sm:$0xff] }
 0x1d6   :  { %v4700_v31 = vsel %vm18575_vm9, %v18574_v12, %v4572_v30  ;;  %v4829_v50 = vsel %vm3805_vm11, %v18576_v56, %v4701_v38  ;;  %vm4955_vm5 = vcmp.gt.f32.partialorder %v5678_v3, %v4443_v43  ;;  %vm4956_vm13 = vcmp.gt.f32.partialorder %v5682_v6, %v4444_v52  ;;  %v5683_v43 = vld [vmem:[%s17057_s0 + $0x48] sm:$0xff]  ;;  %v18580_v61 = vld [vmem:[#allocation78_spill] sm:$0xff]  ;;  %1226 = vrot.lane.b32.xlu1 %v5684_v49, %s5884_s21  ;;  %v18584_v12 = vld [vmem:[#allocation188_spill] sm:$0xff] }
 0x1d7   :  { %v4828_v9 = vsel %vm3804_vm6, %v18577_v39, %v4700_v31  ;;  %vm11089_vm1 = vmand %vm4955_vm5, %vm5083_vm15  ;;  %vm5085_vm9 = vcmp.gt.f32.partialorder %v5683_v43, %v4829_v50  ;;  %v2254_v41 = vrot.slane %v1342_v28, 1  ;;  %v3418_v30 = vrot.slane %v1342_v28, 7  ;;  %v5685_v31 = vld [vmem:[%s17057_s0 + $0x250] sm:$0xff] }
 0x1d8   :  { %vm3808_vm10 = vcmp.eq.s32.totalorder %v9712_v17, 0  ;;  %vm5084_vm6 = vcmp.gt.f32.partialorder %v5682_v6, %v4828_v9  ;;  %v5339_v33 = vsel %vm11089_vm1, %v5678_v3, 0.0  ;;  %v2257_v38 = vrot.slane %v11025_v60, 1  ;;  %1224 = vrot.lane.b32.xlu0 %v5685_v31, %s5884_s21 }
 0x1d9   :  { %vm5212_vm5 = vmand %vm4956_vm13, %vm5084_vm6  ;;  %5467 = vst [vmem:[%s17059_s3 + $0x38] sm:$0xff] %v5339_v33  ;;  %v2488_v3 = vsel %vm1983_vm0, %v2254_v41, %v17547_v18  ;;  %v2489_v56 = vsel %vm1983_vm0, %v2253_v8, %v2254_v41  ;;  %v18581_v39 = vrot.slane %v10931_v20, 7  ;;  %v18582_v9 = vrot.slane %v10922_v44, 7  ;;  %v18583_v33 = vld [vmem:[#allocation64_spill] sm:$0xff]  ;;  %v18585_v8 = vld [vmem:[#allocation469_spill] sm:$0xff] }
 0x1da   :  { %v5340_v49 = vsel %vm5212_vm5, %v5682_v6, 0.0  ;;  %v4317_v31 = vsel %vm3933_vm14, %v2489_v56, %v18583_v33  ;;  %v4318_v18 = vsel %vm3934_vm12, %v2488_v3, %v18584_v12  ;;  %vm18586_vm13 = vcmp.eq.s32.totalorder %v18559_v7, 2  ;;  %v18587_v56 = vld [vmem:[#allocation468_spill] sm:$0xff]  ;;  %v18589_v12 = vld [vmem:[#allocation187_spill] sm:$0xff]  ;;  %v5688_v33 = vld [vmem:[%s17057_s0 + $0x260] sm:$0xff] }
 0x1db   :  { %v3652_v52 = vsel %vm1594_vm2, %v3418_v30, %v18581_v39  ;;  %v3653_v42 = vsel %vm1594_vm2, %v18582_v9, %v3418_v30  ;;  %5468 = vst [vmem:[%s17059_s3 + $0x40] sm:$0xff] %v5340_v49  ;;  %v4445_v6 = vsel %vm3805_vm11, %v10922_v44, %v4317_v31  ;;  %v4446_v30 = vsel %vm3806_vm3, %v1342_v28, %v4318_v18  ;;  %v5686_v9 = vld [vmem:[%s17057_s0 + $0x268] sm:$0xff]  ;;  %v18591_v44 = vld [vmem:[#allocation164_spill] sm:$0xff]  ;;  %v1111_v49 = vpop.permute.xlu1 %1110 }
 0x1dc   :  { %v4574_v41 = vsel %vm18586_vm13, %v18585_v8, %v3653_v42  ;;  %vm18588_vm14 = vcmp.eq.s32.totalorder %v18561_v22, 2  ;;  %1230 = vrot.lane.b32.xlu1 %v5686_v9, %s5884_s21  ;;  %v18590_v42 = vld [vmem:[#allocation185_spill] sm:$0xff]  ;;  %vm4957_vm11 = vcmp.gt.f32.partialorder %v5683_v43, %v4445_v6  ;;  %v5687_v28 = vld [vmem:[%s17057_s0 + $0x50] sm:$0xff]  ;;  %1228 = vrot.lane.b32.xlu0 %v5688_v33, %s5884_s21  ;;  %vm18593_vm5 = vcmp.eq.s32.totalorder %v6314_v55, 127  ;;  %v18595_v6 = vld [vmem:[#allocation79_spill] sm:$0xff] }
 0x1dd   :  { %v4575_v39 = vsel %vm18588_vm14, %v18587_v56, %v3652_v52  ;;  %v4702_v3 = vsel %vm3934_vm12, %v18589_v12, %v4574_v41  ;;  %vm4958_vm12 = vcmp.gt.f32.partialorder %v5687_v28, %v4446_v30  ;;  %v1105_v52 = vpop.permute.xlu0 %1104  ;;  %v18592_v31 = vld [vmem:[#allocation168_spill] sm:$0xff]  ;;  %vm5213_vm6 = vmand %vm4957_vm11, %vm5085_vm9  ;;  %v1344_v8 = vsel %vm18593_vm5, 0.0, %v1101_v47  ;;  %v5689_v56 = vld [vmem:[%s17057_s0 + $0x58] sm:$0xff] }
 0x1de   :  { %v4703_v4 = vsel %vm3935_vm8, %v18590_v42, %v4575_v39  ;;  %v4830_v18 = vsel %vm3806_vm3, %v18591_v44, %v4702_v3  ;;  %vm18594_vm13 = vmmov %vm18593_vm5  ;;  %vm3810_vm14 = vcmp.eq.s32.totalorder %v9831_v16, 0  ;;  %vm3939_vm1 = vcmp.eq.s32.totalorder %v18595_v6, 1  ;;  %v5690_v3 = vld [vmem:[%s17057_s0 + $0x278] sm:$0xff]  ;;  %v5691_v33 = vld [vmem:[%s17057_s0 + $0x270] sm:$0xff] }
 0x1df   :  { %v4831_v7 = vsel %vm3807_vm4, %v18592_v31, %v4703_v4  ;;  %vm5086_vm3 = vcmp.gt.f32.partialorder %v5687_v28, %v4830_v18  ;;  %v11180_v41 = vsel %vm18594_vm13, 0.0, %v1107_v51  ;;  %v5341_v30 = vsel %vm5213_vm6, %v5683_v43, 0.0  ;;  %vm18596_vm11 = vmmov %vm18593_vm5  ;;  %v18600_v31 = vld [vmem:[#allocation65_spill] sm:$0xff]  ;;  %v18611_v12 = vld [vmem:[#allocation174_spill] sm:$0xff] }
 0x1e0   :  { %vm5214_vm15 = vmand %vm4958_vm12, %vm5086_vm3  ;;  %vm5087_vm7 = vcmp.gt.f32.partialorder %v5689_v56, %v4831_v7  ;;  %v2256_v50 = vrot.slane %v1344_v8, 1  ;;  %v3420_v39 = vrot.slane %v1344_v8, 7  ;;  %vm3811_vm9 = vcmp.eq.s32.totalorder %v18595_v6, 0  ;;  %5469 = vst [vmem:[%s17059_s3 + $0x48] sm:$0xff] %v5341_v30  ;;  %1234 = vrot.lane.b32.xlu1 %v5690_v3, %s5884_s21  ;;  %1232 = vrot.lane.b32.xlu0 %v5691_v33, %s5884_s21  ;;  %v18603_v3 = vld [vmem:[#allocation482_spill] sm:$0xff] }
 0x1e1   :  { %v5342_v47 = vsel %vm5214_vm15, %v5687_v28, 0.0  ;;  %v2259_v51 = vrot.slane %v11180_v41, 1  ;;  %v1346_v43 = vsel %vm18596_vm11, 0.0, %v1105_v52  ;;  %v18597_v42 = vrot.slane %v10931_v20, 1  ;;  %v5692_v22 = vld [vmem:[%s17057_s0 + $0x60] sm:$0xff] }
 0x1e2   :  { %5470 = vst [vmem:[%s17059_s3 + $0x50] sm:$0xff] %v5342_v47  ;;  %v2486_v9 = vsel %vm1983_vm0, %v2256_v50, %v2257_v38  ;;  %v18598_v44 = vrot.slane %v11025_v60, 7  ;;  %v18599_v28 = vrot.slane %v10931_v20, 7  ;;  %vm18602_vm15 = vcmp.eq.s32.totalorder %v9712_v17, 1 }
 0x1e3   :  { %v2487_v4 = vsel %vm1983_vm0, %v18597_v42, %v2256_v50  ;;  %v18601_v50 = vld [vmem:[#allocation196_spill] sm:$0xff]  ;;  %vm18604_vm12 = vcmp.eq.s32.totalorder %v9712_v17, 2  ;;  %vm18606_vm3 = vcmp.eq.s32.totalorder %v18580_v61, 2  ;;  %vm18610_vm6 = vcmp.eq.s32.totalorder %v18580_v61, 1  ;;  %v5696_v17 = vld [vmem:[%s17057_s0 + $0x298] sm:$0xff] }
 0x1e4   :  { %v3650_v18 = vsel %vm1594_vm2, %v3420_v39, %v18598_v44  ;;  %v3651_v52 = vsel %vm1594_vm2, %v18599_v28, %v3420_v39  ;;  %v4319_v30 = vsel %vm3935_vm8, %v2487_v4, %v18600_v31  ;;  %v4320_v47 = vsel %vm18602_vm15, %v2486_v9, %v18601_v50  ;;  %v18605_v44 = vld [vmem:[#allocation481_spill] sm:$0xff]  ;;  %v18607_v4 = vld [vmem:[#allocation194_spill] sm:$0xff]  ;;  %vm18608_vm8 = vmmov %vm18602_vm15 }
 0x1e5   :  { %v4576_v42 = vsel %vm18604_vm12, %v18603_v3, %v3651_v52  ;;  %v4577_v39 = vsel %vm18606_vm3, %v18605_v44, %v3650_v18  ;;  %v4447_v28 = vsel %vm3807_vm4, %v10931_v20, %v4319_v30  ;;  %v4448_v33 = vsel %vm3808_vm10, %v1344_v8, %v4320_v47  ;;  %v18609_v9 = vld [vmem:[#allocation193_spill] sm:$0xff]  ;;  %v1109_v52 = vpop.permute.xlu0 %1108  ;;  %v1115_v3 = vpop.permute.xlu1 %1114  ;;  %v18612_v44 = vld [vmem:[#allocation178_spill] sm:$0xff]  ;;  %v5693_v8 = vld [vmem:[%s17057_s0 + $0x288] sm:$0xff] }
 0x1e6   :  { %v4704_v31 = vsel %vm18608_vm8, %v18607_v4, %v4576_v42  ;;  %v4705_v50 = vsel %vm18610_vm6, %v18609_v9, %v4577_v39  ;;  %vm18613_vm4 = vcmp.eq.s32.totalorder %v18580_v61, 0  ;;  %vm4959_vm5 = vcmp.gt.f32.partialorder %v5689_v56, %v4447_v28  ;;  %1238 = vrot.lane.b32.xlu1 %v5693_v8, %s5884_s21  ;;  %v18616_v42 = vld [vmem:[#allocation80_spill] sm:$0xff]  ;;  %v5695_v39 = vld [vmem:[%s17057_s0 + $0x280] sm:$0xff] }
 0x1e7   :  { %v4832_v18 = vsel %vm3808_vm10, %v18611_v12, %v4704_v31  ;;  %v4833_v20 = vsel %vm18613_vm4, %v18612_v44, %v4705_v50  ;;  %vm4960_vm13 = vcmp.gt.f32.partialorder %v5692_v22, %v4448_v33  ;;  %vm3940_vm11 = vcmp.eq.s32.totalorder %v9921_v11, 1  ;;  %vm11260_vm10 = vmand %vm4959_vm5, %vm5087_vm7  ;;  %v5694_v12 = vld [vmem:[%s17057_s0 + $0x68] sm:$0xff]  ;;  %1236 = vrot.lane.b32.xlu0 %v5695_v39, %s5884_s21  ;;  %v18628_v39 = vld [vmem:[#allocation493_spill] sm:$0xff] }
 0x1e8   :  { %vm5088_vm15 = vcmp.gt.f32.partialorder %v5692_v22, %v4832_v18  ;;  %vm5089_vm12 = vcmp.gt.f32.partialorder %v5694_v12, %v4833_v20  ;;  %v2258_v30 = vrot.slane %v1346_v43, 1  ;;  %v3422_v47 = vrot.slane %v1346_v43, 7  ;;  %v18622_v18 = vld [vmem:[#allocation66_spill] sm:$0xff] }
 0x1e9   :  { %vm3812_vm3 = vcmp.eq.s32.totalorder %v9921_v11, 0  ;;  %vm5216_vm7 = vmand %vm4960_vm13, %vm5088_vm15  ;;  %v5343_v7 = vsel %vm11260_vm10, %v5689_v56, 0.0  ;;  %vm18617_vm6 = vcmp.eq.s32.totalorder %v6314_v55, 127  ;;  %vm3813_vm4 = vcmp.eq.s32.totalorder %v18616_v42, 0 }
 0x1ea   :  { %v11277_v28 = vsel %vm18617_vm6, 0.0, %v1111_v49  ;;  %vm18618_vm5 = vmmov %vm18617_vm6  ;;  %v5344_v31 = vsel %vm5216_vm7, %v5692_v22, 0.0  ;;  %5471 = vst [vmem:[%s17059_s3 + $0x58] sm:$0xff] %v5343_v7  ;;  %v2484_v49 = vsel %vm1983_vm0, %v2258_v30, %v2259_v51  ;;  %v2485_v56 = vsel %vm1983_vm0, %v2257_v38, %v2258_v30  ;;  %v18625_v22 = vld [vmem:[#allocation495_spill] sm:$0xff]  ;;  %1242 = vrot.lane.b32.xlu1 %v5696_v17, %s5884_s21  ;;  %v18630_v7 = vld [vmem:[#allocation201_spill] sm:$0xff] }
 0x1eb   :  { %v1348_v33 = vsel %vm18618_vm5, 0.0, %v1109_v52  ;;  %vm18619_vm8 = vmmov %vm18618_vm5  ;;  %v18620_v9 = vrot.slane %v11180_v41, 7  ;;  %5472 = vst [vmem:[%s17059_s3 + $0x60] sm:$0xff] %v5344_v31  ;;  %v18621_v52 = vrot.slane %v11025_v60, 7  ;;  %vm18623_vm13 = vcmp.eq.s32.totalorder %v18580_v61, 1 }
 0x1ec   :  { %v11284_v4 = vsel %vm18619_vm8, 0.0, %v1115_v3  ;;  %v4321_v44 = vsel %vm18623_vm13, %v2485_v56, %v18622_v18  ;;  %vm18624_vm15 = vcmp.eq.s32.totalorder %v9831_v16, 1  ;;  %vm18626_vm10 = vcmp.eq.s32.totalorder %v18595_v6, 2  ;;  %v18631_v56 = vld [vmem:[#allocation202_spill] sm:$0xff]  ;;  %v18646_v6 = vld [vmem:[#allocation197_spill] sm:$0xff] }
 0x1ed   :  { %v3648_v50 = vsel %vm1594_vm2, %v3422_v47, %v18620_v9  ;;  %v3649_v3 = vsel %vm1594_vm2, %v18621_v52, %v3422_v47  ;;  %v4322_v38 = vsel %vm18624_vm15, %v2484_v49, %v9968_v27  ;;  %vm18627_vm8 = vcmp.eq.s32.totalorder %v18580_v61, 0  ;;  %v5697_v49 = vld [vmem:[%s17057_s0 + $0x290] sm:$0xff]  ;;  %vm18632_vm6 = vmmov %vm18624_vm15  ;;  %v18633_v61 = vld [vmem:[#allocation186_spill] sm:$0xff]  ;;  %v1119_v52 = vpop.permute.xlu1 %1118 }
 0x1ee   :  { %v4579_v8 = vsel %vm18626_vm10, %v18625_v22, %v3648_v50  ;;  %v4449_v30 = vsel %vm18627_vm8, %v11025_v60, %v4321_v44  ;;  %v4450_v47 = vsel %vm3810_vm14, %v1346_v43, %v4322_v38  ;;  %vm18629_vm7 = vcmp.eq.s32.totalorder %v9831_v16, 2  ;;  %1240 = vrot.lane.b32.xlu0 %v5697_v49, %s5884_s21  ;;  %v5698_v9 = vld [vmem:[%s17057_s0 + $0x70] sm:$0xff]  ;;  %v1113_v50 = vpop.permute.xlu0 %1112  ;;  %v5699_v22 = vld [vmem:[%s17057_s0 + $0x78] sm:$0xff]  ;;  %v5700_v16 = vld [vmem:[%s17057_s0 + $0x2a8] sm:$0xff] }
 0x1ef   :  { %v4578_v27 = vsel %vm18629_vm7, %v18628_v39, %v3649_v3  ;;  %v4707_v31 = vsel %vm3939_vm1, %v18630_v7, %v4579_v8  ;;  %vm4961_vm5 = vcmp.gt.f32.partialorder %v5694_v12, %v4449_v30  ;;  %vm4962_vm13 = vcmp.gt.f32.partialorder %v5698_v9, %v4450_v47  ;;  %v18634_v3 = vld [vmem:[#allocation182_spill] sm:$0xff]  ;;  %v18635_v39 = vld [vmem:[#allocation81_spill] sm:$0xff]  ;;  %1246 = vrot.lane.b32.xlu1 %v5700_v16, %s5884_s21 }
 0x1f0   :  { %v4706_v60 = vsel %vm18632_vm6, %v18631_v56, %v4578_v27  ;;  %v4835_v43 = vsel %vm3811_vm9, %v18633_v61, %v4707_v31  ;;  %vm5217_vm10 = vmand %vm4961_vm5, %vm5089_vm12  ;;  %v2261_v44 = vrot.slane %v11277_v28, 1  ;;  %v3425_v38 = vrot.slane %v11277_v28, 7  ;;  %v5701_v47 = vld [vmem:[%s17057_s0 + $0x2a0] sm:$0xff]  ;;  %v18643_v16 = vld [vmem:[#allocation213_spill] sm:$0xff] }
 0x1f1   :  { %v4834_v18 = vsel %vm3810_vm14, %v18634_v3, %v4706_v60  ;;  %vm5091_vm8 = vcmp.gt.f32.partialorder %v5699_v22, %v4835_v43  ;;  %vm3814_vm7 = vcmp.eq.s32.totalorder %v10106_v10, 0  ;;  %v5345_v8 = vsel %vm5217_vm10, %v5694_v12, 0.0 }
 0x1f2   :  { %vm5090_vm6 = vcmp.gt.f32.partialorder %v5698_v9, %v4834_v18  ;;  %v2260_v17 = vrot.slane %v1348_v33, 1  ;;  %v3424_v30 = vrot.slane %v1348_v33, 7  ;;  %vm3943_vm15 = vcmp.eq.s32.totalorder %v18635_v39, 1  ;;  %5473 = vst [vmem:[%s17059_s3 + $0x68] sm:$0xff] %v5345_v8  ;;  %1244 = vrot.lane.b32.xlu0 %v5701_v47, %s5884_s21 }
 0x1f3   :  { %vm5218_vm14 = vmand %vm4962_vm13, %vm5090_vm6  ;;  %v2263_v20 = vrot.slane %v11284_v4, 1  ;;  %v3427_v12 = vrot.slane %v11284_v4, 7  ;;  %vm3815_vm12 = vcmp.eq.s32.totalorder %v18635_v39, 0  ;;  %vm18636_vm5 = vcmp.eq.s32.totalorder %v6314_v55, 127 }
 0x1f4   :  { %v1350_v27 = vsel %vm18636_vm5, 0.0, %v1113_v50  ;;  %vm18637_vm10 = vmmov %vm18636_vm5  ;;  %v5346_v31 = vsel %vm5218_vm14, %v5698_v9, 0.0  ;;  %v2482_v49 = vsel %vm1983_vm0, %v2260_v17, %v2261_v44  ;;  %v2483_v56 = vsel %vm1983_vm0, %v2259_v51, %v2260_v17  ;;  %v18639_v50 = vld [vmem:[#allocation69_spill] sm:$0xff]  ;;  %v18641_v17 = vld [vmem:[#allocation502_spill] sm:$0xff] }
 0x1f5   :  { %v11372_v7 = vsel %vm18637_vm10, 0.0, %v1119_v52  ;;  %v3646_v60 = vsel %vm1594_vm2, %v3424_v30, %v3425_v38  ;;  %5474 = vst [vmem:[%s17059_s3 + $0x70] sm:$0xff] %v5346_v31  ;;  %v18638_v61 = vrot.slane %v11180_v41, 7  ;;  %v4323_v52 = vsel %vm3939_vm1, %v2483_v56, %v18639_v50  ;;  %v5703_v31 = vld [vmem:[%s17057_s0 + $0x80] sm:$0xff]  ;;  %v1123_v56 = vpop.permute.xlu1 %1122  ;;  %v5705_v50 = vld [vmem:[%s17057_s0 + $0x88] sm:$0xff] }
 0x1f6   :  { %v4324_v51 = vsel %vm3940_vm11, %v2482_v49, %v10087_v1  ;;  %vm18640_vm13 = vcmp.eq.s32.totalorder %v18616_v42, 2  ;;  %v4451_v18 = vsel %vm3811_vm9, %v11180_v41, %v4323_v52  ;;  %vm18642_vm6 = vcmp.eq.s32.totalorder %v9921_v11, 2  ;;  %v5702_v1 = vld [vmem:[%s17057_s0 + $0x2b8] sm:$0xff]  ;;  %v1117_v49 = vpop.permute.xlu0 %1116 }
 0x1f7   :  { %v3647_v9 = vsel %vm1594_vm2, %v18638_v61, %v3424_v30  ;;  %v4581_v3 = vsel %vm18640_vm13, %v10039_v45, %v3646_v60  ;;  %v4452_v8 = vsel %vm3812_vm3, %v1348_v33, %v4324_v51  ;;  %vm18644_vm1 = vcmp.eq.s32.totalorder %v18616_v42, 1  ;;  %1250 = vrot.lane.b32.xlu1 %v5702_v1, %s5884_s21  ;;  %v18645_v45 = vld [vmem:[#allocation214_spill] sm:$0xff]  ;;  %v5704_v60 = vld [vmem:[%s17057_s0 + $0x2b0] sm:$0xff]  ;;  %v18649_v1 = vld [vmem:[#allocation77_spill] sm:$0xff] }
 0x1f8   :  { %v4580_v30 = vsel %vm18642_vm6, %v18641_v17, %v3647_v9  ;;  %v4709_v47 = vsel %vm18644_vm1, %v18643_v16, %v4581_v3  ;;  %vm4963_vm9 = vcmp.gt.f32.partialorder %v5699_v22, %v4451_v18  ;;  %vm4964_vm14 = vcmp.gt.f32.partialorder %v5703_v31, %v4452_v8  ;;  %1248 = vrot.lane.b32.xlu0 %v5704_v60, %s5884_s21  ;;  %v18647_v61 = vld [vmem:[#allocation192_spill] sm:$0xff]  ;;  %v18648_v3 = vld [vmem:[#allocation85_spill] sm:$0xff]  ;;  %v5706_v16 = vld [vmem:[%s17057_s0 + $0x2c8] sm:$0xff] }
 0x1f9   :  { %v4708_v41 = vsel %vm3940_vm11, %v18645_v45, %v4580_v30  ;;  %v4837_v33 = vsel %vm3813_vm4, %v18646_v6, %v4709_v47  ;;  %vm3944_vm5 = vcmp.eq.s32.totalorder %v10196_v14, 1  ;;  %vm5219_vm11 = vmand %vm4963_vm9, %vm5091_vm8  ;;  %v2262_v52 = vrot.slane %v1350_v27, 1 }
 0x1fa   :  { %v4836_v9 = vsel %vm3812_vm3, %v18647_v61, %v4708_v41  ;;  %vm5093_vm10 = vcmp.gt.f32.partialorder %v5705_v50, %v4837_v33  ;;  %v3426_v51 = vrot.slane %v1350_v27, 7  ;;  %vm3816_vm13 = vcmp.eq.s32.totalorder %v10196_v14, 0  ;;  %v18656_v61 = vld [vmem:[#allocation219_spill] sm:$0xff] }
 0x1fb   :  { %vm3945_vm6 = vcmp.eq.s32.totalorder %v18648_v3, 1  ;;  %vm5092_vm1 = vcmp.gt.f32.partialorder %v5703_v31, %v4836_v9  ;;  %v5347_v18 = vsel %vm5219_vm11, %v5699_v22, 0.0  ;;  %v2265_v17 = vrot.slane %v11372_v7, 1  ;;  %1254 = vrot.lane.b32.xlu1 %v5706_v16, %s5884_s21 }
 0x1fc   :  { %v3429_v11 = vrot.slane %v11372_v7, 7  ;;  %vm5220_vm8 = vmand %vm4964_vm14, %vm5092_vm1  ;;  %5475 = vst [vmem:[%s17059_s3 + $0x78] sm:$0xff] %v5347_v18  ;;  %v2480_v43 = vsel %vm1983_vm0, %v2262_v52, %v2263_v20  ;;  %v2481_v22 = vsel %vm1983_vm0, %v2261_v44, %v2262_v52  ;;  %v3644_v8 = vsel %vm1594_vm2, %v3426_v51, %v3427_v12  ;;  %v18657_v52 = vld [vmem:[#allocation198_spill] sm:$0xff] }
 0x1fd   :  { %v3645_v30 = vsel %vm1594_vm2, %v3425_v38, %v3426_v51  ;;  %v5348_v47 = vsel %vm5220_vm8, %v5703_v31, 0.0  ;;  %vm18650_vm9 = vcmp.eq.s32.totalorder %v18616_v42, 1  ;;  %vm18651_vm14 = vcmp.eq.s32.totalorder %v10106_v10, 1  ;;  %v5707_v38 = vld [vmem:[%s17057_s0 + $0x2c0] sm:$0xff]  ;;  %v18654_v31 = vld [vmem:[#allocation220_spill] sm:$0xff]  ;;  %v18658_v51 = vld [vmem:[#allocation205_spill] sm:$0xff] }
 0x1fe   :  { %v4325_v44 = vsel %vm18650_vm9, %v2481_v22, %v18649_v1  ;;  %v4326_v45 = vsel %vm18651_vm14, %v2480_v43, %v10244_v54  ;;  %vm18652_vm11 = vcmp.eq.s32.totalorder %v10106_v10, 2  ;;  %1252 = vrot.lane.b32.xlu0 %v5707_v38, %s5884_s21  ;;  %5476 = vst [vmem:[%s17059_s3 + $0x80] sm:$0xff] %v5348_v47  ;;  %vm18653_vm1 = vcmp.eq.s32.totalorder %v18635_v39, 2  ;;  %vm18655_vm8 = vmmov %vm18651_vm14  ;;  %v5711_v47 = vld [vmem:[%s17057_s0 + $0x2d0] sm:$0xff] }
 0x1ff   :  { %v4582_v41 = vsel %vm18652_vm11, %v10144_v37, %v3645_v30  ;;  %v4453_v6 = vsel %vm3813_vm4, %v11277_v28, %v4325_v44  ;;  %v4454_v54 = vsel %vm3814_vm7, %v1350_v27, %v4326_v45  ;;  %v4583_v37 = vsel %vm18653_vm1, %v10131_v59, %v3644_v8  ;;  %v5708_v28 = vld [vmem:[%s17057_s0 + $0x90] sm:$0xff]  ;;  %v1121_v59 = vpop.permute.xlu0 %1120  ;;  %v1127_v27 = vpop.permute.xlu1 %1126  ;;  %v18663_v8 = vld [vmem:[#allocation87_spill] sm:$0xff]  ;;  %v5709_v30 = vld [vmem:[%s17057_s0 + $0x2d8] sm:$0xff] }
 0x200   :  { %v4710_v60 = vsel %vm18655_vm8, %v18654_v31, %v4582_v41  ;;  %v4711_v9 = vsel %vm3943_vm15, %v18656_v61, %v4583_v37  ;;  %vm4965_vm4 = vcmp.gt.f32.partialorder %v5705_v50, %v4453_v6  ;;  %vm4966_vm9 = vcmp.gt.f32.partialorder %v5708_v28, %v4454_v54  ;;  %1258 = vrot.lane.b32.xlu1 %v5709_v30, %s5884_s21  ;;  %v18665_v37 = vld [vmem:[#allocation82_spill] sm:$0xff] }
 0x201   :  { %v4838_v42 = vsel %vm3814_vm7, %v18657_v52, %v4710_v60  ;;  %v4839_v18 = vsel %vm3815_vm12, %v18658_v51, %v4711_v9  ;;  %vm11512_vm1 = vmand %vm4965_vm4, %vm5093_vm10  ;;  %vm18661_vm7 = vcmp.eq.s32.totalorder %v6314_v55, 127  ;;  %vm3818_vm14 = vcmp.eq.s32.totalorder %v10317_v19, 0  ;;  %v18667_v61 = vld [vmem:[#allocation222_spill] sm:$0xff] }
 0x202   :  { %vm5094_vm11 = vcmp.gt.f32.partialorder %v5708_v28, %v4838_v42  ;;  %v1352_v10 = vsel %vm18661_vm7, 0.0, %v1117_v49  ;;  %vm18662_vm8 = vmmov %vm18661_vm7  ;;  %vm3947_vm3 = vcmp.eq.s32.totalorder %v18663_v8, 1  ;;  %v5349_v33 = vsel %vm11512_vm1, %v5705_v50, 0.0  ;;  %v5710_v49 = vld [vmem:[%s17057_s0 + $0x98] sm:$0xff]  ;;  %1256 = vrot.lane.b32.xlu0 %v5711_v47, %s5884_s21  ;;  %v18669_v42 = vld [vmem:[#allocation230_spill] sm:$0xff] }
 0x203   :  { %v11520_v22 = vsel %vm18662_vm8, 0.0, %v1123_v56  ;;  %vm5222_vm10 = vmand %vm4966_vm9, %vm5094_vm11  ;;  %vm5095_vm4 = vcmp.gt.f32.partialorder %v5710_v49, %v4839_v18  ;;  %v2264_v56 = vrot.slane %v1352_v10, 1  ;;  %v3428_v16 = vrot.slane %v1352_v10, 7  ;;  %5477 = vst [vmem:[%s17059_s3 + $0x88] sm:$0xff] %v5349_v33  ;;  %v1125_v51 = vpop.permute.xlu0 %1124  ;;  %v1131_v43 = vpop.permute.xlu1 %1130  ;;  %v5713_v30 = vld [vmem:[%s17057_s0 + $0x2e0] sm:$0xff] }
 0x204   :  { %vm3819_vm7 = vcmp.eq.s32.totalorder %v18663_v8, 0  ;;  %v5350_v1 = vsel %vm5222_vm10, %v5708_v28, 0.0  ;;  %v2267_v50 = vrot.slane %v11520_v22, 1  ;;  %v3431_v44 = vrot.slane %v11520_v22, 7  ;;  %vm18664_vm9 = vmmov %vm18662_vm8  ;;  %v18670_v28 = vld [vmem:[#allocation225_spill] sm:$0xff] }
 0x205   :  { %v1354_v45 = vsel %vm18664_vm9, 0.0, %v1121_v59  ;;  %5478 = vst [vmem:[%s17059_s3 + $0x90] sm:$0xff] %v5350_v1  ;;  %v2478_v41 = vsel %vm1983_vm0, %v2264_v56, %v2265_v17  ;;  %v2479_v38 = vsel %vm1983_vm0, %v2263_v20, %v2264_v56  ;;  %v3642_v6 = vsel %vm1594_vm2, %v3428_v16, %v3429_v11  ;;  %v5714_v56 = vld [vmem:[%s17057_s0 + $0xa0] sm:$0xff] }
 0x206   :  { %v3643_v54 = vsel %vm1594_vm2, %v3427_v12, %v3428_v16  ;;  %v4327_v31 = vsel %vm3943_vm15, %v2479_v38, %v18665_v37  ;;  %v4328_v60 = vsel %vm3944_vm5, %v2478_v41, %v10370_v34  ;;  %vm18666_vm11 = vcmp.eq.s32.totalorder %v10196_v14, 2  ;;  %v5712_v12 = vld [vmem:[%s17057_s0 + $0x2e8] sm:$0xff]  ;;  %1260 = vrot.lane.b32.xlu0 %v5713_v30, %s5884_s21  ;;  %v18676_v41 = vld [vmem:[#allocation89_spill] sm:$0xff] }
 0x207   :  { %v4584_v20 = vsel %vm18666_vm11, %v10260_v2, %v3643_v54  ;;  %vm18668_vm1 = vcmp.eq.s32.totalorder %v18648_v3, 2  ;;  %1262 = vrot.lane.b32.xlu1 %v5712_v12, %s5884_s21  ;;  %v4455_v52 = vsel %vm3815_vm12, %v11284_v4, %v4327_v31  ;;  %v4456_v34 = vsel %vm3816_vm13, %v1352_v10, %v4328_v60  ;;  %v18671_v4 = vld [vmem:[#allocation212_spill] sm:$0xff]  ;;  %v18672_v10 = vld [vmem:[#allocation211_spill] sm:$0xff]  ;;  %v5716_v37 = vld [vmem:[%s17057_s0 + $0x2f8] sm:$0xff] }
 0x208   :  { %v4585_v9 = vsel %vm18668_vm1, %v18667_v61, %v3642_v6  ;;  %v4712_v2 = vsel %vm3944_vm5, %v18669_v42, %v4584_v20  ;;  %vm18673_vm15 = vcmp.eq.s32.totalorder %v18648_v3, 0  ;;  %vm4967_vm12 = vcmp.gt.f32.partialorder %v5710_v49, %v4455_v52  ;;  %v5715_v14 = vld [vmem:[%s17057_s0 + $0xa8] sm:$0xff]  ;;  %v5717_v20 = vld [vmem:[%s17057_s0 + $0x2f0] sm:$0xff]  ;;  %v18680_v61 = vld [vmem:[#allocation86_spill] sm:$0xff] }
 0x209   :  { %v4713_v59 = vsel %vm3945_vm6, %v18670_v28, %v4585_v9  ;;  %v4840_v39 = vsel %vm3816_vm13, %v18671_v4, %v4712_v2  ;;  %vm4968_vm5 = vcmp.gt.f32.partialorder %v5714_v56, %v4456_v34  ;;  %vm11606_vm9 = vmand %vm4967_vm12, %vm5095_vm4  ;;  %v2266_v47 = vrot.slane %v1354_v45, 1  ;;  %v18685_v2 = vld [vmem:[#allocation238_spill] sm:$0xff] }
 0x20a   :  { %v4841_v33 = vsel %vm18673_vm15, %v18672_v10, %v4713_v59  ;;  %vm5096_vm10 = vcmp.gt.f32.partialorder %v5714_v56, %v4840_v39  ;;  %v3430_v1 = vrot.slane %v1354_v45, 7  ;;  %vm3820_vm11 = vcmp.eq.s32.totalorder %v10480_v24, 0  ;;  %vm18677_vm4 = vmmov %vm18662_vm8  ;;  %1264 = vrot.lane.b32.xlu0 %v5717_v20, %s5884_s21  ;;  %v5720_v10 = vld [vmem:[%s17057_s0 + $0xb8] sm:$0xff]  ;;  %v5722_v20 = vld [vmem:[%s17057_s0 + $0x310] sm:$0xff] }
 0x20b   :  { %vm3949_vm1 = vcmp.eq.s32.totalorder %v18676_v41, 1  ;;  %vm5224_vm15 = vmand %vm4968_vm5, %vm5096_vm10  ;;  %v5351_v38 = vsel %vm11606_vm9, %v5710_v49, 0.0  ;;  %v11619_v18 = vsel %vm18677_vm4, 0.0, %v1127_v27  ;;  %vm3821_vm12 = vcmp.eq.s32.totalorder %v18676_v41, 0  ;;  %1266 = vrot.lane.b32.xlu1 %v5716_v37, %s5884_s21 }
 0x20c   :  { %vm18678_vm8 = vmmov %vm18677_vm4  ;;  %v5352_v49 = vsel %vm5224_vm15, %v5714_v56, 0.0  ;;  %5479 = vst [vmem:[%s17059_s3 + $0x98] sm:$0xff] %v5351_v38  ;;  %v2476_v27 = vsel %vm1983_vm0, %v2266_v47, %v2267_v50  ;;  %v2477_v31 = vsel %vm1983_vm0, %v2265_v17, %v2266_v47  ;;  %v3640_v60 = vsel %vm1594_vm2, %v3430_v1, %v3431_v44  ;;  %v5721_v56 = vld [vmem:[%s17057_s0 + $0x3f8] sm:$0xff]  ;;  %v18691_v47 = vld [vmem:[#allocation91_spill] sm:$0xff] }
 0x20d   :  { %v11624_v6 = vsel %vm18678_vm8, 0.0, %v1125_v51  ;;  %vm18679_vm13 = vmmov %vm18677_vm4  ;;  %5480 = vst [vmem:[%s17059_s3 + $0xa0] sm:$0xff] %v5352_v49  ;;  %v3641_v17 = vsel %vm1594_vm2, %v3429_v11, %v3430_v1  ;;  %v4329_v9 = vsel %vm3945_vm6, %v2477_v31, %v18680_v61  ;;  %vm18681_vm5 = vcmp.eq.s32.totalorder %v10317_v19, 1  ;;  %v5719_v51 = vld [vmem:[%s17057_s0 + $0x300] sm:$0xff]  ;;  %v18694_v61 = vld [vmem:[#allocation88_spill] sm:$0xff] }
 0x20e   :  { %v11628_v54 = vsel %vm18679_vm13, 0.0, %v1131_v43  ;;  %v4330_v12 = vsel %vm18681_vm5, %v2476_v27, %v10452_v26  ;;  %vm18682_vm8 = vcmp.eq.s32.totalorder %v18663_v8, 2  ;;  %vm18683_vm10 = vcmp.eq.s32.totalorder %v18648_v3, 0  ;;  %v18686_v26 = vld [vmem:[#allocation239_spill] sm:$0xff]  ;;  %vm18687_vm6 = vmmov %vm18681_vm5  ;;  %v18689_v43 = vld [vmem:[#allocation217_spill] sm:$0xff]  ;;  %1330 = vrot.lane.b32.xlu0 %v5721_v56, %s5884_s21 }
 0x20f   :  { %v4587_v52 = vsel %vm18682_vm8, %v10415_v58, %v3640_v60  ;;  %v4457_v34 = vsel %vm18683_vm10, %v11372_v7, %v4329_v9  ;;  %v4458_v42 = vsel %vm3818_vm14, %v1354_v45, %v4330_v12  ;;  %vm18684_vm9 = vcmp.eq.s32.totalorder %v10317_v19, 2  ;;  %v18688_v58 = vld [vmem:[#allocation223_spill] sm:$0xff]  ;;  %v5718_v7 = vld [vmem:[%s17057_s0 + $0xb0] sm:$0xff]  ;;  %v1135_v45 = vpop.permute.xlu1 %1134  ;;  %1268 = vrot.lane.b32.xlu1 %v5719_v51, %s5884_s21  ;;  %v5724_v8 = vld [vmem:[%s17057_s0 + $0xc0] sm:$0xff] }
 0x210   :  { %v4586_v11 = vsel %vm18684_vm9, %v10421_v32, %v3641_v17  ;;  %v4715_v28 = vsel %vm3947_vm3, %v18685_v2, %v4587_v52  ;;  %vm4969_vm13 = vcmp.gt.f32.partialorder %v5715_v14, %v4457_v34  ;;  %vm4970_vm15 = vcmp.gt.f32.partialorder %v5718_v7, %v4458_v42  ;;  %v1129_v32 = vpop.permute.xlu0 %1128  ;;  %v5723_v52 = vld [vmem:[%s17057_s0 + $0x308] sm:$0xff]  ;;  %v18698_v42 = vld [vmem:[#allocation244_spill] sm:$0xff]  ;;  %v5727_v51 = vld [vmem:[%s17057_s0 + $0x318] sm:$0xff] }
 0x211   :  { %v4714_v59 = vsel %vm18687_vm6, %v18686_v26, %v4586_v11  ;;  %v4843_v3 = vsel %vm3819_vm7, %v18688_v58, %v4715_v28  ;;  %vm3950_vm4 = vcmp.eq.s32.totalorder %v10566_v15, 1  ;;  %vm18690_vm5 = vcmp.gt.f32.partialorder %v5715_v14, %v4841_v33  ;;  %v18699_v11 = vld [vmem:[#allocation247_spill] sm:$0xff]  ;;  %v11907_v26 = vld [vmem:[%s17057_s0 + $0xf8] sm:$0xff] }
 0x212   :  { %v4842_v30 = vsel %vm3818_vm14, %v18689_v43, %v4714_v59  ;;  %vm5225_vm8 = vmand %vm4969_vm13, %vm18690_vm5  ;;  %v2269_v4 = vrot.slane %v11619_v18, 1  ;;  %v3433_v39 = vrot.slane %v11619_v18, 7  ;;  %vm5099_vm10 = vcmp.gt.f32.partialorder %v5720_v10, %v4843_v3  ;;  %1270 = vrot.lane.b32.xlu0 %v5723_v52, %s5884_s21  ;;  %v18701_v28 = vld [vmem:[#allocation231_spill] sm:$0xff] }
 0x213   :  { %vm5098_vm14 = vcmp.gt.f32.partialorder %v5718_v7, %v4842_v30  ;;  %v5353_v19 = vsel %vm5225_vm8, %v5715_v14, 0.0  ;;  %v2268_v33 = vrot.slane %v11624_v6, 1  ;;  %v3432_v16 = vrot.slane %v11624_v6, 7  ;;  %1272 = vrot.lane.b32.xlu1 %v5722_v20, %s5884_s21  ;;  %v1139_v52 = vpop.permute.xlu1 %1138 }
 0x214   :  { %vm3951_vm6 = vcmp.eq.s32.totalorder %v18691_v47, 1  ;;  %vm5226_vm13 = vmand %vm4970_vm15, %vm5098_vm14  ;;  %5481 = vst [vmem:[%s17059_s3 + $0xa8] sm:$0xff] %v5353_v19  ;;  %v2271_v1 = vrot.slane %v11628_v54, 1  ;;  %v3435_v38 = vrot.slane %v11628_v54, 7  ;;  %vm3823_vm5 = vcmp.eq.s32.totalorder %v18691_v47, 0  ;;  %v1133_v20 = vpop.permute.xlu0 %1132 }
 0x215   :  { %vm18692_vm8 = vcmp.eq.s32.totalorder %v6314_v55, 127  ;;  %v5354_v49 = vsel %vm5226_vm13, %v5718_v7, 0.0  ;;  %v2474_v27 = vsel %vm1983_vm0, %v2268_v33, %v2269_v4  ;;  %v2475_v31 = vsel %vm1983_vm0, %v2267_v50, %v2268_v33  ;;  %v18707_v33 = vld [vmem:[#allocation90_spill] sm:$0xff] }
 0x216   :  { %v1358_v14 = vsel %vm18692_vm8, 0.0, %v1129_v32  ;;  %vm18693_vm9 = vmmov %vm18692_vm8  ;;  %v3638_v60 = vsel %vm1594_vm2, %v3432_v16, %v3433_v39  ;;  %5482 = vst [vmem:[%s17059_s3 + $0xb0] sm:$0xff] %v5354_v49  ;;  %v3639_v17 = vsel %vm1594_vm2, %v3431_v44, %v3432_v16  ;;  %v4331_v50 = vsel %vm3947_vm3, %v2475_v31, %v18694_v61  ;;  %1274 = vrot.lane.b32.xlu0 %v5727_v51, %s5884_s21 }
 0x217   :  { %v11722_v37 = vsel %vm18693_vm9, 0.0, %v1135_v45  ;;  %vm18695_vm15 = vcmp.eq.s32.totalorder %v10480_v24, 1  ;;  %vm18696_vm9 = vcmp.eq.s32.totalorder %v18676_v41, 2  ;;  %v4459_v44 = vsel %vm3819_vm7, %v11520_v22, %v4331_v50  ;;  %v18713_v41 = vld [vmem:[#allocation253_spill] sm:$0xff]  ;;  %v5730_v50 = vld [vmem:[%s17057_s0 + $0x328] sm:$0xff] }
 0x218   :  { %v4332_v9 = vsel %vm18695_vm15, %v2474_v27, %v10607_v53  ;;  %v4589_v12 = vsel %vm18696_vm9, %v10504_v48, %v3638_v60  ;;  %vm18697_vm3 = vcmp.eq.s32.totalorder %v10480_v24, 2  ;;  %vm18700_vm14 = vmmov %vm18695_vm15  ;;  %vm4971_vm7 = vcmp.gt.f32.partialorder %v5720_v10, %v4459_v44  ;;  %v5725_v24 = vld [vmem:[%s17057_s0 + $0x320] sm:$0xff]  ;;  %v18709_v27 = vld [vmem:[#allocation95_spill] sm:$0xff] }
 0x219   :  { %v4460_v34 = vsel %vm3820_vm11, %v11624_v6, %v4332_v9  ;;  %v4588_v53 = vsel %vm18697_vm3, %v10510_v21, %v3639_v17  ;;  %v4717_v48 = vsel %vm3949_vm1, %v18698_v42, %v4589_v12  ;;  %v18702_v6 = vld [vmem:[#allocation226_spill] sm:$0xff]  ;;  %vm11781_vm8 = vmand %vm4971_vm7, %vm5099_vm10  ;;  %v2270_v59 = vrot.slane %v1358_v14, 1  ;;  %1276 = vrot.lane.b32.xlu1 %v5725_v24, %s5884_s21  ;;  %v18712_v60 = vld [vmem:[#allocation257_spill] sm:$0xff] }
 0x21a   :  { %v4716_v2 = vsel %vm18700_vm14, %v18699_v11, %v4588_v53  ;;  %v4845_v22 = vsel %vm3821_vm12, %v18701_v28, %v4717_v48  ;;  %vm4972_vm13 = vcmp.gt.f32.partialorder %v5724_v8, %v4460_v34  ;;  %v3434_v58 = vrot.slane %v1358_v14, 7  ;;  %v5728_v17 = vld [vmem:[%s17057_s0 + $0x330] sm:$0xff]  ;;  %1278 = vrot.lane.b32.xlu0 %v5730_v50, %s5884_s21  ;;  %v18718_v42 = vld [vmem:[#allocation265_spill] sm:$0xff]  ;;  %v5731_v28 = vld [vmem:[%s17057_s0 + $0x340] sm:$0xff] }
 0x21b   :  { %v4844_v21 = vsel %vm3820_vm11, %v18702_v6, %v4716_v2  ;;  %v18705_v7 = vrot.slane %v9760_v36, 7  ;;  %v18706_v32 = vrot.slane %v9690_v5, 7  ;;  %v5355_v3 = vsel %vm11781_vm8, %v5720_v10, 0.0  ;;  %v5726_v36 = vld [vmem:[%s17057_s0 + $0xc8] sm:$0xff]  ;;  %v18716_v9 = vld [vmem:[#allocation240_spill] sm:$0xff] }
 0x21c   :  { %vm5100_vm11 = vcmp.gt.f32.partialorder %v5724_v8, %v4844_v21  ;;  %vm5101_vm10 = vcmp.gt.f32.partialorder %v5726_v36, %v4845_v22  ;;  %v2273_v5 = vrot.slane %v11722_v37, 1  ;;  %vm3824_vm15 = vcmp.eq.s32.totalorder %v10684_v25, 0  ;;  %5483 = vst [vmem:[%s17059_s3 + $0xb8] sm:$0xff] %v5355_v3  ;;  %v11901_v6 = vld [vmem:[%s17057_s0 + $0xf0] sm:$0xff] }
 0x21d   :  { %v11791_v45 = vsel %vm1594_vm2, %v18706_v32, %v18705_v7  ;;  %vm5228_vm9 = vmand %vm4972_vm13, %vm5100_vm11  ;;  %v2472_v43 = vsel %vm1983_vm0, %v2270_v59, %v2271_v1  ;;  %v2473_v30 = vsel %vm1983_vm0, %v2269_v4, %v2270_v59  ;;  %v3636_v10 = vsel %vm1594_vm2, %v3434_v58, %v3435_v38  ;;  %1280 = vrot.lane.b32.xlu1 %v5728_v17, %s5884_s21 }
 0x21e   :  { %v3637_v56 = vsel %vm1594_vm2, %v3433_v39, %v3434_v58  ;;  %v5356_v19 = vsel %vm5228_vm9, %v5724_v8, 0.0  ;;  %v4333_v16 = vsel %vm3949_vm1, %v2473_v30, %v18707_v33  ;;  %v4334_v49 = vsel %vm3950_vm4, %v2472_v43, %v10679_v23  ;;  %v5735_v58 = vld [vmem:[%s17057_s0 + $0x338] sm:$0xff]  ;;  %v18723_v33 = vld [vmem:[#allocation260_spill] sm:$0xff] }
 0x21f   :  { %vm18708_vm3 = vcmp.eq.s32.totalorder %v10566_v15, 2  ;;  %vm3825_vm14 = vcmp.eq.s32.totalorder %v18709_v27, 0  ;;  %5484 = vst [vmem:[%s17059_s3 + $0xc0] sm:$0xff] %v5356_v19  ;;  %v4461_v39 = vsel %vm3821_vm12, %v11619_v18, %v4333_v16  ;;  %vm18710_vm1 = vcmp.eq.s32.totalorder %v10566_v15, 0  ;;  %1282 = vrot.lane.b32.xlu0 %v5735_v58, %s5884_s21  ;;  %v12023_v58 = vld [vmem:[%s17058_s1 + $0x40] sm:$0xff] }
 0x220   :  { %v4590_v4 = vsel %vm18708_vm3, %v10625_v35, %v3637_v56  ;;  %v4462_v31 = vsel %vm18710_vm1, %v1358_v14, %v4334_v49  ;;  %vm18711_vm7 = vcmp.eq.s32.totalorder %v18691_v47, 2  ;;  %v18714_v14 = vld [vmem:[#allocation234_spill] sm:$0xff]  ;;  %vm18715_vm12 = vmmov %vm18710_vm1  ;;  %vm4973_vm13 = vcmp.gt.f32.partialorder %v5726_v36, %v4461_v39  ;;  %v18722_v56 = vld [vmem:[#allocation261_spill] sm:$0xff] }
 0x221   :  { %v4591_v23 = vsel %vm18711_vm7, %v10670_v63, %v3636_v10  ;;  %v4718_v35 = vsel %vm3950_vm4, %v18712_v60, %v4590_v4  ;;  %v5729_v63 = vld [vmem:[%s17057_s0 + $0xd0] sm:$0xff]  ;;  %vm5229_vm11 = vmand %vm4973_vm13, %vm5101_vm10  ;;  %v3437_v15 = vrot.slane %v11722_v37, 7  ;;  %vm3952_vm9 = vcmp.eq.s32.totalorder %v10684_v25, 1  ;;  %1284 = vrot.lane.b32.xlu1 %v5731_v28, %s5884_s21  ;;  %v5738_v49 = vld [vmem:[%s17057_s0 + $0xe0] sm:$0xff]  ;;  %v1137_v60 = vpop.permute.xlu0 %1136 }
 0x222   :  { %v4719_v18 = vsel %vm3951_vm6, %v18713_v41, %v4591_v23  ;;  %v4846_v61 = vsel %vm18715_vm12, %v18714_v14, %v4718_v35  ;;  %vm4974_vm4 = vcmp.gt.f32.partialorder %v5729_v63, %v4462_v31  ;;  %v5357_v44 = vsel %vm5229_vm11, %v5726_v36, 0.0  ;;  %v18720_v36 = vld [vmem:[#allocation94_spill] sm:$0xff]  ;;  %v5739_v4 = vld [vmem:[%s17057_s0 + $0x348] sm:$0xff]  ;;  %v18725_v23 = vld [vmem:[#allocation248_spill] sm:$0xff]  ;;  %v1143_v35 = vpop.permute.xlu1 %1142 }
 0x223   :  { %v4847_v12 = vsel %vm3823_vm5, %v18716_v9, %v4719_v18  ;;  %vm5102_vm8 = vcmp.gt.f32.partialorder %v5729_v63, %v4846_v61  ;;  %vm3953_vm1 = vcmp.eq.s32.totalorder %v18709_v27, 1  ;;  %vm4080_vm7 = vcmp.eq.s32.totalorder %v10684_v25, 2  ;;  %5485 = vst [vmem:[%s17059_s3 + $0xc8] sm:$0xff] %v5357_v44  ;;  %1286 = vrot.lane.b32.xlu0 %v5739_v4, %s5884_s21  ;;  %v18726_v18 = vld [vmem:[#allocation31_spill] sm:$0xff]  ;;  %v18728_v61 = vld [vmem:[#allocation32_spill] sm:$0xff]  ;;  %v18737_v4 = vld [vmem:[#allocation34_spill] sm:$0xff] }
 0x224   :  { %vm5230_vm3 = vmand %vm4974_vm4, %vm5102_vm8  ;;  %vm18717_vm12 = vcmp.eq.s32.totalorder %v6314_v55, 127  ;;  %v4208_v48 = vsel %vm4080_vm7, %v10738_v13, %v18718_v42  ;;  %v5732_v13 = vld [vmem:[%s17058_s1 + $0x38] sm:$0xff]  ;;  %v1496_v21 = vrot.slane %v11901_v6, 7  ;;  %v1497_v59 = vrot.slane %v11907_v26, 7 }
 0x225   :  { %v1360_v34 = vsel %vm18717_vm12, 0.0, %v1133_v20  ;;  %v5358_v53 = vsel %vm5230_vm3, %v5729_v63, 0.0  ;;  %vm18719_vm10 = vmmov %vm18717_vm12  ;;  %v11896_v8 = vunpack.c.2.s8 %v5732_v13  ;;  %vm18721_vm13 = vcmp.eq.s32.totalorder %v18709_v27, 2  ;;  %v5741_v42 = vld [vmem:[%s17057_s0 + $0x358] sm:$0xff]  ;;  %v1141_v27 = vpop.permute.xlu0 %1140 }
 0x226   :  { %v2272_v11 = vrot.slane %v1360_v34, 1  ;;  %v3436_v2 = vrot.slane %v1360_v34, 7  ;;  %5486 = vst [vmem:[%s17059_s3 + $0xd0] sm:$0xff] %v5358_v53  ;;  %v11891_v22 = vsel %vm18719_vm10, 0.0, %v1139_v52  ;;  %v2758_v39 = vrot.slane %v10650_v0, 7  ;;  %vm18731_vm12 = vmmov %vm18719_vm10 }
 0x227   :  { %v3146_v31 = vrot.slane %v10650_v0, 1  ;;  %v2275_v17 = vrot.slane %v11891_v22, 1  ;;  %v3439_v41 = vrot.slane %v11891_v22, 7  ;;  %v18727_v14 = vrot.slane %v18726_v18, 1  ;;  %1290 = vrot.lane.b32.xlu0 %v5741_v42, %s5884_s21  ;;  %v18741_v18 = vld [vmem:[#allocation250_spill] sm:$0xff] }
 0x228   :  { %v2470_v7 = vsel %vm1983_vm0, %v2272_v11, %v2273_v5  ;;  %v2471_v32 = vsel %vm1983_vm0, %v2271_v1, %v2272_v11  ;;  %v3634_v24 = vsel %vm1594_vm2, %v3436_v2, %v3437_v15  ;;  %v3635_v3 = vsel %vm1594_vm2, %v3435_v38, %v3436_v2  ;;  %v5742_v2 = vld [vmem:[%s17057_s0 + $0xe8] sm:$0xff] }
 0x229   :  { %v4335_v51 = vsel %vm3951_vm6, %v2471_v32, %v18720_v36  ;;  %v4336_v43 = vsel %vm3952_vm9, %v2470_v7, %v4208_v48  ;;  %v4592_v1 = vsel %vm4080_vm7, %v11791_v45, %v3635_v3  ;;  %v4593_v30 = vsel %vm18721_vm13, %v10808_v29, %v3634_v24  ;;  %v5736_v45 = vld [vmem:[%s17057_s0 + $0x350] sm:$0xff]  ;;  %v5737_v29 = vld [vmem:[%s17057_s0 + $0xd8] sm:$0xff]  ;;  %v18732_v48 = vld [vmem:[#allocation275_spill] sm:$0xff] }
 0x22a   :  { %v4463_v10 = vsel %vm3823_vm5, %v11628_v54, %v4335_v51  ;;  %v4464_v38 = vsel %vm3824_vm15, %v1360_v34, %v4336_v43  ;;  %v4720_v19 = vsel %vm3952_vm9, %v18722_v56, %v4592_v1  ;;  %v4721_v16 = vsel %vm3953_vm1, %v18723_v33, %v4593_v30  ;;  %1288 = vrot.lane.b32.xlu1 %v5736_v45, %s5884_s21  ;;  %v18724_v54 = vld [vmem:[#allocation243_spill] sm:$0xff]  ;;  %v5740_v34 = vld [vmem:[%s17057_s0 + $0x360] sm:$0xff] }
 0x22b   :  { %vm5103_vm6 = vcmp.gt.f32.partialorder %v5737_v29, %v4847_v12  ;;  %v4848_v47 = vsel %vm3824_vm15, %v18724_v54, %v4720_v19  ;;  %vm4975_vm5 = vcmp.gt.f32.partialorder %v5737_v29, %v4463_v10  ;;  %vm4976_vm4 = vcmp.gt.f32.partialorder %v5738_v49, %v4464_v38  ;;  %v12031_v32 = vld [vmem:[%s17057_s0 + $0x100] sm:$0xff]  ;;  %v12037_v3 = vld [vmem:[%s17057_s0 + $0x108] sm:$0xff]  ;;  %v5746_v10 = vld [vmem:[%s17057_s0 + $0x370] sm:$0xff] }
 0x22c   :  { %v4849_v25 = vsel %vm3825_vm14, %v18725_v23, %v4721_v16  ;;  %vm5104_vm15 = vcmp.gt.f32.partialorder %v5738_v49, %v4848_v47  ;;  %vm5231_vm8 = vmand %vm4975_vm5, %vm5103_vm6  ;;  %v18729_v63 = vrot.slane %v18728_v61, 1  ;;  %v1691_v12 = vsel %vm1594_vm2, %v1496_v21, %v1497_v59  ;;  %v18733_v38 = vld [vmem:[#allocation276_spill] sm:$0xff]  ;;  %v18735_v47 = vld [vmem:[#allocation33_spill] sm:$0xff] }
 0x22d   :  { %vm5232_vm11 = vmand %vm4976_vm4, %vm5104_vm15  ;;  %v5359_v20 = vsel %vm5231_vm8, %v5737_v29, 0.0  ;;  %v18730_v52 = vrot.slane %v9753_v62, 7  ;;  %vm4082_vm9 = vcmp.eq.s32.totalorder %v11896_v8, 2  ;;  %vm3826_vm3 = vcmp.eq.s32.totalorder %v11896_v8, 0  ;;  %v18734_v29 = vld [vmem:[#allocation269_spill] sm:$0xff] }
 0x22e   :  { %v2080_v50 = vsel %vm1983_vm0, %v18729_v63, %v18727_v14  ;;  %v5360_v9 = vsel %vm5232_vm11, %v5738_v49, 0.0  ;;  %5487 = vst [vmem:[%s17059_s3 + $0xd8] sm:$0xff] %v5359_v20  ;;  %1292 = vrot.lane.b32.xlu1 %v5740_v34, %s5884_s21  ;;  %vm3954_vm7 = vcmp.eq.s32.totalorder %v11896_v8, 1  ;;  %v1362_v62 = vsel %vm18731_vm12, 0.0, %v1137_v60  ;;  %v5748_v8 = vld [vmem:[%s17057_s0 + $0x380] sm:$0xff]  ;;  %v1147_v63 = vpop.permute.xlu1 %1146  ;;  %vm18744_vm12 = vmmov %vm18719_vm10 }
 0x22f   :  { %v1692_v44 = vsel %vm1594_vm2, %v18730_v52, %v1496_v21  ;;  %5488 = vst [vmem:[%s17059_s3 + $0xe0] sm:$0xff] %v5360_v9  ;;  %v12007_v53 = vsel %vm18719_vm10, 0.0, %v1143_v35  ;;  %v4210_v11 = vsel %vm4082_vm9, %v2080_v50, %v18732_v48  ;;  %vm5105_vm13 = vcmp.gt.f32.partialorder %v5742_v2, %v4849_v25  ;;  %v18739_v35 = vld [vmem:[#allocation96_spill] sm:$0xff]  ;;  %v5749_v50 = vld [vmem:[%s17057_s0 + $0x378] sm:$0xff]  ;;  %v18746_v48 = vld [vmem:[#allocation286_spill] sm:$0xff] }
 0x230   :  { %v2274_v28 = vrot.slane %v1362_v62, 1  ;;  %v3438_v13 = vrot.slane %v1362_v62, 7  ;;  %v2277_v21 = vrot.slane %v12007_v53, 1  ;;  %v12026_v7 = vunpack.c.0.s8 %v12023_v58 }
 0x231   :  { %v1498_v24 = vrot.slane %v12031_v32, 7  ;;  %v1499_v36 = vrot.slane %v12037_v3, 7  ;;  %v3441_v33 = vrot.slane %v12007_v53, 7  ;;  %v18736_v49 = vrot.slane %v18735_v47, 1  ;;  %v5752_v47 = vld [vmem:[%s17057_s0 + $0x3a0] sm:$0xff] }
 0x232   :  { %v2468_v51 = vsel %vm1983_vm0, %v2274_v28, %v2275_v17  ;;  %v2469_v43 = vsel %vm1983_vm0, %v2273_v5, %v2274_v28  ;;  %v3632_v1 = vsel %vm1594_vm2, %v3438_v13, %v3439_v41  ;;  %v3633_v30 = vsel %vm1594_vm2, %v3437_v15, %v3438_v13  ;;  %1296 = vrot.lane.b32.xlu1 %v5746_v10, %s5884_s21  ;;  %v5747_v15 = vld [vmem:[%s17057_s0 + $0x368] sm:$0xff]  ;;  %v5750_v28 = vld [vmem:[%s17057_s0 + $0x390] sm:$0xff] }
 0x233   :  { %v4337_v5 = vsel %vm3953_vm1, %v2469_v43, %v18733_v38  ;;  %v4338_v56 = vsel %vm3954_vm7, %v2468_v51, %v4210_v11  ;;  %v4594_v19 = vsel %vm4082_vm9, %v1692_v44, %v3633_v30  ;;  %1294 = vrot.lane.b32.xlu0 %v5747_v15, %s5884_s21  ;;  %v18738_v23 = vrot.slane %v18737_v4, 1  ;;  %v18748_v30 = vld [vmem:[#allocation97_spill] sm:$0xff] }
 0x234   :  { %v4465_v16 = vsel %vm3825_vm14, %v11722_v37, %v4337_v5  ;;  %v4466_v45 = vsel %vm3826_vm3, %v1362_v62, %v4338_v56  ;;  %v4722_v54 = vsel %vm3954_vm7, %v18734_v29, %v4594_v19  ;;  %vm18740_vm1 = vcmp.eq.s32.totalorder %v18739_v35, 2  ;;  %v18750_v19 = vld [vmem:[#allocation282_spill] sm:$0xff]  ;;  %v18752_v29 = vld [vmem:[#allocation259_spill] sm:$0xff] }
 0x235   :  { %v2078_v60 = vsel %vm1983_vm0, %v18738_v23, %v18736_v49  ;;  %v4595_v20 = vsel %vm18740_vm1, %v1691_v12, %v3632_v1  ;;  %v4850_v37 = vsel %vm3826_vm3, %v18741_v18, %v4722_v54  ;;  %vm4977_vm14 = vcmp.gt.f32.partialorder %v5742_v2, %v4465_v16  ;;  %v18742_v12 = vld [vmem:[#allocation98_spill] sm:$0xff]  ;;  %v5751_v1 = vld [vmem:[%s17057_s0 + $0x388] sm:$0xff]  ;;  %v18751_v16 = vld [vmem:[#allocation281_spill] sm:$0xff] }
 0x236   :  { %vm4978_vm6 = vcmp.gt.f32.partialorder %v11901_v6, %v4466_v45  ;;  %vm5106_vm5 = vcmp.gt.f32.partialorder %v11901_v6, %v4850_v37  ;;  %vm5233_vm4 = vmand %vm4977_vm14, %vm5105_vm13  ;;  %v1689_v14 = vsel %vm1594_vm2, %v1498_v24, %v1499_v36  ;;  %vm3827_vm15 = vcmp.eq.s32.totalorder %v18739_v35, 0  ;;  %1300 = vrot.lane.b32.xlu1 %v5748_v8, %s5884_s21  ;;  %v12213_v23 = vld [vmem:[%s17057_s0 + $0x118] sm:$0xff]  ;;  %v18755_v18 = vld [vmem:[#allocation266_spill] sm:$0xff] }
 0x237   :  { %vm3955_vm8 = vcmp.eq.s32.totalorder %v18739_v35, 1  ;;  %vm5234_vm11 = vmand %vm4978_vm6, %vm5106_vm5  ;;  %v5361_v61 = vsel %vm5233_vm4, %v5742_v2, 0.0  ;;  %v1690_v25 = vsel %vm1594_vm2, %v1497_v59, %v1498_v24  ;;  %vm3828_vm9 = vcmp.eq.s32.totalorder %v12026_v7, 0  ;;  %1298 = vrot.lane.b32.xlu0 %v5749_v50, %s5884_s21  ;;  %v18743_v59 = vld [vmem:[#allocation268_spill] sm:$0xff]  ;;  %v1145_v35 = vpop.permute.xlu0 %1144  ;;  %v18756_v8 = vld [vmem:[#allocation35_spill] sm:$0xff] }
 0x238   :  { %vm4084_vm3 = vcmp.eq.s32.totalorder %v12026_v7, 2  ;;  %v5362_v9 = vsel %vm5234_vm11, %v11901_v6, 0.0  ;;  %5489 = vst [vmem:[%s17059_s3 + $0xe8] sm:$0xff] %v5361_v61  ;;  %vm3829_vm7 = vcmp.eq.s32.totalorder %v18742_v12, 0  ;;  %v4723_v52 = vsel %vm3955_vm8, %v18743_v59, %v4595_v20  ;;  %v18745_v6 = vld [vmem:[#allocation254_spill] sm:$0xff]  ;;  %vm18747_vm14 = vmmov %vm18744_vm12  ;;  %v5755_v20 = vld [vmem:[%s17057_s0 + $0x398] sm:$0xff] }
 0x239   :  { %v1364_v44 = vsel %vm18744_vm12, 0.0, %v1141_v27  ;;  %5490 = vst [vmem:[%s17059_s3 + $0xf0] sm:$0xff] %v5362_v9  ;;  %vm3956_vm10 = vcmp.eq.s32.totalorder %v12026_v7, 1  ;;  %v4851_v34 = vsel %vm3827_vm15, %v18745_v6, %v4723_v52  ;;  %vm3957_vm13 = vcmp.eq.s32.totalorder %v18742_v12, 1  ;;  %v1151_v9 = vpop.permute.xlu1 %1150  ;;  %v18760_v52 = vld [vmem:[#allocation100_spill] sm:$0xff]  ;;  %v5762_v7 = vld [vmem:[%s17057_s0 + $0x3b8] sm:$0xff] }
 0x23a   :  { %v2276_v62 = vrot.slane %v1364_v44, 1  ;;  %v3440_v42 = vrot.slane %v1364_v44, 7  ;;  %v4212_v11 = vsel %vm4084_vm3, %v2078_v60, %v18746_v48  ;;  %vm5107_vm1 = vcmp.gt.f32.partialorder %v11907_v26, %v4851_v34  ;;  %1304 = vrot.lane.b32.xlu1 %v5750_v28, %s5884_s21  ;;  %v5756_v6 = vld [vmem:[%s17057_s0 + $0x3b0] sm:$0xff]  ;;  %v5758_v28 = vld [vmem:[%s17058_s1 + $0x48] sm:$0xff] }
 0x23b   :  { %v12138_v2 = vsel %vm18747_vm14, 0.0, %v1147_v63  ;;  %1302 = vrot.lane.b32.xlu0 %v5751_v1, %s5884_s21  ;;  %vm18749_vm6 = vcmp.eq.s32.totalorder %v18742_v12, 2  ;;  %v1501_v60 = vrot.slane %v12213_v23, 7  ;;  %v18757_v61 = vrot.slane %v18756_v8, 1  ;;  %v18763_v48 = vld [vmem:[#allocation292_spill] sm:$0xff] }
 0x23c   :  { %v2466_v13 = vsel %vm1983_vm0, %v2276_v62, %v2277_v21  ;;  %v2467_v24 = vsel %vm1983_vm0, %v2275_v17, %v2276_v62  ;;  %v3630_v51 = vsel %vm1594_vm2, %v3440_v42, %v3441_v33  ;;  %v3631_v43 = vsel %vm1594_vm2, %v3439_v41, %v3440_v42 }
 0x23d   :  { %v4339_v17 = vsel %vm3955_vm8, %v2467_v24, %v18748_v30  ;;  %v4340_v10 = vsel %vm3956_vm10, %v2466_v13, %v4212_v11  ;;  %v4596_v38 = vsel %vm4084_vm3, %v1690_v25, %v3631_v43  ;;  %v4597_v5 = vsel %vm18749_vm6, %v1689_v14, %v3630_v51  ;;  %v18758_v25 = vld [vmem:[#allocation36_spill] sm:$0xff]  ;;  %v12280_v24 = vld [vmem:[%s17057_s0 + $0x120] sm:$0xff]  ;;  %v12286_v43 = vld [vmem:[%s17057_s0 + $0x128] sm:$0xff] }
 0x23e   :  { %v4467_v41 = vsel %vm3827_vm15, %v11891_v22, %v4339_v17  ;;  %v4468_v56 = vsel %vm3828_vm9, %v1364_v44, %v4340_v10  ;;  %v4724_v15 = vsel %vm3956_vm10, %v18750_v19, %v4596_v38  ;;  %v4725_v45 = vsel %vm3957_vm13, %v18751_v16, %v4597_v5  ;;  %1308 = vrot.lane.b32.xlu1 %v5752_v47, %s5884_s21  ;;  %v18764_v5 = vld [vmem:[#allocation99_spill] sm:$0xff] }
 0x23f   :  { %v4852_v54 = vsel %vm3828_vm9, %v18752_v29, %v4724_v15  ;;  %vm4979_vm5 = vcmp.gt.f32.partialorder %v11907_v26, %v4467_v41  ;;  %vm4980_vm4 = vcmp.gt.f32.partialorder %v12031_v32, %v4468_v56  ;;  %v12190_v22 = vunpack.c.2.s8 %v12023_v58  ;;  %v12207_v58 = vld [vmem:[%s17057_s0 + $0x110] sm:$0xff]  ;;  %1306 = vrot.lane.b32.xlu0 %v5755_v20, %s5884_s21  ;;  %v5761_v15 = vld [vmem:[%s17057_s0 + $0x3c0] sm:$0xff] }
 0x240   :  { %vm5108_vm15 = vcmp.gt.f32.partialorder %v12031_v32, %v4852_v54  ;;  %vm12199_vm8 = vmand %vm4979_vm5, %vm5107_vm1  ;;  %v2279_v49 = vrot.slane %v12138_v2, 1  ;;  %v1500_v4 = vrot.slane %v12207_v58, 7  ;;  %v4853_v37 = vsel %vm3829_vm7, %v18755_v18, %v4725_v45  ;;  %v18766_v45 = vld [vmem:[#allocation289_spill] sm:$0xff]  ;;  %v18767_v54 = vld [vmem:[#allocation288_spill] sm:$0xff] }
 0x241   :  { %vm5236_vm11 = vmand %vm4980_vm4, %vm5108_vm15  ;;  %v5363_v27 = vsel %vm12199_vm8, %v11907_v26, 0.0  ;;  %v3443_v14 = vrot.slane %v12138_v2, 7  ;;  %v18759_v63 = vrot.slane %v18758_v25, 1  ;;  %vm3830_vm9 = vcmp.eq.s32.totalorder %v12190_v22, 0  ;;  %v18770_v25 = vld [vmem:[#allocation37_spill] sm:$0xff] }
 0x242   :  { %v5364_v59 = vsel %vm5236_vm11, %v12031_v32, 0.0  ;;  %5491 = vst [vmem:[%s17059_s3 + $0xf8] sm:$0xff] %v5363_v27  ;;  %vm3831_vm3 = vcmp.eq.s32.totalorder %v18760_v52, 0  ;;  %vm3958_vm12 = vcmp.eq.s32.totalorder %v12190_v22, 1  ;;  %v1687_v26 = vsel %vm1594_vm2, %v1500_v4, %v1501_v60  ;;  %vm18761_vm1 = vmmov %vm18747_vm14  ;;  %1312 = vrot.lane.b32.xlu1 %v5756_v6, %s5884_s21  ;;  %v1155_v27 = vpop.permute.xlu1 %1154  ;;  %v18777_v6 = vld [vmem:[#allocation302_spill] sm:$0xff] }
 0x243   :  { %v2076_v50 = vsel %vm1983_vm0, %v18759_v63, %v18757_v61  ;;  %5492 = vst [vmem:[%s17059_s3 + $0x100] sm:$0xff] %v5364_v59  ;;  %v1688_v32 = vsel %vm1594_vm2, %v1499_v36, %v1500_v4  ;;  %vm4086_vm10 = vcmp.eq.s32.totalorder %v12190_v22, 2  ;;  %v1366_v44 = vsel %vm18761_vm1, 0.0, %v1145_v35  ;;  %vm18762_vm6 = vmmov %vm18761_vm1  ;;  %v5757_v36 = vld [vmem:[%s17057_s0 + $0x3a8] sm:$0xff]  ;;  %v18769_v4 = vld [vmem:[#allocation272_spill] sm:$0xff] }
 0x244   :  { %vm3959_vm14 = vcmp.eq.s32.totalorder %v18760_v52, 1  ;;  %v2278_v34 = vrot.slane %v1366_v44, 1  ;;  %v3442_v62 = vrot.slane %v1366_v44, 7  ;;  %v12263_v42 = vsel %vm18762_vm6, 0.0, %v1151_v9  ;;  %1310 = vrot.lane.b32.xlu0 %v5757_v36, %s5884_s21 }
 0x245   :  { %v4214_v11 = vsel %vm4086_vm10, %v2076_v50, %v18763_v48  ;;  %v12275_v13 = vunpack.c.0.s8 %v5758_v28  ;;  %v1502_v51 = vrot.slane %v12280_v24, 7  ;;  %v1503_v1 = vrot.slane %v12286_v43, 7  ;;  %v18772_v50 = vld [vmem:[#allocation38_spill] sm:$0xff] }
 0x246   :  { %v2464_v30 = vsel %vm1983_vm0, %v2278_v34, %v2279_v49  ;;  %v2465_v17 = vsel %vm1983_vm0, %v2277_v21, %v2278_v34  ;;  %v3628_v10 = vsel %vm1594_vm2, %v3442_v62, %v3443_v14  ;;  %v3629_v38 = vsel %vm1594_vm2, %v3441_v33, %v3442_v62  ;;  %1316 = vrot.lane.b32.xlu1 %v5761_v15, %s5884_s21 }
 0x247   :  { %v4341_v41 = vsel %vm3957_vm13, %v2465_v17, %v18764_v5  ;;  %v4342_v56 = vsel %vm3958_vm12, %v2464_v30, %v4214_v11  ;;  %v4598_v21 = vsel %vm4086_vm10, %v1688_v32, %v3629_v38  ;;  %vm18765_vm5 = vcmp.eq.s32.totalorder %v18760_v52, 2  ;;  %v5764_v32 = vld [vmem:[%s17057_s0 + $0x3c8] sm:$0xff]  ;;  %v12402_v17 = vld [vmem:[%s17057_s0 + $0x138] sm:$0xff]  ;;  %v5767_v38 = vld [vmem:[%s17057_s0 + $0x3e0] sm:$0xff] }
 0x248   :  { %v4599_v19 = vsel %vm18765_vm5, %v1687_v26, %v3628_v10  ;;  %v4469_v33 = vsel %vm3829_vm7, %v12007_v53, %v4341_v41  ;;  %v4470_v16 = vsel %vm3830_vm9, %v1366_v44, %v4342_v56  ;;  %v4726_v29 = vsel %vm3958_vm12, %v18766_v45, %v4598_v21  ;;  %1314 = vrot.lane.b32.xlu0 %v5762_v7, %s5884_s21  ;;  %v18768_v53 = vld [vmem:[#allocation267_spill] sm:$0xff]  ;;  %v5768_v21 = vld [vmem:[%s17057_s0 + $0x3d8] sm:$0xff] }
 0x249   :  { %v4727_v47 = vsel %vm3959_vm14, %v18767_v54, %v4599_v19  ;;  %vm5109_vm13 = vcmp.gt.f32.partialorder %v12037_v3, %v4853_v37  ;;  %v4854_v12 = vsel %vm3830_vm9, %v18768_v53, %v4726_v29  ;;  %vm4981_vm7 = vcmp.gt.f32.partialorder %v12037_v3, %v4469_v33  ;;  %v1149_v37 = vpop.permute.xlu0 %1148  ;;  %v18778_v19 = vld [vmem:[#allocation103_spill] sm:$0xff]  ;;  %v18780_v29 = vld [vmem:[#allocation298_spill] sm:$0xff]  ;;  %v18782_v53 = vld [vmem:[#allocation280_spill] sm:$0xff] }
 0x24a   :  { %vm4982_vm4 = vcmp.gt.f32.partialorder %v12207_v58, %v4470_v16  ;;  %v4855_v35 = vsel %vm3831_vm3, %v18769_v4, %v4727_v47  ;;  %vm5110_vm15 = vcmp.gt.f32.partialorder %v12207_v58, %v4854_v12  ;;  %vm5237_vm8 = vmand %vm4981_vm7, %vm5109_vm13  ;;  %v2281_v20 = vrot.slane %v12263_v42, 1  ;;  %v18781_v47 = vld [vmem:[#allocation297_spill] sm:$0xff]  ;;  %v5769_v4 = vld [vmem:[%s17057_s0 + $0x3f0] sm:$0xff] }
 0x24b   :  { %v3445_v18 = vrot.slane %v12263_v42, 7  ;;  %vm5238_vm11 = vmand %vm4982_vm4, %vm5110_vm15  ;;  %v5365_v22 = vsel %vm5237_vm8, %v12037_v3, 0.0  ;;  %v1685_v8 = vsel %vm1594_vm2, %v1502_v51, %v1503_v1  ;;  %v1686_v61 = vsel %vm1594_vm2, %v1501_v60, %v1502_v51  ;;  %v5763_v3 = vld [vmem:[%s17057_s0 + $0x3d0] sm:$0xff] }
 0x24c   :  { %v18771_v63 = vrot.slane %v18770_v25, 1  ;;  %v18773_v9 = vrot.slane %v18772_v50, 1  ;;  %1320 = vrot.lane.b32.xlu1 %v5763_v3, %s5884_s21  ;;  %v5366_v26 = vsel %vm5238_vm11, %v12207_v58, 0.0  ;;  %5493 = vst [vmem:[%s17059_s3 + $0x108] sm:$0xff] %v5365_v22  ;;  %vm3832_vm9 = vcmp.eq.s32.totalorder %v12275_v13, 0  ;;  %v18774_v60 = vld [vmem:[#allocation104_spill] sm:$0xff]  ;;  %1318 = vrot.lane.b32.xlu0 %v5764_v32, %s5884_s21 }
 0x24d   :  { %vm3833_vm12 = vcmp.eq.s32.totalorder %v18774_v60, 0  ;;  %vm4088_vm10 = vcmp.eq.s32.totalorder %v12275_v13, 2  ;;  %5494 = vst [vmem:[%s17059_s3 + $0x110] sm:$0xff] %v5366_v26  ;;  %vm3960_vm1 = vcmp.eq.s32.totalorder %v12275_v13, 1  ;;  %vm3961_vm6 = vcmp.eq.s32.totalorder %v18774_v60, 1  ;;  %v12396_v51 = vld [vmem:[%s17057_s0 + $0x130] sm:$0xff]  ;;  %v1153_v52 = vpop.permute.xlu0 %1152 }
 0x24e   :  { %v2074_v59 = vsel %vm1983_vm0, %v18773_v9, %v18771_v63  ;;  %vm18775_vm5 = vcmp.eq.s32.totalorder %v6314_v55, 127  ;;  %vm5111_vm7 = vcmp.gt.f32.partialorder %v12213_v23, %v4855_v35  ;;  %v12391_v11 = vunpack.c.2.s8 %v5758_v28  ;;  %v18784_v13 = vld [vmem:[#allocation39_spill] sm:$0xff] }
 0x24f   :  { %v1368_v58 = vsel %vm18775_vm5, 0.0, %v1149_v37  ;;  %vm18776_vm13 = vmmov %vm18775_vm5  ;;  %v4216_v34 = vsel %vm4088_vm10, %v2074_v59, %v18777_v6  ;;  %v1504_v30 = vrot.slane %v12396_v51, 7  ;;  %v1505_v10 = vrot.slane %v12402_v17, 7  ;;  %v18783_v37 = vld [vmem:[#allocation279_spill] sm:$0xff]  ;;  %v1159_v59 = vpop.permute.xlu1 %1158 }
 0x250   :  { %v12384_v44 = vsel %vm18776_vm13, 0.0, %v1155_v27  ;;  %v2280_v62 = vrot.slane %v1368_v58, 1  ;;  %v3444_v36 = vrot.slane %v1368_v58, 7  ;;  %1324 = vrot.lane.b32.xlu1 %v5767_v38, %s5884_s21  ;;  %1322 = vrot.lane.b32.xlu0 %v5768_v21, %s5884_s21  ;;  %vm18779_vm4 = vcmp.eq.s32.totalorder %v18774_v60, 2  ;;  %v5770_v63 = vld [vmem:[%s17057_s0 + $0x3e8] sm:$0xff] }
 0x251   :  { %v2283_v48 = vrot.slane %v12384_v44, 1  ;;  %v18785_v22 = vrot.slane %v18784_v13, 1  ;;  %vm3834_vm11 = vcmp.eq.s32.totalorder %v12391_v11, 0  ;;  %v1683_v35 = vsel %vm1594_vm2, %v1504_v30, %v1505_v10  ;;  %v12519_v38 = vld [vmem:[%s17057_s0 + $0x148] sm:$0xff]  ;;  %v18797_v13 = vld [vmem:[#allocation41_spill] sm:$0xff] }
 0x252   :  { %v2462_v28 = vsel %vm1983_vm0, %v2280_v62, %v2281_v20  ;;  %v2463_v5 = vsel %vm1983_vm0, %v2279_v49, %v2280_v62  ;;  %v3626_v41 = vsel %vm1594_vm2, %v3444_v36, %v3445_v18  ;;  %v3627_v56 = vsel %vm1594_vm2, %v3443_v14, %v3444_v36  ;;  %v12513_v36 = vld [vmem:[%s17057_s0 + $0x140] sm:$0xff] }
 0x253   :  { %v4343_v49 = vsel %vm3959_vm14, %v2463_v5, %v18778_v19  ;;  %v4344_v15 = vsel %vm3960_vm1, %v2462_v28, %v4216_v34  ;;  %v4600_v33 = vsel %vm4088_vm10, %v1686_v61, %v3627_v56  ;;  %v4601_v16 = vsel %vm18779_vm4, %v1685_v8, %v3626_v41  ;;  %v18786_v8 = vld [vmem:[#allocation40_spill] sm:$0xff]  ;;  %vm18790_vm4 = vmmov %vm18776_vm13  ;;  %v18791_v19 = vld [vmem:[#allocation105_spill] sm:$0xff] }
 0x254   :  { %v4471_v14 = vsel %vm3831_vm3, %v12138_v2, %v4343_v49  ;;  %v4472_v45 = vsel %vm3832_vm9, %v1368_v58, %v4344_v15  ;;  %v4728_v54 = vsel %vm3960_vm1, %v18780_v29, %v4600_v33  ;;  %v4729_v7 = vsel %vm3961_vm6, %v18781_v47, %v4601_v16  ;;  %1328 = vrot.lane.b32.xlu1 %v5769_v4, %s5884_s21  ;;  %v5771_v34 = vld [vmem:[%s17058_s1 + $0x50] sm:$0xff]  ;;  %v18795_v47 = vld [vmem:[#allocation287_spill] sm:$0xff]  ;;  %v1163_v4 = vpop.permute.xlu1 %1162 }
 0x255   :  { %v4856_v12 = vsel %vm3832_vm9, %v18782_v53, %v4728_v54  ;;  %vm4983_vm14 = vcmp.gt.f32.partialorder %v12213_v23, %v4471_v14  ;;  %vm4984_vm15 = vcmp.gt.f32.partialorder %v12280_v24, %v4472_v45  ;;  %v3447_v2 = vrot.slane %v12384_v44, 7  ;;  %1326 = vrot.lane.b32.xlu0 %v5770_v63, %s5884_s21  ;;  %v18793_v14 = vld [vmem:[#allocation309_spill] sm:$0xff]  ;;  %v18794_v29 = vld [vmem:[#allocation308_spill] sm:$0xff] }
 0x256   :  { %v4857_v27 = vsel %vm3833_vm12, %v18783_v37, %v4729_v7  ;;  %vm5112_vm3 = vcmp.gt.f32.partialorder %v12280_v24, %v4856_v12  ;;  %vm5239_vm8 = vmand %vm4983_vm14, %vm5111_vm7  ;;  %v18787_v61 = vrot.slane %v18786_v8, 1  ;;  %v1684_v9 = vsel %vm1594_vm2, %v1503_v1, %v1504_v30  ;;  %v18789_v1 = vld [vmem:[#allocation311_spill] sm:$0xff]  ;;  %v18799_v8 = vld [vmem:[#allocation42_spill] sm:$0xff] }
 0x257   :  { %vm5240_vm9 = vmand %vm4984_vm15, %vm5112_vm3  ;;  %v5367_v50 = vsel %vm5239_vm8, %v12213_v23, 0.0  ;;  %vm4090_vm10 = vcmp.eq.s32.totalorder %v12391_v11, 2  ;;  %v18788_v23 = vld [vmem:[#allocation106_spill] sm:$0xff]  ;;  %vm3962_vm5 = vcmp.eq.s32.totalorder %v12391_v11, 1  ;;  %v1370_v26 = vsel %vm18776_vm13, 0.0, %v1153_v52  ;;  %v1157_v52 = vpop.permute.xlu0 %1156 }
 0x258   :  { %v2072_v25 = vsel %vm1983_vm0, %v18787_v61, %v18785_v22  ;;  %v5368_v3 = vsel %vm5240_vm9, %v12280_v24, 0.0  ;;  %5495 = vst [vmem:[%s17059_s3 + $0x118] sm:$0xff] %v5367_v50  ;;  %vm3835_vm1 = vcmp.eq.s32.totalorder %v18788_v23, 0  ;;  %vm3963_vm7 = vcmp.eq.s32.totalorder %v18788_v23, 1  ;;  %v18804_v50 = vld [vmem:[#allocation318_spill] sm:$0xff] }
 0x259   :  { %5496 = vst [vmem:[%s17059_s3 + $0x120] sm:$0xff] %v5368_v3  ;;  %v4218_v24 = vsel %vm4090_vm10, %v2072_v25, %v18789_v1  ;;  %v2282_v32 = vrot.slane %v1370_v26, 1  ;;  %v3446_v58 = vrot.slane %v1370_v26, 7  ;;  %v12503_v6 = vsel %vm18790_vm4, 0.0, %v1159_v59  ;;  %v12613_v1 = vld [vmem:[%s17057_s0 + $0x150] sm:$0xff] }
 0x25a   :  { %v12508_v62 = vunpack.c.0.s8 %v5771_v34  ;;  %v1506_v30 = vrot.slane %v12513_v36, 7  ;;  %v1507_v28 = vrot.slane %v12519_v38, 7  ;;  %vm18792_vm14 = vcmp.eq.s32.totalorder %v18788_v23, 2 }
 0x25b   :  { %v2460_v5 = vsel %vm1983_vm0, %v2282_v32, %v2283_v48  ;;  %v2461_v41 = vsel %vm1983_vm0, %v2281_v20, %v2282_v32  ;;  %v3624_v56 = vsel %vm1594_vm2, %v3446_v58, %v3447_v2  ;;  %v3625_v21 = vsel %vm1594_vm2, %v3445_v18, %v3446_v58  ;;  %v12619_v32 = vld [vmem:[%s17057_s0 + $0x158] sm:$0xff]  ;;  %v1161_v23 = vpop.permute.xlu0 %1160 }
 0x25c   :  { %v4345_v49 = vsel %vm3961_vm6, %v2461_v41, %v18791_v19  ;;  %v4346_v15 = vsel %vm3962_vm5, %v2460_v5, %v4218_v24  ;;  %v4602_v20 = vsel %vm4090_vm10, %v1684_v9, %v3625_v21  ;;  %v4603_v33 = vsel %vm18792_vm14, %v1683_v35, %v3624_v56  ;;  %v18805_v56 = vld [vmem:[#allocation107_spill] sm:$0xff] }
 0x25d   :  { %v4473_v16 = vsel %vm3833_vm12, %v12263_v42, %v4345_v49  ;;  %v4474_v18 = vsel %vm3834_vm11, %v1370_v26, %v4346_v15  ;;  %v4730_v45 = vsel %vm3962_vm5, %v18793_v14, %v4602_v20  ;;  %v4731_v54 = vsel %vm3963_vm7, %v18794_v29, %v4603_v33  ;;  %v18796_v42 = vld [vmem:[#allocation293_spill] sm:$0xff]  ;;  %v18807_v20 = vld [vmem:[#allocation316_spill] sm:$0xff] }
 0x25e   :  { %vm5113_vm6 = vcmp.gt.f32.partialorder %v12286_v43, %v4857_v27  ;;  %v4858_v7 = vsel %vm3834_vm11, %v18795_v47, %v4730_v45  ;;  %vm4985_vm15 = vcmp.gt.f32.partialorder %v12286_v43, %v4473_v16  ;;  %vm4986_vm12 = vcmp.gt.f32.partialorder %v12396_v51, %v4474_v18  ;;  %v18808_v16 = vld [vmem:[#allocation315_spill] sm:$0xff]  ;;  %v18809_v14 = vld [vmem:[#allocation301_spill] sm:$0xff]  ;;  %v18810_v29 = vld [vmem:[#allocation300_spill] sm:$0xff] }
 0x25f   :  { %v4859_v60 = vsel %vm3835_vm1, %v18796_v42, %v4731_v54  ;;  %vm5114_vm3 = vcmp.gt.f32.partialorder %v12396_v51, %v4858_v7  ;;  %vm5241_vm8 = vmand %vm4985_vm15, %vm5113_vm6  ;;  %v2285_v53 = vrot.slane %v12503_v6, 1  ;;  %v3449_v12 = vrot.slane %v12503_v6, 7  ;;  %v18811_v47 = vld [vmem:[#allocation43_spill] sm:$0xff] }
 0x260   :  { %vm5242_vm9 = vmand %vm4986_vm12, %vm5114_vm3  ;;  %v5369_v11 = vsel %vm5241_vm8, %v12286_v43, 0.0  ;;  %v1681_v37 = vsel %vm1594_vm2, %v1506_v30, %v1507_v28  ;;  %v1682_v27 = vsel %vm1594_vm2, %v1505_v10, %v1506_v30  ;;  %v18798_v22 = vrot.slane %v18797_v13, 1  ;;  %v18801_v43 = vld [vmem:[#allocation108_spill] sm:$0xff] }
 0x261   :  { %v18800_v61 = vrot.slane %v18799_v8, 1  ;;  %v5370_v63 = vsel %vm5242_vm9, %v12396_v51, 0.0  ;;  %5497 = vst [vmem:[%s17059_s3 + $0x128] sm:$0xff] %v5369_v11  ;;  %vm3836_vm11 = vcmp.eq.s32.totalorder %v12508_v62, 0  ;;  %vm3837_vm10 = vcmp.eq.s32.totalorder %v18801_v43, 0 }
 0x262   :  { %vm4092_vm5 = vcmp.eq.s32.totalorder %v12508_v62, 2  ;;  %5498 = vst [vmem:[%s17059_s3 + $0x130] sm:$0xff] %v5370_v63  ;;  %vm3964_vm13 = vcmp.eq.s32.totalorder %v12508_v62, 1  ;;  %vm3965_vm4 = vcmp.eq.s32.totalorder %v18801_v43, 1  ;;  %vm18802_vm14 = vcmp.eq.s32.totalorder %v6314_v55, 127  ;;  %v18813_v62 = vld [vmem:[#allocation44_spill] sm:$0xff] }
 0x263   :  { %v2070_v25 = vsel %vm1983_vm0, %v18800_v61, %v18798_v22  ;;  %v1372_v51 = vsel %vm18802_vm14, 0.0, %v1157_v52  ;;  %vm18803_vm6 = vmmov %vm18802_vm14  ;;  %vm5115_vm15 = vcmp.gt.f32.partialorder %v12402_v17, %v4859_v60  ;;  %v12608_v26 = vunpack.c.2.s8 %v5771_v34 }
 0x264   :  { %v12601_v10 = vsel %vm18803_vm6, 0.0, %v1163_v4  ;;  %v4220_v35 = vsel %vm4092_vm5, %v2070_v25, %v18804_v50  ;;  %v2284_v9 = vrot.slane %v1372_v51, 1  ;;  %v3448_v59 = vrot.slane %v1372_v51, 7  ;;  %v5776_v25 = vld [vmem:[%s17058_s1 + $0x58] sm:$0xff] }
 0x265   :  { %v2287_v3 = vrot.slane %v12601_v10, 1  ;;  %v1508_v24 = vrot.slane %v12613_v1, 7  ;;  %v1509_v58 = vrot.slane %v12619_v32, 7  ;;  %vm18806_vm12 = vcmp.eq.s32.totalorder %v18801_v43, 2 }
 0x266   :  { %v2458_v34 = vsel %vm1983_vm0, %v2284_v9, %v2285_v53  ;;  %v2459_v30 = vsel %vm1983_vm0, %v2283_v48, %v2284_v9  ;;  %v3622_v5 = vsel %vm1594_vm2, %v3448_v59, %v3449_v12  ;;  %v3623_v41 = vsel %vm1594_vm2, %v3447_v2, %v3448_v59 }
 0x267   :  { %v4347_v21 = vsel %vm3963_vm7, %v2459_v30, %v18805_v56  ;;  %v4348_v19 = vsel %vm3964_vm13, %v2458_v34, %v4220_v35  ;;  %v4604_v48 = vsel %vm4092_vm5, %v1682_v27, %v3623_v41  ;;  %v4605_v49 = vsel %vm18806_vm12, %v1681_v37, %v3622_v5  ;;  %v1167_v37 = vpop.permute.xlu1 %1166  ;;  %vm18817_vm12 = vmmov %vm18803_vm6  ;;  %v12720_v35 = vld [vmem:[%s17057_s0 + $0x168] sm:$0xff]  ;;  %v18818_v5 = vld [vmem:[#allocation109_spill] sm:$0xff] }
 0x268   :  { %v4475_v15 = vsel %vm3835_vm1, %v12384_v44, %v4347_v21  ;;  %v4476_v2 = vsel %vm3836_vm11, %v1372_v51, %v4348_v19  ;;  %v4732_v33 = vsel %vm3964_vm13, %v18807_v20, %v4604_v48  ;;  %v4733_v18 = vsel %vm3965_vm4, %v18808_v16, %v4605_v49  ;;  %v12714_v51 = vld [vmem:[%s17057_s0 + $0x160] sm:$0xff]  ;;  %v18820_v48 = vld [vmem:[#allocation325_spill] sm:$0xff] }
 0x269   :  { %v4860_v45 = vsel %vm3836_vm11, %v18809_v14, %v4732_v33  ;;  %vm4987_vm7 = vcmp.gt.f32.partialorder %v12402_v17, %v4475_v15  ;;  %vm4988_vm3 = vcmp.gt.f32.partialorder %v12513_v36, %v4476_v2  ;;  %v3451_v44 = vrot.slane %v12601_v10, 7  ;;  %v18821_v15 = vld [vmem:[#allocation324_spill] sm:$0xff]  ;;  %v18822_v20 = vld [vmem:[#allocation305_spill] sm:$0xff]  ;;  %v1165_v14 = vpop.permute.xlu0 %1164 }
 0x26a   :  { %v4861_v54 = vsel %vm3837_vm10, %v18810_v29, %v4733_v18  ;;  %vm5116_vm1 = vcmp.gt.f32.partialorder %v12513_v36, %v4860_v45  ;;  %vm5243_vm8 = vmand %vm4987_vm7, %vm5115_vm15  ;;  %v18812_v7 = vrot.slane %v18811_v47, 1  ;;  %v18814_v42 = vrot.slane %v18813_v62, 1 }
 0x26b   :  { %vm3838_vm9 = vcmp.eq.s32.totalorder %v12608_v26, 0  ;;  %vm5244_vm11 = vmand %vm4988_vm3, %vm5116_vm1  ;;  %v5371_v4 = vsel %vm5243_vm8, %v12402_v17, 0.0  ;;  %v1679_v11 = vsel %vm1594_vm2, %v1508_v24, %v1509_v58  ;;  %v1680_v60 = vsel %vm1594_vm2, %v1507_v28, %v1508_v24  ;;  %v18815_v17 = vld [vmem:[#allocation110_spill] sm:$0xff]  ;;  %v18816_v28 = vld [vmem:[#allocation328_spill] sm:$0xff]  ;;  %v1171_v45 = vpop.permute.xlu1 %1170 }
 0x26c   :  { %v2068_v52 = vsel %vm1983_vm0, %v18814_v42, %v18812_v7  ;;  %vm4094_vm5 = vcmp.eq.s32.totalorder %v12608_v26, 2  ;;  %v5372_v27 = vsel %vm5244_vm11, %v12513_v36, 0.0  ;;  %5499 = vst [vmem:[%s17059_s3 + $0x138] sm:$0xff] %v5371_v4  ;;  %vm3839_vm13 = vcmp.eq.s32.totalorder %v18815_v17, 0  ;;  %v18826_v7 = vld [vmem:[#allocation46_spill] sm:$0xff]  ;;  %v18831_v4 = vld [vmem:[#allocation341_spill] sm:$0xff] }
 0x26d   :  { %vm3966_vm14 = vcmp.eq.s32.totalorder %v12608_v26, 1  ;;  %v1374_v13 = vsel %vm18803_vm6, 0.0, %v1161_v23  ;;  %5500 = vst [vmem:[%s17059_s3 + $0x140] sm:$0xff] %v5372_v27  ;;  %vm3967_vm15 = vcmp.eq.s32.totalorder %v18815_v17, 1  ;;  %v4222_v36 = vsel %vm4094_vm5, %v2068_v52, %v18816_v28  ;;  %v12814_v28 = vld [vmem:[%s17057_s0 + $0x170] sm:$0xff] }
 0x26e   :  { %v2286_v22 = vrot.slane %v1374_v13, 1  ;;  %v3450_v8 = vrot.slane %v1374_v13, 7  ;;  %v12704_v61 = vsel %vm18817_vm12, 0.0, %v1167_v37  ;;  %v12709_v63 = vunpack.c.0.s8 %v5776_v25 }
 0x26f   :  { %v1510_v50 = vrot.slane %v12714_v51, 7  ;;  %v1511_v9 = vrot.slane %v12720_v35, 7  ;;  %vm18819_vm7 = vcmp.eq.s32.totalorder %v18815_v17, 2  ;;  %v2289_v16 = vrot.slane %v12704_v61, 1  ;;  %v1169_v17 = vpop.permute.xlu0 %1168 }
 0x270   :  { %v2456_v59 = vsel %vm1983_vm0, %v2286_v22, %v2287_v3  ;;  %v2457_v24 = vsel %vm1983_vm0, %v2285_v53, %v2286_v22  ;;  %v3620_v34 = vsel %vm1594_vm2, %v3450_v8, %v3451_v44  ;;  %v3621_v30 = vsel %vm1594_vm2, %v3449_v12, %v3450_v8  ;;  %v12820_v22 = vld [vmem:[%s17057_s0 + $0x178] sm:$0xff] }
 0x271   :  { %v4349_v41 = vsel %vm3965_vm4, %v2457_v24, %v18818_v5  ;;  %v4350_v56 = vsel %vm3966_vm14, %v2456_v59, %v4222_v36  ;;  %v4606_v53 = vsel %vm4094_vm5, %v1680_v60, %v3621_v30  ;;  %v4607_v21 = vsel %vm18819_vm7, %v1679_v11, %v3620_v34  ;;  %v18832_v34 = vld [vmem:[#allocation111_spill] sm:$0xff] }
 0x272   :  { %v4477_v19 = vsel %vm3837_vm10, %v12503_v6, %v4349_v41  ;;  %v4478_v12 = vsel %vm3838_vm9, %v1374_v13, %v4350_v56  ;;  %v4734_v49 = vsel %vm3966_vm14, %v18820_v48, %v4606_v53  ;;  %v4735_v2 = vsel %vm3967_vm15, %v18821_v15, %v4607_v21  ;;  %v18823_v6 = vld [vmem:[#allocation307_spill] sm:$0xff]  ;;  %v18834_v53 = vld [vmem:[#allocation336_spill] sm:$0xff]  ;;  %v302_v15 = vld [vmem:[%s17060_s2] sm:$0xff] }
 0x273   :  { %vm5117_vm4 = vcmp.gt.f32.partialorder %v12519_v38, %v4861_v54  ;;  %v4862_v33 = vsel %vm3838_vm9, %v18822_v20, %v4734_v49  ;;  %vm4989_vm3 = vcmp.gt.f32.partialorder %v12519_v38, %v4477_v19  ;;  %vm4990_vm10 = vcmp.gt.f32.partialorder %v12613_v1, %v4478_v12  ;;  %v18824_v54 = vld [vmem:[#allocation45_spill] sm:$0xff]  ;;  %v18835_v19 = vld [vmem:[#allocation335_spill] sm:$0xff]  ;;  %v18836_v48 = vld [vmem:[#allocation320_spill] sm:$0xff]  ;;  %1463 = vrot.lane.b32.xlu1 %v302_v15, %s5884_s21 }
 0x274   :  { %v4863_v43 = vsel %vm3839_vm13, %v18823_v6, %v4735_v2  ;;  %vm5118_vm1 = vcmp.gt.f32.partialorder %v12613_v1, %v4862_v33  ;;  %vm5245_vm8 = vmand %vm4989_vm3, %vm5117_vm4  ;;  %v3453_v18 = vrot.slane %v12704_v61, 7  ;;  %v1677_v23 = vsel %vm1594_vm2, %v1510_v50, %v1511_v9  ;;  %v18837_v2 = vld [vmem:[#allocation319_spill] sm:$0xff]  ;;  %v18840_v6 = vld [vmem:[#allocation48_spill] sm:$0xff]  ;;  %1460 = vrot.lane.b32.xlu0 %v302_v15, %s5883_s16 }
 0x275   :  { %vm5246_vm11 = vmand %vm4990_vm10, %vm5118_vm1  ;;  %v5373_v26 = vsel %vm5245_vm8, %v12519_v38, 0.0  ;;  %v1678_v29 = vsel %vm1594_vm2, %v1509_v58, %v1510_v50  ;;  %v18825_v47 = vrot.slane %v18824_v54, 1  ;;  %v18827_v62 = vrot.slane %v18826_v7, 1  ;;  %v18828_v38 = vld [vmem:[#allocation114_spill] sm:$0xff] }
 0x276   :  { %v5374_v52 = vsel %vm5246_vm11, %v12613_v1, 0.0  ;;  %5501 = vst [vmem:[%s17059_s3 + $0x148] sm:$0xff] %v5373_v26  ;;  %vm3840_vm9 = vcmp.eq.s32.totalorder %v12709_v63, 0  ;;  %vm3841_vm5 = vcmp.eq.s32.totalorder %v18828_v38, 0  ;;  %vm4096_vm14 = vcmp.eq.s32.totalorder %v12709_v63, 2 }
 0x277   :  { %v2066_v42 = vsel %vm1983_vm0, %v18827_v62, %v18825_v47  ;;  %5502 = vst [vmem:[%s17059_s3 + $0x150] sm:$0xff] %v5374_v52  ;;  %vm3968_vm6 = vcmp.eq.s32.totalorder %v12709_v63, 1  ;;  %vm3969_vm12 = vcmp.eq.s32.totalorder %v18828_v38, 1  ;;  %vm18829_vm7 = vcmp.eq.s32.totalorder %v6314_v55, 127  ;;  %v18838_v63 = vld [vmem:[#allocation47_spill] sm:$0xff]  ;;  %v5781_v52 = vld [vmem:[%s17058_s1 + $0x60] sm:$0xff] }
 0x278   :  { %v1376_v1 = vsel %vm18829_vm7, 0.0, %v1165_v14  ;;  %vm18830_vm4 = vmmov %vm18829_vm7  ;;  %v4224_v11 = vsel %vm4096_vm14, %v2066_v42, %v18831_v4  ;;  %vm5119_vm3 = vcmp.gt.f32.partialorder %v12619_v32, %v4863_v43  ;;  %v12809_v13 = vunpack.c.2.s8 %v5776_v25  ;;  %v12920_v4 = vld [vmem:[%s17057_s0 + $0x180] sm:$0xff] }
 0x279   :  { %v12802_v58 = vsel %vm18830_vm4, 0.0, %v1171_v45  ;;  %v2288_v60 = vrot.slane %v1376_v1, 1  ;;  %v3452_v37 = vrot.slane %v1376_v1, 7  ;;  %v1512_v36 = vrot.slane %v12814_v28, 7 }
 0x27a   :  { %v2291_v27 = vrot.slane %v12802_v58, 1  ;;  %v1513_v8 = vrot.slane %v12820_v22, 7  ;;  %vm18833_vm10 = vcmp.eq.s32.totalorder %v18828_v38, 2  ;;  %v18839_v33 = vrot.slane %v18838_v63, 1 }
 0x27b   :  { %v2454_v25 = vsel %vm1983_vm0, %v2288_v60, %v2289_v16  ;;  %v2455_v50 = vsel %vm1983_vm0, %v2287_v3, %v2288_v60  ;;  %v3618_v59 = vsel %vm1594_vm2, %v3452_v37, %v3453_v18  ;;  %v3619_v24 = vsel %vm1594_vm2, %v3451_v44, %v3452_v37  ;;  %v12926_v60 = vld [vmem:[%s17057_s0 + $0x188] sm:$0xff] }
 0x27c   :  { %v4351_v30 = vsel %vm3967_vm15, %v2455_v50, %v18832_v34  ;;  %v4352_v5 = vsel %vm3968_vm6, %v2454_v25, %v4224_v11  ;;  %v4608_v3 = vsel %vm4096_vm14, %v1678_v29, %v3619_v24  ;;  %v4609_v41 = vsel %vm18833_vm10, %v1677_v23, %v3618_v59  ;;  %v1175_v29 = vpop.permute.xlu1 %1174  ;;  %vm18844_vm10 = vmmov %vm18830_vm4  ;;  %v18845_v24 = vld [vmem:[#allocation115_spill] sm:$0xff] }
 0x27d   :  { %v4479_v56 = vsel %vm3839_vm13, %v12601_v10, %v4351_v30  ;;  %v4480_v44 = vsel %vm3840_vm9, %v1376_v1, %v4352_v5  ;;  %v4736_v21 = vsel %vm3968_vm6, %v18834_v53, %v4608_v3  ;;  %v4737_v12 = vsel %vm3969_vm12, %v18835_v19, %v4609_v41  ;;  %v18847_v41 = vld [vmem:[#allocation343_spill] sm:$0xff] }
 0x27e   :  { %v4864_v49 = vsel %vm3840_vm9, %v18836_v48, %v4736_v21  ;;  %vm4991_vm15 = vcmp.gt.f32.partialorder %v12619_v32, %v4479_v56  ;;  %vm4992_vm1 = vcmp.gt.f32.partialorder %v12714_v51, %v4480_v44  ;;  %v3455_v10 = vrot.slane %v12802_v58, 7  ;;  %v18848_v44 = vld [vmem:[#allocation342_spill] sm:$0xff]  ;;  %v18849_v21 = vld [vmem:[#allocation321_spill] sm:$0xff] }
 0x27f   :  { %v4865_v20 = vsel %vm3841_vm5, %v18837_v2, %v4737_v12  ;;  %vm5120_vm13 = vcmp.gt.f32.partialorder %v12714_v51, %v4864_v49  ;;  %vm5247_vm8 = vmand %vm4991_vm15, %vm5119_vm3  ;;  %v18841_v14 = vrot.slane %v18840_v6, 1  ;;  %vm3842_vm11 = vcmp.eq.s32.totalorder %v12809_v13, 0  ;;  %v1173_v49 = vpop.permute.xlu0 %1172 }
 0x280   :  { %vm5248_vm9 = vmand %vm4992_vm1, %vm5120_vm13  ;;  %v5375_v26 = vsel %vm5247_vm8, %v12619_v32, 0.0  ;;  %v1675_v43 = vsel %vm1594_vm2, %v1512_v36, %v1513_v8  ;;  %v1676_v23 = vsel %vm1594_vm2, %v1511_v9, %v1512_v36  ;;  %vm4098_vm14 = vcmp.eq.s32.totalorder %v12809_v13, 2  ;;  %v18842_v32 = vld [vmem:[#allocation116_spill] sm:$0xff]  ;;  %v18843_v9 = vld [vmem:[#allocation346_spill] sm:$0xff] }
 0x281   :  { %v2064_v45 = vsel %vm1983_vm0, %v18841_v14, %v18839_v33  ;;  %v5376_v54 = vsel %vm5248_vm9, %v12714_v51, 0.0  ;;  %5503 = vst [vmem:[%s17059_s3 + $0x158] sm:$0xff] %v5375_v26  ;;  %vm3843_vm6 = vcmp.eq.s32.totalorder %v18842_v32, 0  ;;  %vm3970_vm7 = vcmp.eq.s32.totalorder %v12809_v13, 1  ;;  %v18853_v33 = vld [vmem:[#allocation50_spill] sm:$0xff]  ;;  %v18858_v26 = vld [vmem:[#allocation353_spill] sm:$0xff] }
 0x282   :  { %v1378_v47 = vsel %vm18830_vm4, 0.0, %v1169_v17  ;;  %5504 = vst [vmem:[%s17059_s3 + $0x160] sm:$0xff] %v5376_v54  ;;  %vm3971_vm3 = vcmp.eq.s32.totalorder %v18842_v32, 1  ;;  %v4226_v51 = vsel %vm4098_vm14, %v2064_v45, %v18843_v9  ;;  %v12910_v42 = vsel %vm18844_vm10, 0.0, %v1175_v29  ;;  %v1179_v17 = vpop.permute.xlu1 %1178  ;;  %v13020_v9 = vld [vmem:[%s17057_s0 + $0x190] sm:$0xff] }
 0x283   :  { %v2290_v7 = vrot.slane %v1378_v47, 1  ;;  %v3454_v62 = vrot.slane %v1378_v47, 7  ;;  %v12915_v1 = vunpack.c.0.s8 %v5781_v52  ;;  %v1514_v11 = vrot.slane %v12920_v4, 7 }
 0x284   :  { %v1515_v37 = vrot.slane %v12926_v60, 7  ;;  %vm18846_vm15 = vcmp.eq.s32.totalorder %v18842_v32, 2  ;;  %v2293_v12 = vrot.slane %v12910_v42, 1  ;;  %v3457_v48 = vrot.slane %v12910_v42, 7  ;;  %v1177_v32 = vpop.permute.xlu0 %1176 }
 0x285   :  { %v2452_v36 = vsel %vm1983_vm0, %v2290_v7, %v2291_v27  ;;  %v2453_v25 = vsel %vm1983_vm0, %v2289_v16, %v2290_v7  ;;  %v3616_v50 = vsel %vm1594_vm2, %v3454_v62, %v3455_v10  ;;  %v3617_v59 = vsel %vm1594_vm2, %v3453_v18, %v3454_v62  ;;  %v13026_v7 = vld [vmem:[%s17057_s0 + $0x198] sm:$0xff] }
 0x286   :  { %v4353_v34 = vsel %vm3969_vm12, %v2453_v25, %v18845_v24  ;;  %v4354_v30 = vsel %vm3970_vm7, %v2452_v36, %v4226_v51  ;;  %v4610_v16 = vsel %vm4098_vm14, %v1676_v23, %v3617_v59  ;;  %v4611_v5 = vsel %vm18846_vm15, %v1675_v43, %v3616_v50  ;;  %v18859_v50 = vld [vmem:[#allocation117_spill] sm:$0xff] }
 0x287   :  { %v4481_v3 = vsel %vm3841_vm5, %v12704_v61, %v4353_v34  ;;  %v4482_v18 = vsel %vm3842_vm11, %v1378_v47, %v4354_v30  ;;  %v4738_v56 = vsel %vm3970_vm7, %v18847_v41, %v4610_v16  ;;  %v4739_v53 = vsel %vm3971_vm3, %v18848_v44, %v4611_v5  ;;  %v18850_v61 = vld [vmem:[#allocation327_spill] sm:$0xff]  ;;  %v18861_v16 = vld [vmem:[#allocation352_spill] sm:$0xff]  ;;  %v18863_v41 = vld [vmem:[#allocation334_spill] sm:$0xff] }
 0x288   :  { %vm5121_vm12 = vcmp.gt.f32.partialorder %v12720_v35, %v4865_v20  ;;  %v4866_v19 = vsel %vm3842_vm11, %v18849_v21, %v4738_v56  ;;  %vm4993_vm1 = vcmp.gt.f32.partialorder %v12720_v35, %v4481_v3  ;;  %vm4994_vm5 = vcmp.gt.f32.partialorder %v12814_v28, %v4482_v18  ;;  %v18851_v20 = vld [vmem:[#allocation49_spill] sm:$0xff]  ;;  %v18862_v3 = vld [vmem:[#allocation347_spill] sm:$0xff] }
 0x289   :  { %v4867_v38 = vsel %vm3843_vm6, %v18850_v61, %v4739_v53  ;;  %vm5122_vm13 = vcmp.gt.f32.partialorder %v12814_v28, %v4866_v19  ;;  %vm5249_vm8 = vmand %vm4993_vm1, %vm5121_vm12  ;;  %v1673_v15 = vsel %vm1594_vm2, %v1514_v11, %v1515_v37  ;;  %v1674_v2 = vsel %vm1594_vm2, %v1513_v8, %v1514_v11  ;;  %v18864_v44 = vld [vmem:[#allocation333_spill] sm:$0xff]  ;;  %v18865_v21 = vld [vmem:[#allocation51_spill] sm:$0xff] }
 0x28a   :  { %vm5250_vm9 = vmand %vm4994_vm5, %vm5122_vm13  ;;  %v5377_v13 = vsel %vm5249_vm8, %v12720_v35, 0.0  ;;  %v18852_v63 = vrot.slane %v18851_v20, 1  ;;  %v18854_v6 = vrot.slane %v18853_v33, 1  ;;  %vm3844_vm11 = vcmp.eq.s32.totalorder %v12915_v1, 0  ;;  %v18855_v35 = vld [vmem:[#allocation118_spill] sm:$0xff] }
 0x28b   :  { %v5378_v45 = vsel %vm5250_vm9, %v12814_v28, 0.0  ;;  %5505 = vst [vmem:[%s17059_s3 + $0x168] sm:$0xff] %v5377_v13  ;;  %vm3845_vm14 = vcmp.eq.s32.totalorder %v18855_v35, 0  ;;  %vm4100_vm7 = vcmp.eq.s32.totalorder %v12915_v1, 2  ;;  %vm3972_vm4 = vcmp.eq.s32.totalorder %v12915_v1, 1  ;;  %v18867_v1 = vld [vmem:[#allocation52_spill] sm:$0xff] }
 0x28c   :  { %v2062_v14 = vsel %vm1983_vm0, %v18854_v6, %v18852_v63  ;;  %5506 = vst [vmem:[%s17059_s3 + $0x170] sm:$0xff] %v5378_v45  ;;  %vm3973_vm10 = vcmp.eq.s32.totalorder %v18855_v35, 1  ;;  %vm18856_vm15 = vcmp.eq.s32.totalorder %v6314_v55, 127  ;;  %vm5123_vm1 = vcmp.gt.f32.partialorder %v12820_v22, %v4867_v38 }
 0x28d   :  { %v1380_v28 = vsel %vm18856_vm15, 0.0, %v1173_v49  ;;  %vm18857_vm12 = vmmov %vm18856_vm15  ;;  %v4228_v43 = vsel %vm4100_vm7, %v2062_v14, %v18858_v26  ;;  %v13015_v47 = vunpack.c.2.s8 %v5781_v52  ;;  %v1516_v51 = vrot.slane %v13020_v9, 7  ;;  %v5786_v14 = vld [vmem:[%s17058_s1 + $0x68] sm:$0xff] }
 0x28e   :  { %v13008_v8 = vsel %vm18857_vm12, 0.0, %v1179_v17  ;;  %v2292_v23 = vrot.slane %v1380_v28, 1  ;;  %v3456_v29 = vrot.slane %v1380_v28, 7  ;;  %v1517_v62 = vrot.slane %v13026_v7, 7 }
 0x28f   :  { %v2295_v54 = vrot.slane %v13008_v8, 1  ;;  %vm18860_vm5 = vcmp.eq.s32.totalorder %v18855_v35, 2  ;;  %v18866_v19 = vrot.slane %v18865_v21, 1  ;;  %v18868_v61 = vrot.slane %v18867_v1, 1 }
 0x290   :  { %v2450_v52 = vsel %vm1983_vm0, %v2292_v23, %v2293_v12  ;;  %v2451_v11 = vsel %vm1983_vm0, %v2291_v27, %v2292_v23  ;;  %v3614_v36 = vsel %vm1594_vm2, %v3456_v29, %v3457_v48  ;;  %v3615_v25 = vsel %vm1594_vm2, %v3455_v10, %v3456_v29 }
 0x291   :  { %v4355_v59 = vsel %vm3971_vm3, %v2451_v11, %v18859_v50  ;;  %v4356_v24 = vsel %vm3972_vm4, %v2450_v52, %v4228_v43  ;;  %v4612_v27 = vsel %vm4100_vm7, %v1674_v2, %v3615_v25  ;;  %v4613_v34 = vsel %vm18860_vm5, %v1673_v15, %v3614_v36  ;;  %v1183_v15 = vpop.permute.xlu1 %1182  ;;  %vm18871_vm5 = vmmov %vm18857_vm12  ;;  %v13127_v43 = vld [vmem:[%s17057_s0 + $0x1a8] sm:$0xff] }
 0x292   :  { %v4483_v30 = vsel %vm3843_vm6, %v12802_v58, %v4355_v59  ;;  %v4484_v10 = vsel %vm3844_vm11, %v1380_v28, %v4356_v24  ;;  %v4740_v5 = vsel %vm3972_vm4, %v18861_v16, %v4612_v27  ;;  %v4741_v18 = vsel %vm3973_vm10, %v18862_v3, %v4613_v34  ;;  %v13121_v28 = vld [vmem:[%s17057_s0 + $0x1a0] sm:$0xff]  ;;  %v18872_v36 = vld [vmem:[#allocation119_spill] sm:$0xff]  ;;  %v18874_v27 = vld [vmem:[#allocation360_spill] sm:$0xff] }
 0x293   :  { %v4868_v56 = vsel %vm3844_vm11, %v18863_v41, %v4740_v5  ;;  %vm4995_vm3 = vcmp.gt.f32.partialorder %v12820_v22, %v4483_v30  ;;  %vm4996_vm13 = vcmp.gt.f32.partialorder %v12920_v4, %v4484_v10  ;;  %v3459_v58 = vrot.slane %v13008_v8, 7  ;;  %v18875_v30 = vld [vmem:[#allocation359_spill] sm:$0xff]  ;;  %v18876_v16 = vld [vmem:[#allocation338_spill] sm:$0xff]  ;;  %v1181_v41 = vpop.permute.xlu0 %1180 }
 0x294   :  { %v4869_v53 = vsel %vm3845_vm14, %v18864_v44, %v4741_v18  ;;  %vm5124_vm6 = vcmp.gt.f32.partialorder %v12920_v4, %v4868_v56  ;;  %vm5251_vm8 = vmand %vm4995_vm3, %vm5123_vm1  ;;  %v2060_v49 = vsel %vm1983_vm0, %v18868_v61, %v18866_v19  ;;  %vm3846_vm9 = vcmp.eq.s32.totalorder %v13015_v47, 0  ;;  %v18880_v19 = vld [vmem:[#allocation54_spill] sm:$0xff] }
 0x295   :  { %vm5252_vm11 = vmand %vm4996_vm13, %vm5124_vm6  ;;  %v5379_v17 = vsel %vm5251_vm8, %v12820_v22, 0.0  ;;  %v1671_v13 = vsel %vm1594_vm2, %v1516_v51, %v1517_v62  ;;  %v1672_v38 = vsel %vm1594_vm2, %v1515_v37, %v1516_v51  ;;  %vm4102_vm7 = vcmp.eq.s32.totalorder %v13015_v47, 2  ;;  %v18869_v22 = vld [vmem:[#allocation120_spill] sm:$0xff]  ;;  %v18870_v37 = vld [vmem:[#allocation362_spill] sm:$0xff]  ;;  %v1187_v56 = vpop.permute.xlu1 %1186 }
 0x296   :  { %v5380_v2 = vsel %vm5252_vm11, %v12920_v4, 0.0  ;;  %5507 = vst [vmem:[%s17059_s3 + $0x178] sm:$0xff] %v5379_v17  ;;  %vm3847_vm4 = vcmp.eq.s32.totalorder %v18869_v22, 0  ;;  %vm3974_vm15 = vcmp.eq.s32.totalorder %v13015_v47, 1  ;;  %v1382_v20 = vsel %vm18857_vm12, 0.0, %v1177_v32  ;;  %v18885_v17 = vld [vmem:[#allocation371_spill] sm:$0xff] }
 0x297   :  { %5508 = vst [vmem:[%s17059_s3 + $0x180] sm:$0xff] %v5380_v2  ;;  %vm3975_vm1 = vcmp.eq.s32.totalorder %v18869_v22, 1  ;;  %v4230_v4 = vsel %vm4102_vm7, %v2060_v49, %v18870_v37  ;;  %v2294_v63 = vrot.slane %v1382_v20, 1  ;;  %v3458_v33 = vrot.slane %v1382_v20, 7  ;;  %v13221_v37 = vld [vmem:[%s17057_s0 + $0x1b0] sm:$0xff] }
 0x298   :  { %v13111_v6 = vsel %vm18871_vm5, 0.0, %v1183_v15  ;;  %v13116_v45 = vunpack.c.0.s8 %v5786_v14  ;;  %v1518_v26 = vrot.slane %v13121_v28, 7  ;;  %v1519_v23 = vrot.slane %v13127_v43, 7 }
 0x299   :  { %v2448_v29 = vsel %vm1983_vm0, %v2294_v63, %v2295_v54  ;;  %v2449_v51 = vsel %vm1983_vm0, %v2293_v12, %v2294_v63  ;;  %v3612_v52 = vsel %vm1594_vm2, %v3458_v33, %v3459_v58  ;;  %v3613_v11 = vsel %vm1594_vm2, %v3457_v48, %v3458_v33  ;;  %v13227_v63 = vld [vmem:[%s17057_s0 + $0x1b8] sm:$0xff] }
 0x29a   :  { %v4357_v25 = vsel %vm3973_vm10, %v2449_v51, %v18872_v36  ;;  %v4358_v50 = vsel %vm3974_vm15, %v2448_v29, %v4230_v4  ;;  %v4614_v12 = vsel %vm4102_vm7, %v1672_v38, %v3613_v11  ;;  %vm18873_vm3 = vcmp.eq.s32.totalorder %v18869_v22, 2  ;;  %v1185_v22 = vpop.permute.xlu0 %1184 }
 0x29b   :  { %v4615_v59 = vsel %vm18873_vm3, %v1671_v13, %v3612_v52  ;;  %v4485_v24 = vsel %vm3845_vm14, %v12910_v42, %v4357_v25  ;;  %v4486_v48 = vsel %vm3846_vm9, %v1382_v20, %v4358_v50  ;;  %v4742_v34 = vsel %vm3974_vm15, %v18874_v27, %v4614_v12  ;;  %v18877_v42 = vld [vmem:[#allocation344_spill] sm:$0xff]  ;;  %v18886_v52 = vld [vmem:[#allocation123_spill] sm:$0xff]  ;;  %v18888_v12 = vld [vmem:[#allocation369_spill] sm:$0xff] }
 0x29c   :  { %v4743_v10 = vsel %vm3975_vm1, %v18875_v30, %v4615_v59  ;;  %vm5125_vm10 = vcmp.gt.f32.partialorder %v12926_v60, %v4869_v53  ;;  %v4870_v5 = vsel %vm3846_vm9, %v18876_v16, %v4742_v34  ;;  %vm4997_vm13 = vcmp.gt.f32.partialorder %v12926_v60, %v4485_v24  ;;  %v18878_v53 = vld [vmem:[#allocation53_spill] sm:$0xff]  ;;  %v18890_v27 = vld [vmem:[#allocation351_spill] sm:$0xff]  ;;  %v18891_v30 = vld [vmem:[#allocation350_spill] sm:$0xff] }
 0x29d   :  { %vm4998_vm14 = vcmp.gt.f32.partialorder %v13020_v9, %v4486_v48  ;;  %v4871_v35 = vsel %vm3847_vm4, %v18877_v42, %v4743_v10  ;;  %vm5126_vm6 = vcmp.gt.f32.partialorder %v13020_v9, %v4870_v5  ;;  %vm5253_vm8 = vmand %vm4997_vm13, %vm5125_vm10  ;;  %v2297_v3 = vrot.slane %v13111_v6, 1  ;;  %v18889_v24 = vld [vmem:[#allocation365_spill] sm:$0xff]  ;;  %v18892_v16 = vld [vmem:[#allocation55_spill] sm:$0xff] }
 0x29e   :  { %v3461_v18 = vrot.slane %v13111_v6, 7  ;;  %vm5254_vm11 = vmand %vm4998_vm14, %vm5126_vm6  ;;  %v5381_v47 = vsel %vm5253_vm8, %v12926_v60, 0.0  ;;  %v1669_v32 = vsel %vm1594_vm2, %v1518_v26, %v1519_v23  ;;  %v1670_v44 = vsel %vm1594_vm2, %v1517_v62, %v1518_v26  ;;  %v18882_v60 = vld [vmem:[#allocation124_spill] sm:$0xff] }
 0x29f   :  { %v18879_v21 = vrot.slane %v18878_v53, 1  ;;  %v18881_v1 = vrot.slane %v18880_v19, 1  ;;  %v5382_v49 = vsel %vm5254_vm11, %v13020_v9, 0.0  ;;  %5509 = vst [vmem:[%s17059_s3 + $0x188] sm:$0xff] %v5381_v47  ;;  %vm3848_vm9 = vcmp.eq.s32.totalorder %v13116_v45, 0 }
 0x2a0   :  { %vm3849_vm7 = vcmp.eq.s32.totalorder %v18882_v60, 0  ;;  %vm4104_vm15 = vcmp.eq.s32.totalorder %v13116_v45, 2  ;;  %5510 = vst [vmem:[%s17059_s3 + $0x190] sm:$0xff] %v5382_v49  ;;  %vm3976_vm12 = vcmp.eq.s32.totalorder %v13116_v45, 1  ;;  %vm3977_vm5 = vcmp.eq.s32.totalorder %v18882_v60, 1  ;;  %v18894_v45 = vld [vmem:[#allocation56_spill] sm:$0xff] }
 0x2a1   :  { %v2058_v61 = vsel %vm1983_vm0, %v18881_v1, %v18879_v21  ;;  %vm18883_vm3 = vcmp.eq.s32.totalorder %v6314_v55, 127  ;;  %vm5127_vm13 = vcmp.gt.f32.partialorder %v13026_v7, %v4871_v35  ;;  %v13216_v20 = vunpack.c.2.s8 %v5786_v14 }
 0x2a2   :  { %v1384_v9 = vsel %vm18883_vm3, 0.0, %v1181_v41  ;;  %vm18884_vm10 = vmmov %vm18883_vm3  ;;  %v4232_v13 = vsel %vm4104_vm15, %v2058_v61, %v18885_v17  ;;  %v1520_v4 = vrot.slane %v13221_v37, 7  ;;  %v1521_v33 = vrot.slane %v13227_v63, 7  ;;  %v5791_v61 = vld [vmem:[%s17058_s1 + $0x70] sm:$0xff] }
 0x2a3   :  { %v13209_v62 = vsel %vm18884_vm10, 0.0, %v1187_v56  ;;  %v2296_v38 = vrot.slane %v1384_v9, 1  ;;  %v3460_v15 = vrot.slane %v1384_v9, 7  ;;  %vm18887_vm14 = vcmp.eq.s32.totalorder %v18882_v60, 2 }
 0x2a4   :  { %v2299_v2 = vrot.slane %v13209_v62, 1  ;;  %v18893_v5 = vrot.slane %v18892_v16, 1  ;;  %v18895_v42 = vrot.slane %v18894_v45, 1  ;;  %vm3850_vm11 = vcmp.eq.s32.totalorder %v13216_v20, 0 }
 0x2a5   :  { %v2446_v14 = vsel %vm1983_vm0, %v2296_v38, %v2297_v3  ;;  %v2447_v26 = vsel %vm1983_vm0, %v2295_v54, %v2296_v38  ;;  %v3610_v29 = vsel %vm1594_vm2, %v3460_v15, %v3461_v18  ;;  %v3611_v51 = vsel %vm1594_vm2, %v3459_v58, %v3460_v15 }
 0x2a6   :  { %v4359_v11 = vsel %vm3975_vm1, %v2447_v26, %v18886_v52  ;;  %v4360_v36 = vsel %vm3976_vm12, %v2446_v14, %v4232_v13  ;;  %v4616_v54 = vsel %vm4104_vm15, %v1670_v44, %v3611_v51  ;;  %v4617_v25 = vsel %vm18887_vm14, %v1669_v32, %v3610_v29  ;;  %v1191_v32 = vpop.permute.xlu1 %1190  ;;  %vm18898_vm14 = vmmov %vm18884_vm10  ;;  %v13328_v13 = vld [vmem:[%s17057_s0 + $0x1c8] sm:$0xff]  ;;  %v18899_v29 = vld [vmem:[#allocation125_spill] sm:$0xff] }
 0x2a7   :  { %v4487_v50 = vsel %vm3847_vm4, %v13008_v8, %v4359_v11  ;;  %v4488_v58 = vsel %vm3848_vm9, %v1384_v9, %v4360_v36  ;;  %v4744_v59 = vsel %vm3976_vm12, %v18888_v12, %v4616_v54  ;;  %v4745_v48 = vsel %vm3977_vm5, %v18889_v24, %v4617_v25  ;;  %v13322_v9 = vld [vmem:[%s17057_s0 + $0x1c0] sm:$0xff]  ;;  %v18901_v54 = vld [vmem:[#allocation375_spill] sm:$0xff] }
 0x2a8   :  { %v4872_v34 = vsel %vm3848_vm9, %v18890_v27, %v4744_v59  ;;  %vm4999_vm1 = vcmp.gt.f32.partialorder %v13026_v7, %v4487_v50  ;;  %vm5000_vm6 = vcmp.gt.f32.partialorder %v13121_v28, %v4488_v58  ;;  %v3463_v8 = vrot.slane %v13209_v62, 7  ;;  %v18902_v50 = vld [vmem:[#allocation374_spill] sm:$0xff]  ;;  %v18903_v12 = vld [vmem:[#allocation355_spill] sm:$0xff]  ;;  %v1189_v27 = vpop.permute.xlu0 %1188 }
 0x2a9   :  { %v4873_v10 = vsel %vm3849_vm7, %v18891_v30, %v4745_v48  ;;  %vm5128_vm4 = vcmp.gt.f32.partialorder %v13121_v28, %v4872_v34  ;;  %vm5255_vm8 = vmand %vm4999_vm1, %vm5127_vm13  ;;  %v2056_v41 = vsel %vm1983_vm0, %v18895_v42, %v18893_v5  ;;  %v1667_v47 = vsel %vm1594_vm2, %v1520_v4, %v1521_v33  ;;  %v18907_v5 = vld [vmem:[#allocation58_spill] sm:$0xff] }
 0x2aa   :  { %vm5256_vm9 = vmand %vm5000_vm6, %vm5128_vm4  ;;  %v5383_v56 = vsel %vm5255_vm8, %v13026_v7, 0.0  ;;  %v1668_v35 = vsel %vm1594_vm2, %v1519_v23, %v1520_v4  ;;  %vm4106_vm15 = vcmp.eq.s32.totalorder %v13216_v20, 2  ;;  %v18896_v7 = vld [vmem:[#allocation126_spill] sm:$0xff]  ;;  %vm3978_vm3 = vcmp.eq.s32.totalorder %v13216_v20, 1  ;;  %v18897_v23 = vld [vmem:[#allocation381_spill] sm:$0xff]  ;;  %v1195_v34 = vpop.permute.xlu1 %1194 }
 0x2ab   :  { %v5384_v44 = vsel %vm5256_vm9, %v13121_v28, 0.0  ;;  %5511 = vst [vmem:[%s17059_s3 + $0x198] sm:$0xff] %v5383_v56  ;;  %vm3851_vm12 = vcmp.eq.s32.totalorder %v18896_v7, 0  ;;  %v1386_v53 = vsel %vm18884_vm10, 0.0, %v1185_v22  ;;  %vm3979_vm13 = vcmp.eq.s32.totalorder %v18896_v7, 1  ;;  %v18912_v56 = vld [vmem:[#allocation388_spill] sm:$0xff] }
 0x2ac   :  { %5512 = vst [vmem:[%s17059_s3 + $0x1a0] sm:$0xff] %v5384_v44  ;;  %v4234_v28 = vsel %vm4106_vm15, %v2056_v41, %v18897_v23  ;;  %v2298_v21 = vrot.slane %v1386_v53, 1  ;;  %v3462_v19 = vrot.slane %v1386_v53, 7  ;;  %v13312_v1 = vsel %vm18898_vm14, 0.0, %v1191_v32  ;;  %v13422_v23 = vld [vmem:[%s17057_s0 + $0x1d0] sm:$0xff] }
 0x2ad   :  { %v13317_v49 = vunpack.c.0.s8 %v5791_v61  ;;  %v1522_v17 = vrot.slane %v13322_v9, 7  ;;  %v1523_v38 = vrot.slane %v13328_v13, 7  ;;  %vm18900_vm1 = vcmp.eq.s32.totalorder %v18896_v7, 2  ;;  %v1193_v7 = vpop.permute.xlu0 %1192 }
 0x2ae   :  { %v2444_v15 = vsel %vm1983_vm0, %v2298_v21, %v2299_v2  ;;  %v2445_v4 = vsel %vm1983_vm0, %v2297_v3, %v2298_v21  ;;  %v3608_v14 = vsel %vm1594_vm2, %v3462_v19, %v3463_v8  ;;  %v3609_v26 = vsel %vm1594_vm2, %v3461_v18, %v3462_v19  ;;  %v13428_v21 = vld [vmem:[%s17057_s0 + $0x1d8] sm:$0xff] }
 0x2af   :  { %v4361_v51 = vsel %vm3977_vm5, %v2445_v4, %v18899_v29  ;;  %v4362_v52 = vsel %vm3978_vm3, %v2444_v15, %v4234_v28  ;;  %v4618_v3 = vsel %vm4106_vm15, %v1668_v35, %v3609_v26  ;;  %v4619_v11 = vsel %vm18900_vm1, %v1667_v47, %v3608_v14  ;;  %v18913_v14 = vld [vmem:[#allocation127_spill] sm:$0xff] }
 0x2b0   :  { %v4489_v36 = vsel %vm3849_vm7, %v13111_v6, %v4361_v51  ;;  %v4490_v18 = vsel %vm3850_vm11, %v1386_v53, %v4362_v52  ;;  %v4746_v25 = vsel %vm3978_vm3, %v18901_v54, %v4618_v3  ;;  %v4747_v58 = vsel %vm3979_vm13, %v18902_v50, %v4619_v11  ;;  %v18904_v6 = vld [vmem:[#allocation361_spill] sm:$0xff]  ;;  %v18915_v3 = vld [vmem:[#allocation386_spill] sm:$0xff]  ;;  %v18918_v50 = vld [vmem:[#allocation372_spill] sm:$0xff] }
 0x2b1   :  { %vm5129_vm5 = vcmp.gt.f32.partialorder %v13127_v43, %v4873_v10  ;;  %v4874_v59 = vsel %vm3850_vm11, %v18903_v12, %v4746_v25  ;;  %vm5001_vm6 = vcmp.gt.f32.partialorder %v13127_v43, %v4489_v36  ;;  %vm5002_vm7 = vcmp.gt.f32.partialorder %v13221_v37, %v4490_v18  ;;  %v18905_v10 = vld [vmem:[#allocation57_spill] sm:$0xff]  ;;  %v18917_v54 = vld [vmem:[#allocation366_spill] sm:$0xff] }
 0x2b2   :  { %v4875_v60 = vsel %vm3851_vm12, %v18904_v6, %v4747_v58  ;;  %vm5130_vm4 = vcmp.gt.f32.partialorder %v13221_v37, %v4874_v59  ;;  %vm5257_vm8 = vmand %vm5001_vm6, %vm5129_vm5  ;;  %v2301_v24 = vrot.slane %v13312_v1, 1  ;;  %v3465_v48 = vrot.slane %v13312_v1, 7  ;;  %v18916_v36 = vld [vmem:[#allocation385_spill] sm:$0xff] }
 0x2b3   :  { %vm5258_vm9 = vmand %vm5002_vm7, %vm5130_vm4  ;;  %v5385_v20 = vsel %vm5257_vm8, %v13127_v43, 0.0  ;;  %v1665_v22 = vsel %vm1594_vm2, %v1522_v17, %v1523_v38  ;;  %v1666_v30 = vsel %vm1594_vm2, %v1521_v33, %v1522_v17  ;;  %v18906_v16 = vrot.slane %v18905_v10, 1  ;;  %v18909_v43 = vld [vmem:[#allocation128_spill] sm:$0xff]  ;;  %v18919_v12 = vld [vmem:[#allocation61_spill] sm:$0xff] }
 0x2b4   :  { %v18908_v45 = vrot.slane %v18907_v5, 1  ;;  %v5386_v41 = vsel %vm5258_vm9, %v13221_v37, 0.0  ;;  %5513 = vst [vmem:[%s17059_s3 + $0x1a8] sm:$0xff] %v5385_v20  ;;  %vm3852_vm11 = vcmp.eq.s32.totalorder %v13317_v49, 0  ;;  %vm3853_vm15 = vcmp.eq.s32.totalorder %v18909_v43, 0 }
 0x2b5   :  { %vm4108_vm3 = vcmp.eq.s32.totalorder %v13317_v49, 2  ;;  %5514 = vst [vmem:[%s17059_s3 + $0x1b0] sm:$0xff] %v5386_v41  ;;  %vm3980_vm10 = vcmp.eq.s32.totalorder %v13317_v49, 1  ;;  %vm3981_vm14 = vcmp.eq.s32.totalorder %v18909_v43, 1  ;;  %vm18910_vm1 = vcmp.eq.s32.totalorder %v6314_v55, 127  ;;  %v18921_v49 = vld [vmem:[#allocation62_spill] sm:$0xff] }
 0x2b6   :  { %v2054_v42 = vsel %vm1983_vm0, %v18908_v45, %v18906_v16  ;;  %v1388_v37 = vsel %vm18910_vm1, 0.0, %v1189_v27  ;;  %vm18911_vm5 = vmmov %vm18910_vm1  ;;  %vm5131_vm6 = vcmp.gt.f32.partialorder %v13227_v63, %v4875_v60  ;;  %v13417_v53 = vunpack.c.2.s8 %v5791_v61 }
 0x2b7   :  { %v13410_v33 = vsel %vm18911_vm5, 0.0, %v1195_v34  ;;  %v4236_v47 = vsel %vm4108_vm3, %v2054_v42, %v18912_v56  ;;  %v2300_v35 = vrot.slane %v1388_v37, 1  ;;  %v3464_v32 = vrot.slane %v1388_v37, 7  ;;  %v5796_v42 = vld [vmem:[%s17058_s1 + $0x78] sm:$0xff] }
 0x2b8   :  { %v2303_v44 = vrot.slane %v13410_v33, 1  ;;  %v1524_v28 = vrot.slane %v13422_v23, 7  ;;  %v1525_v19 = vrot.slane %v13428_v21, 7  ;;  %vm18914_vm7 = vcmp.eq.s32.totalorder %v18909_v43, 2 }
 0x2b9   :  { %v2442_v61 = vsel %vm1983_vm0, %v2300_v35, %v2301_v24  ;;  %v2443_v17 = vsel %vm1983_vm0, %v2299_v2, %v2300_v35  ;;  %v3606_v15 = vsel %vm1594_vm2, %v3464_v32, %v3465_v48  ;;  %v3607_v4 = vsel %vm1594_vm2, %v3463_v8, %v3464_v32 }
 0x2ba   :  { %v4363_v26 = vsel %vm3979_vm13, %v2443_v17, %v18913_v14  ;;  %v4364_v29 = vsel %vm3980_vm10, %v2442_v61, %v4236_v47  ;;  %v4620_v2 = vsel %vm4108_vm3, %v1666_v30, %v3607_v4  ;;  %v4621_v51 = vsel %vm18914_vm7, %v1665_v22, %v3606_v15  ;;  %v1199_v22 = vpop.permute.xlu1 %1198  ;;  %vm18925_vm7 = vmmov %vm18911_vm5  ;;  %v13529_v47 = vld [vmem:[%s17057_s0 + $0x1e8] sm:$0xff]  ;;  %v18926_v15 = vld [vmem:[#allocation130_spill] sm:$0xff] }
 0x2bb   :  { %v4491_v52 = vsel %vm3851_vm12, %v13209_v62, %v4363_v26  ;;  %v4492_v8 = vsel %vm3852_vm11, %v1388_v37, %v4364_v29  ;;  %v4748_v11 = vsel %vm3980_vm10, %v18915_v3, %v4620_v2  ;;  %v4749_v18 = vsel %vm3981_vm14, %v18916_v36, %v4621_v51  ;;  %v13523_v37 = vld [vmem:[%s17057_s0 + $0x1e0] sm:$0xff]  ;;  %v18928_v2 = vld [vmem:[#allocation391_spill] sm:$0xff]  ;;  %v18930_v3 = vld [vmem:[#allocation373_spill] sm:$0xff] }
 0x2bc   :  { %v4876_v25 = vsel %vm3852_vm11, %v18917_v54, %v4748_v11  ;;  %vm5003_vm13 = vcmp.gt.f32.partialorder %v13227_v63, %v4491_v52  ;;  %vm5004_vm4 = vcmp.gt.f32.partialorder %v13322_v9, %v4492_v8  ;;  %v3467_v62 = vrot.slane %v13410_v33, 7  ;;  %v18929_v52 = vld [vmem:[#allocation390_spill] sm:$0xff]  ;;  %v1197_v54 = vpop.permute.xlu0 %1196 }
 0x2bd   :  { %v4877_v58 = vsel %vm3853_vm15, %v18918_v50, %v4749_v18  ;;  %vm5132_vm12 = vcmp.gt.f32.partialorder %v13322_v9, %v4876_v25  ;;  %vm5259_vm8 = vmand %vm5003_vm13, %vm5131_vm6  ;;  %v18920_v59 = vrot.slane %v18919_v12, 1  ;;  %v18922_v6 = vrot.slane %v18921_v49, 1 }
 0x2be   :  { %vm3854_vm9 = vcmp.eq.s32.totalorder %v13417_v53, 0  ;;  %vm5260_vm11 = vmand %vm5004_vm4, %vm5132_vm12  ;;  %v5387_v34 = vsel %vm5259_vm8, %v13227_v63, 0.0  ;;  %v1663_v20 = vsel %vm1594_vm2, %v1524_v28, %v1525_v19  ;;  %v1664_v60 = vsel %vm1594_vm2, %v1523_v38, %v1524_v28  ;;  %v18923_v63 = vld [vmem:[#allocation133_spill] sm:$0xff]  ;;  %v18924_v38 = vld [vmem:[#allocation392_spill] sm:$0xff]  ;;  %v1203_v25 = vpop.permute.xlu1 %1202 }
 0x2bf   :  { %v2052_v27 = vsel %vm1983_vm0, %v18922_v6, %v18920_v59  ;;  %vm4110_vm3 = vcmp.eq.s32.totalorder %v13417_v53, 2  ;;  %v5388_v30 = vsel %vm5260_vm11, %v13322_v9, 0.0  ;;  %5515 = vst [vmem:[%s17059_s3 + $0x1b8] sm:$0xff] %v5387_v34  ;;  %vm3855_vm10 = vcmp.eq.s32.totalorder %v18923_v63, 0  ;;  %v18934_v59 = vld [vmem:[#allocation71_spill] sm:$0xff]  ;;  %v18939_v34 = vld [vmem:[#allocation400_spill] sm:$0xff] }
 0x2c0   :  { %vm3982_vm1 = vcmp.eq.s32.totalorder %v13417_v53, 1  ;;  %v1390_v10 = vsel %vm18911_vm5, 0.0, %v1193_v7  ;;  %5516 = vst [vmem:[%s17059_s3 + $0x1c0] sm:$0xff] %v5388_v30  ;;  %vm3983_vm6 = vcmp.eq.s32.totalorder %v18923_v63, 1  ;;  %v4238_v9 = vsel %vm4110_vm3, %v2052_v27, %v18924_v38  ;;  %v13623_v38 = vld [vmem:[%s17057_s0 + $0x1f0] sm:$0xff] }
 0x2c1   :  { %v2302_v16 = vrot.slane %v1390_v10, 1  ;;  %v3466_v5 = vrot.slane %v1390_v10, 7  ;;  %v13513_v45 = vsel %vm18925_vm7, 0.0, %v1199_v22  ;;  %v13518_v41 = vunpack.c.0.s8 %v5796_v42 }
 0x2c2   :  { %v1526_v56 = vrot.slane %v13523_v37, 7  ;;  %v1527_v35 = vrot.slane %v13529_v47, 7  ;;  %vm18927_vm13 = vcmp.eq.s32.totalorder %v18923_v63, 2  ;;  %v2305_v36 = vrot.slane %v13513_v45, 1  ;;  %v1201_v63 = vpop.permute.xlu0 %1200 }
 0x2c3   :  { %v2440_v32 = vsel %vm1983_vm0, %v2302_v16, %v2303_v44  ;;  %v2441_v28 = vsel %vm1983_vm0, %v2301_v24, %v2302_v16  ;;  %v3604_v61 = vsel %vm1594_vm2, %v3466_v5, %v3467_v62  ;;  %v3605_v17 = vsel %vm1594_vm2, %v3465_v48, %v3466_v5  ;;  %v13629_v16 = vld [vmem:[%s17057_s0 + $0x1f8] sm:$0xff] }
 0x2c4   :  { %v4365_v4 = vsel %vm3981_vm14, %v2441_v28, %v18926_v15  ;;  %v4366_v14 = vsel %vm3982_vm1, %v2440_v32, %v4238_v9  ;;  %v4622_v24 = vsel %vm4110_vm3, %v1664_v60, %v3605_v17  ;;  %v4623_v26 = vsel %vm18927_vm13, %v1663_v20, %v3604_v61  ;;  %v18940_v61 = vld [vmem:[#allocation136_spill] sm:$0xff] }
 0x2c5   :  { %v4493_v29 = vsel %vm3853_vm15, %v13312_v1, %v4365_v4  ;;  %v4494_v48 = vsel %vm3854_vm9, %v1390_v10, %v4366_v14  ;;  %v4750_v51 = vsel %vm3982_vm1, %v18928_v2, %v4622_v24  ;;  %v4751_v8 = vsel %vm3983_vm6, %v18929_v52, %v4623_v26  ;;  %v18931_v1 = vld [vmem:[#allocation379_spill] sm:$0xff]  ;;  %v18942_v24 = vld [vmem:[#allocation396_spill] sm:$0xff] }
 0x2c6   :  { %vm5133_vm14 = vcmp.gt.f32.partialorder %v13328_v13, %v4877_v58  ;;  %v4878_v11 = vsel %vm3854_vm9, %v18930_v3, %v4750_v51  ;;  %vm5005_vm4 = vcmp.gt.f32.partialorder %v13328_v13, %v4493_v29  ;;  %vm5006_vm15 = vcmp.gt.f32.partialorder %v13422_v23, %v4494_v48  ;;  %v18932_v58 = vld [vmem:[#allocation70_spill] sm:$0xff]  ;;  %v18943_v29 = vld [vmem:[#allocation395_spill] sm:$0xff]  ;;  %v18944_v2 = vld [vmem:[#allocation384_spill] sm:$0xff] }
 0x2c7   :  { %v4879_v43 = vsel %vm3855_vm10, %v18931_v1, %v4751_v8  ;;  %vm5134_vm12 = vcmp.gt.f32.partialorder %v13422_v23, %v4878_v11  ;;  %vm5261_vm8 = vmand %vm5005_vm4, %vm5133_vm14  ;;  %v3469_v18 = vrot.slane %v13513_v45, 7  ;;  %v1661_v7 = vsel %vm1594_vm2, %v1526_v56, %v1527_v35  ;;  %v18945_v52 = vld [vmem:[#allocation383_spill] sm:$0xff] }
 0x2c8   :  { %vm5262_vm11 = vmand %vm5006_vm15, %vm5134_vm12  ;;  %v5389_v53 = vsel %vm5261_vm8, %v13328_v13, 0.0  ;;  %v1662_v50 = vsel %vm1594_vm2, %v1525_v19, %v1526_v56  ;;  %v18933_v12 = vrot.slane %v18932_v58, 1  ;;  %v18935_v49 = vrot.slane %v18934_v59, 1  ;;  %v18936_v13 = vld [vmem:[#allocation137_spill] sm:$0xff]  ;;  %v18946_v3 = vld [vmem:[#allocation83_spill] sm:$0xff] }
 0x2c9   :  { %v5390_v27 = vsel %vm5262_vm11, %v13422_v23, 0.0  ;;  %5517 = vst [vmem:[%s17059_s3 + $0x1c8] sm:$0xff] %v5389_v53  ;;  %vm3856_vm9 = vcmp.eq.s32.totalorder %v13518_v41, 0  ;;  %vm3857_vm3 = vcmp.eq.s32.totalorder %v18936_v13, 0  ;;  %vm4112_vm1 = vcmp.eq.s32.totalorder %v13518_v41, 2 }
 0x2ca   :  { %v2050_v6 = vsel %vm1983_vm0, %v18935_v49, %v18933_v12  ;;  %5518 = vst [vmem:[%s17059_s3 + $0x1d0] sm:$0xff] %v5390_v27  ;;  %vm3984_vm5 = vcmp.eq.s32.totalorder %v13518_v41, 1  ;;  %vm3985_vm7 = vcmp.eq.s32.totalorder %v18936_v13, 1  ;;  %vm18937_vm13 = vcmp.eq.s32.totalorder %v6314_v55, 127  ;;  %v18948_v41 = vld [vmem:[#allocation84_spill] sm:$0xff] }
 0x2cb   :  { %v1392_v23 = vsel %vm18937_vm13, 0.0, %v1197_v54  ;;  %vm18938_vm14 = vmmov %vm18937_vm13  ;;  %v4240_v20 = vsel %vm4112_vm1, %v2050_v6, %v18939_v34  ;;  %vm5135_vm4 = vcmp.gt.f32.partialorder %v13428_v21, %v4879_v43  ;;  %v13618_v10 = vunpack.c.2.s8 %v5796_v42  ;;  %v5801_v6 = vld [vmem:[%s17058_s1 + $0x80] sm:$0xff] }
 0x2cc   :  { %v13611_v19 = vsel %vm18938_vm14, 0.0, %v1203_v25  ;;  %v2304_v60 = vrot.slane %v1392_v23, 1  ;;  %v3468_v22 = vrot.slane %v1392_v23, 7  ;;  %v1528_v9 = vrot.slane %v13623_v38, 7 }
 0x2cd   :  { %v2307_v30 = vrot.slane %v13611_v19, 1  ;;  %v1529_v5 = vrot.slane %v13629_v16, 7  ;;  %vm18941_vm15 = vcmp.eq.s32.totalorder %v18936_v13, 2  ;;  %v18947_v11 = vrot.slane %v18946_v3, 1 }
 0x2ce   :  { %v2438_v42 = vsel %vm1983_vm0, %v2304_v60, %v2305_v36  ;;  %v2439_v56 = vsel %vm1983_vm0, %v2303_v44, %v2304_v60  ;;  %v3602_v32 = vsel %vm1594_vm2, %v3468_v22, %v3469_v18  ;;  %v3603_v28 = vsel %vm1594_vm2, %v3467_v62, %v3468_v22 }
 0x2cf   :  { %v4367_v17 = vsel %vm3983_vm6, %v2439_v56, %v18940_v61  ;;  %v4368_v15 = vsel %vm3984_vm5, %v2438_v42, %v4240_v20  ;;  %v4624_v44 = vsel %vm4112_vm1, %v1662_v50, %v3603_v28  ;;  %v4625_v4 = vsel %vm18941_vm15, %v1661_v7, %v3602_v32  ;;  %v1207_v7 = vpop.permute.xlu1 %1206  ;;  %vm18952_vm15 = vmmov %vm18938_vm14  ;;  %v13730_v20 = vld [vmem:[%s17057_s0 + $0x208] sm:$0xff]  ;;  %v18953_v32 = vld [vmem:[#allocation138_spill] sm:$0xff] }
 0x2d0   :  { %v4495_v14 = vsel %vm3855_vm10, %v13410_v33, %v4367_v17  ;;  %v4496_v62 = vsel %vm3856_vm9, %v1392_v23, %v4368_v15  ;;  %v4752_v26 = vsel %vm3984_vm5, %v18942_v24, %v4624_v44  ;;  %v4753_v48 = vsel %vm3985_vm7, %v18943_v29, %v4625_v4  ;;  %v13724_v23 = vld [vmem:[%s17057_s0 + $0x200] sm:$0xff]  ;;  %v18955_v44 = vld [vmem:[#allocation403_spill] sm:$0xff]  ;;  %v18957_v24 = vld [vmem:[#allocation389_spill] sm:$0xff] }
 0x2d1   :  { %v4880_v51 = vsel %vm3856_vm9, %v18944_v2, %v4752_v26  ;;  %vm5007_vm6 = vcmp.gt.f32.partialorder %v13428_v21, %v4495_v14  ;;  %vm5008_vm12 = vcmp.gt.f32.partialorder %v13523_v37, %v4496_v62  ;;  %v3471_v33 = vrot.slane %v13611_v19, 7  ;;  %v18956_v14 = vld [vmem:[#allocation402_spill] sm:$0xff]  ;;  %v1205_v2 = vpop.permute.xlu0 %1204 }
 0x2d2   :  { %v4881_v8 = vsel %vm3857_vm3, %v18945_v52, %v4753_v48  ;;  %vm5136_vm10 = vcmp.gt.f32.partialorder %v13523_v37, %v4880_v51  ;;  %vm5263_vm8 = vmand %vm5007_vm6, %vm5135_vm4  ;;  %v18949_v1 = vrot.slane %v18948_v41, 1  ;;  %vm3858_vm11 = vcmp.eq.s32.totalorder %v13618_v10, 0 }
 0x2d3   :  { %vm5264_vm9 = vmand %vm5008_vm12, %vm5136_vm10  ;;  %v5391_v25 = vsel %vm5263_vm8, %v13428_v21, 0.0  ;;  %v1659_v53 = vsel %vm1594_vm2, %v1528_v9, %v1529_v5  ;;  %v1660_v43 = vsel %vm1594_vm2, %v1527_v35, %v1528_v9  ;;  %vm4114_vm1 = vcmp.eq.s32.totalorder %v13618_v10, 2  ;;  %v18950_v21 = vld [vmem:[#allocation144_spill] sm:$0xff]  ;;  %v1211_v51 = vpop.permute.xlu1 %1210 }
 0x2d4   :  { %v2048_v54 = vsel %vm1983_vm0, %v18949_v1, %v18947_v11  ;;  %v5392_v50 = vsel %vm5264_vm9, %v13523_v37, 0.0  ;;  %5519 = vst [vmem:[%s17059_s3 + $0x1d8] sm:$0xff] %v5391_v25  ;;  %vm3859_vm5 = vcmp.eq.s32.totalorder %v18950_v21, 0  ;;  %vm3986_vm13 = vcmp.eq.s32.totalorder %v13618_v10, 1  ;;  %v18951_v35 = vld [vmem:[#allocation404_spill] sm:$0xff]  ;;  %v18961_v11 = vld [vmem:[#allocation93_spill] sm:$0xff] }
 0x2d5   :  { %v1394_v58 = vsel %vm18938_vm14, 0.0, %v1201_v63  ;;  %5520 = vst [vmem:[%s17059_s3 + $0x1e0] sm:$0xff] %v5392_v50  ;;  %vm3987_vm4 = vcmp.eq.s32.totalorder %v18950_v21, 1  ;;  %v4242_v37 = vsel %vm4114_vm1, %v2048_v54, %v18951_v35  ;;  %v13714_v49 = vsel %vm18952_vm15, 0.0, %v1207_v7  ;;  %v18966_v25 = vld [vmem:[#allocation408_spill] sm:$0xff] }
 0x2d6   :  { %v2306_v12 = vrot.slane %v1394_v58, 1  ;;  %v3470_v59 = vrot.slane %v1394_v58, 7  ;;  %v13719_v27 = vunpack.c.0.s8 %v5801_v6  ;;  %v1530_v34 = vrot.slane %v13724_v23, 7  ;;  %v13824_v35 = vld [vmem:[%s17057_s0 + $0x210] sm:$0xff] }
 0x2d7   :  { %v1531_v60 = vrot.slane %v13730_v20, 7  ;;  %vm18954_vm6 = vcmp.eq.s32.totalorder %v18950_v21, 2  ;;  %v2309_v29 = vrot.slane %v13714_v49, 1  ;;  %v3473_v48 = vrot.slane %v13714_v49, 7  ;;  %v1209_v21 = vpop.permute.xlu0 %1208 }
 0x2d8   :  { %v2436_v22 = vsel %vm1983_vm0, %v2306_v12, %v2307_v30  ;;  %v2437_v9 = vsel %vm1983_vm0, %v2305_v36, %v2306_v12  ;;  %v3600_v42 = vsel %vm1594_vm2, %v3470_v59, %v3471_v33  ;;  %v3601_v56 = vsel %vm1594_vm2, %v3469_v18, %v3470_v59  ;;  %v13830_v12 = vld [vmem:[%s17057_s0 + $0x218] sm:$0xff] }
 0x2d9   :  { %v4369_v28 = vsel %vm3985_vm7, %v2437_v9, %v18953_v32  ;;  %v4370_v61 = vsel %vm3986_vm13, %v2436_v22, %v4242_v37  ;;  %v4626_v36 = vsel %vm4114_vm1, %v1660_v43, %v3601_v56  ;;  %v4627_v17 = vsel %vm18954_vm6, %v1659_v53, %v3600_v42  ;;  %v18967_v42 = vld [vmem:[#allocation410_spill] sm:$0xff] }
 0x2da   :  { %v4497_v15 = vsel %vm3857_vm3, %v13513_v45, %v4369_v28  ;;  %v4498_v18 = vsel %vm3858_vm11, %v1394_v58, %v4370_v61  ;;  %v4754_v4 = vsel %vm3986_vm13, %v18955_v44, %v4626_v36  ;;  %v4755_v62 = vsel %vm3987_vm4, %v18956_v14, %v4627_v17  ;;  %v18958_v45 = vld [vmem:[#allocation393_spill] sm:$0xff]  ;;  %v18969_v36 = vld [vmem:[#allocation407_spill] sm:$0xff]  ;;  %v18971_v44 = vld [vmem:[#allocation394_spill] sm:$0xff] }
 0x2db   :  { %vm5137_vm7 = vcmp.gt.f32.partialorder %v13529_v47, %v4881_v8  ;;  %v4882_v26 = vsel %vm3858_vm11, %v18957_v24, %v4754_v4  ;;  %vm5009_vm12 = vcmp.gt.f32.partialorder %v13529_v47, %v4497_v15  ;;  %vm5010_vm3 = vcmp.gt.f32.partialorder %v13623_v38, %v4498_v18  ;;  %v18959_v8 = vld [vmem:[#allocation92_spill] sm:$0xff]  ;;  %v18970_v15 = vld [vmem:[#allocation406_spill] sm:$0xff]  ;;  %v18972_v14 = vld [vmem:[#allocation397_spill] sm:$0xff] }
 0x2dc   :  { %v4883_v13 = vsel %vm3859_vm5, %v18958_v45, %v4755_v62  ;;  %vm5138_vm10 = vcmp.gt.f32.partialorder %v13623_v38, %v4882_v26  ;;  %vm5265_vm8 = vmand %vm5009_vm12, %vm5137_vm7  ;;  %v1657_v63 = vsel %vm1594_vm2, %v1530_v34, %v1531_v60  ;;  %v1658_v52 = vsel %vm1594_vm2, %v1529_v5, %v1530_v34  ;;  %v18973_v24 = vld [vmem:[#allocation101_spill] sm:$0xff] }
 0x2dd   :  { %vm5266_vm9 = vmand %vm5010_vm3, %vm5138_vm10  ;;  %v5393_v10 = vsel %vm5265_vm8, %v13529_v47, 0.0  ;;  %v18960_v3 = vrot.slane %v18959_v8, 1  ;;  %v18962_v41 = vrot.slane %v18961_v11, 1  ;;  %vm3860_vm11 = vcmp.eq.s32.totalorder %v13719_v27, 0  ;;  %v18963_v47 = vld [vmem:[#allocation145_spill] sm:$0xff] }
 0x2de   :  { %v5394_v54 = vsel %vm5266_vm9, %v13623_v38, 0.0  ;;  %5521 = vst [vmem:[%s17059_s3 + $0x1e8] sm:$0xff] %v5393_v10  ;;  %vm3861_vm1 = vcmp.eq.s32.totalorder %v18963_v47, 0  ;;  %vm4116_vm13 = vcmp.eq.s32.totalorder %v13719_v27, 2  ;;  %vm3988_vm14 = vcmp.eq.s32.totalorder %v13719_v27, 1  ;;  %v18975_v27 = vld [vmem:[#allocation102_spill] sm:$0xff] }
 0x2df   :  { %v2046_v1 = vsel %vm1983_vm0, %v18962_v41, %v18960_v3  ;;  %5522 = vst [vmem:[%s17059_s3 + $0x1f0] sm:$0xff] %v5394_v54  ;;  %vm3989_vm15 = vcmp.eq.s32.totalorder %v18963_v47, 1  ;;  %vm18964_vm6 = vcmp.eq.s32.totalorder %v6314_v55, 127  ;;  %vm5139_vm12 = vcmp.gt.f32.partialorder %v13629_v16, %v4883_v13 }
 0x2e0   :  { %v1396_v38 = vsel %vm18964_vm6, 0.0, %v1205_v2  ;;  %vm18965_vm7 = vmmov %vm18964_vm6  ;;  %v4244_v53 = vsel %vm4116_vm13, %v2046_v1, %v18966_v25  ;;  %v13819_v58 = vunpack.c.2.s8 %v5801_v6  ;;  %v1532_v37 = vrot.slane %v13824_v35, 7  ;;  %v5806_v1 = vld [vmem:[%s17058_s1 + $0x88] sm:$0xff] }
 0x2e1   :  { %v13812_v5 = vsel %vm18965_vm7, 0.0, %v1211_v51  ;;  %v2308_v43 = vrot.slane %v1396_v38, 1  ;;  %v3472_v7 = vrot.slane %v1396_v38, 7  ;;  %v1533_v59 = vrot.slane %v13830_v12, 7 }
 0x2e2   :  { %v2311_v50 = vrot.slane %v13812_v5, 1  ;;  %vm18968_vm3 = vcmp.eq.s32.totalorder %v18963_v47, 2  ;;  %v18974_v26 = vrot.slane %v18973_v24, 1  ;;  %v18976_v45 = vrot.slane %v18975_v27, 1 }
 0x2e3   :  { %v2434_v6 = vsel %vm1983_vm0, %v2308_v43, %v2309_v29  ;;  %v2435_v34 = vsel %vm1983_vm0, %v2307_v30, %v2308_v43  ;;  %v3598_v22 = vsel %vm1594_vm2, %v3472_v7, %v3473_v48  ;;  %v3599_v9 = vsel %vm1594_vm2, %v3471_v33, %v3472_v7 }
 0x2e4   :  { %v4371_v56 = vsel %vm3987_vm4, %v2435_v34, %v18967_v42  ;;  %v4372_v32 = vsel %vm3988_vm14, %v2434_v6, %v4244_v53  ;;  %v4628_v30 = vsel %vm4116_vm13, %v1658_v52, %v3599_v9  ;;  %v4629_v28 = vsel %vm18968_vm3, %v1657_v63, %v3598_v22  ;;  %v1215_v63 = vpop.permute.xlu1 %1214  ;;  %vm18979_vm3 = vmmov %vm18965_vm7  ;;  %v13931_v53 = vld [vmem:[%s17057_s0 + $0x228] sm:$0xff]  ;;  %v18980_v22 = vld [vmem:[#allocation416_spill] sm:$0xff] }
 0x2e5   :  { %v4499_v61 = vsel %vm3859_vm5, %v13611_v19, %v4371_v56  ;;  %v4500_v33 = vsel %vm3860_vm11, %v1396_v38, %v4372_v32  ;;  %v4756_v17 = vsel %vm3988_vm14, %v18969_v36, %v4628_v30  ;;  %v4757_v18 = vsel %vm3989_vm15, %v18970_v15, %v4629_v28  ;;  %v13925_v38 = vld [vmem:[%s17057_s0 + $0x220] sm:$0xff]  ;;  %v18984_v36 = vld [vmem:[#allocation399_spill] sm:$0xff] }
 0x2e6   :  { %v4884_v4 = vsel %vm3860_vm11, %v18971_v44, %v4756_v17  ;;  %vm5011_vm4 = vcmp.gt.f32.partialorder %v13629_v16, %v4499_v61  ;;  %vm5012_vm10 = vcmp.gt.f32.partialorder %v13724_v23, %v4500_v33  ;;  %v3475_v19 = vrot.slane %v13812_v5, 7  ;;  %v18982_v30 = vld [vmem:[#allocation414_spill] sm:$0xff]  ;;  %v18983_v61 = vld [vmem:[#allocation413_spill] sm:$0xff]  ;;  %v1213_v44 = vpop.permute.xlu0 %1212 }
 0x2e7   :  { %v4885_v62 = vsel %vm3861_vm1, %v18972_v14, %v4757_v18  ;;  %vm5140_vm5 = vcmp.gt.f32.partialorder %v13724_v23, %v4884_v4  ;;  %vm5267_vm8 = vmand %vm5011_vm4, %vm5139_vm12  ;;  %v2044_v2 = vsel %vm1983_vm0, %v18976_v45, %v18974_v26  ;;  %vm3862_vm9 = vcmp.eq.s32.totalorder %v13819_v58, 0  ;;  %v18988_v26 = vld [vmem:[#allocation113_spill] sm:$0xff] }
 0x2e8   :  { %vm5268_vm11 = vmand %vm5012_vm10, %vm5140_vm5  ;;  %v5395_v51 = vsel %vm5267_vm8, %v13629_v16, 0.0  ;;  %v1655_v10 = vsel %vm1594_vm2, %v1532_v37, %v1533_v59  ;;  %v1656_v13 = vsel %vm1594_vm2, %v1531_v60, %v1532_v37  ;;  %vm4118_vm13 = vcmp.eq.s32.totalorder %v13819_v58, 2  ;;  %v18977_v16 = vld [vmem:[#allocation156_spill] sm:$0xff]  ;;  %v18978_v60 = vld [vmem:[#allocation415_spill] sm:$0xff]  ;;  %v1219_v4 = vpop.permute.xlu1 %1218 }
 0x2e9   :  { %v5396_v52 = vsel %vm5268_vm11, %v13724_v23, 0.0  ;;  %5523 = vst [vmem:[%s17059_s3 + $0x1f8] sm:$0xff] %v5395_v51  ;;  %vm3863_vm14 = vcmp.eq.s32.totalorder %v18977_v16, 0  ;;  %vm3990_vm6 = vcmp.eq.s32.totalorder %v13819_v58, 1  ;;  %v1398_v8 = vsel %vm18965_vm7, 0.0, %v1209_v21  ;;  %v18993_v51 = vld [vmem:[#allocation424_spill] sm:$0xff] }
 0x2ea   :  { %5524 = vst [vmem:[%s17059_s3 + $0x200] sm:$0xff] %v5396_v52  ;;  %vm3991_vm12 = vcmp.eq.s32.totalorder %v18977_v16, 1  ;;  %v4246_v23 = vsel %vm4118_vm13, %v2044_v2, %v18978_v60  ;;  %v2310_v3 = vrot.slane %v1398_v8, 1  ;;  %v3474_v11 = vrot.slane %v1398_v8, 7  ;;  %v14025_v60 = vld [vmem:[%s17057_s0 + $0x230] sm:$0xff] }
 0x2eb   :  { %v13915_v41 = vsel %vm18979_vm3, 0.0, %v1215_v63  ;;  %v13920_v54 = vunpack.c.0.s8 %v5806_v1  ;;  %v1534_v25 = vrot.slane %v13925_v38, 7  ;;  %v1535_v43 = vrot.slane %v13931_v53, 7 }
 0x2ec   :  { %v2432_v7 = vsel %vm1983_vm0, %v2310_v3, %v2311_v50  ;;  %v2433_v37 = vsel %vm1983_vm0, %v2309_v29, %v2310_v3  ;;  %v3596_v6 = vsel %vm1594_vm2, %v3474_v11, %v3475_v19  ;;  %v3597_v34 = vsel %vm1594_vm2, %v3473_v48, %v3474_v11  ;;  %v14031_v3 = vld [vmem:[%s17057_s0 + $0x238] sm:$0xff] }
 0x2ed   :  { %v4373_v9 = vsel %vm3989_vm15, %v2433_v37, %v18980_v22  ;;  %v4374_v42 = vsel %vm3990_vm6, %v2432_v7, %v4246_v23  ;;  %v4630_v29 = vsel %vm4118_vm13, %v1656_v13, %v3597_v34  ;;  %vm18981_vm4 = vcmp.eq.s32.totalorder %v18977_v16, 2  ;;  %v1217_v16 = vpop.permute.xlu0 %1216 }
 0x2ee   :  { %v4631_v56 = vsel %vm18981_vm4, %v1655_v10, %v3596_v6  ;;  %v4501_v32 = vsel %vm3861_vm1, %v13714_v49, %v4373_v9  ;;  %v4502_v48 = vsel %vm3862_vm9, %v1398_v8, %v4374_v42  ;;  %v4758_v28 = vsel %vm3990_vm6, %v18982_v30, %v4630_v29  ;;  %v18985_v49 = vld [vmem:[#allocation401_spill] sm:$0xff]  ;;  %v18994_v6 = vld [vmem:[#allocation163_spill] sm:$0xff]  ;;  %v18998_v30 = vld [vmem:[#allocation2_spill] sm:$0xff] }
 0x2ef   :  { %v4759_v33 = vsel %vm3991_vm12, %v18983_v61, %v4631_v56  ;;  %vm5141_vm15 = vcmp.gt.f32.partialorder %v13730_v20, %v4885_v62  ;;  %v4886_v17 = vsel %vm3862_vm9, %v18984_v36, %v4758_v28  ;;  %vm5013_vm10 = vcmp.gt.f32.partialorder %v13730_v20, %v4501_v32  ;;  %v18986_v62 = vld [vmem:[#allocation112_spill] sm:$0xff]  ;;  %v18996_v29 = vld [vmem:[#allocation423_spill] sm:$0xff]  ;;  %v18997_v32 = vld [vmem:[#allocation422_spill] sm:$0xff] }
 0x2f0   :  { %vm5014_vm1 = vcmp.gt.f32.partialorder %v13824_v35, %v4502_v48  ;;  %v4887_v47 = vsel %vm3863_vm14, %v18985_v49, %v4759_v33  ;;  %vm5142_vm5 = vcmp.gt.f32.partialorder %v13824_v35, %v4886_v17  ;;  %vm5269_vm8 = vmand %vm5013_vm10, %vm5141_vm15  ;;  %v2313_v15 = vrot.slane %v13915_v41, 1  ;;  %v18999_v61 = vld [vmem:[#allocation409_spill] sm:$0xff] }
 0x2f1   :  { %v3477_v18 = vrot.slane %v13915_v41, 7  ;;  %vm5270_vm11 = vmand %vm5014_vm1, %vm5142_vm5  ;;  %v5397_v58 = vsel %vm5269_vm8, %v13730_v20, 0.0  ;;  %v1653_v21 = vsel %vm1594_vm2, %v1534_v25, %v1535_v43  ;;  %v1654_v14 = vsel %vm1594_vm2, %v1533_v59, %v1534_v25  ;;  %v18990_v20 = vld [vmem:[#allocation165_spill] sm:$0xff] }
 0x2f2   :  { %v18987_v24 = vrot.slane %v18986_v62, 1  ;;  %v18989_v27 = vrot.slane %v18988_v26, 1  ;;  %v5398_v2 = vsel %vm5270_vm11, %v13824_v35, 0.0  ;;  %5525 = vst [vmem:[%s17059_s3 + $0x208] sm:$0xff] %v5397_v58  ;;  %vm3864_vm9 = vcmp.eq.s32.totalorder %v13920_v54, 0  ;;  %v19000_v36 = vld [vmem:[#allocation121_spill] sm:$0xff] }
 0x2f3   :  { %vm3865_vm13 = vcmp.eq.s32.totalorder %v18990_v20, 0  ;;  %vm4120_vm6 = vcmp.eq.s32.totalorder %v13920_v54, 2  ;;  %5526 = vst [vmem:[%s17059_s3 + $0x210] sm:$0xff] %v5398_v2  ;;  %vm3992_vm7 = vcmp.eq.s32.totalorder %v13920_v54, 1  ;;  %vm3993_vm3 = vcmp.eq.s32.totalorder %v18990_v20, 1  ;;  %v19002_v54 = vld [vmem:[#allocation122_spill] sm:$0xff] }
 0x2f4   :  { %v2042_v45 = vsel %vm1983_vm0, %v18989_v27, %v18987_v24  ;;  %vm18991_vm4 = vcmp.eq.s32.totalorder %v6314_v55, 127  ;;  %vm5143_vm10 = vcmp.gt.f32.partialorder %v13830_v12, %v4887_v47  ;;  %v14020_v8 = vunpack.c.2.s8 %v5806_v1 }
 0x2f5   :  { %v1400_v35 = vsel %vm18991_vm4, 0.0, %v1213_v44  ;;  %vm18992_vm15 = vmmov %vm18991_vm4  ;;  %v4248_v10 = vsel %vm4120_vm6, %v2042_v45, %v18993_v51  ;;  %v1536_v23 = vrot.slane %v14025_v60, 7  ;;  %v1537_v11 = vrot.slane %v14031_v3, 7  ;;  %v5811_v45 = vld [vmem:[%s17058_s1 + $0x90] sm:$0xff] }
 0x2f6   :  { %v14013_v59 = vsel %vm18992_vm15, 0.0, %v1219_v4  ;;  %v2312_v13 = vrot.slane %v1400_v35, 1  ;;  %v3476_v63 = vrot.slane %v1400_v35, 7  ;;  %vm18995_vm1 = vcmp.eq.s32.totalorder %v18990_v20, 2 }
 0x2f7   :  { %v2315_v52 = vrot.slane %v14013_v59, 1  ;;  %v19001_v17 = vrot.slane %v19000_v36, 1  ;;  %v19003_v49 = vrot.slane %v19002_v54, 1  ;;  %vm3866_vm11 = vcmp.eq.s32.totalorder %v14020_v8, 0 }
 0x2f8   :  { %v2430_v1 = vsel %vm1983_vm0, %v2312_v13, %v2313_v15  ;;  %v2431_v25 = vsel %vm1983_vm0, %v2311_v50, %v2312_v13  ;;  %v3594_v7 = vsel %vm1594_vm2, %v3476_v63, %v3477_v18  ;;  %v3595_v37 = vsel %vm1594_vm2, %v3475_v19, %v3476_v63 }
 0x2f9   :  { %v4375_v34 = vsel %vm3991_vm12, %v2431_v25, %v18994_v6  ;;  %v4376_v22 = vsel %vm3992_vm7, %v2430_v1, %v4248_v10  ;;  %v4632_v50 = vsel %vm4120_vm6, %v1654_v14, %v3595_v37  ;;  %v4633_v9 = vsel %vm18995_vm1, %v1653_v21, %v3594_v7  ;;  %v1223_v21 = vpop.permute.xlu1 %1222  ;;  %vm19006_vm1 = vmmov %vm18992_vm15  ;;  %v14132_v10 = vld [vmem:[%s17057_s0 + $0x248] sm:$0xff]  ;;  %v19007_v7 = vld [vmem:[#allocation6_spill] sm:$0xff] }
 0x2fa   :  { %v4503_v42 = vsel %vm3863_vm14, %v13812_v5, %v4375_v34  ;;  %v4504_v19 = vsel %vm3864_vm9, %v1400_v35, %v4376_v22  ;;  %v4760_v56 = vsel %vm3992_vm7, %v18996_v29, %v4632_v50  ;;  %v4761_v48 = vsel %vm3993_vm3, %v18997_v32, %v4633_v9  ;;  %v14126_v35 = vld [vmem:[%s17057_s0 + $0x240] sm:$0xff]  ;;  %v19009_v50 = vld [vmem:[#allocation427_spill] sm:$0xff]  ;;  %v19011_v29 = vld [vmem:[#allocation412_spill] sm:$0xff] }
 0x2fb   :  { %v4888_v28 = vsel %vm3864_vm9, %v18998_v30, %v4760_v56  ;;  %vm5015_vm12 = vcmp.gt.f32.partialorder %v13830_v12, %v4503_v42  ;;  %vm5016_vm5 = vcmp.gt.f32.partialorder %v13925_v38, %v4504_v19  ;;  %v3479_v5 = vrot.slane %v14013_v59, 7  ;;  %v19010_v42 = vld [vmem:[#allocation4_spill] sm:$0xff]  ;;  %v1221_v30 = vpop.permute.xlu0 %1220 }
 0x2fc   :  { %v4889_v33 = vsel %vm3865_vm13, %v18999_v61, %v4761_v48  ;;  %vm5144_vm14 = vcmp.gt.f32.partialorder %v13925_v38, %v4888_v28  ;;  %vm5271_vm8 = vmand %vm5015_vm12, %vm5143_vm10  ;;  %v2040_v44 = vsel %vm1983_vm0, %v19003_v49, %v19001_v17  ;;  %v1651_v58 = vsel %vm1594_vm2, %v1536_v23, %v1537_v11  ;;  %v19015_v17 = vld [vmem:[#allocation135_spill] sm:$0xff] }
 0x2fd   :  { %vm5272_vm9 = vmand %vm5016_vm5, %vm5144_vm14  ;;  %v5399_v4 = vsel %vm5271_vm8, %v13830_v12, 0.0  ;;  %v1652_v47 = vsel %vm1594_vm2, %v1535_v43, %v1536_v23  ;;  %vm4122_vm6 = vcmp.eq.s32.totalorder %v14020_v8, 2  ;;  %v19004_v12 = vld [vmem:[#allocation176_spill] sm:$0xff]  ;;  %vm3994_vm4 = vcmp.eq.s32.totalorder %v14020_v8, 1  ;;  %v19005_v43 = vld [vmem:[#allocation5_spill] sm:$0xff]  ;;  %v1227_v28 = vpop.permute.xlu1 %1226 }
 0x2fe   :  { %v5400_v14 = vsel %vm5272_vm9, %v13925_v38, 0.0  ;;  %5527 = vst [vmem:[%s17059_s3 + $0x218] sm:$0xff] %v5399_v4  ;;  %vm3867_vm7 = vcmp.eq.s32.totalorder %v19004_v12, 0  ;;  %v1402_v62 = vsel %vm18992_vm15, 0.0, %v1217_v16  ;;  %vm3995_vm10 = vcmp.eq.s32.totalorder %v19004_v12, 1  ;;  %v19020_v4 = vld [vmem:[#allocation430_spill] sm:$0xff] }
 0x2ff   :  { %5528 = vst [vmem:[%s17059_s3 + $0x220] sm:$0xff] %v5400_v14  ;;  %v4250_v38 = vsel %vm4122_vm6, %v2040_v44, %v19005_v43  ;;  %v2314_v24 = vrot.slane %v1402_v62, 1  ;;  %v3478_v26 = vrot.slane %v1402_v62, 7  ;;  %v14116_v27 = vsel %vm19006_vm1, 0.0, %v1223_v21  ;;  %v14226_v43 = vld [vmem:[%s17057_s0 + $0x250] sm:$0xff] }
 0x300   :  { %v14121_v2 = vunpack.c.0.s8 %v5811_v45  ;;  %v1538_v51 = vrot.slane %v14126_v35, 7  ;;  %v1539_v13 = vrot.slane %v14132_v10, 7  ;;  %vm19008_vm12 = vcmp.eq.s32.totalorder %v19004_v12, 2  ;;  %v1225_v12 = vpop.permute.xlu0 %1224 }
 0x301   :  { %v2428_v63 = vsel %vm1983_vm0, %v2314_v24, %v2315_v52  ;;  %v2429_v23 = vsel %vm1983_vm0, %v2313_v15, %v2314_v24  ;;  %v3592_v1 = vsel %vm1594_vm2, %v3478_v26, %v3479_v5  ;;  %v3593_v25 = vsel %vm1594_vm2, %v3477_v18, %v3478_v26  ;;  %v14232_v24 = vld [vmem:[%s17057_s0 + $0x258] sm:$0xff] }
 0x302   :  { %v4377_v37 = vsel %vm3993_vm3, %v2429_v23, %v19007_v7  ;;  %v4378_v6 = vsel %vm3994_vm4, %v2428_v63, %v4250_v38  ;;  %v4634_v15 = vsel %vm4122_vm6, %v1652_v47, %v3593_v25  ;;  %v4635_v34 = vsel %vm19008_vm12, %v1651_v58, %v3592_v1  ;;  %v19021_v1 = vld [vmem:[#allocation183_spill] sm:$0xff] }
 0x303   :  { %v4505_v22 = vsel %vm3865_vm13, %v13915_v41, %v4377_v37  ;;  %v4506_v18 = vsel %vm3866_vm11, %v1402_v62, %v4378_v6  ;;  %v4762_v9 = vsel %vm3994_vm4, %v19009_v50, %v4634_v15  ;;  %v4763_v19 = vsel %vm3995_vm10, %v19010_v42, %v4635_v34  ;;  %v19012_v41 = vld [vmem:[#allocation411_spill] sm:$0xff]  ;;  %v19023_v15 = vld [vmem:[#allocation429_spill] sm:$0xff] }
 0x304   :  { %vm5145_vm3 = vcmp.gt.f32.partialorder %v13931_v53, %v4889_v33  ;;  %v4890_v56 = vsel %vm3866_vm11, %v19011_v29, %v4762_v9  ;;  %vm5017_vm5 = vcmp.gt.f32.partialorder %v13931_v53, %v4505_v22  ;;  %vm5018_vm13 = vcmp.gt.f32.partialorder %v14025_v60, %v4506_v18  ;;  %v19013_v33 = vld [vmem:[#allocation134_spill] sm:$0xff]  ;;  %v19024_v22 = vld [vmem:[#allocation173_spill] sm:$0xff]  ;;  %v19026_v42 = vld [vmem:[#allocation419_spill] sm:$0xff] }
 0x305   :  { %v4891_v20 = vsel %vm3867_vm7, %v19012_v41, %v4763_v19  ;;  %vm5146_vm14 = vcmp.gt.f32.partialorder %v14025_v60, %v4890_v56  ;;  %vm5273_vm8 = vmand %vm5017_vm5, %vm5145_vm3  ;;  %v2317_v32 = vrot.slane %v14116_v27, 1  ;;  %v3481_v48 = vrot.slane %v14116_v27, 7  ;;  %v19025_v50 = vld [vmem:[#allocation417_spill] sm:$0xff]  ;;  %v19027_v29 = vld [vmem:[#allocation142_spill] sm:$0xff] }
 0x306   :  { %vm5274_vm9 = vmand %vm5018_vm13, %vm5146_vm14  ;;  %v5401_v8 = vsel %vm5273_vm8, %v13931_v53, 0.0  ;;  %v1649_v16 = vsel %vm1594_vm2, %v1538_v51, %v1539_v13  ;;  %v1650_v61 = vsel %vm1594_vm2, %v1537_v11, %v1538_v51  ;;  %v19014_v36 = vrot.slane %v19013_v33, 1  ;;  %v19017_v53 = vld [vmem:[#allocation184_spill] sm:$0xff] }
 0x307   :  { %v19016_v54 = vrot.slane %v19015_v17, 1  ;;  %v5402_v44 = vsel %vm5274_vm9, %v14025_v60, 0.0  ;;  %5529 = vst [vmem:[%s17059_s3 + $0x228] sm:$0xff] %v5401_v8  ;;  %vm3868_vm11 = vcmp.eq.s32.totalorder %v14121_v2, 0  ;;  %vm3869_vm6 = vcmp.eq.s32.totalorder %v19017_v53, 0 }
 0x308   :  { %vm4124_vm4 = vcmp.eq.s32.totalorder %v14121_v2, 2  ;;  %5530 = vst [vmem:[%s17059_s3 + $0x230] sm:$0xff] %v5402_v44  ;;  %vm3996_vm15 = vcmp.eq.s32.totalorder %v14121_v2, 1  ;;  %vm3997_vm1 = vcmp.eq.s32.totalorder %v19017_v53, 1  ;;  %vm19018_vm12 = vcmp.eq.s32.totalorder %v6314_v55, 127  ;;  %v19029_v2 = vld [vmem:[#allocation143_spill] sm:$0xff] }
 0x309   :  { %v2038_v49 = vsel %vm1983_vm0, %v19016_v54, %v19014_v36  ;;  %v1404_v60 = vsel %vm19018_vm12, 0.0, %v1221_v30  ;;  %vm19019_vm3 = vmmov %vm19018_vm12  ;;  %vm5147_vm5 = vcmp.gt.f32.partialorder %v14031_v3, %v4891_v20  ;;  %v14221_v62 = vunpack.c.2.s8 %v5811_v45 }
 0x30a   :  { %v14214_v11 = vsel %vm19019_vm3, 0.0, %v1227_v28  ;;  %v4252_v58 = vsel %vm4124_vm4, %v2038_v49, %v19020_v4  ;;  %v2316_v47 = vrot.slane %v1404_v60, 1  ;;  %v3480_v21 = vrot.slane %v1404_v60, 7  ;;  %v5816_v49 = vld [vmem:[%s17058_s1 + $0x98] sm:$0xff] }
 0x30b   :  { %v2319_v14 = vrot.slane %v14214_v11, 1  ;;  %v1540_v38 = vrot.slane %v14226_v43, 7  ;;  %v1541_v26 = vrot.slane %v14232_v24, 7  ;;  %vm19022_vm13 = vcmp.eq.s32.totalorder %v19017_v53, 2 }
 0x30c   :  { %v2426_v45 = vsel %vm1983_vm0, %v2316_v47, %v2317_v32  ;;  %v2427_v51 = vsel %vm1983_vm0, %v2315_v52, %v2316_v47  ;;  %v3590_v63 = vsel %vm1594_vm2, %v3480_v21, %v3481_v48  ;;  %v3591_v23 = vsel %vm1594_vm2, %v3479_v5, %v3480_v21 }
 0x30d   :  { %v4379_v25 = vsel %vm3995_vm10, %v2427_v51, %v19021_v1  ;;  %v4380_v7 = vsel %vm3996_vm15, %v2426_v45, %v4252_v58  ;;  %v4636_v52 = vsel %vm4124_vm4, %v1650_v61, %v3591_v23  ;;  %v4637_v37 = vsel %vm19022_vm13, %v1649_v16, %v3590_v63  ;;  %v1231_v16 = vpop.permute.xlu1 %1230  ;;  %vm19033_vm13 = vmmov %vm19019_vm3  ;;  %v14333_v58 = vld [vmem:[%s17057_s0 + $0x268] sm:$0xff] }
 0x30e   :  { %v4507_v6 = vsel %vm3867_vm7, %v14013_v59, %v4379_v25  ;;  %v4508_v5 = vsel %vm3868_vm11, %v1404_v60, %v4380_v7  ;;  %v4764_v34 = vsel %vm3996_vm15, %v19023_v15, %v4636_v52  ;;  %v4765_v18 = vsel %vm3997_vm1, %v19024_v22, %v4637_v37  ;;  %v14327_v60 = vld [vmem:[%s17057_s0 + $0x260] sm:$0xff]  ;;  %v19034_v63 = vld [vmem:[#allocation191_spill] sm:$0xff]  ;;  %v19038_v15 = vld [vmem:[#allocation425_spill] sm:$0xff] }
 0x30f   :  { %v4892_v9 = vsel %vm3868_vm11, %v19025_v50, %v4764_v34  ;;  %vm5019_vm10 = vcmp.gt.f32.partialorder %v14031_v3, %v4507_v6  ;;  %vm5020_vm14 = vcmp.gt.f32.partialorder %v14126_v35, %v4508_v5  ;;  %v3483_v59 = vrot.slane %v14214_v11, 7  ;;  %v19036_v52 = vld [vmem:[#allocation435_spill] sm:$0xff]  ;;  %v19037_v6 = vld [vmem:[#allocation434_spill] sm:$0xff]  ;;  %v1229_v50 = vpop.permute.xlu0 %1228 }
 0x310   :  { %v4893_v19 = vsel %vm3869_vm6, %v19026_v42, %v4765_v18  ;;  %vm5148_vm7 = vcmp.gt.f32.partialorder %v14126_v35, %v4892_v9  ;;  %vm5275_vm8 = vmand %vm5019_vm10, %vm5147_vm5  ;;  %v19028_v56 = vrot.slane %v19027_v29, 1  ;;  %v19030_v41 = vrot.slane %v19029_v2, 1 }
 0x311   :  { %vm3870_vm9 = vcmp.eq.s32.totalorder %v14221_v62, 0  ;;  %vm5276_vm11 = vmand %vm5020_vm14, %vm5148_vm7  ;;  %v5403_v28 = vsel %vm5275_vm8, %v14031_v3, 0.0  ;;  %v1647_v8 = vsel %vm1594_vm2, %v1540_v38, %v1541_v26  ;;  %v1648_v20 = vsel %vm1594_vm2, %v1539_v13, %v1540_v38  ;;  %v19031_v3 = vld [vmem:[#allocation195_spill] sm:$0xff]  ;;  %v19032_v13 = vld [vmem:[#allocation438_spill] sm:$0xff]  ;;  %v1235_v9 = vpop.permute.xlu1 %1234 }
 0x312   :  { %v2036_v30 = vsel %vm1983_vm0, %v19030_v41, %v19028_v56  ;;  %vm4126_vm4 = vcmp.eq.s32.totalorder %v14221_v62, 2  ;;  %v5404_v61 = vsel %vm5276_vm11, %v14126_v35, 0.0  ;;  %5531 = vst [vmem:[%s17059_s3 + $0x238] sm:$0xff] %v5403_v28  ;;  %vm3871_vm15 = vcmp.eq.s32.totalorder %v19031_v3, 0  ;;  %v19042_v56 = vld [vmem:[#allocation153_spill] sm:$0xff]  ;;  %v19047_v28 = vld [vmem:[#allocation159_spill] sm:$0xff] }
 0x313   :  { %vm3998_vm12 = vcmp.eq.s32.totalorder %v14221_v62, 1  ;;  %v1406_v33 = vsel %vm19019_vm3, 0.0, %v1225_v12  ;;  %5532 = vst [vmem:[%s17059_s3 + $0x240] sm:$0xff] %v5404_v61  ;;  %vm3999_vm5 = vcmp.eq.s32.totalorder %v19031_v3, 1  ;;  %v4254_v35 = vsel %vm4126_vm4, %v2036_v30, %v19032_v13  ;;  %v14427_v13 = vld [vmem:[%s17057_s0 + $0x270] sm:$0xff] }
 0x314   :  { %v2318_v36 = vrot.slane %v1406_v33, 1  ;;  %v3482_v17 = vrot.slane %v1406_v33, 7  ;;  %v14317_v54 = vsel %vm19033_vm13, 0.0, %v1231_v16  ;;  %v14322_v44 = vunpack.c.0.s8 %v5816_v49 }
 0x315   :  { %v1542_v4 = vrot.slane %v14327_v60, 7  ;;  %v1543_v47 = vrot.slane %v14333_v58, 7  ;;  %vm19035_vm10 = vcmp.eq.s32.totalorder %v19031_v3, 2  ;;  %v2321_v22 = vrot.slane %v14317_v54, 1  ;;  %v1233_v3 = vpop.permute.xlu0 %1232 }
 0x316   :  { %v2424_v21 = vsel %vm1983_vm0, %v2318_v36, %v2319_v14  ;;  %v2425_v38 = vsel %vm1983_vm0, %v2317_v32, %v2318_v36  ;;  %v3588_v45 = vsel %vm1594_vm2, %v3482_v17, %v3483_v59  ;;  %v3589_v51 = vsel %vm1594_vm2, %v3481_v48, %v3482_v17  ;;  %v14433_v36 = vld [vmem:[%s17057_s0 + $0x278] sm:$0xff] }
 0x317   :  { %v4381_v23 = vsel %vm3997_vm1, %v2425_v38, %v19034_v63  ;;  %v4382_v1 = vsel %vm3998_vm12, %v2424_v21, %v4254_v35  ;;  %v4638_v32 = vsel %vm4126_vm4, %v1648_v20, %v3589_v51  ;;  %v4639_v25 = vsel %vm19035_vm10, %v1647_v8, %v3588_v45  ;;  %v19048_v45 = vld [vmem:[#allocation7_spill] sm:$0xff] }
 0x318   :  { %v4509_v7 = vsel %vm3869_vm6, %v14116_v27, %v4381_v23  ;;  %v4510_v48 = vsel %vm3870_vm9, %v1406_v33, %v4382_v1  ;;  %v4766_v37 = vsel %vm3998_vm12, %v19036_v52, %v4638_v32  ;;  %v4767_v5 = vsel %vm3999_vm5, %v19037_v6, %v4639_v25  ;;  %v19039_v27 = vld [vmem:[#allocation426_spill] sm:$0xff]  ;;  %v19052_v52 = vld [vmem:[#allocation428_spill] sm:$0xff]  ;;  %v19053_v6 = vld [vmem:[#allocation431_spill] sm:$0xff] }
 0x319   :  { %vm5149_vm1 = vcmp.gt.f32.partialorder %v14132_v10, %v4893_v19  ;;  %v4894_v34 = vsel %vm3870_vm9, %v19038_v15, %v4766_v37  ;;  %vm5021_vm14 = vcmp.gt.f32.partialorder %v14132_v10, %v4509_v7  ;;  %vm5022_vm6 = vcmp.gt.f32.partialorder %v14226_v43, %v4510_v48  ;;  %v19040_v19 = vld [vmem:[#allocation152_spill] sm:$0xff]  ;;  %v19050_v32 = vld [vmem:[#allocation442_spill] sm:$0xff]  ;;  %v19051_v7 = vld [vmem:[#allocation441_spill] sm:$0xff] }
 0x31a   :  { %v4895_v53 = vsel %vm3871_vm15, %v19039_v27, %v4767_v5  ;;  %vm5150_vm7 = vcmp.gt.f32.partialorder %v14226_v43, %v4894_v34  ;;  %vm5277_vm8 = vmand %vm5021_vm14, %vm5149_vm1  ;;  %v3485_v18 = vrot.slane %v14317_v54, 7  ;;  %v1645_v12 = vsel %vm1594_vm2, %v1542_v4, %v1543_v47  ;;  %v19054_v15 = vld [vmem:[#allocation160_spill] sm:$0xff] }
 0x31b   :  { %vm5278_vm11 = vmand %vm5022_vm6, %vm5150_vm7  ;;  %v5405_v62 = vsel %vm5277_vm8, %v14132_v10, 0.0  ;;  %v1646_v42 = vsel %vm1594_vm2, %v1541_v26, %v1542_v4  ;;  %v19041_v29 = vrot.slane %v19040_v19, 1  ;;  %v19043_v2 = vrot.slane %v19042_v56, 1  ;;  %v19044_v10 = vld [vmem:[#allocation204_spill] sm:$0xff] }
 0x31c   :  { %v5406_v30 = vsel %vm5278_vm11, %v14226_v43, 0.0  ;;  %5533 = vst [vmem:[%s17059_s3 + $0x248] sm:$0xff] %v5405_v62  ;;  %vm3872_vm9 = vcmp.eq.s32.totalorder %v14322_v44, 0  ;;  %vm3873_vm4 = vcmp.eq.s32.totalorder %v19044_v10, 0  ;;  %vm4128_vm12 = vcmp.eq.s32.totalorder %v14322_v44, 2 }
 0x31d   :  { %v2034_v41 = vsel %vm1983_vm0, %v19043_v2, %v19041_v29  ;;  %5534 = vst [vmem:[%s17059_s3 + $0x250] sm:$0xff] %v5406_v30  ;;  %vm4000_vm3 = vcmp.eq.s32.totalorder %v14322_v44, 1  ;;  %vm4001_vm13 = vcmp.eq.s32.totalorder %v19044_v10, 1  ;;  %vm19045_vm10 = vcmp.eq.s32.totalorder %v6314_v55, 127  ;;  %v19056_v44 = vld [vmem:[#allocation161_spill] sm:$0xff] }
 0x31e   :  { %v1408_v43 = vsel %vm19045_vm10, 0.0, %v1229_v50  ;;  %vm19046_vm1 = vmmov %vm19045_vm10  ;;  %v4256_v8 = vsel %vm4128_vm12, %v2034_v41, %v19047_v28  ;;  %vm5151_vm14 = vcmp.gt.f32.partialorder %v14232_v24, %v4895_v53  ;;  %v14422_v33 = vunpack.c.2.s8 %v5816_v49  ;;  %v5821_v41 = vld [vmem:[%s17058_s1 + $0xa0] sm:$0xff] }
 0x31f   :  { %v14415_v26 = vsel %vm19046_vm1, 0.0, %v1235_v9  ;;  %v2320_v20 = vrot.slane %v1408_v43, 1  ;;  %v3484_v16 = vrot.slane %v1408_v43, 7  ;;  %v1544_v35 = vrot.slane %v14427_v13, 7 }
 0x320   :  { %v2323_v61 = vrot.slane %v14415_v26, 1  ;;  %v1545_v17 = vrot.slane %v14433_v36, 7  ;;  %vm19049_vm6 = vcmp.eq.s32.totalorder %v19044_v10, 2  ;;  %v19055_v34 = vrot.slane %v19054_v15, 1 }
 0x321   :  { %v2422_v49 = vsel %vm1983_vm0, %v2320_v20, %v2321_v22  ;;  %v2423_v4 = vsel %vm1983_vm0, %v2319_v14, %v2320_v20  ;;  %v3586_v21 = vsel %vm1594_vm2, %v3484_v16, %v3485_v18  ;;  %v3587_v38 = vsel %vm1594_vm2, %v3483_v59, %v3484_v16 }
 0x322   :  { %v4383_v51 = vsel %vm3999_vm5, %v2423_v4, %v19048_v45  ;;  %v4384_v63 = vsel %vm4000_vm3, %v2422_v49, %v4256_v8  ;;  %v4640_v14 = vsel %vm4128_vm12, %v1646_v42, %v3587_v38  ;;  %v4641_v23 = vsel %vm19049_vm6, %v1645_v12, %v3586_v21  ;;  %v1239_v12 = vpop.permute.xlu1 %1238  ;;  %vm19060_vm6 = vmmov %vm19046_vm1  ;;  %v14534_v8 = vld [vmem:[%s17057_s0 + $0x288] sm:$0xff]  ;;  %v19061_v21 = vld [vmem:[#allocation209_spill] sm:$0xff] }
 0x323   :  { %v4511_v1 = vsel %vm3871_vm15, %v14214_v11, %v4383_v51  ;;  %v4512_v59 = vsel %vm3872_vm9, %v1408_v43, %v4384_v63  ;;  %v4768_v25 = vsel %vm4000_vm3, %v19050_v32, %v4640_v14  ;;  %v4769_v48 = vsel %vm4001_vm13, %v19051_v7, %v4641_v23  ;;  %v14528_v43 = vld [vmem:[%s17057_s0 + $0x280] sm:$0xff]  ;;  %v19063_v14 = vld [vmem:[#allocation444_spill] sm:$0xff] }
 0x324   :  { %v4896_v37 = vsel %vm3872_vm9, %v19052_v52, %v4768_v25  ;;  %vm5023_vm5 = vcmp.gt.f32.partialorder %v14232_v24, %v4511_v1  ;;  %vm5024_vm7 = vcmp.gt.f32.partialorder %v14327_v60, %v4512_v59  ;;  %v3487_v11 = vrot.slane %v14415_v26, 7  ;;  %v19064_v1 = vld [vmem:[#allocation443_spill] sm:$0xff]  ;;  %v19065_v32 = vld [vmem:[#allocation432_spill] sm:$0xff]  ;;  %v1237_v52 = vpop.permute.xlu0 %1236 }
 0x325   :  { %v4897_v5 = vsel %vm3873_vm4, %v19053_v6, %v4769_v48  ;;  %vm5152_vm15 = vcmp.gt.f32.partialorder %v14327_v60, %v4896_v37  ;;  %vm5279_vm8 = vmand %vm5023_vm5, %vm5151_vm14  ;;  %v19057_v27 = vrot.slane %v19056_v44, 1  ;;  %vm3874_vm11 = vcmp.eq.s32.totalorder %v14422_v33, 0 }
 0x326   :  { %vm5280_vm9 = vmand %vm5024_vm7, %vm5152_vm15  ;;  %v5407_v9 = vsel %vm5279_vm8, %v14232_v24, 0.0  ;;  %v1643_v62 = vsel %vm1594_vm2, %v1544_v35, %v1545_v17  ;;  %v1644_v53 = vsel %vm1594_vm2, %v1543_v47, %v1544_v35  ;;  %vm4130_vm12 = vcmp.eq.s32.totalorder %v14422_v33, 2  ;;  %v19058_v24 = vld [vmem:[#allocation210_spill] sm:$0xff]  ;;  %v19059_v47 = vld [vmem:[#allocation445_spill] sm:$0xff]  ;;  %v1243_v37 = vpop.permute.xlu1 %1242 }
 0x327   :  { %v2032_v50 = vsel %vm1983_vm0, %v19057_v27, %v19055_v34  ;;  %v5408_v42 = vsel %vm5280_vm9, %v14327_v60, 0.0  ;;  %5535 = vst [vmem:[%s17059_s3 + $0x258] sm:$0xff] %v5407_v9  ;;  %vm3875_vm3 = vcmp.eq.s32.totalorder %v19058_v24, 0  ;;  %vm4002_vm10 = vcmp.eq.s32.totalorder %v14422_v33, 1  ;;  %v19069_v34 = vld [vmem:[#allocation172_spill] sm:$0xff] }
 0x328   :  { %v1410_v19 = vsel %vm19046_vm1, 0.0, %v1233_v3  ;;  %5536 = vst [vmem:[%s17059_s3 + $0x260] sm:$0xff] %v5408_v42  ;;  %vm4003_vm14 = vcmp.eq.s32.totalorder %v19058_v24, 1  ;;  %v4258_v60 = vsel %vm4130_vm12, %v2032_v50, %v19059_v47  ;;  %v14518_v2 = vsel %vm19060_vm6, 0.0, %v1239_v12  ;;  %v19074_v9 = vld [vmem:[#allocation452_spill] sm:$0xff] }
 0x329   :  { %v2322_v29 = vrot.slane %v1410_v19, 1  ;;  %v3486_v56 = vrot.slane %v1410_v19, 7  ;;  %v14523_v30 = vunpack.c.0.s8 %v5821_v41  ;;  %v1546_v28 = vrot.slane %v14528_v43, 7  ;;  %v14628_v47 = vld [vmem:[%s17057_s0 + $0x290] sm:$0xff] }
 0x32a   :  { %v1547_v20 = vrot.slane %v14534_v8, 7  ;;  %vm19062_vm5 = vcmp.eq.s32.totalorder %v19058_v24, 2  ;;  %v2325_v7 = vrot.slane %v14518_v2, 1  ;;  %v3489_v48 = vrot.slane %v14518_v2, 7  ;;  %v1241_v24 = vpop.permute.xlu0 %1240 }
 0x32b   :  { %v2420_v16 = vsel %vm1983_vm0, %v2322_v29, %v2323_v61  ;;  %v2421_v35 = vsel %vm1983_vm0, %v2321_v22, %v2322_v29  ;;  %v3584_v49 = vsel %vm1594_vm2, %v3486_v56, %v3487_v11  ;;  %v3585_v4 = vsel %vm1594_vm2, %v3485_v18, %v3486_v56  ;;  %v14634_v29 = vld [vmem:[%s17057_s0 + $0x298] sm:$0xff] }
 0x32c   :  { %v4385_v38 = vsel %vm4001_vm13, %v2421_v35, %v19061_v21  ;;  %v4386_v45 = vsel %vm4002_vm10, %v2420_v16, %v4258_v60  ;;  %v4642_v22 = vsel %vm4130_vm12, %v1644_v53, %v3585_v4  ;;  %v4643_v51 = vsel %vm19062_vm5, %v1643_v62, %v3584_v49  ;;  %v19075_v49 = vld [vmem:[#allocation453_spill] sm:$0xff] }
 0x32d   :  { %v4513_v63 = vsel %vm3873_vm4, %v14317_v54, %v4385_v38  ;;  %v4514_v18 = vsel %vm3874_vm11, %v1410_v19, %v4386_v45  ;;  %v4770_v23 = vsel %vm4002_vm10, %v19063_v14, %v4642_v22  ;;  %v4771_v59 = vsel %vm4003_vm14, %v19064_v1, %v4643_v51  ;;  %v19066_v54 = vld [vmem:[#allocation437_spill] sm:$0xff]  ;;  %v19077_v22 = vld [vmem:[#allocation451_spill] sm:$0xff]  ;;  %v19080_v1 = vld [vmem:[#allocation440_spill] sm:$0xff] }
 0x32e   :  { %vm5153_vm13 = vcmp.gt.f32.partialorder %v14333_v58, %v4897_v5  ;;  %v4898_v25 = vsel %vm3874_vm11, %v19065_v32, %v4770_v23  ;;  %vm5025_vm7 = vcmp.gt.f32.partialorder %v14333_v58, %v4513_v63  ;;  %vm5026_vm4 = vcmp.gt.f32.partialorder %v14427_v13, %v4514_v18  ;;  %v19067_v5 = vld [vmem:[#allocation171_spill] sm:$0xff]  ;;  %v19078_v63 = vld [vmem:[#allocation449_spill] sm:$0xff]  ;;  %v19081_v32 = vld [vmem:[#allocation180_spill] sm:$0xff] }
 0x32f   :  { %v4899_v10 = vsel %vm3875_vm3, %v19066_v54, %v4771_v59  ;;  %vm5154_vm15 = vcmp.gt.f32.partialorder %v14427_v13, %v4898_v25  ;;  %vm5281_vm8 = vmand %vm5025_vm7, %vm5153_vm13  ;;  %v1641_v3 = vsel %vm1594_vm2, %v1546_v28, %v1547_v20  ;;  %v1642_v6 = vsel %vm1594_vm2, %v1545_v17, %v1546_v28  ;;  %v19079_v14 = vld [vmem:[#allocation439_spill] sm:$0xff] }
 0x330   :  { %vm5282_vm9 = vmand %vm5026_vm4, %vm5154_vm15  ;;  %v5409_v33 = vsel %vm5281_vm8, %v14333_v58, 0.0  ;;  %v19068_v15 = vrot.slane %v19067_v5, 1  ;;  %v19070_v44 = vrot.slane %v19069_v34, 1  ;;  %vm3876_vm11 = vcmp.eq.s32.totalorder %v14523_v30, 0  ;;  %v19071_v58 = vld [vmem:[#allocation221_spill] sm:$0xff] }
 0x331   :  { %v5410_v50 = vsel %vm5282_vm9, %v14427_v13, 0.0  ;;  %5537 = vst [vmem:[%s17059_s3 + $0x268] sm:$0xff] %v5409_v33  ;;  %vm3877_vm12 = vcmp.eq.s32.totalorder %v19071_v58, 0  ;;  %vm4132_vm10 = vcmp.eq.s32.totalorder %v14523_v30, 2  ;;  %vm4004_vm1 = vcmp.eq.s32.totalorder %v14523_v30, 1  ;;  %v19083_v30 = vld [vmem:[#allocation181_spill] sm:$0xff] }
 0x332   :  { %v2030_v27 = vsel %vm1983_vm0, %v19070_v44, %v19068_v15  ;;  %5538 = vst [vmem:[%s17059_s3 + $0x270] sm:$0xff] %v5410_v50  ;;  %vm4005_vm6 = vcmp.eq.s32.totalorder %v19071_v58, 1  ;;  %vm19072_vm5 = vcmp.eq.s32.totalorder %v6314_v55, 127  ;;  %vm5155_vm7 = vcmp.gt.f32.partialorder %v14433_v36, %v4899_v10 }
 0x333   :  { %v1412_v13 = vsel %vm19072_vm5, 0.0, %v1237_v52  ;;  %vm19073_vm13 = vmmov %vm19072_vm5  ;;  %v4260_v62 = vsel %vm4132_vm10, %v2030_v27, %v19074_v9  ;;  %v14623_v19 = vunpack.c.2.s8 %v5821_v41  ;;  %v1548_v60 = vrot.slane %v14628_v47, 7  ;;  %v5826_v27 = vld [vmem:[%s17058_s1 + $0xa8] sm:$0xff] }
 0x334   :  { %v14616_v17 = vsel %vm19073_vm13, 0.0, %v1243_v37  ;;  %v2324_v53 = vrot.slane %v1412_v13, 1  ;;  %v3488_v12 = vrot.slane %v1412_v13, 7  ;;  %v1549_v56 = vrot.slane %v14634_v29, 7 }
 0x335   :  { %v2327_v42 = vrot.slane %v14616_v17, 1  ;;  %vm19076_vm4 = vcmp.eq.s32.totalorder %v19071_v58, 2  ;;  %v19082_v25 = vrot.slane %v19081_v32, 1  ;;  %v19084_v54 = vrot.slane %v19083_v30, 1 }
 0x336   :  { %v2418_v41 = vsel %vm1983_vm0, %v2324_v53, %v2325_v7  ;;  %v2419_v28 = vsel %vm1983_vm0, %v2323_v61, %v2324_v53  ;;  %v3582_v16 = vsel %vm1594_vm2, %v3488_v12, %v3489_v48  ;;  %v3583_v35 = vsel %vm1594_vm2, %v3487_v11, %v3488_v12 }
 0x337   :  { %v4387_v4 = vsel %vm4003_vm14, %v2419_v28, %v19075_v49  ;;  %v4388_v21 = vsel %vm4004_vm1, %v2418_v41, %v4260_v62  ;;  %v4644_v61 = vsel %vm4132_vm10, %v1642_v6, %v3583_v35  ;;  %v4645_v38 = vsel %vm19076_vm4, %v1641_v3, %v3582_v16  ;;  %v1247_v3 = vpop.permute.xlu1 %1246  ;;  %vm19087_vm4 = vmmov %vm19073_vm13  ;;  %v14735_v62 = vld [vmem:[%s17057_s0 + $0x2a8] sm:$0xff]  ;;  %v19088_v16 = vld [vmem:[#allocation224_spill] sm:$0xff] }
 0x338   :  { %v4515_v45 = vsel %vm3875_vm3, %v14415_v26, %v4387_v4  ;;  %v4516_v11 = vsel %vm3876_vm11, %v1412_v13, %v4388_v21  ;;  %v4772_v51 = vsel %vm4004_vm1, %v19077_v22, %v4644_v61  ;;  %v4773_v18 = vsel %vm4005_vm6, %v19078_v63, %v4645_v38  ;;  %v14729_v13 = vld [vmem:[%s17057_s0 + $0x2a0] sm:$0xff] }
 0x339   :  { %v4900_v23 = vsel %vm3876_vm11, %v19079_v14, %v4772_v51  ;;  %vm5027_vm14 = vcmp.gt.f32.partialorder %v14433_v36, %v4515_v45  ;;  %vm5028_vm15 = vcmp.gt.f32.partialorder %v14528_v43, %v4516_v11  ;;  %v3491_v26 = vrot.slane %v14616_v17, 7  ;;  %v19090_v61 = vld [vmem:[#allocation10_spill] sm:$0xff]  ;;  %v19091_v45 = vld [vmem:[#allocation9_spill] sm:$0xff]  ;;  %v1245_v14 = vpop.permute.xlu0 %1244 }
 0x33a   :  { %v4901_v59 = vsel %vm3877_vm12, %v19080_v1, %v4773_v18  ;;  %vm5156_vm3 = vcmp.gt.f32.partialorder %v14528_v43, %v4900_v23  ;;  %vm5283_vm8 = vmand %vm5027_vm14, %vm5155_vm7  ;;  %v2028_v52 = vsel %vm1983_vm0, %v19084_v54, %v19082_v25  ;;  %vm3878_vm9 = vcmp.eq.s32.totalorder %v14623_v19, 0  ;;  %v19092_v22 = vld [vmem:[#allocation446_spill] sm:$0xff] }
 0x33b   :  { %vm5284_vm11 = vmand %vm5028_vm15, %vm5156_vm3  ;;  %v5411_v37 = vsel %vm5283_vm8, %v14433_v36, 0.0  ;;  %v1639_v33 = vsel %vm1594_vm2, %v1548_v60, %v1549_v56  ;;  %v1640_v10 = vsel %vm1594_vm2, %v1547_v20, %v1548_v60  ;;  %vm4134_vm10 = vcmp.eq.s32.totalorder %v14623_v19, 2  ;;  %v19085_v36 = vld [vmem:[#allocation229_spill] sm:$0xff]  ;;  %v19086_v20 = vld [vmem:[#allocation458_spill] sm:$0xff]  ;;  %v1251_v23 = vpop.permute.xlu1 %1250 }
 0x33c   :  { %v5412_v6 = vsel %vm5284_vm11, %v14528_v43, 0.0  ;;  %5539 = vst [vmem:[%s17059_s3 + $0x278] sm:$0xff] %v5411_v37  ;;  %vm3879_vm1 = vcmp.eq.s32.totalorder %v19085_v36, 0  ;;  %vm4006_vm5 = vcmp.eq.s32.totalorder %v14623_v19, 1  ;;  %v1414_v5 = vsel %vm19073_vm13, 0.0, %v1241_v24  ;;  %v19096_v25 = vld [vmem:[#allocation190_spill] sm:$0xff] }
 0x33d   :  { %5540 = vst [vmem:[%s17059_s3 + $0x280] sm:$0xff] %v5412_v6  ;;  %vm4007_vm7 = vcmp.eq.s32.totalorder %v19085_v36, 1  ;;  %v4262_v43 = vsel %vm4134_vm10, %v2028_v52, %v19086_v20  ;;  %v2326_v15 = vrot.slane %v1414_v5, 1  ;;  %v3490_v34 = vrot.slane %v1414_v5, 7  ;;  %v19101_v37 = vld [vmem:[#allocation463_spill] sm:$0xff]  ;;  %v14829_v20 = vld [vmem:[%s17057_s0 + $0x2b0] sm:$0xff] }
 0x33e   :  { %v14719_v44 = vsel %vm19087_vm4, 0.0, %v1247_v3  ;;  %v14724_v50 = vunpack.c.0.s8 %v5826_v27  ;;  %v1550_v9 = vrot.slane %v14729_v13, 7  ;;  %v1551_v53 = vrot.slane %v14735_v62, 7 }
 0x33f   :  { %v2416_v12 = vsel %vm1983_vm0, %v2326_v15, %v2327_v42  ;;  %v2417_v60 = vsel %vm1983_vm0, %v2325_v7, %v2326_v15  ;;  %v3580_v41 = vsel %vm1594_vm2, %v3490_v34, %v3491_v26  ;;  %v3581_v28 = vsel %vm1594_vm2, %v3489_v48, %v3490_v34  ;;  %v14835_v15 = vld [vmem:[%s17057_s0 + $0x2b8] sm:$0xff] }
 0x340   :  { %v4389_v35 = vsel %vm4005_vm6, %v2417_v60, %v19088_v16  ;;  %v4390_v49 = vsel %vm4006_vm5, %v2416_v12, %v4262_v43  ;;  %v4646_v7 = vsel %vm4134_vm10, %v1640_v10, %v3581_v28  ;;  %vm19089_vm14 = vcmp.eq.s32.totalorder %v19085_v36, 2  ;;  %v1249_v36 = vpop.permute.xlu0 %1248 }
 0x341   :  { %v4647_v4 = vsel %vm19089_vm14, %v1639_v33, %v3580_v41  ;;  %v4517_v21 = vsel %vm3877_vm12, %v14518_v2, %v4389_v35  ;;  %v4518_v48 = vsel %vm3878_vm9, %v1414_v5, %v4390_v49  ;;  %v4774_v38 = vsel %vm4006_vm5, %v19090_v61, %v4646_v7  ;;  %v19093_v2 = vld [vmem:[#allocation447_spill] sm:$0xff]  ;;  %v19102_v41 = vld [vmem:[#allocation233_spill] sm:$0xff]  ;;  %v19106_v61 = vld [vmem:[#allocation448_spill] sm:$0xff] }
 0x342   :  { %v4775_v11 = vsel %vm4007_vm7, %v19091_v45, %v4647_v4  ;;  %vm5157_vm6 = vcmp.gt.f32.partialorder %v14534_v8, %v4901_v59  ;;  %v4902_v51 = vsel %vm3878_vm9, %v19092_v22, %v4774_v38  ;;  %vm5029_vm15 = vcmp.gt.f32.partialorder %v14534_v8, %v4517_v21  ;;  %v19094_v59 = vld [vmem:[#allocation189_spill] sm:$0xff]  ;;  %v19105_v21 = vld [vmem:[#allocation460_spill] sm:$0xff]  ;;  %v19107_v45 = vld [vmem:[#allocation450_spill] sm:$0xff] }
 0x343   :  { %vm5030_vm12 = vcmp.gt.f32.partialorder %v14628_v47, %v4518_v48  ;;  %v4903_v58 = vsel %vm3879_vm1, %v19093_v2, %v4775_v11  ;;  %vm5158_vm3 = vcmp.gt.f32.partialorder %v14628_v47, %v4902_v51  ;;  %vm5285_vm8 = vmand %vm5029_vm15, %vm5157_vm6  ;;  %v2329_v63 = vrot.slane %v14719_v44, 1  ;;  %v19104_v7 = vld [vmem:[#allocation461_spill] sm:$0xff]  ;;  %v19108_v22 = vld [vmem:[#allocation199_spill] sm:$0xff] }
 0x344   :  { %v3493_v18 = vrot.slane %v14719_v44, 7  ;;  %vm5286_vm11 = vmand %vm5030_vm12, %vm5158_vm3  ;;  %v5413_v19 = vsel %vm5285_vm8, %v14534_v8, 0.0  ;;  %v1637_v24 = vsel %vm1594_vm2, %v1550_v9, %v1551_v53  ;;  %v1638_v1 = vsel %vm1594_vm2, %v1549_v56, %v1550_v9  ;;  %v19098_v8 = vld [vmem:[#allocation237_spill] sm:$0xff] }
 0x345   :  { %v19095_v32 = vrot.slane %v19094_v59, 1  ;;  %v19097_v30 = vrot.slane %v19096_v25, 1  ;;  %v5414_v52 = vsel %vm5286_vm11, %v14628_v47, 0.0  ;;  %5541 = vst [vmem:[%s17059_s3 + $0x288] sm:$0xff] %v5413_v19  ;;  %vm3880_vm9 = vcmp.eq.s32.totalorder %v14724_v50, 0 }
 0x346   :  { %vm3881_vm10 = vcmp.eq.s32.totalorder %v19098_v8, 0  ;;  %vm4136_vm5 = vcmp.eq.s32.totalorder %v14724_v50, 2  ;;  %5542 = vst [vmem:[%s17059_s3 + $0x290] sm:$0xff] %v5414_v52  ;;  %vm4008_vm13 = vcmp.eq.s32.totalorder %v14724_v50, 1  ;;  %vm4009_vm4 = vcmp.eq.s32.totalorder %v19098_v8, 1  ;;  %v19110_v50 = vld [vmem:[#allocation200_spill] sm:$0xff] }
 0x347   :  { %v2026_v54 = vsel %vm1983_vm0, %v19097_v30, %v19095_v32  ;;  %vm19099_vm14 = vcmp.eq.s32.totalorder %v6314_v55, 127  ;;  %vm5159_vm15 = vcmp.gt.f32.partialorder %v14634_v29, %v4903_v58  ;;  %v14824_v5 = vunpack.c.2.s8 %v5826_v27 }
 0x348   :  { %v1416_v47 = vsel %vm19099_vm14, 0.0, %v1245_v14  ;;  %vm19100_vm6 = vmmov %vm19099_vm14  ;;  %v4264_v33 = vsel %vm4136_vm5, %v2026_v54, %v19101_v37  ;;  %v1552_v43 = vrot.slane %v14829_v20, 7  ;;  %v1553_v34 = vrot.slane %v14835_v15, 7  ;;  %v5831_v54 = vld [vmem:[%s17058_s1 + $0xb0] sm:$0xff] }
 0x349   :  { %v14817_v56 = vsel %vm19100_vm6, 0.0, %v1251_v23  ;;  %v2328_v10 = vrot.slane %v1416_v47, 1  ;;  %v3492_v3 = vrot.slane %v1416_v47, 7  ;;  %vm19103_vm12 = vcmp.eq.s32.totalorder %v19098_v8, 2 }
 0x34a   :  { %v2331_v6 = vrot.slane %v14817_v56, 1  ;;  %v19109_v51 = vrot.slane %v19108_v22, 1  ;;  %v19111_v2 = vrot.slane %v19110_v50, 1  ;;  %vm3882_vm11 = vcmp.eq.s32.totalorder %v14824_v5, 0 }
 0x34b   :  { %v2414_v27 = vsel %vm1983_vm0, %v2328_v10, %v2329_v63  ;;  %v2415_v9 = vsel %vm1983_vm0, %v2327_v42, %v2328_v10  ;;  %v3578_v12 = vsel %vm1594_vm2, %v3492_v3, %v3493_v18  ;;  %v3579_v60 = vsel %vm1594_vm2, %v3491_v26, %v3492_v3 }
 0x34c   :  { %v4391_v28 = vsel %vm4007_vm7, %v2415_v9, %v19102_v41  ;;  %v4392_v16 = vsel %vm4008_vm13, %v2414_v27, %v4264_v33  ;;  %v4648_v42 = vsel %vm4136_vm5, %v1638_v1, %v3579_v60  ;;  %v4649_v35 = vsel %vm19103_vm12, %v1637_v24, %v3578_v12  ;;  %v1255_v24 = vpop.permute.xlu1 %1254  ;;  %vm19114_vm12 = vmmov %vm19100_vm6  ;;  %v14936_v33 = vld [vmem:[%s17057_s0 + $0x2c8] sm:$0xff]  ;;  %v19115_v12 = vld [vmem:[#allocation242_spill] sm:$0xff] }
 0x34d   :  { %v4519_v49 = vsel %vm3879_vm1, %v14616_v17, %v4391_v28  ;;  %v4520_v26 = vsel %vm3880_vm9, %v1416_v47, %v4392_v16  ;;  %v4776_v4 = vsel %vm4008_vm13, %v19104_v7, %v4648_v42  ;;  %v4777_v48 = vsel %vm4009_vm4, %v19105_v21, %v4649_v35  ;;  %v14930_v47 = vld [vmem:[%s17057_s0 + $0x2c0] sm:$0xff]  ;;  %v19117_v42 = vld [vmem:[#allocation12_spill] sm:$0xff] }
 0x34e   :  { %v4904_v38 = vsel %vm3880_vm9, %v19106_v61, %v4776_v4  ;;  %vm5031_vm7 = vcmp.gt.f32.partialorder %v14634_v29, %v4519_v49  ;;  %vm5032_vm3 = vcmp.gt.f32.partialorder %v14729_v13, %v4520_v26  ;;  %v3495_v17 = vrot.slane %v14817_v56, 7  ;;  %v19118_v49 = vld [vmem:[#allocation11_spill] sm:$0xff]  ;;  %v19119_v7 = vld [vmem:[#allocation454_spill] sm:$0xff]  ;;  %v1253_v61 = vpop.permute.xlu0 %1252 }
 0x34f   :  { %v4905_v11 = vsel %vm3881_vm10, %v19107_v45, %v4777_v48  ;;  %vm5160_vm1 = vcmp.gt.f32.partialorder %v14729_v13, %v4904_v38  ;;  %vm5287_vm8 = vmand %vm5031_vm7, %vm5159_vm15  ;;  %v2024_v14 = vsel %vm1983_vm0, %v19111_v2, %v19109_v51  ;;  %v1635_v19 = vsel %vm1594_vm2, %v1552_v43, %v1553_v34  ;;  %v19123_v51 = vld [vmem:[#allocation208_spill] sm:$0xff] }
 0x350   :  { %vm5288_vm9 = vmand %vm5032_vm3, %vm5160_vm1  ;;  %v5415_v23 = vsel %vm5287_vm8, %v14634_v29, 0.0  ;;  %v1636_v58 = vsel %vm1594_vm2, %v1551_v53, %v1552_v43  ;;  %vm4138_vm5 = vcmp.eq.s32.totalorder %v14824_v5, 2  ;;  %v19112_v29 = vld [vmem:[#allocation246_spill] sm:$0xff]  ;;  %vm4010_vm14 = vcmp.eq.s32.totalorder %v14824_v5, 1  ;;  %v19113_v53 = vld [vmem:[#allocation467_spill] sm:$0xff]  ;;  %v1259_v38 = vpop.permute.xlu1 %1258 }
 0x351   :  { %v5416_v1 = vsel %vm5288_vm9, %v14729_v13, 0.0  ;;  %5543 = vst [vmem:[%s17059_s3 + $0x298] sm:$0xff] %v5415_v23  ;;  %vm3883_vm13 = vcmp.eq.s32.totalorder %v19112_v29, 0  ;;  %v1418_v59 = vsel %vm19100_vm6, 0.0, %v1249_v36  ;;  %vm4011_vm15 = vcmp.eq.s32.totalorder %v19112_v29, 1  ;;  %v19128_v23 = vld [vmem:[#allocation474_spill] sm:$0xff] }
 0x352   :  { %5544 = vst [vmem:[%s17059_s3 + $0x2a0] sm:$0xff] %v5416_v1  ;;  %v4266_v13 = vsel %vm4138_vm5, %v2024_v14, %v19113_v53  ;;  %v2330_v32 = vrot.slane %v1418_v59, 1  ;;  %v3494_v25 = vrot.slane %v1418_v59, 7  ;;  %v14920_v30 = vsel %vm19114_vm12, 0.0, %v1255_v24  ;;  %v15030_v53 = vld [vmem:[%s17057_s0 + $0x2d0] sm:$0xff] }
 0x353   :  { %v14925_v52 = vunpack.c.0.s8 %v5831_v54  ;;  %v1554_v37 = vrot.slane %v14930_v47, 7  ;;  %v1555_v10 = vrot.slane %v14936_v33, 7  ;;  %vm19116_vm7 = vcmp.eq.s32.totalorder %v19112_v29, 2  ;;  %v1257_v29 = vpop.permute.xlu0 %1256 }
 0x354   :  { %v2412_v3 = vsel %vm1983_vm0, %v2330_v32, %v2331_v6  ;;  %v2413_v43 = vsel %vm1983_vm0, %v2329_v63, %v2330_v32  ;;  %v3576_v27 = vsel %vm1594_vm2, %v3494_v25, %v3495_v17  ;;  %v3577_v9 = vsel %vm1594_vm2, %v3493_v18, %v3494_v25  ;;  %v15036_v32 = vld [vmem:[%s17057_s0 + $0x2d8] sm:$0xff] }
 0x355   :  { %v4393_v60 = vsel %vm4009_vm4, %v2413_v43, %v19115_v12  ;;  %v4394_v41 = vsel %vm4010_vm14, %v2412_v3, %v4266_v13  ;;  %v4650_v63 = vsel %vm4138_vm5, %v1636_v58, %v3577_v9  ;;  %v4651_v28 = vsel %vm19116_vm7, %v1635_v19, %v3576_v27  ;;  %v19129_v27 = vld [vmem:[#allocation251_spill] sm:$0xff] }
 0x356   :  { %v4521_v16 = vsel %vm3881_vm10, %v14719_v44, %v4393_v60  ;;  %v4522_v18 = vsel %vm3882_vm11, %v1418_v59, %v4394_v41  ;;  %v4778_v35 = vsel %vm4010_vm14, %v19117_v42, %v4650_v63  ;;  %v4779_v26 = vsel %vm4011_vm15, %v19118_v49, %v4651_v28  ;;  %v19120_v44 = vld [vmem:[#allocation457_spill] sm:$0xff]  ;;  %v19131_v63 = vld [vmem:[#allocation471_spill] sm:$0xff]  ;;  %v19134_v49 = vld [vmem:[#allocation462_spill] sm:$0xff] }
 0x357   :  { %vm5161_vm4 = vcmp.gt.f32.partialorder %v14735_v62, %v4905_v11  ;;  %v4906_v4 = vsel %vm3882_vm11, %v19119_v7, %v4778_v35  ;;  %vm5033_vm3 = vcmp.gt.f32.partialorder %v14735_v62, %v4521_v16  ;;  %vm5034_vm10 = vcmp.gt.f32.partialorder %v14829_v20, %v4522_v18  ;;  %v19121_v11 = vld [vmem:[#allocation207_spill] sm:$0xff]  ;;  %v19132_v16 = vld [vmem:[#allocation470_spill] sm:$0xff]  ;;  %v19135_v7 = vld [vmem:[#allocation216_spill] sm:$0xff] }
 0x358   :  { %v4907_v8 = vsel %vm3883_vm13, %v19120_v44, %v4779_v26  ;;  %vm5162_vm1 = vcmp.gt.f32.partialorder %v14829_v20, %v4906_v4  ;;  %vm5289_vm8 = vmand %vm5033_vm3, %vm5161_vm4  ;;  %v2333_v21 = vrot.slane %v14920_v30, 1  ;;  %v3497_v48 = vrot.slane %v14920_v30, 7  ;;  %v19133_v42 = vld [vmem:[#allocation459_spill] sm:$0xff] }
 0x359   :  { %vm5290_vm9 = vmand %vm5034_vm10, %vm5162_vm1  ;;  %v5417_v5 = vsel %vm5289_vm8, %v14735_v62, 0.0  ;;  %v1633_v36 = vsel %vm1594_vm2, %v1554_v37, %v1555_v10  ;;  %v1634_v45 = vsel %vm1594_vm2, %v1553_v34, %v1554_v37  ;;  %v19122_v22 = vrot.slane %v19121_v11, 1  ;;  %v19125_v62 = vld [vmem:[#allocation252_spill] sm:$0xff] }
 0x35a   :  { %v19124_v50 = vrot.slane %v19123_v51, 1  ;;  %v5418_v14 = vsel %vm5290_vm9, %v14829_v20, 0.0  ;;  %5545 = vst [vmem:[%s17059_s3 + $0x2a8] sm:$0xff] %v5417_v5  ;;  %vm3884_vm11 = vcmp.eq.s32.totalorder %v14925_v52, 0  ;;  %vm3885_vm5 = vcmp.eq.s32.totalorder %v19125_v62, 0 }
 0x35b   :  { %vm4140_vm14 = vcmp.eq.s32.totalorder %v14925_v52, 2  ;;  %5546 = vst [vmem:[%s17059_s3 + $0x2b0] sm:$0xff] %v5418_v14  ;;  %vm4012_vm6 = vcmp.eq.s32.totalorder %v14925_v52, 1  ;;  %vm4013_vm12 = vcmp.eq.s32.totalorder %v19125_v62, 1  ;;  %vm19126_vm7 = vcmp.eq.s32.totalorder %v6314_v55, 127  ;;  %v19137_v52 = vld [vmem:[#allocation218_spill] sm:$0xff] }
 0x35c   :  { %v2022_v2 = vsel %vm1983_vm0, %v19124_v50, %v19122_v22  ;;  %v1420_v20 = vsel %vm19126_vm7, 0.0, %v1253_v61  ;;  %vm19127_vm4 = vmmov %vm19126_vm7  ;;  %vm5163_vm3 = vcmp.gt.f32.partialorder %v14835_v15, %v4907_v8  ;;  %v15025_v59 = vunpack.c.2.s8 %v5831_v54 }
 0x35d   :  { %v15018_v34 = vsel %vm19127_vm4, 0.0, %v1259_v38  ;;  %v4268_v19 = vsel %vm4140_vm14, %v2022_v2, %v19128_v23  ;;  %v2332_v58 = vrot.slane %v1420_v20, 1  ;;  %v3496_v24 = vrot.slane %v1420_v20, 7  ;;  %v5836_v2 = vld [vmem:[%s17058_s1 + $0xb8] sm:$0xff] }
 0x35e   :  { %v2335_v1 = vrot.slane %v15018_v34, 1  ;;  %v1556_v13 = vrot.slane %v15030_v53, 7  ;;  %v1557_v25 = vrot.slane %v15036_v32, 7  ;;  %vm19130_vm10 = vcmp.eq.s32.totalorder %v19125_v62, 2 }
 0x35f   :  { %v2410_v54 = vsel %vm1983_vm0, %v2332_v58, %v2333_v21  ;;  %v2411_v37 = vsel %vm1983_vm0, %v2331_v6, %v2332_v58  ;;  %v3574_v3 = vsel %vm1594_vm2, %v3496_v24, %v3497_v48  ;;  %v3575_v43 = vsel %vm1594_vm2, %v3495_v17, %v3496_v24 }
 0x360   :  { %v4395_v9 = vsel %vm4011_vm15, %v2411_v37, %v19129_v27  ;;  %v4396_v12 = vsel %vm4012_vm6, %v2410_v54, %v4268_v19  ;;  %v4652_v6 = vsel %vm4140_vm14, %v1634_v45, %v3575_v43  ;;  %v4653_v60 = vsel %vm19130_vm10, %v1633_v36, %v3574_v3  ;;  %v1263_v36 = vpop.permute.xlu1 %1262  ;;  %vm19141_vm10 = vmmov %vm19127_vm4  ;;  %v15137_v19 = vld [vmem:[%s17057_s0 + $0x2e8] sm:$0xff]  ;;  %v19142_v3 = vld [vmem:[#allocation480_spill] sm:$0xff] }
 0x361   :  { %v4523_v41 = vsel %vm3883_vm13, %v14817_v56, %v4395_v9  ;;  %v4524_v17 = vsel %vm3884_vm11, %v1420_v20, %v4396_v12  ;;  %v4780_v28 = vsel %vm4012_vm6, %v19131_v63, %v4652_v6  ;;  %v4781_v18 = vsel %vm4013_vm12, %v19132_v16, %v4653_v60  ;;  %v15131_v20 = vld [vmem:[%s17057_s0 + $0x2e0] sm:$0xff]  ;;  %v19144_v6 = vld [vmem:[#allocation477_spill] sm:$0xff] }
 0x362   :  { %v4908_v35 = vsel %vm3884_vm11, %v19133_v42, %v4780_v28  ;;  %vm5035_vm15 = vcmp.gt.f32.partialorder %v14835_v15, %v4523_v41  ;;  %vm5036_vm1 = vcmp.gt.f32.partialorder %v14930_v47, %v4524_v17  ;;  %v3499_v56 = vrot.slane %v15018_v34, 7  ;;  %v19145_v41 = vld [vmem:[#allocation476_spill] sm:$0xff]  ;;  %v19146_v63 = vld [vmem:[#allocation465_spill] sm:$0xff]  ;;  %v1261_v42 = vpop.permute.xlu0 %1260 }
 0x363   :  { %v4909_v26 = vsel %vm3885_vm5, %v19134_v49, %v4781_v18  ;;  %vm5164_vm13 = vcmp.gt.f32.partialorder %v14930_v47, %v4908_v35  ;;  %vm5291_vm8 = vmand %vm5035_vm15, %vm5163_vm3  ;;  %v19136_v4 = vrot.slane %v19135_v7, 1  ;;  %v19138_v44 = vrot.slane %v19137_v52, 1  ;;  %v19149_v35 = vld [vmem:[#allocation466_spill] sm:$0xff]  ;;  %v19150_v7 = vld [vmem:[#allocation227_spill] sm:$0xff] }
 0x364   :  { %vm3886_vm9 = vcmp.eq.s32.totalorder %v15025_v59, 0  ;;  %vm5292_vm11 = vmand %vm5036_vm1, %vm5164_vm13  ;;  %v5419_v38 = vsel %vm5291_vm8, %v14835_v15, 0.0  ;;  %v1631_v5 = vsel %vm1594_vm2, %v1556_v13, %v1557_v25  ;;  %v1632_v8 = vsel %vm1594_vm2, %v1555_v10, %v1556_v13  ;;  %v19139_v15 = vld [vmem:[#allocation264_spill] sm:$0xff]  ;;  %v19140_v10 = vld [vmem:[#allocation479_spill] sm:$0xff] }
 0x365   :  { %v2020_v61 = vsel %vm1983_vm0, %v19138_v44, %v19136_v4  ;;  %vm4142_vm14 = vcmp.eq.s32.totalorder %v15025_v59, 2  ;;  %v5420_v45 = vsel %vm5292_vm11, %v14930_v47, 0.0  ;;  %5547 = vst [vmem:[%s17059_s3 + $0x2b8] sm:$0xff] %v5419_v38  ;;  %vm3887_vm6 = vcmp.eq.s32.totalorder %v19139_v15, 0  ;;  %v19152_v52 = vld [vmem:[#allocation228_spill] sm:$0xff] }
 0x366   :  { %vm4014_vm7 = vcmp.eq.s32.totalorder %v15025_v59, 1  ;;  %v1422_v11 = vsel %vm19127_vm4, 0.0, %v1257_v29  ;;  %5548 = vst [vmem:[%s17059_s3 + $0x2c0] sm:$0xff] %v5420_v45  ;;  %vm4015_vm3 = vcmp.eq.s32.totalorder %v19139_v15, 1  ;;  %v4270_v47 = vsel %vm4142_vm14, %v2020_v61, %v19140_v10 }
 0x367   :  { %v2334_v22 = vrot.slane %v1422_v11, 1  ;;  %v3498_v51 = vrot.slane %v1422_v11, 7  ;;  %v15121_v50 = vsel %vm19141_vm10, 0.0, %v1263_v36  ;;  %v15126_v14 = vunpack.c.0.s8 %v5836_v2  ;;  %v19155_v36 = vld [vmem:[#allocation485_spill] sm:$0xff] }
 0x368   :  { %v1558_v23 = vrot.slane %v15131_v20, 7  ;;  %v1559_v58 = vrot.slane %v15137_v19, 7  ;;  %vm19143_vm15 = vcmp.eq.s32.totalorder %v19139_v15, 2  ;;  %v19148_v16 = vrot.slane %v10522_v46, 7 }
 0x369   :  { %v2408_v24 = vsel %vm1983_vm0, %v2334_v22, %v2335_v1  ;;  %v2409_v13 = vsel %vm1983_vm0, %v2333_v21, %v2334_v22  ;;  %v3572_v54 = vsel %vm1594_vm2, %v3498_v51, %v3499_v56  ;;  %v3573_v37 = vsel %vm1594_vm2, %v3497_v48, %v3498_v51  ;;  %v15245_v22 = vld [vmem:[%s17057_s0 + $0x2f0] sm:$0xff] }
 0x36a   :  { %v4397_v43 = vsel %vm4013_vm12, %v2409_v13, %v19142_v3  ;;  %v4398_v27 = vsel %vm4014_vm7, %v2408_v24, %v4270_v47  ;;  %v4654_v21 = vsel %vm4142_vm14, %v1632_v8, %v3573_v37  ;;  %v4655_v9 = vsel %vm19143_vm15, %v1631_v5, %v3572_v54  ;;  %v1267_v5 = vpop.permute.xlu1 %1266  ;;  %v19157_v3 = vld [vmem:[#allocation270_spill] sm:$0xff] }
 0x36b   :  { %v4525_v12 = vsel %vm3885_vm5, %v14920_v30, %v4397_v43  ;;  %v4526_v48 = vsel %vm3886_vm9, %v1422_v11, %v4398_v27  ;;  %v4782_v60 = vsel %vm4014_vm7, %v19144_v6, %v4654_v21  ;;  %v4783_v17 = vsel %vm4015_vm3, %v19145_v41, %v4655_v9  ;;  %v19160_v6 = vld [vmem:[#allocation483_spill] sm:$0xff]  ;;  %v19161_v41 = vld [vmem:[#allocation473_spill] sm:$0xff] }
 0x36c   :  { %vm5165_vm12 = vcmp.gt.f32.partialorder %v14936_v33, %v4909_v26  ;;  %v4910_v28 = vsel %vm3886_vm9, %v19146_v63, %v4782_v60  ;;  %vm5037_vm1 = vcmp.gt.f32.partialorder %v14936_v33, %v4525_v12  ;;  %vm5038_vm5 = vcmp.gt.f32.partialorder %v15030_v53, %v4526_v48  ;;  %v19159_v12 = vld [vmem:[#allocation484_spill] sm:$0xff] }
 0x36d   :  { %v19147_v30 = vrot.slane %v10644_v40, 7  ;;  %v15196_v59 = vsel %vm1594_vm2, %v19148_v16, %v2758_v39  ;;  %vm5166_vm13 = vcmp.gt.f32.partialorder %v15030_v53, %v4910_v28  ;;  %vm5293_vm8 = vmand %vm5037_vm1, %vm5165_vm12  ;;  %v2337_v18 = vrot.slane %v15121_v50, 1  ;;  %v19162_v28 = vld [vmem:[#allocation235_spill] sm:$0xff]  ;;  %v19164_v16 = vld [vmem:[#allocation236_spill] sm:$0xff] }
 0x36e   :  { %v4911_v29 = vsel %vm3887_vm6, %v19149_v35, %v4783_v17  ;;  %vm5294_vm9 = vmand %vm5038_vm5, %vm5166_vm13  ;;  %v5421_v49 = vsel %vm5293_vm8, %v14936_v33, 0.0  ;;  %v3501_v26 = vrot.slane %v15121_v50, 7  ;;  %v19151_v4 = vrot.slane %v19150_v7, 1  ;;  %v19166_v35 = vld [vmem:[#allocation472_spill] sm:$0xff]  ;;  %v1269_v7 = vpop.permute.xlu1 %1268 }
 0x36f   :  { %v15188_v62 = vsel %vm1594_vm2, %v2758_v39, %v19147_v30  ;;  %v19153_v39 = vrot.slane %v19152_v52, 1  ;;  %v5422_v61 = vsel %vm5294_vm9, %v15030_v53, 0.0  ;;  %5549 = vst [vmem:[%s17059_s3 + $0x2c8] sm:$0xff] %v5421_v49  ;;  %v1629_v33 = vsel %vm1594_vm2, %v1558_v23, %v1559_v58  ;;  %v19154_v53 = vld [vmem:[#allocation271_spill] sm:$0xff]  ;;  %vm19156_vm12 = vmmov %vm19141_vm10 }
 0x370   :  { %v1630_v38 = vsel %vm1594_vm2, %v1557_v25, %v1558_v23  ;;  %vm4144_vm11 = vcmp.eq.s32.totalorder %v15126_v14, 2  ;;  %5550 = vst [vmem:[%s17059_s3 + $0x2d0] sm:$0xff] %v5422_v61  ;;  %vm3888_vm14 = vcmp.eq.s32.totalorder %v15126_v14, 0  ;;  %vm3889_vm7 = vcmp.eq.s32.totalorder %v19154_v53, 0  ;;  %v15251_v23 = vld [vmem:[%s17057_s0 + $0x2f8] sm:$0xff] }
 0x371   :  { %v2018_v44 = vsel %vm1983_vm0, %v19153_v39, %v19151_v4  ;;  %vm4016_vm4 = vcmp.eq.s32.totalorder %v15126_v14, 1  ;;  %v1424_v8 = vsel %vm19141_vm10, 0.0, %v1261_v42  ;;  %vm4017_vm15 = vcmp.eq.s32.totalorder %v19154_v53, 1 }
 0x372   :  { %v4272_v25 = vsel %vm4144_vm11, %v2018_v44, %v19155_v36  ;;  %v2336_v45 = vrot.slane %v1424_v8, 1  ;;  %v3500_v11 = vrot.slane %v1424_v8, 7  ;;  %v15238_v10 = vsel %vm19156_vm12, 0.0, %v1267_v5 }
 0x373   :  { %v15240_v47 = vunpack.c.2.s8 %v5836_v2  ;;  %v1560_v51 = vrot.slane %v15245_v22, 7  ;;  %v1561_v24 = vrot.slane %v15251_v23, 7  ;;  %vm19158_vm1 = vcmp.eq.s32.totalorder %v19154_v53, 2 }
 0x374   :  { %v2406_v2 = vsel %vm1983_vm0, %v2336_v45, %v2337_v18  ;;  %v2407_v13 = vsel %vm1983_vm0, %v2335_v1, %v2336_v45  ;;  %v3570_v54 = vsel %vm1594_vm2, %v3500_v11, %v3501_v26  ;;  %v3571_v37 = vsel %vm1594_vm2, %v3499_v56, %v3500_v11 }
 0x375   :  { %v4399_v43 = vsel %vm4015_vm3, %v2407_v13, %v19157_v3  ;;  %v4400_v27 = vsel %vm4016_vm4, %v2406_v2, %v4272_v25  ;;  %v4656_v1 = vsel %vm4144_vm11, %v1630_v38, %v3571_v37  ;;  %v4657_v21 = vsel %vm19158_vm1, %v1629_v33, %v3570_v54  ;;  %v19169_v33 = vld [vmem:[#allocation490_spill] sm:$0xff]  ;;  %v19173_v3 = vld [vmem:[#allocation489_spill] sm:$0xff] }
 0x376   :  { %v4527_v9 = vsel %vm3887_vm6, %v15018_v34, %v4399_v43  ;;  %v4528_v56 = vsel %vm3888_vm14, %v1424_v8, %v4400_v27  ;;  %v4784_v48 = vsel %vm4016_vm4, %v19159_v12, %v4656_v1  ;;  %v4785_v60 = vsel %vm4017_vm15, %v19160_v6, %v4657_v21  ;;  %v1265_v34 = vpop.permute.xlu0 %1264  ;;  %vm19167_vm4 = vmmov %vm19141_vm10  ;;  %v19174_v27 = vld [vmem:[#allocation488_spill] sm:$0xff]  ;;  %v19175_v21 = vld [vmem:[#allocation475_spill] sm:$0xff]  ;;  %v1273_v12 = vpop.permute.xlu1 %1272 }
 0x377   :  { %vm5167_vm3 = vcmp.gt.f32.partialorder %v15036_v32, %v4911_v29  ;;  %v4912_v17 = vsel %vm3888_vm14, %v19161_v41, %v4784_v48  ;;  %vm5039_vm5 = vcmp.gt.f32.partialorder %v15036_v32, %v4527_v9  ;;  %vm5040_vm6 = vcmp.gt.f32.partialorder %v15131_v20, %v4528_v56 }
 0x378   :  { %vm5168_vm13 = vcmp.gt.f32.partialorder %v15131_v20, %v4912_v17  ;;  %vm5295_vm8 = vmand %vm5039_vm5, %vm5167_vm3  ;;  %v2339_v15 = vrot.slane %v15238_v10, 1  ;;  %v3503_v63 = vrot.slane %v15238_v10, 7  ;;  %v19163_v30 = vrot.slane %v19162_v28, 1  ;;  %v19178_v17 = vld [vmem:[#allocation285_spill] sm:$0xff] }
 0x379   :  { %v19165_v42 = vrot.slane %v19164_v16, 1  ;;  %v4913_v29 = vsel %vm3889_vm7, %v19166_v35, %v4785_v60  ;;  %vm5296_vm9 = vmand %vm5040_vm6, %vm5168_vm13  ;;  %v5423_v49 = vsel %vm5295_vm8, %v15036_v32, 0.0  ;;  %vm3890_vm11 = vcmp.eq.s32.totalorder %v15240_v47, 0  ;;  %v19177_v60 = vld [vmem:[#allocation478_spill] sm:$0xff] }
 0x37a   :  { %vm4146_vm14 = vcmp.eq.s32.totalorder %v15240_v47, 2  ;;  %v5424_v4 = vsel %vm5296_vm9, %v15131_v20, 0.0  ;;  %5551 = vst [vmem:[%s17059_s3 + $0x2d8] sm:$0xff] %v5423_v49  ;;  %v1627_v52 = vsel %vm1594_vm2, %v1560_v51, %v1561_v24  ;;  %v1628_v32 = vsel %vm1594_vm2, %v1559_v58, %v1560_v51  ;;  %v19168_v20 = vld [vmem:[#allocation278_spill] sm:$0xff]  ;;  %vm19170_vm3 = vmmov %vm19167_vm4  ;;  %v19171_v51 = vld [vmem:[#allocation277_spill] sm:$0xff] }
 0x37b   :  { %v2016_v14 = vsel %vm1983_vm0, %v19165_v42, %v19163_v30  ;;  %v1426_v39 = vsel %vm19167_vm4, 0.0, %v1265_v34  ;;  %5552 = vst [vmem:[%s17059_s3 + $0x2e0] sm:$0xff] %v5424_v4  ;;  %vm3891_vm10 = vcmp.eq.s32.totalorder %v19168_v20, 0  ;;  %vm4018_vm12 = vcmp.eq.s32.totalorder %v15240_v47, 1  ;;  %v15337_v58 = vld [vmem:[%s17057_s0 + $0x300] sm:$0xff]  ;;  %v15444_v4 = vld [vmem:[%s17057_s0 + $0x308] sm:$0xff] }
 0x37c   :  { %v2338_v44 = vrot.slane %v1426_v39, 1  ;;  %v3502_v61 = vrot.slane %v1426_v39, 7  ;;  %vm4019_vm1 = vcmp.eq.s32.totalorder %v19168_v20, 1  ;;  %v4274_v38 = vsel %vm4146_vm14, %v2016_v14, %v19169_v33  ;;  %v19182_v14 = vld [vmem:[#allocation494_spill] sm:$0xff] }
 0x37d   :  { %v1562_v5 = vrot.slane %v15337_v58, 7  ;;  %v15342_v8 = vsel %vm19170_vm3, 0.0, %v1269_v7  ;;  %vm19172_vm5 = vcmp.eq.s32.totalorder %v19168_v20, 2  ;;  %v19176_v48 = vrot.slane %v10644_v40, 1  ;;  %v19183_v20 = vld [vmem:[#allocation14_spill] sm:$0xff] }
 0x37e   :  { %v2404_v36 = vsel %vm1983_vm0, %v2338_v44, %v2339_v15  ;;  %v2405_v25 = vsel %vm1983_vm0, %v2337_v18, %v2338_v44  ;;  %v3568_v45 = vsel %vm1594_vm2, %v3502_v61, %v3503_v63  ;;  %v3569_v11 = vsel %vm1594_vm2, %v3501_v26, %v3502_v61 }
 0x37f   :  { %v4401_v2 = vsel %vm4017_vm15, %v2405_v25, %v19171_v51  ;;  %v4402_v13 = vsel %vm4018_vm12, %v2404_v36, %v4274_v38  ;;  %v4658_v54 = vsel %vm4146_vm14, %v1628_v32, %v3569_v11  ;;  %v4659_v18 = vsel %vm19172_vm5, %v1627_v52, %v3568_v45  ;;  %vm19179_vm14 = vmmov %vm19170_vm3  ;;  %v15450_v52 = vld [vmem:[%s17057_s0 + $0x310] sm:$0xff]  ;;  %v19186_v25 = vld [vmem:[#allocation245_spill] sm:$0xff]  ;;  %v1277_v51 = vpop.permute.xlu1 %1276 }
 0x380   :  { %v4529_v37 = vsel %vm3889_vm7, %v15121_v50, %v4401_v2  ;;  %v4530_v26 = vsel %vm3890_vm11, %v1426_v39, %v4402_v13  ;;  %v4786_v43 = vsel %vm4018_vm12, %v19173_v3, %v4658_v54  ;;  %v4787_v1 = vsel %vm4019_vm1, %v19174_v27, %v4659_v18  ;;  %v1331_v50 = vpop.permute.xlu0 %1330  ;;  %v19184_v38 = vld [vmem:[#allocation256_spill] sm:$0xff]  ;;  %v19188_v13 = vld [vmem:[#allocation291_spill] sm:$0xff] }
 0x381   :  { %vm5169_vm15 = vcmp.gt.f32.partialorder %v15137_v19, %v4913_v29  ;;  %v4914_v9 = vsel %vm3890_vm11, %v19175_v21, %v4786_v43  ;;  %vm5041_vm6 = vcmp.gt.f32.partialorder %v15137_v19, %v4529_v37  ;;  %vm5042_vm7 = vcmp.gt.f32.partialorder %v15245_v22, %v4530_v26  ;;  %v5842_v29 = vld [vmem:[%s17058_s1 + $0xc0] sm:$0xff]  ;;  %v19191_v43 = vld [vmem:[#allocation500_spill] sm:$0xff] }
 0x382   :  { %vm5170_vm13 = vcmp.gt.f32.partialorder %v15245_v22, %v4914_v9  ;;  %vm5297_vm8 = vmand %vm5041_vm6, %vm5169_vm15  ;;  %v1626_v53 = vsel %vm1594_vm2, %v1561_v24, %v1562_v5  ;;  %v2340_v56 = vrot.slane %v15342_v8, 1  ;;  %v3504_v47 = vrot.slane %v15342_v8, 7  ;;  %v15495_v9 = vld [vmem:[%s17057_s0 + $0x320] sm:$0xff] }
 0x383   :  { %v15397_v6 = vsel %vm1983_vm0, %v3146_v31, %v19176_v48  ;;  %v4915_v41 = vsel %vm3891_vm10, %v19177_v60, %v4787_v1  ;;  %vm5298_vm9 = vmand %vm5042_vm7, %vm5170_vm13  ;;  %v5425_v24 = vsel %vm5297_vm8, %v15137_v19, 0.0  ;;  %vm4020_vm11 = vcmp.eq.s32.totalorder %v19178_v17, 1  ;;  %v19180_v19 = vld [vmem:[#allocation290_spill] sm:$0xff] }
 0x384   :  { %v5426_v34 = vsel %vm5298_vm9, %v15245_v22, 0.0  ;;  %5553 = vst [vmem:[%s17059_s3 + $0x2e8] sm:$0xff] %v5425_v24  ;;  %v2403_v28 = vsel %vm1983_vm0, %v2339_v15, %v2340_v56  ;;  %v3567_v30 = vsel %vm1594_vm2, %v3503_v63, %v3504_v47  ;;  %v15414_v16 = vsel %vm19179_vm14, 0.0, %v1331_v50  ;;  %v1271_v39 = vpop.permute.xlu0 %1270  ;;  %vm19189_vm8 = vmmov %vm19170_vm3 }
 0x385   :  { %5554 = vst [vmem:[%s17059_s3 + $0x2f0] sm:$0xff] %v5426_v34  ;;  %vm3892_vm4 = vcmp.eq.s32.totalorder %v19178_v17, 0  ;;  %v4403_v22 = vsel %vm4019_vm1, %v2403_v28, %v19180_v19  ;;  %vm19181_vm12 = vcmp.eq.s32.totalorder %v19178_v17, 2  ;;  %v15427_v63 = vsel %vm19170_vm3, 0.0, %v1273_v12  ;;  %vm19190_vm14 = vmmov %vm19170_vm3  ;;  %v19197_v17 = vld [vmem:[#allocation487_spill] sm:$0xff] }
 0x386   :  { %v4660_v15 = vsel %vm19181_vm12, %v1626_v53, %v3567_v30  ;;  %v4531_v42 = vsel %vm3891_vm10, %v15238_v10, %v4403_v22  ;;  %vm5171_vm5 = vcmp.gt.f32.partialorder %v15251_v23, %v4915_v41  ;;  %v271_v49 = vunpack.c.1.s8 %v5842_v29  ;;  %v19192_v41 = vld [vmem:[#allocation296_spill] sm:$0xff]  ;;  %v19194_v22 = vld [vmem:[#allocation491_spill] sm:$0xff] }
 0x387   :  { %v4788_v35 = vsel %vm4020_vm11, %v19182_v14, %v4660_v15  ;;  %vm5043_vm1 = vcmp.gt.f32.partialorder %v15251_v23, %v4531_v42  ;;  %v3535_v7 = vrot.slane %v15414_v16, 7  ;;  %v1563_v10 = vrot.slane %v15444_v4, 7  ;;  %v19195_v15 = vld [vmem:[#allocation499_spill] sm:$0xff]  ;;  %v19196_v14 = vld [vmem:[#allocation13_spill] sm:$0xff] }
 0x388   :  { %v1564_v32 = vrot.slane %v15450_v52, 7  ;;  %v4916_v44 = vsel %vm3892_vm4, %v19183_v20, %v4788_v35  ;;  %vm5299_vm10 = vmand %vm5043_vm1, %vm5171_vm5  ;;  %v2342_v61 = vrot.slane %v15427_v63, 1  ;;  %v3506_v33 = vrot.slane %v15427_v63, 7  ;;  %v1281_v20 = vpop.permute.xlu1 %1280 }
 0x389   :  { %v19185_v36 = vrot.slane %v19184_v38, 1  ;;  %v19187_v45 = vrot.slane %v19186_v25, 1  ;;  %v5427_v2 = vsel %vm5299_vm10, %v15251_v23, 0.0  ;;  %vm3893_vm15 = vcmp.eq.s32.totalorder %v271_v49, 0 }
 0x38a   :  { %vm3894_vm6 = vcmp.eq.s32.totalorder %v19188_v13, 0  ;;  %vm4021_vm7 = vcmp.eq.s32.totalorder %v271_v49, 1  ;;  %5555 = vst [vmem:[%s17059_s3 + $0x2f8] sm:$0xff] %v5427_v2  ;;  %v1624_v54 = vsel %vm1594_vm2, %v1563_v10, %v1564_v32  ;;  %v1625_v18 = vsel %vm1594_vm2, %v1562_v5, %v1563_v10  ;;  %v15489_v5 = vld [vmem:[%s17057_s0 + $0x318] sm:$0xff] }
 0x38b   :  { %v2013_v11 = vsel %vm1983_vm0, %v19187_v45, %v19185_v36  ;;  %vm4149_vm13 = vcmp.eq.s32.totalorder %v271_v49, 2  ;;  %v1429_v23 = vsel %vm19189_vm8, 0.0, %v1271_v39  ;;  %vm4022_vm9 = vcmp.eq.s32.totalorder %v19188_v13, 1  ;;  %v1275_v39 = vpop.permute.xlu0 %1274  ;;  %v19198_v36 = vld [vmem:[#allocation263_spill] sm:$0xff] }
 0x38c   :  { %v2341_v37 = vrot.slane %v1429_v23, 1  ;;  %v3505_v26 = vrot.slane %v1429_v23, 7  ;;  %v15480_v3 = vsel %vm19190_vm14, 0.0, %v1277_v51  ;;  %v4277_v27 = vsel %vm4149_vm13, %v2013_v11, %v19191_v43  ;;  %v19200_v45 = vld [vmem:[#allocation255_spill] sm:$0xff] }
 0x38d   :  { %v15484_v1 = vunpack.c.3.s8 %v5842_v29  ;;  %v1565_v21 = vrot.slane %v15489_v5, 7  ;;  %v1566_v50 = vrot.slane %v15495_v9, 7  ;;  %vm19193_vm12 = vcmp.eq.s32.totalorder %v19188_v13, 2  ;;  %v5847_v43 = vld [vmem:[%s17058_s1 + $0xc8] sm:$0xff] }
 0x38e   :  { %v2401_v53 = vsel %vm1983_vm0, %v2341_v37, %v2342_v61  ;;  %v2402_v12 = vsel %vm1983_vm0, %v2340_v56, %v2341_v37  ;;  %v3565_v48 = vsel %vm1594_vm2, %v3505_v26, %v3506_v33  ;;  %v3566_v60 = vsel %vm1594_vm2, %v3504_v47, %v3505_v26 }
 0x38f   :  { %v4404_v24 = vsel %vm4020_vm11, %v2402_v12, %v19192_v41  ;;  %v4405_v34 = vsel %vm4021_vm7, %v2401_v53, %v4277_v27  ;;  %v4661_v28 = vsel %vm4149_vm13, %v1625_v18, %v3566_v60  ;;  %v4662_v30 = vsel %vm19193_vm12, %v1624_v54, %v3565_v48  ;;  %v19205_v54 = vld [vmem:[#allocation505_spill] sm:$0xff]  ;;  %v15587_v12 = vld [vmem:[%s17057_s0 + $0x330] sm:$0xff]  ;;  %v1279_v13 = vpop.permute.xlu0 %1278 }
 0x390   :  { %v4532_v56 = vsel %vm3892_vm4, %v15342_v8, %v4404_v24  ;;  %v4533_v19 = vsel %vm3893_vm15, %v1429_v23, %v4405_v34  ;;  %v4789_v47 = vsel %vm4021_vm7, %v19194_v22, %v4661_v28  ;;  %v4790_v42 = vsel %vm4022_vm9, %v19195_v15, %v4662_v30  ;;  %v19206_v28 = vld [vmem:[#allocation306_spill] sm:$0xff] }
 0x391   :  { %vm5172_vm11 = vcmp.gt.f32.partialorder %v15337_v58, %v4916_v44  ;;  %v4917_v35 = vsel %vm3893_vm15, %v19196_v14, %v4789_v47  ;;  %vm5044_vm3 = vcmp.gt.f32.partialorder %v15337_v58, %v4532_v56  ;;  %vm5045_vm5 = vcmp.gt.f32.partialorder %v15444_v4, %v4533_v19  ;;  %v19208_v47 = vld [vmem:[#allocation498_spill] sm:$0xff] }
 0x392   :  { %v4918_v8 = vsel %vm3894_vm6, %v19197_v17, %v4790_v42  ;;  %vm5173_vm4 = vcmp.gt.f32.partialorder %v15444_v4, %v4917_v35  ;;  %vm5300_vm1 = vmand %vm5044_vm3, %vm5172_vm11  ;;  %v2344_v29 = vrot.slane %v15480_v3, 1  ;;  %v3508_v10 = vrot.slane %v15480_v3, 7  ;;  %v19209_v42 = vld [vmem:[#allocation504_spill] sm:$0xff]  ;;  %v19210_v35 = vld [vmem:[#allocation486_spill] sm:$0xff] }
 0x393   :  { %vm5301_vm10 = vmand %vm5045_vm5, %vm5173_vm4  ;;  %v5428_v49 = vsel %vm5300_vm1, %v15337_v58, 0.0  ;;  %v1622_v44 = vsel %vm1594_vm2, %v1565_v21, %v1566_v50  ;;  %v1623_v38 = vsel %vm1594_vm2, %v1564_v32, %v1565_v21  ;;  %v19199_v25 = vrot.slane %v19198_v36, 1  ;;  %v19202_v58 = vld [vmem:[#allocation299_spill] sm:$0xff] }
 0x394   :  { %v19201_v11 = vrot.slane %v19200_v45, 1  ;;  %v5429_v2 = vsel %vm5301_vm10, %v15444_v4, 0.0  ;;  %5556 = vst [vmem:[%s17059_s3 + $0x300] sm:$0xff] %v5428_v49  ;;  %vm3895_vm15 = vcmp.eq.s32.totalorder %v15484_v1, 0  ;;  %vm3896_vm7 = vcmp.eq.s32.totalorder %v19202_v58, 0  ;;  %v15581_v21 = vld [vmem:[%s17057_s0 + $0x328] sm:$0xff] }
 0x395   :  { %vm4151_vm13 = vcmp.eq.s32.totalorder %v15484_v1, 2  ;;  %5557 = vst [vmem:[%s17059_s3 + $0x308] sm:$0xff] %v5429_v2  ;;  %vm4023_vm8 = vcmp.eq.s32.totalorder %v15484_v1, 1  ;;  %vm4024_vm14 = vcmp.eq.s32.totalorder %v19202_v58, 1  ;;  %vm19203_vm12 = vcmp.eq.s32.totalorder %v6314_v55, 127  ;;  %v19212_v49 = vld [vmem:[#allocation274_spill] sm:$0xff] }
 0x396   :  { %v2011_v51 = vsel %vm1983_vm0, %v19201_v11, %v19199_v25  ;;  %v1431_v4 = vsel %vm19203_vm12, 0.0, %v1275_v39  ;;  %vm19204_vm11 = vmmov %vm19203_vm12  ;;  %vm5174_vm3 = vcmp.gt.f32.partialorder %v15450_v52, %v4918_v8  ;;  %v15576_v27 = vunpack.c.1.s8 %v5847_v43  ;;  %v19211_v39 = vld [vmem:[#allocation16_spill] sm:$0xff]  ;;  %v19214_v1 = vld [vmem:[#allocation262_spill] sm:$0xff]  ;;  %v1285_v11 = vpop.permute.xlu1 %1284 }
 0x397   :  { %v15566_v32 = vsel %vm19204_vm11, 0.0, %v1281_v20  ;;  %v4279_v18 = vsel %vm4151_vm13, %v2011_v51, %v19205_v54  ;;  %v2343_v23 = vrot.slane %v1431_v4, 1  ;;  %v3507_v37 = vrot.slane %v1431_v4, 7 }
 0x398   :  { %v2346_v26 = vrot.slane %v15566_v32, 1  ;;  %v1567_v53 = vrot.slane %v15581_v21, 7  ;;  %v1568_v48 = vrot.slane %v15587_v12, 7  ;;  %vm19207_vm5 = vcmp.eq.s32.totalorder %v19202_v58, 2 }
 0x399   :  { %v2399_v60 = vsel %vm1983_vm0, %v2343_v23, %v2344_v29  ;;  %v2400_v41 = vsel %vm1983_vm0, %v2342_v61, %v2343_v23  ;;  %v3563_v24 = vsel %vm1594_vm2, %v3507_v37, %v3508_v10  ;;  %v3564_v34 = vsel %vm1594_vm2, %v3506_v33, %v3507_v37  ;;  %v15679_v37 = vld [vmem:[%s17057_s0 + $0x338] sm:$0xff] }
 0x39a   :  { %v4406_v30 = vsel %vm4022_vm9, %v2400_v41, %v19206_v28  ;;  %v4407_v56 = vsel %vm4023_vm8, %v2399_v60, %v4279_v18  ;;  %v4663_v61 = vsel %vm4151_vm13, %v1623_v38, %v3564_v34  ;;  %v4664_v19 = vsel %vm19207_vm5, %v1622_v44, %v3563_v24  ;;  %vm19218_vm5 = vmmov %vm19204_vm11  ;;  %v15685_v60 = vld [vmem:[%s17057_s0 + $0x340] sm:$0xff] }
 0x39b   :  { %v4534_v22 = vsel %vm3894_vm6, %v15427_v63, %v4406_v30  ;;  %v4535_v33 = vsel %vm3895_vm15, %v1431_v4, %v4407_v56  ;;  %v4791_v15 = vsel %vm4023_vm8, %v19208_v47, %v4663_v61  ;;  %v4792_v14 = vsel %vm4024_vm14, %v19209_v42, %v4664_v19  ;;  %v19219_v30 = vld [vmem:[#allocation314_spill] sm:$0xff] }
 0x39c   :  { %v4919_v17 = vsel %vm3895_vm15, %v19210_v35, %v4791_v15  ;;  %vm5046_vm9 = vcmp.gt.f32.partialorder %v15450_v52, %v4534_v22  ;;  %vm5047_vm4 = vcmp.gt.f32.partialorder %v15489_v5, %v4535_v33  ;;  %v3510_v63 = vrot.slane %v15566_v32, 7  ;;  %v19221_v33 = vld [vmem:[#allocation503_spill] sm:$0xff] }
 0x39d   :  { %v4920_v20 = vsel %vm3896_vm7, %v19211_v39, %v4792_v14  ;;  %vm5175_vm6 = vcmp.gt.f32.partialorder %v15489_v5, %v4919_v17  ;;  %vm5302_vm1 = vmand %vm5046_vm9, %vm5174_vm3  ;;  %v19213_v44 = vrot.slane %v19212_v49, 1  ;;  %v19215_v38 = vrot.slane %v19214_v1, 1  ;;  %v19222_v15 = vld [vmem:[#allocation507_spill] sm:$0xff]  ;;  %v1283_v39 = vpop.permute.xlu0 %1282  ;;  %v19225_v1 = vld [vmem:[#allocation284_spill] sm:$0xff] }
 0x39e   :  { %vm3897_vm10 = vcmp.eq.s32.totalorder %v15576_v27, 0  ;;  %vm5303_vm15 = vmand %vm5047_vm4, %vm5175_vm6  ;;  %v5430_v25 = vsel %vm5302_vm1, %v15450_v52, 0.0  ;;  %v1620_v45 = vsel %vm1594_vm2, %v1567_v53, %v1568_v48  ;;  %v1621_v8 = vsel %vm1594_vm2, %v1566_v50, %v1567_v53  ;;  %v19216_v52 = vld [vmem:[#allocation310_spill] sm:$0xff]  ;;  %v19217_v50 = vld [vmem:[#allocation508_spill] sm:$0xff] }
 0x39f   :  { %v2009_v36 = vsel %vm1983_vm0, %v19215_v38, %v19213_v44  ;;  %vm4153_vm13 = vcmp.eq.s32.totalorder %v15576_v27, 2  ;;  %v5431_v51 = vsel %vm5303_vm15, %v15489_v5, 0.0  ;;  %5558 = vst [vmem:[%s17059_s3 + $0x310] sm:$0xff] %v5430_v25  ;;  %vm3898_vm8 = vcmp.eq.s32.totalorder %v19216_v52, 0  ;;  %v19223_v14 = vld [vmem:[#allocation15_spill] sm:$0xff] }
 0x3a0   :  { %vm4025_vm12 = vcmp.eq.s32.totalorder %v15576_v27, 1  ;;  %v1433_v2 = vsel %vm19204_vm11, 0.0, %v1279_v13  ;;  %5559 = vst [vmem:[%s17059_s3 + $0x318] sm:$0xff] %v5431_v51  ;;  %vm4026_vm3 = vcmp.eq.s32.totalorder %v19216_v52, 1  ;;  %v4281_v5 = vsel %vm4153_vm13, %v2009_v36, %v19217_v50  ;;  %v19227_v36 = vld [vmem:[#allocation273_spill] sm:$0xff] }
 0x3a1   :  { %v2345_v4 = vrot.slane %v1433_v2, 1  ;;  %v3509_v54 = vrot.slane %v1433_v2, 7  ;;  %v15672_v18 = vsel %vm19218_vm5, 0.0, %v1285_v11  ;;  %v15674_v23 = vunpack.c.3.s8 %v5847_v43  ;;  %v19232_v11 = vld [vmem:[#allocation19_spill] sm:$0xff] }
 0x3a2   :  { %v1569_v53 = vrot.slane %v15679_v37, 7  ;;  %v1570_v41 = vrot.slane %v15685_v60, 7  ;;  %vm19220_vm9 = vcmp.eq.s32.totalorder %v19216_v52, 2  ;;  %v2348_v17 = vrot.slane %v15672_v18, 1  ;;  %v1287_v52 = vpop.permute.xlu0 %1286 }
 0x3a3   :  { %v2397_v43 = vsel %vm1983_vm0, %v2345_v4, %v2346_v26  ;;  %v2398_v24 = vsel %vm1983_vm0, %v2344_v29, %v2345_v4  ;;  %v3561_v34 = vsel %vm1594_vm2, %v3509_v54, %v3510_v63  ;;  %v3562_v28 = vsel %vm1594_vm2, %v3508_v10, %v3509_v54  ;;  %v5852_v4 = vld [vmem:[%s17058_s1 + $0xd0] sm:$0xff] }
 0x3a4   :  { %v4408_v56 = vsel %vm4024_vm14, %v2398_v24, %v19219_v30  ;;  %v4409_v61 = vsel %vm4025_vm12, %v2397_v43, %v4281_v5  ;;  %v4665_v29 = vsel %vm4153_vm13, %v1621_v8, %v3562_v28  ;;  %v4666_v19 = vsel %vm19220_vm9, %v1620_v45, %v3561_v34  ;;  %v15788_v24 = vld [vmem:[%s17057_s0 + $0x350] sm:$0xff] }
 0x3a5   :  { %v4536_v22 = vsel %vm3896_vm7, %v15480_v3, %v4408_v56  ;;  %v4537_v10 = vsel %vm3897_vm10, %v1433_v2, %v4409_v61  ;;  %v4793_v47 = vsel %vm4025_vm12, %v19221_v33, %v4665_v29  ;;  %v4794_v42 = vsel %vm4026_vm3, %v19222_v15, %v4666_v19  ;;  %v19224_v3 = vld [vmem:[#allocation497_spill] sm:$0xff]  ;;  %v19233_v29 = vld [vmem:[#allocation326_spill] sm:$0xff] }
 0x3a6   :  { %vm5176_vm14 = vcmp.gt.f32.partialorder %v15495_v9, %v4920_v20  ;;  %v4921_v35 = vsel %vm3897_vm10, %v19223_v14, %v4793_v47  ;;  %vm5048_vm4 = vcmp.gt.f32.partialorder %v15495_v9, %v4536_v22  ;;  %vm5049_vm7 = vcmp.gt.f32.partialorder %v15581_v21, %v4537_v10  ;;  %v1289_v20 = vpop.permute.xlu1 %1288  ;;  %v19235_v47 = vld [vmem:[#allocation506_spill] sm:$0xff] }
 0x3a7   :  { %v4922_v58 = vsel %vm3898_vm8, %v19224_v3, %v4794_v42  ;;  %vm5177_vm6 = vcmp.gt.f32.partialorder %v15581_v21, %v4921_v35  ;;  %vm5304_vm1 = vmand %vm5048_vm4, %vm5176_vm14  ;;  %v3512_v13 = vrot.slane %v15672_v18, 7  ;;  %v1618_v49 = vsel %vm1594_vm2, %v1569_v53, %v1570_v41  ;;  %v19236_v42 = vld [vmem:[#allocation511_spill] sm:$0xff]  ;;  %v19237_v35 = vld [vmem:[#allocation496_spill] sm:$0xff] }
 0x3a8   :  { %vm5305_vm15 = vmand %vm5049_vm7, %vm5177_vm6  ;;  %v5432_v27 = vsel %vm5304_vm1, %v15495_v9, 0.0  ;;  %v1619_v44 = vsel %vm1594_vm2, %v1568_v48, %v1569_v53  ;;  %v19226_v38 = vrot.slane %v19225_v1, 1  ;;  %v19228_v25 = vrot.slane %v19227_v36, 1  ;;  %v19229_v9 = vld [vmem:[#allocation317_spill] sm:$0xff]  ;;  %v15782_v53 = vld [vmem:[%s17057_s0 + $0x348] sm:$0xff] }
 0x3a9   :  { %v5433_v8 = vsel %vm5305_vm15, %v15581_v21, 0.0  ;;  %5560 = vst [vmem:[%s17059_s3 + $0x320] sm:$0xff] %v5432_v27  ;;  %vm3899_vm10 = vcmp.eq.s32.totalorder %v15674_v23, 0  ;;  %vm3900_vm13 = vcmp.eq.s32.totalorder %v19229_v9, 0  ;;  %vm4155_vm12 = vcmp.eq.s32.totalorder %v15674_v23, 2  ;;  %v19239_v27 = vld [vmem:[#allocation295_spill] sm:$0xff] }
 0x3aa   :  { %v2007_v45 = vsel %vm1983_vm0, %v19228_v25, %v19226_v38  ;;  %5561 = vst [vmem:[%s17059_s3 + $0x328] sm:$0xff] %v5433_v8  ;;  %vm4027_vm11 = vcmp.eq.s32.totalorder %v15674_v23, 1  ;;  %vm4028_vm5 = vcmp.eq.s32.totalorder %v19229_v9, 1  ;;  %vm19230_vm9 = vcmp.eq.s32.totalorder %v6314_v55, 127  ;;  %v19241_v23 = vld [vmem:[#allocation283_spill] sm:$0xff]  ;;  %v1293_v25 = vpop.permute.xlu1 %1292 }
 0x3ab   :  { %v1435_v21 = vsel %vm19230_vm9, 0.0, %v1283_v39  ;;  %vm19231_vm14 = vmmov %vm19230_vm9  ;;  %v4283_v51 = vsel %vm4155_vm12, %v2007_v45, %v19232_v11  ;;  %vm5178_vm4 = vcmp.gt.f32.partialorder %v15587_v12, %v4922_v58  ;;  %v15777_v54 = vunpack.c.1.s8 %v5852_v4  ;;  %v19238_v39 = vld [vmem:[#allocation501_spill] sm:$0xff] }
 0x3ac   :  { %v15767_v48 = vsel %vm19231_vm14, 0.0, %v1289_v20  ;;  %v2347_v2 = vrot.slane %v1435_v21, 1  ;;  %v3511_v50 = vrot.slane %v1435_v21, 7  ;;  %v1571_v43 = vrot.slane %v15782_v53, 7 }
 0x3ad   :  { %v2350_v5 = vrot.slane %v15767_v48, 1  ;;  %v1572_v34 = vrot.slane %v15788_v24, 7  ;;  %vm19234_vm7 = vcmp.eq.s32.totalorder %v19229_v9, 2  ;;  %vm3901_vm15 = vcmp.eq.s32.totalorder %v15777_v54, 0 }
 0x3ae   :  { %v2395_v28 = vsel %vm1983_vm0, %v2347_v2, %v2348_v17  ;;  %v2396_v30 = vsel %vm1983_vm0, %v2346_v26, %v2347_v2  ;;  %v3559_v56 = vsel %vm1594_vm2, %v3511_v50, %v3512_v13  ;;  %v3560_v61 = vsel %vm1594_vm2, %v3510_v63, %v3511_v50  ;;  %v15880_v50 = vld [vmem:[%s17057_s0 + $0x358] sm:$0xff] }
 0x3af   :  { %v4410_v19 = vsel %vm4026_vm3, %v2396_v30, %v19233_v29  ;;  %v4411_v22 = vsel %vm4027_vm11, %v2395_v28, %v4283_v51  ;;  %v4667_v26 = vsel %vm4155_vm12, %v1619_v44, %v3560_v61  ;;  %v4668_v10 = vsel %vm19234_vm7, %v1618_v49, %v3559_v56  ;;  %vm19245_vm7 = vmmov %vm19231_vm14  ;;  %v15886_v28 = vld [vmem:[%s17057_s0 + $0x360] sm:$0xff] }
 0x3b0   :  { %v4538_v33 = vsel %vm3898_vm8, %v15566_v32, %v4410_v19  ;;  %v4539_v63 = vsel %vm3899_vm10, %v1435_v21, %v4411_v22  ;;  %v4795_v15 = vsel %vm4027_vm11, %v19235_v47, %v4667_v26  ;;  %v4796_v14 = vsel %vm4028_vm5, %v19236_v42, %v4668_v10  ;;  %v19246_v19 = vld [vmem:[#allocation20_spill] sm:$0xff] }
 0x3b1   :  { %v4923_v3 = vsel %vm3899_vm10, %v19237_v35, %v4795_v15  ;;  %vm5050_vm3 = vcmp.gt.f32.partialorder %v15587_v12, %v4538_v33  ;;  %vm5051_vm6 = vcmp.gt.f32.partialorder %v15679_v37, %v4539_v63  ;;  %v3514_v32 = vrot.slane %v15767_v48, 7  ;;  %v19248_v63 = vld [vmem:[#allocation215_spill] sm:$0xff]  ;;  %v19249_v15 = vld [vmem:[#allocation514_spill] sm:$0xff] }
 0x3b2   :  { %v4924_v20 = vsel %vm3900_vm13, %v19238_v39, %v4796_v14  ;;  %vm5179_vm8 = vcmp.gt.f32.partialorder %v15679_v37, %v4923_v3  ;;  %vm5306_vm1 = vmand %vm5050_vm3, %vm5178_vm4  ;;  %v19240_v49 = vrot.slane %v19239_v27, 1  ;;  %v19242_v44 = vrot.slane %v19241_v23, 1  ;;  %v19250_v14 = vld [vmem:[#allocation206_spill] sm:$0xff]  ;;  %v1291_v39 = vpop.permute.xlu0 %1290  ;;  %v19252_v23 = vld [vmem:[#allocation304_spill] sm:$0xff] }
 0x3b3   :  { %vm5307_vm10 = vmand %vm5051_vm6, %vm5179_vm8  ;;  %v5434_v38 = vsel %vm5306_vm1, %v15587_v12, 0.0  ;;  %v1616_v36 = vsel %vm1594_vm2, %v1571_v43, %v1572_v34  ;;  %v1617_v58 = vsel %vm1594_vm2, %v1570_v41, %v1571_v43  ;;  %vm4157_vm12 = vcmp.eq.s32.totalorder %v15777_v54, 2  ;;  %v19243_v12 = vld [vmem:[#allocation329_spill] sm:$0xff]  ;;  %v19244_v41 = vld [vmem:[#allocation515_spill] sm:$0xff] }
 0x3b4   :  { %v2005_v1 = vsel %vm1983_vm0, %v19242_v44, %v19240_v49  ;;  %v5435_v45 = vsel %vm5307_vm10, %v15679_v37, 0.0  ;;  %5562 = vst [vmem:[%s17059_s3 + $0x330] sm:$0xff] %v5434_v38  ;;  %vm3902_vm11 = vcmp.eq.s32.totalorder %v19243_v12, 0  ;;  %vm4029_vm9 = vcmp.eq.s32.totalorder %v15777_v54, 1 }
 0x3b5   :  { %v1437_v8 = vsel %vm19231_vm14, 0.0, %v1287_v52  ;;  %5563 = vst [vmem:[%s17059_s3 + $0x338] sm:$0xff] %v5435_v45  ;;  %vm4030_vm4 = vcmp.eq.s32.totalorder %v19243_v12, 1  ;;  %v4285_v37 = vsel %vm4157_vm12, %v2005_v1, %v19244_v41  ;;  %v15873_v51 = vsel %vm19245_vm7, 0.0, %v1293_v25  ;;  %v19254_v1 = vld [vmem:[#allocation294_spill] sm:$0xff]  ;;  %v19259_v25 = vld [vmem:[#allocation523_spill] sm:$0xff] }
 0x3b6   :  { %v2349_v21 = vrot.slane %v1437_v8, 1  ;;  %v3513_v11 = vrot.slane %v1437_v8, 7  ;;  %v15875_v2 = vunpack.c.3.s8 %v5852_v4  ;;  %v1573_v43 = vrot.slane %v15880_v50, 7 }
 0x3b7   :  { %v1574_v30 = vrot.slane %v15886_v28, 7  ;;  %vm19247_vm3 = vcmp.eq.s32.totalorder %v19243_v12, 2  ;;  %v2352_v3 = vrot.slane %v15873_v51, 1  ;;  %v3516_v52 = vrot.slane %v15873_v51, 7  ;;  %v1295_v12 = vpop.permute.xlu0 %1294 }
 0x3b8   :  { %v2393_v4 = vsel %vm1983_vm0, %v2349_v21, %v2350_v5  ;;  %v2394_v56 = vsel %vm1983_vm0, %v2348_v17, %v2349_v21  ;;  %v3557_v61 = vsel %vm1594_vm2, %v3513_v11, %v3514_v32  ;;  %v3558_v29 = vsel %vm1594_vm2, %v3512_v13, %v3513_v11  ;;  %v5857_v21 = vld [vmem:[%s17058_s1 + $0xd8] sm:$0xff] }
 0x3b9   :  { %v4412_v22 = vsel %vm4028_vm5, %v2394_v56, %v19246_v19  ;;  %v4413_v26 = vsel %vm4029_vm9, %v2393_v4, %v4285_v37  ;;  %v4669_v17 = vsel %vm4157_vm12, %v1617_v58, %v3558_v29  ;;  %v4670_v10 = vsel %vm19247_vm3, %v1616_v36, %v3557_v61  ;;  %v15989_v56 = vld [vmem:[%s17057_s0 + $0x370] sm:$0xff] }
 0x3ba   :  { %v4540_v33 = vsel %vm3900_vm13, %v15672_v18, %v4412_v22  ;;  %v4541_v13 = vsel %vm3901_vm15, %v1437_v8, %v4413_v26  ;;  %v4797_v47 = vsel %vm4029_vm9, %v19248_v63, %v4669_v17  ;;  %v4798_v42 = vsel %vm4030_vm4, %v19249_v15, %v4670_v10  ;;  %v19251_v18 = vld [vmem:[#allocation18_spill] sm:$0xff]  ;;  %v19260_v17 = vld [vmem:[#allocation516_spill] sm:$0xff] }
 0x3bb   :  { %vm5180_vm5 = vcmp.gt.f32.partialorder %v15685_v60, %v4924_v20  ;;  %v4925_v35 = vsel %vm3901_vm15, %v19250_v14, %v4797_v47  ;;  %vm5052_vm6 = vcmp.gt.f32.partialorder %v15685_v60, %v4540_v33  ;;  %vm5053_vm13 = vcmp.gt.f32.partialorder %v15782_v53, %v4541_v13  ;;  %v1297_v20 = vpop.permute.xlu1 %1296  ;;  %v19262_v47 = vld [vmem:[#allocation332_spill] sm:$0xff] }
 0x3bc   :  { %v4926_v9 = vsel %vm3902_vm11, %v19251_v18, %v4798_v42  ;;  %vm5181_vm8 = vcmp.gt.f32.partialorder %v15782_v53, %v4925_v35  ;;  %vm5308_vm1 = vmand %vm5052_vm6, %vm5180_vm5  ;;  %v1614_v27 = vsel %vm1594_vm2, %v1573_v43, %v1574_v30  ;;  %v1615_v49 = vsel %vm1594_vm2, %v1572_v34, %v1573_v43  ;;  %v15983_v43 = vld [vmem:[%s17057_s0 + $0x368] sm:$0xff]  ;;  %v19263_v42 = vld [vmem:[#allocation520_spill] sm:$0xff] }
 0x3bd   :  { %vm5309_vm10 = vmand %vm5053_vm13, %vm5181_vm8  ;;  %v5436_v54 = vsel %vm5308_vm1, %v15685_v60, 0.0  ;;  %v19253_v44 = vrot.slane %v19252_v23, 1  ;;  %v19255_v38 = vrot.slane %v19254_v1, 1  ;;  %vm3903_vm15 = vcmp.eq.s32.totalorder %v15875_v2, 0  ;;  %v19256_v60 = vld [vmem:[#allocation337_spill] sm:$0xff] }
 0x3be   :  { %v5437_v58 = vsel %vm5309_vm10, %v15782_v53, 0.0  ;;  %5564 = vst [vmem:[%s17059_s3 + $0x340] sm:$0xff] %v5436_v54  ;;  %vm3904_vm12 = vcmp.eq.s32.totalorder %v19256_v60, 0  ;;  %vm4159_vm9 = vcmp.eq.s32.totalorder %v15875_v2, 2  ;;  %vm4031_vm14 = vcmp.eq.s32.totalorder %v15875_v2, 1  ;;  %v19264_v35 = vld [vmem:[#allocation17_spill] sm:$0xff] }
 0x3bf   :  { %v2003_v36 = vsel %vm1983_vm0, %v19255_v38, %v19253_v44  ;;  %5565 = vst [vmem:[%s17059_s3 + $0x348] sm:$0xff] %v5437_v58  ;;  %vm4032_vm7 = vcmp.eq.s32.totalorder %v19256_v60, 1  ;;  %vm19257_vm3 = vcmp.eq.s32.totalorder %v6314_v55, 127  ;;  %vm5182_vm6 = vcmp.gt.f32.partialorder %v15788_v24, %v4926_v9  ;;  %v19266_v54 = vld [vmem:[#allocation313_spill] sm:$0xff]  ;;  %v19268_v2 = vld [vmem:[#allocation303_spill] sm:$0xff]  ;;  %v1301_v38 = vpop.permute.xlu1 %1300 }
 0x3c0   :  { %v1439_v53 = vsel %vm19257_vm3, 0.0, %v1291_v39  ;;  %vm19258_vm5 = vmmov %vm19257_vm3  ;;  %v4287_v45 = vsel %vm4159_vm9, %v2003_v36, %v19259_v25  ;;  %v15978_v11 = vunpack.c.1.s8 %v5857_v21  ;;  %v1575_v4 = vrot.slane %v15983_v43, 7  ;;  %v19265_v39 = vld [vmem:[#allocation510_spill] sm:$0xff] }
 0x3c1   :  { %v15968_v34 = vsel %vm19258_vm5, 0.0, %v1297_v20  ;;  %v2351_v8 = vrot.slane %v1439_v53, 1  ;;  %v3515_v41 = vrot.slane %v1439_v53, 7  ;;  %v1576_v61 = vrot.slane %v15989_v56, 7 }
 0x3c2   :  { %v2354_v37 = vrot.slane %v15968_v34, 1  ;;  %vm19261_vm13 = vcmp.eq.s32.totalorder %v19256_v60, 2  ;;  %vm3905_vm10 = vcmp.eq.s32.totalorder %v15978_v11, 0  ;;  %v1613_v9 = vsel %vm1594_vm2, %v1574_v30, %v1575_v4  ;;  %v19271_v30 = vld [vmem:[#allocation22_spill] sm:$0xff] }
 0x3c3   :  { %v2391_v29 = vsel %vm1983_vm0, %v2351_v8, %v2352_v3  ;;  %v2392_v19 = vsel %vm1983_vm0, %v2350_v5, %v2351_v8  ;;  %v3555_v22 = vsel %vm1594_vm2, %v3515_v41, %v3516_v52  ;;  %v3556_v26 = vsel %vm1594_vm2, %v3514_v32, %v3515_v41  ;;  %v16081_v41 = vld [vmem:[%s17057_s0 + $0x378] sm:$0xff] }
 0x3c4   :  { %v4414_v10 = vsel %vm4030_vm4, %v2392_v19, %v19260_v17  ;;  %v4415_v33 = vsel %vm4031_vm14, %v2391_v29, %v4287_v45  ;;  %v4671_v5 = vsel %vm4159_vm9, %v1615_v49, %v3556_v26  ;;  %v4672_v13 = vsel %vm19261_vm13, %v1614_v27, %v3555_v22  ;;  %vm19272_vm13 = vmmov %vm19258_vm5  ;;  %v16087_v29 = vld [vmem:[%s17057_s0 + $0x380] sm:$0xff] }
 0x3c5   :  { %v4542_v63 = vsel %vm3902_vm11, %v15767_v48, %v4414_v10  ;;  %v4543_v32 = vsel %vm3903_vm15, %v1439_v53, %v4415_v33  ;;  %v4799_v15 = vsel %vm4031_vm14, %v19262_v47, %v4671_v5  ;;  %v4800_v14 = vsel %vm4032_vm7, %v19263_v42, %v4672_v13  ;;  %v19273_v10 = vld [vmem:[#allocation524_spill] sm:$0xff] }
 0x3c6   :  { %v4927_v18 = vsel %vm3903_vm15, %v19264_v35, %v4799_v15  ;;  %vm5054_vm4 = vcmp.gt.f32.partialorder %v15788_v24, %v4542_v63  ;;  %vm5055_vm8 = vcmp.gt.f32.partialorder %v15880_v50, %v4543_v32  ;;  %v3518_v48 = vrot.slane %v15968_v34, 7  ;;  %v19275_v32 = vld [vmem:[#allocation519_spill] sm:$0xff]  ;;  %v19276_v15 = vld [vmem:[#allocation21_spill] sm:$0xff] }
 0x3c7   :  { %v4928_v20 = vsel %vm3904_vm12, %v19265_v39, %v4800_v14  ;;  %vm5183_vm11 = vcmp.gt.f32.partialorder %v15880_v50, %v4927_v18  ;;  %vm5310_vm1 = vmand %vm5054_vm4, %vm5182_vm6  ;;  %v19267_v27 = vrot.slane %v19266_v54, 1  ;;  %v19269_v49 = vrot.slane %v19268_v2, 1  ;;  %v19277_v14 = vld [vmem:[#allocation509_spill] sm:$0xff]  ;;  %v1299_v39 = vpop.permute.xlu0 %1298  ;;  %v19279_v2 = vld [vmem:[#allocation323_spill] sm:$0xff] }
 0x3c8   :  { %vm5311_vm15 = vmand %vm5055_vm8, %vm5183_vm11  ;;  %v5438_v44 = vsel %vm5310_vm1, %v15788_v24, 0.0  ;;  %v1612_v1 = vsel %vm1594_vm2, %v1575_v4, %v1576_v61  ;;  %vm4161_vm9 = vcmp.eq.s32.totalorder %v15978_v11, 2  ;;  %v19270_v24 = vld [vmem:[#allocation345_spill] sm:$0xff]  ;;  %vm4033_vm3 = vcmp.eq.s32.totalorder %v15978_v11, 1 }
 0x3c9   :  { %v2001_v23 = vsel %vm1983_vm0, %v19269_v49, %v19267_v27  ;;  %v5439_v36 = vsel %vm5311_vm15, %v15880_v50, 0.0  ;;  %5566 = vst [vmem:[%s17059_s3 + $0x350] sm:$0xff] %v5438_v44  ;;  %vm3906_vm14 = vcmp.eq.s32.totalorder %v19270_v24, 0  ;;  %v1441_v58 = vsel %vm19258_vm5, 0.0, %v1295_v12 }
 0x3ca   :  { %5567 = vst [vmem:[%s17059_s3 + $0x358] sm:$0xff] %v5439_v36  ;;  %vm4034_vm6 = vcmp.eq.s32.totalorder %v19270_v24, 1  ;;  %v4289_v50 = vsel %vm4161_vm9, %v2001_v23, %v19271_v30  ;;  %v2353_v53 = vrot.slane %v1441_v58, 1  ;;  %v3517_v25 = vrot.slane %v1441_v58, 7  ;;  %v19281_v23 = vld [vmem:[#allocation312_spill] sm:$0xff] }
 0x3cb   :  { %v16074_v45 = vsel %vm19272_vm13, 0.0, %v1301_v38  ;;  %v16076_v8 = vunpack.c.3.s8 %v5857_v21  ;;  %v1577_v4 = vrot.slane %v16081_v41, 7  ;;  %v1578_v19 = vrot.slane %v16087_v29, 7  ;;  %v19286_v38 = vld [vmem:[#allocation531_spill] sm:$0xff] }
 0x3cc   :  { %v2389_v21 = vsel %vm1983_vm0, %v2353_v53, %v2354_v37  ;;  %v2390_v22 = vsel %vm1983_vm0, %v2352_v3, %v2353_v53  ;;  %v3553_v26 = vsel %vm1594_vm2, %v3517_v25, %v3518_v48  ;;  %v3554_v17 = vsel %vm1594_vm2, %v3516_v52, %v3517_v25  ;;  %v5862_v53 = vld [vmem:[%s17058_s1 + $0xe0] sm:$0xff] }
 0x3cd   :  { %v4416_v33 = vsel %vm4032_vm7, %v2390_v22, %v19273_v10  ;;  %v4417_v5 = vsel %vm4033_vm3, %v2389_v21, %v4289_v50  ;;  %v4673_v3 = vsel %vm4161_vm9, %v1613_v9, %v3554_v17  ;;  %vm19274_vm4 = vcmp.eq.s32.totalorder %v19270_v24, 2  ;;  %v16190_v22 = vld [vmem:[%s17057_s0 + $0x390] sm:$0xff]  ;;  %v1303_v24 = vpop.permute.xlu0 %1302 }
 0x3ce   :  { %v4674_v13 = vsel %vm19274_vm4, %v1612_v1, %v3553_v26  ;;  %v4544_v63 = vsel %vm3904_vm12, %v15873_v51, %v4416_v33  ;;  %v4545_v52 = vsel %vm3905_vm10, %v1441_v58, %v4417_v5  ;;  %v4801_v47 = vsel %vm4033_vm3, %v19275_v32, %v4673_v3  ;;  %v19278_v51 = vld [vmem:[#allocation513_spill] sm:$0xff]  ;;  %v19287_v3 = vld [vmem:[#allocation358_spill] sm:$0xff] }
 0x3cf   :  { %v4802_v42 = vsel %vm4034_vm6, %v19276_v15, %v4674_v13  ;;  %vm5184_vm7 = vcmp.gt.f32.partialorder %v15886_v28, %v4928_v20  ;;  %v4929_v35 = vsel %vm3905_vm10, %v19277_v14, %v4801_v47  ;;  %vm5056_vm8 = vcmp.gt.f32.partialorder %v15886_v28, %v4544_v63  ;;  %v1305_v20 = vpop.permute.xlu1 %1304  ;;  %v19289_v47 = vld [vmem:[#allocation525_spill] sm:$0xff] }
 0x3d0   :  { %vm5057_vm12 = vcmp.gt.f32.partialorder %v15983_v43, %v4545_v52  ;;  %v4930_v60 = vsel %vm3906_vm14, %v19278_v51, %v4802_v42  ;;  %vm5185_vm11 = vcmp.gt.f32.partialorder %v15983_v43, %v4929_v35  ;;  %vm5312_vm1 = vmand %vm5056_vm8, %vm5184_vm7  ;;  %v2356_v18 = vrot.slane %v16074_v45, 1  ;;  %v19290_v42 = vld [vmem:[#allocation530_spill] sm:$0xff]  ;;  %v19291_v35 = vld [vmem:[#allocation512_spill] sm:$0xff] }
 0x3d1   :  { %v3520_v12 = vrot.slane %v16074_v45, 7  ;;  %vm5313_vm15 = vmand %vm5057_vm12, %vm5185_vm11  ;;  %v5440_v11 = vsel %vm5312_vm1, %v15886_v28, 0.0  ;;  %v1610_v54 = vsel %vm1594_vm2, %v1577_v4, %v1578_v19  ;;  %v1611_v27 = vsel %vm1594_vm2, %v1576_v61, %v1577_v4  ;;  %v19283_v28 = vld [vmem:[#allocation354_spill] sm:$0xff]  ;;  %v16184_v4 = vld [vmem:[%s17057_s0 + $0x388] sm:$0xff] }
 0x3d2   :  { %v19280_v49 = vrot.slane %v19279_v2, 1  ;;  %v19282_v44 = vrot.slane %v19281_v23, 1  ;;  %v5441_v9 = vsel %vm5313_vm15, %v15983_v43, 0.0  ;;  %5568 = vst [vmem:[%s17059_s3 + $0x360] sm:$0xff] %v5440_v11  ;;  %vm3907_vm10 = vcmp.eq.s32.totalorder %v16076_v8, 0  ;;  %v19293_v11 = vld [vmem:[#allocation331_spill] sm:$0xff] }
 0x3d3   :  { %vm3908_vm9 = vcmp.eq.s32.totalorder %v19283_v28, 0  ;;  %vm4163_vm3 = vcmp.eq.s32.totalorder %v16076_v8, 2  ;;  %5569 = vst [vmem:[%s17059_s3 + $0x368] sm:$0xff] %v5441_v9  ;;  %vm4035_vm5 = vcmp.eq.s32.totalorder %v16076_v8, 1  ;;  %vm4036_vm13 = vcmp.eq.s32.totalorder %v19283_v28, 1  ;;  %v19295_v8 = vld [vmem:[#allocation322_spill] sm:$0xff] }
 0x3d4   :  { %v1999_v1 = vsel %vm1983_vm0, %v19282_v44, %v19280_v49  ;;  %vm19284_vm4 = vcmp.eq.s32.totalorder %v6314_v55, 127  ;;  %vm5186_vm8 = vcmp.gt.f32.partialorder %v15989_v56, %v4930_v60  ;;  %v16179_v25 = vunpack.c.1.s8 %v5862_v53  ;;  %v1309_v44 = vpop.permute.xlu1 %1308 }
 0x3d5   :  { %v1443_v43 = vsel %vm19284_vm4, 0.0, %v1299_v39  ;;  %vm19285_vm7 = vmmov %vm19284_vm4  ;;  %v4291_v36 = vsel %vm4163_vm3, %v1999_v1, %v19286_v38  ;;  %v1579_v21 = vrot.slane %v16184_v4, 7  ;;  %v1580_v26 = vrot.slane %v16190_v22, 7  ;;  %v19292_v39 = vld [vmem:[#allocation518_spill] sm:$0xff] }
 0x3d6   :  { %v16169_v61 = vsel %vm19285_vm7, 0.0, %v1305_v20  ;;  %v2355_v58 = vrot.slane %v1443_v43, 1  ;;  %v3519_v30 = vrot.slane %v1443_v43, 7  ;;  %vm19288_vm12 = vcmp.eq.s32.totalorder %v19283_v28, 2 }
 0x3d7   :  { %v2358_v50 = vrot.slane %v16169_v61, 1  ;;  %vm3909_vm15 = vcmp.eq.s32.totalorder %v16179_v25, 0  ;;  %v1608_v23 = vsel %vm1594_vm2, %v1579_v21, %v1580_v26  ;;  %v1609_v60 = vsel %vm1594_vm2, %v1578_v19, %v1579_v21  ;;  %v19298_v19 = vld [vmem:[#allocation232_spill] sm:$0xff] }
 0x3d8   :  { %v2387_v17 = vsel %vm1983_vm0, %v2355_v58, %v2356_v18  ;;  %v2388_v10 = vsel %vm1983_vm0, %v2354_v37, %v2355_v58  ;;  %v3551_v33 = vsel %vm1594_vm2, %v3519_v30, %v3520_v12  ;;  %v3552_v5 = vsel %vm1594_vm2, %v3518_v48, %v3519_v30  ;;  %v16282_v30 = vld [vmem:[%s17057_s0 + $0x398] sm:$0xff] }
 0x3d9   :  { %v4418_v13 = vsel %vm4034_vm6, %v2388_v10, %v19287_v3  ;;  %v4419_v63 = vsel %vm4035_vm5, %v2387_v17, %v4291_v36  ;;  %v4675_v37 = vsel %vm4163_vm3, %v1611_v27, %v3552_v5  ;;  %v4676_v52 = vsel %vm19288_vm12, %v1610_v54, %v3551_v33  ;;  %vm19299_vm12 = vmmov %vm19285_vm7  ;;  %v16288_v17 = vld [vmem:[%s17057_s0 + $0x3a0] sm:$0xff] }
 0x3da   :  { %v4546_v32 = vsel %vm3906_vm14, %v15968_v34, %v4418_v13  ;;  %v4547_v48 = vsel %vm3907_vm10, %v1443_v43, %v4419_v63  ;;  %v4803_v15 = vsel %vm4035_vm5, %v19289_v47, %v4675_v37  ;;  %v4804_v14 = vsel %vm4036_vm13, %v19290_v42, %v4676_v52  ;;  %v19300_v13 = vld [vmem:[#allocation364_spill] sm:$0xff] }
 0x3db   :  { %v4931_v51 = vsel %vm3907_vm10, %v19291_v35, %v4803_v15  ;;  %vm5058_vm6 = vcmp.gt.f32.partialorder %v15989_v56, %v4546_v32  ;;  %vm5059_vm11 = vcmp.gt.f32.partialorder %v16081_v41, %v4547_v48  ;;  %v3522_v34 = vrot.slane %v16169_v61, 7  ;;  %v19302_v48 = vld [vmem:[#allocation529_spill] sm:$0xff]  ;;  %v19303_v15 = vld [vmem:[#allocation535_spill] sm:$0xff] }
 0x3dc   :  { %v4932_v20 = vsel %vm3908_vm9, %v19292_v39, %v4804_v14  ;;  %vm5187_vm14 = vcmp.gt.f32.partialorder %v16081_v41, %v4931_v51  ;;  %vm5314_vm1 = vmand %vm5058_vm6, %vm5186_vm8  ;;  %v19294_v54 = vrot.slane %v19293_v11, 1  ;;  %v19296_v27 = vrot.slane %v19295_v8, 1  ;;  %v19304_v14 = vld [vmem:[#allocation517_spill] sm:$0xff]  ;;  %v1307_v39 = vpop.permute.xlu0 %1306  ;;  %v19306_v8 = vld [vmem:[#allocation340_spill] sm:$0xff] }
 0x3dd   :  { %vm5315_vm10 = vmand %vm5059_vm11, %vm5187_vm14  ;;  %v5442_v49 = vsel %vm5314_vm1, %v15989_v56, 0.0  ;;  %vm4165_vm3 = vcmp.eq.s32.totalorder %v16179_v25, 2  ;;  %v19297_v56 = vld [vmem:[#allocation363_spill] sm:$0xff]  ;;  %vm4037_vm4 = vcmp.eq.s32.totalorder %v16179_v25, 1  ;;  %v1445_v9 = vsel %vm19285_vm7, 0.0, %v1303_v24 }
 0x3de   :  { %v1997_v2 = vsel %vm1983_vm0, %v19296_v27, %v19294_v54  ;;  %v5443_v1 = vsel %vm5315_vm10, %v16081_v41, 0.0  ;;  %5570 = vst [vmem:[%s17059_s3 + $0x370] sm:$0xff] %v5442_v49  ;;  %vm3910_vm5 = vcmp.eq.s32.totalorder %v19297_v56, 0  ;;  %vm4038_vm8 = vcmp.eq.s32.totalorder %v19297_v56, 1 }
 0x3df   :  { %5571 = vst [vmem:[%s17059_s3 + $0x378] sm:$0xff] %v5443_v1  ;;  %v4293_v41 = vsel %vm4165_vm3, %v1997_v2, %v19298_v19  ;;  %v2357_v43 = vrot.slane %v1445_v9, 1  ;;  %v3521_v38 = vrot.slane %v1445_v9, 7  ;;  %v16275_v36 = vsel %vm19299_vm12, 0.0, %v1309_v44  ;;  %v19308_v2 = vld [vmem:[#allocation330_spill] sm:$0xff] }
 0x3e0   :  { %v16277_v58 = vunpack.c.3.s8 %v5862_v53  ;;  %v1581_v21 = vrot.slane %v16282_v30, 7  ;;  %v1582_v10 = vrot.slane %v16288_v17, 7  ;;  %vm19301_vm6 = vcmp.eq.s32.totalorder %v19297_v56, 2  ;;  %v19313_v44 = vld [vmem:[#allocation538_spill] sm:$0xff]  ;;  %v1311_v56 = vpop.permute.xlu0 %1310 }
 0x3e1   :  { %v2385_v53 = vsel %vm1983_vm0, %v2357_v43, %v2358_v50  ;;  %v2386_v33 = vsel %vm1983_vm0, %v2356_v18, %v2357_v43  ;;  %v3549_v5 = vsel %vm1594_vm2, %v3521_v38, %v3522_v34  ;;  %v3550_v3 = vsel %vm1594_vm2, %v3520_v12, %v3521_v38  ;;  %v5867_v43 = vld [vmem:[%s17058_s1 + $0xe8] sm:$0xff] }
 0x3e2   :  { %v4420_v63 = vsel %vm4036_vm13, %v2386_v33, %v19300_v13  ;;  %v4421_v37 = vsel %vm4037_vm4, %v2385_v53, %v4293_v41  ;;  %v4677_v18 = vsel %vm4165_vm3, %v1609_v60, %v3550_v3  ;;  %v4678_v52 = vsel %vm19301_vm6, %v1608_v23, %v3549_v5  ;;  %v16391_v33 = vld [vmem:[%s17057_s0 + $0x3b0] sm:$0xff] }
 0x3e3   :  { %v4548_v32 = vsel %vm3908_vm9, %v16074_v45, %v4420_v63  ;;  %v4549_v12 = vsel %vm3909_vm15, %v1445_v9, %v4421_v37  ;;  %v4805_v47 = vsel %vm4037_vm4, %v19302_v48, %v4677_v18  ;;  %v4806_v42 = vsel %vm4038_vm8, %v19303_v15, %v4678_v52  ;;  %v19305_v45 = vld [vmem:[#allocation522_spill] sm:$0xff]  ;;  %v19314_v18 = vld [vmem:[#allocation23_spill] sm:$0xff] }
 0x3e4   :  { %vm5188_vm13 = vcmp.gt.f32.partialorder %v16087_v29, %v4932_v20  ;;  %v4933_v35 = vsel %vm3909_vm15, %v19304_v14, %v4805_v47  ;;  %vm5060_vm11 = vcmp.gt.f32.partialorder %v16087_v29, %v4548_v32  ;;  %vm5061_vm9 = vcmp.gt.f32.partialorder %v16184_v4, %v4549_v12  ;;  %v1313_v20 = vpop.permute.xlu1 %1312  ;;  %v19316_v47 = vld [vmem:[#allocation534_spill] sm:$0xff] }
 0x3e5   :  { %v4934_v28 = vsel %vm3910_vm5, %v19305_v45, %v4806_v42  ;;  %vm5189_vm14 = vcmp.gt.f32.partialorder %v16184_v4, %v4933_v35  ;;  %vm5316_vm1 = vmand %vm5060_vm11, %vm5188_vm13  ;;  %v2360_v51 = vrot.slane %v16275_v36, 1  ;;  %v3524_v24 = vrot.slane %v16275_v36, 7  ;;  %v19317_v42 = vld [vmem:[#allocation378_spill] sm:$0xff]  ;;  %v19318_v35 = vld [vmem:[#allocation521_spill] sm:$0xff] }
 0x3e6   :  { %vm5317_vm10 = vmand %vm5061_vm9, %vm5189_vm14  ;;  %v5444_v25 = vsel %vm5316_vm1, %v16087_v29, 0.0  ;;  %v1606_v11 = vsel %vm1594_vm2, %v1581_v21, %v1582_v10  ;;  %v1607_v54 = vsel %vm1594_vm2, %v1580_v26, %v1581_v21  ;;  %v19307_v27 = vrot.slane %v19306_v8, 1  ;;  %v19310_v29 = vld [vmem:[#allocation370_spill] sm:$0xff]  ;;  %v16385_v21 = vld [vmem:[%s17057_s0 + $0x3a8] sm:$0xff] }
 0x3e7   :  { %v19309_v49 = vrot.slane %v19308_v2, 1  ;;  %v5445_v60 = vsel %vm5317_vm10, %v16184_v4, 0.0  ;;  %5572 = vst [vmem:[%s17059_s3 + $0x380] sm:$0xff] %v5444_v25  ;;  %vm3911_vm15 = vcmp.eq.s32.totalorder %v16277_v58, 0  ;;  %vm3912_vm3 = vcmp.eq.s32.totalorder %v19310_v29, 0  ;;  %v19320_v25 = vld [vmem:[#allocation349_spill] sm:$0xff] }
 0x3e8   :  { %vm4167_vm4 = vcmp.eq.s32.totalorder %v16277_v58, 2  ;;  %5573 = vst [vmem:[%s17059_s3 + $0x388] sm:$0xff] %v5445_v60  ;;  %vm4039_vm7 = vcmp.eq.s32.totalorder %v16277_v58, 1  ;;  %vm4040_vm12 = vcmp.eq.s32.totalorder %v19310_v29, 1  ;;  %vm19311_vm6 = vcmp.eq.s32.totalorder %v6314_v55, 127  ;;  %v19322_v58 = vld [vmem:[#allocation339_spill] sm:$0xff] }
 0x3e9   :  { %v1995_v23 = vsel %vm1983_vm0, %v19309_v49, %v19307_v27  ;;  %v1447_v4 = vsel %vm19311_vm6, 0.0, %v1307_v39  ;;  %vm19312_vm13 = vmmov %vm19311_vm6  ;;  %vm5190_vm11 = vcmp.gt.f32.partialorder %v16190_v22, %v4934_v28  ;;  %v16380_v38 = vunpack.c.1.s8 %v5867_v43  ;;  %v19319_v39 = vld [vmem:[#allocation528_spill] sm:$0xff]  ;;  %v1317_v49 = vpop.permute.xlu1 %1316 }
 0x3ea   :  { %v16370_v26 = vsel %vm19312_vm13, 0.0, %v1313_v20  ;;  %v4295_v1 = vsel %vm4167_vm4, %v1995_v23, %v19313_v44  ;;  %v2359_v9 = vrot.slane %v1447_v4, 1  ;;  %v3523_v19 = vrot.slane %v1447_v4, 7 }
 0x3eb   :  { %v2362_v41 = vrot.slane %v16370_v26, 1  ;;  %v1583_v53 = vrot.slane %v16385_v21, 7  ;;  %v1584_v5 = vrot.slane %v16391_v33, 7  ;;  %vm19315_vm9 = vcmp.eq.s32.totalorder %v19310_v29, 2 }
 0x3ec   :  { %v2383_v3 = vsel %vm1983_vm0, %v2359_v9, %v2360_v51  ;;  %v2384_v13 = vsel %vm1983_vm0, %v2358_v50, %v2359_v9  ;;  %v3547_v63 = vsel %vm1594_vm2, %v3523_v19, %v3524_v24  ;;  %v3548_v37 = vsel %vm1594_vm2, %v3522_v34, %v3523_v19  ;;  %v16483_v19 = vld [vmem:[%s17057_s0 + $0x3b8] sm:$0xff] }
 0x3ed   :  { %v4422_v52 = vsel %vm4038_vm8, %v2384_v13, %v19314_v18  ;;  %v4423_v32 = vsel %vm4039_vm7, %v2383_v3, %v4295_v1  ;;  %v4679_v50 = vsel %vm4167_vm4, %v1607_v54, %v3548_v37  ;;  %v4680_v12 = vsel %vm19315_vm9, %v1606_v11, %v3547_v63  ;;  %vm19326_vm9 = vmmov %vm19312_vm13  ;;  %v16489_v3 = vld [vmem:[%s17057_s0 + $0x3c0] sm:$0xff] }
 0x3ee   :  { %v4550_v48 = vsel %vm3910_vm5, %v16169_v61, %v4422_v52  ;;  %v4551_v34 = vsel %vm3911_vm15, %v1447_v4, %v4423_v32  ;;  %v4807_v15 = vsel %vm4039_vm7, %v19316_v47, %v4679_v50  ;;  %v4808_v14 = vsel %vm4040_vm12, %v19317_v42, %v4680_v12  ;;  %v19327_v52 = vld [vmem:[#allocation382_spill] sm:$0xff] }
 0x3ef   :  { %v4935_v45 = vsel %vm3911_vm15, %v19318_v35, %v4807_v15  ;;  %vm5062_vm8 = vcmp.gt.f32.partialorder %v16190_v22, %v4550_v48  ;;  %vm5063_vm14 = vcmp.gt.f32.partialorder %v16282_v30, %v4551_v34  ;;  %v3526_v61 = vrot.slane %v16370_v26, 7  ;;  %v19329_v34 = vld [vmem:[#allocation24_spill] sm:$0xff]  ;;  %v19330_v15 = vld [vmem:[#allocation541_spill] sm:$0xff] }
 0x3f0   :  { %v4936_v20 = vsel %vm3912_vm3, %v19319_v39, %v4808_v14  ;;  %vm5191_vm5 = vcmp.gt.f32.partialorder %v16282_v30, %v4935_v45  ;;  %vm5318_vm1 = vmand %vm5062_vm8, %vm5190_vm11  ;;  %v19321_v11 = vrot.slane %v19320_v25, 1  ;;  %v19323_v54 = vrot.slane %v19322_v58, 1  ;;  %v19331_v14 = vld [vmem:[#allocation527_spill] sm:$0xff]  ;;  %v1315_v39 = vpop.permute.xlu0 %1314  ;;  %v19333_v58 = vld [vmem:[#allocation357_spill] sm:$0xff] }
 0x3f1   :  { %vm3913_vm10 = vcmp.eq.s32.totalorder %v16380_v38, 0  ;;  %vm5319_vm15 = vmand %vm5063_vm14, %vm5191_vm5  ;;  %v5446_v27 = vsel %vm5318_vm1, %v16190_v22, 0.0  ;;  %v1604_v2 = vsel %vm1594_vm2, %v1583_v53, %v1584_v5  ;;  %v1605_v28 = vsel %vm1594_vm2, %v1582_v10, %v1583_v53  ;;  %v19324_v22 = vld [vmem:[#allocation380_spill] sm:$0xff]  ;;  %v19325_v10 = vld [vmem:[#allocation542_spill] sm:$0xff] }
 0x3f2   :  { %v1993_v8 = vsel %vm1983_vm0, %v19323_v54, %v19321_v11  ;;  %vm4169_vm4 = vcmp.eq.s32.totalorder %v16380_v38, 2  ;;  %v5447_v23 = vsel %vm5319_vm15, %v16282_v30, 0.0  ;;  %5574 = vst [vmem:[%s17059_s3 + $0x390] sm:$0xff] %v5446_v27  ;;  %vm3914_vm7 = vcmp.eq.s32.totalorder %v19324_v22, 0 }
 0x3f3   :  { %vm4041_vm6 = vcmp.eq.s32.totalorder %v16380_v38, 1  ;;  %v1449_v60 = vsel %vm19312_vm13, 0.0, %v1311_v56  ;;  %5575 = vst [vmem:[%s17059_s3 + $0x398] sm:$0xff] %v5447_v23  ;;  %vm4042_vm11 = vcmp.eq.s32.totalorder %v19324_v22, 1  ;;  %v4297_v30 = vsel %vm4169_vm4, %v1993_v8, %v19325_v10  ;;  %v19335_v8 = vld [vmem:[#allocation348_spill] sm:$0xff] }
 0x3f4   :  { %v2361_v4 = vrot.slane %v1449_v60, 1  ;;  %v3525_v44 = vrot.slane %v1449_v60, 7  ;;  %v16476_v1 = vsel %vm19326_vm9, 0.0, %v1317_v49  ;;  %v16478_v9 = vunpack.c.3.s8 %v5867_v43  ;;  %v19340_v49 = vld [vmem:[#allocation544_spill] sm:$0xff] }
 0x3f5   :  { %v1585_v53 = vrot.slane %v16483_v19, 7  ;;  %v1586_v13 = vrot.slane %v16489_v3, 7  ;;  %vm19328_vm8 = vcmp.eq.s32.totalorder %v19324_v22, 2  ;;  %v2364_v45 = vrot.slane %v16476_v1, 1  ;;  %v1319_v22 = vpop.permute.xlu0 %1318 }
 0x3f6   :  { %v2381_v43 = vsel %vm1983_vm0, %v2361_v4, %v2362_v41  ;;  %v2382_v63 = vsel %vm1983_vm0, %v2360_v51, %v2361_v4  ;;  %v3545_v37 = vsel %vm1594_vm2, %v3525_v44, %v3526_v61  ;;  %v3546_v18 = vsel %vm1594_vm2, %v3524_v24, %v3525_v44  ;;  %v5872_v4 = vld [vmem:[%s17058_s1 + $0xf0] sm:$0xff] }
 0x3f7   :  { %v4424_v32 = vsel %vm4040_vm12, %v2382_v63, %v19327_v52  ;;  %v4425_v50 = vsel %vm4041_vm6, %v2381_v43, %v4297_v30  ;;  %v4681_v51 = vsel %vm4169_vm4, %v1605_v28, %v3546_v18  ;;  %v4682_v12 = vsel %vm19328_vm8, %v1604_v2, %v3545_v37  ;;  %v16592_v63 = vld [vmem:[%s17057_s0 + $0x3d0] sm:$0xff] }
 0x3f8   :  { %v4552_v48 = vsel %vm3912_vm3, %v16275_v36, %v4424_v32  ;;  %v4553_v24 = vsel %vm3913_vm10, %v1449_v60, %v4425_v50  ;;  %v4809_v47 = vsel %vm4041_vm6, %v19329_v34, %v4681_v51  ;;  %v4810_v42 = vsel %vm4042_vm11, %v19330_v15, %v4682_v12  ;;  %v19332_v36 = vld [vmem:[#allocation533_spill] sm:$0xff]  ;;  %v19341_v51 = vld [vmem:[#allocation543_spill] sm:$0xff] }
 0x3f9   :  { %vm5192_vm12 = vcmp.gt.f32.partialorder %v16288_v17, %v4936_v20  ;;  %v4937_v35 = vsel %vm3913_vm10, %v19331_v14, %v4809_v47  ;;  %vm5064_vm14 = vcmp.gt.f32.partialorder %v16288_v17, %v4552_v48  ;;  %vm5065_vm3 = vcmp.gt.f32.partialorder %v16385_v21, %v4553_v24  ;;  %v1321_v20 = vpop.permute.xlu1 %1320  ;;  %v19343_v47 = vld [vmem:[#allocation241_spill] sm:$0xff] }
 0x3fa   :  { %v4938_v29 = vsel %vm3914_vm7, %v19332_v36, %v4810_v42  ;;  %vm5193_vm5 = vcmp.gt.f32.partialorder %v16385_v21, %v4937_v35  ;;  %vm5320_vm1 = vmand %vm5064_vm14, %vm5192_vm12  ;;  %v3528_v56 = vrot.slane %v16476_v1, 7  ;;  %v1602_v25 = vsel %vm1594_vm2, %v1585_v53, %v1586_v13  ;;  %v19344_v42 = vld [vmem:[#allocation67_spill] sm:$0xff]  ;;  %v19345_v35 = vld [vmem:[#allocation532_spill] sm:$0xff] }
 0x3fb   :  { %vm5321_vm15 = vmand %vm5065_vm3, %vm5193_vm5  ;;  %v5448_v38 = vsel %vm5320_vm1, %v16288_v17, 0.0  ;;  %v1603_v11 = vsel %vm1594_vm2, %v1584_v5, %v1585_v53  ;;  %v19334_v54 = vrot.slane %v19333_v58, 1  ;;  %v19336_v27 = vrot.slane %v19335_v8, 1  ;;  %v19337_v17 = vld [vmem:[#allocation387_spill] sm:$0xff] }
 0x3fc   :  { %v5449_v28 = vsel %vm5321_vm15, %v16385_v21, 0.0  ;;  %5576 = vst [vmem:[%s17059_s3 + $0x3a0] sm:$0xff] %v5448_v38  ;;  %vm3915_vm10 = vcmp.eq.s32.totalorder %v16478_v9, 0  ;;  %vm3916_vm4 = vcmp.eq.s32.totalorder %v19337_v17, 0  ;;  %vm4171_vm6 = vcmp.eq.s32.totalorder %v16478_v9, 2  ;;  %v16586_v53 = vld [vmem:[%s17057_s0 + $0x3c8] sm:$0xff] }
 0x3fd   :  { %v1991_v2 = vsel %vm1983_vm0, %v19336_v27, %v19334_v54  ;;  %5577 = vst [vmem:[%s17059_s3 + $0x3a8] sm:$0xff] %v5449_v28  ;;  %vm4043_vm13 = vcmp.eq.s32.totalorder %v16478_v9, 1  ;;  %vm4044_vm9 = vcmp.eq.s32.totalorder %v19337_v17, 1  ;;  %vm19338_vm8 = vcmp.eq.s32.totalorder %v6314_v55, 127  ;;  %v19347_v38 = vld [vmem:[#allocation368_spill] sm:$0xff]  ;;  %v1325_v27 = vpop.permute.xlu1 %1324 }
 0x3fe   :  { %v1451_v21 = vsel %vm19338_vm8, 0.0, %v1315_v39  ;;  %vm19339_vm12 = vmmov %vm19338_vm8  ;;  %v4299_v23 = vsel %vm4171_vm6, %v1991_v2, %v19340_v49  ;;  %vm5194_vm14 = vcmp.gt.f32.partialorder %v16391_v33, %v4938_v29  ;;  %v16581_v44 = vunpack.c.1.s8 %v5872_v4  ;;  %v19346_v39 = vld [vmem:[#allocation537_spill] sm:$0xff]  ;;  %v19349_v9 = vld [vmem:[#allocation356_spill] sm:$0xff] }
 0x3ff   :  { %v16571_v5 = vsel %vm19339_vm12, 0.0, %v1321_v20  ;;  %v2363_v60 = vrot.slane %v1451_v21, 1  ;;  %v3527_v10 = vrot.slane %v1451_v21, 7  ;;  %v1587_v43 = vrot.slane %v16586_v53, 7 }
 0x400   :  { %v2366_v30 = vrot.slane %v16571_v5, 1  ;;  %v1588_v37 = vrot.slane %v16592_v63, 7  ;;  %vm19342_vm3 = vcmp.eq.s32.totalorder %v19337_v17, 2  ;;  %vm3917_vm15 = vcmp.eq.s32.totalorder %v16581_v44, 0 }
 0x401   :  { %v2379_v18 = vsel %vm1983_vm0, %v2363_v60, %v2364_v45  ;;  %v2380_v52 = vsel %vm1983_vm0, %v2362_v41, %v2363_v60  ;;  %v3543_v32 = vsel %vm1594_vm2, %v3527_v10, %v3528_v56  ;;  %v3544_v50 = vsel %vm1594_vm2, %v3526_v61, %v3527_v10  ;;  %v16684_v10 = vld [vmem:[%s17057_s0 + $0x3d8] sm:$0xff] }
 0x402   :  { %v4426_v12 = vsel %vm4042_vm11, %v2380_v52, %v19341_v51  ;;  %v4427_v48 = vsel %vm4043_vm13, %v2379_v18, %v4299_v23  ;;  %v4683_v41 = vsel %vm4171_vm6, %v1603_v11, %v3544_v50  ;;  %v4684_v24 = vsel %vm19342_vm3, %v1602_v25, %v3543_v32  ;;  %vm19353_vm3 = vmmov %vm19339_vm12  ;;  %v16690_v18 = vld [vmem:[%s17057_s0 + $0x3e0] sm:$0xff] }
 0x403   :  { %v4554_v34 = vsel %vm3914_vm7, %v16370_v26, %v4426_v12  ;;  %v4555_v61 = vsel %vm3915_vm10, %v1451_v21, %v4427_v48  ;;  %v4811_v15 = vsel %vm4043_vm13, %v19343_v47, %v4683_v41  ;;  %v4812_v14 = vsel %vm4044_vm9, %v19344_v42, %v4684_v24  ;;  %v19354_v12 = vld [vmem:[#allocation545_spill] sm:$0xff] }
 0x404   :  { %v4939_v36 = vsel %vm3915_vm10, %v19345_v35, %v4811_v15  ;;  %vm5066_vm11 = vcmp.gt.f32.partialorder %v16391_v33, %v4554_v34  ;;  %vm5067_vm5 = vcmp.gt.f32.partialorder %v16483_v19, %v4555_v61  ;;  %v3530_v26 = vrot.slane %v16571_v5, 7  ;;  %v19356_v61 = vld [vmem:[#allocation26_spill] sm:$0xff]  ;;  %v19357_v15 = vld [vmem:[#allocation547_spill] sm:$0xff] }
 0x405   :  { %v4940_v20 = vsel %vm3916_vm4, %v19346_v39, %v4812_v14  ;;  %vm5195_vm7 = vcmp.gt.f32.partialorder %v16483_v19, %v4939_v36  ;;  %vm5322_vm1 = vmand %vm5066_vm11, %vm5194_vm14  ;;  %v19348_v25 = vrot.slane %v19347_v38, 1  ;;  %v19350_v11 = vrot.slane %v19349_v9, 1  ;;  %v19358_v14 = vld [vmem:[#allocation536_spill] sm:$0xff] }
 0x406   :  { %vm5323_vm10 = vmand %vm5067_vm5, %vm5195_vm7  ;;  %v5450_v54 = vsel %vm5322_vm1, %v16391_v33, 0.0  ;;  %v1600_v8 = vsel %vm1594_vm2, %v1587_v43, %v1588_v37  ;;  %v1601_v29 = vsel %vm1594_vm2, %v1586_v13, %v1587_v43  ;;  %vm4173_vm6 = vcmp.eq.s32.totalorder %v16581_v44, 2  ;;  %v19351_v33 = vld [vmem:[#allocation492_spill] sm:$0xff] }
 0x407   :  { %v1989_v58 = vsel %vm1983_vm0, %v19350_v11, %v19348_v25  ;;  %v5451_v2 = vsel %vm5323_vm10, %v16483_v19, 0.0  ;;  %5578 = vst [vmem:[%s17059_s3 + $0x3b0] sm:$0xff] %v5450_v54  ;;  %vm3918_vm13 = vcmp.eq.s32.totalorder %v19351_v33, 0  ;;  %vm4045_vm8 = vcmp.eq.s32.totalorder %v16581_v44, 1  ;;  %v19352_v13 = vld [vmem:[#allocation548_spill] sm:$0xff] }
 0x408   :  { %v1453_v28 = vsel %vm19339_vm12, 0.0, %v1319_v22  ;;  %5579 = vst [vmem:[%s17059_s3 + $0x3b8] sm:$0xff] %v5451_v2  ;;  %vm4046_vm14 = vcmp.eq.s32.totalorder %v19351_v33, 1  ;;  %v4301_v19 = vsel %vm4173_vm6, %v1989_v58, %v19352_v13  ;;  %v16677_v23 = vsel %vm19353_vm3, 0.0, %v1325_v27  ;;  %v19360_v22 = vld [vmem:[#allocation28_spill] sm:$0xff]  ;;  %v19365_v27 = vld [vmem:[#allocation367_spill] sm:$0xff]  ;;  %vm19368_vm12 = vmmov %vm19353_vm3 }
 0x409   :  { %v2365_v21 = vrot.slane %v1453_v28, 1  ;;  %v3529_v49 = vrot.slane %v1453_v28, 7  ;;  %v16679_v60 = vunpack.c.3.s8 %v5872_v4  ;;  %v1589_v43 = vrot.slane %v16684_v10, 7  ;;  %v19362_v38 = vld [vmem:[#allocation540_spill] sm:$0xff] }
 0x40a   :  { %v1590_v52 = vrot.slane %v16690_v18, 7  ;;  %vm19355_vm11 = vcmp.eq.s32.totalorder %v19351_v33, 2  ;;  %v2371_v36 = vrot.slane %v15414_v16, 1  ;;  %v19361_v39 = vrot.slane %v19360_v22, 7 }
 0x40b   :  { %v2377_v4 = vsel %vm1983_vm0, %v2365_v21, %v2366_v30  ;;  %v2378_v32 = vsel %vm1983_vm0, %v2364_v45, %v2365_v21  ;;  %v3541_v50 = vsel %vm1594_vm2, %v3529_v49, %v3530_v26  ;;  %v3542_v51 = vsel %vm1594_vm2, %v3528_v56, %v3529_v49  ;;  %v19369_v49 = vld [vmem:[#allocation68_spill] sm:$0xff] }
 0x40c   :  { %v4428_v48 = vsel %vm4044_vm9, %v2378_v32, %v19354_v12  ;;  %v4429_v41 = vsel %vm4045_vm8, %v2377_v4, %v4301_v19  ;;  %v4685_v45 = vsel %vm4173_vm6, %v1601_v29, %v3542_v51  ;;  %v4686_v24 = vsel %vm19355_vm11, %v1600_v8, %v3541_v50  ;;  %v19363_v8 = vld [vmem:[#allocation377_spill] sm:$0xff]  ;;  %v16798_v32 = vld [vmem:[%s17057_s0 + $0x3f0] sm:$0xff] }
 0x40d   :  { %v4556_v34 = vsel %vm3916_vm4, %v16476_v1, %v4428_v48  ;;  %v4557_v56 = vsel %vm3917_vm15, %v1453_v28, %v4429_v41  ;;  %v4813_v47 = vsel %vm4045_vm8, %v19356_v61, %v4685_v45  ;;  %v4814_v42 = vsel %vm4046_vm14, %v19357_v15, %v4686_v24  ;;  %v19367_v28 = vld [vmem:[#allocation526_spill] sm:$0xff]  ;;  %v16804_v51 = vld [vmem:[%s17057_s0 + $0x3f8] sm:$0xff] }
 0x40e   :  { %vm5196_vm9 = vcmp.gt.f32.partialorder %v16489_v3, %v4940_v20  ;;  %v4941_v35 = vsel %vm3917_vm15, %v19358_v14, %v4813_v47  ;;  %vm5068_vm5 = vcmp.gt.f32.partialorder %v16489_v3, %v4556_v34  ;;  %vm5069_vm4 = vcmp.gt.f32.partialorder %v16586_v53, %v4557_v56  ;;  %v1323_v20 = vpop.permute.xlu0 %1322  ;;  %v19370_v34 = vld [vmem:[#allocation549_spill] sm:$0xff] }
 0x40f   :  { %v19359_v1 = vrot.slane %v10522_v46, 1  ;;  %v16750_v44 = vsel %vm1594_vm2, %v3535_v7, %v19361_v39  ;;  %vm5197_vm7 = vcmp.gt.f32.partialorder %v16586_v53, %v4941_v35  ;;  %vm5324_vm1 = vmand %vm5068_vm5, %vm5196_vm9  ;;  %v4942_v25 = vsel %vm3918_vm13, %v19362_v38, %v4814_v42  ;;  %v19372_v42 = vld [vmem:[#allocation546_spill] sm:$0xff]  ;;  %v19374_v39 = vld [vmem:[#allocation539_spill] sm:$0xff] }
 0x410   :  { %vm5325_vm15 = vmand %vm5069_vm4, %vm5197_vm7  ;;  %v2368_v9 = vrot.slane %v16677_v23, 1  ;;  %v3532_v11 = vrot.slane %v16677_v23, 7  ;;  %v1598_v54 = vsel %vm1594_vm2, %v1589_v43, %v1590_v52  ;;  %v19364_v29 = vrot.slane %v19363_v8, 1  ;;  %v19373_v35 = vld [vmem:[#allocation550_spill] sm:$0xff] }
 0x411   :  { %v16741_v17 = vsel %vm1983_vm0, %v19359_v1, %v3146_v31  ;;  %v5452_v31 = vsel %vm5324_vm1, %v16489_v3, 0.0  ;;  %v5453_v58 = vsel %vm5325_vm15, %v16586_v53, 0.0  ;;  %v19366_v2 = vrot.slane %v19365_v27, 1 }
 0x412   :  { %5580 = vst [vmem:[%s17059_s3 + $0x3c0] sm:$0xff] %v5452_v31  ;;  %vm4175_vm10 = vcmp.eq.s32.totalorder %v16679_v60, 2  ;;  %5581 = vst [vmem:[%s17059_s3 + $0x3c8] sm:$0xff] %v5453_v58  ;;  %v1599_v53 = vsel %vm1594_vm2, %v1588_v37, %v1589_v43  ;;  %vm3919_vm6 = vcmp.eq.s32.totalorder %v16679_v60, 0  ;;  %vm3920_vm8 = vcmp.eq.s32.totalorder %v19367_v28, 0  ;;  %v5877_v37 = vld [vmem:[%s17058_s1 + $0xf8] sm:$0xff] }
 0x413   :  { %v1987_v3 = vsel %vm1983_vm0, %v19366_v2, %v19364_v29  ;;  %v1455_v13 = vsel %vm19368_vm12, 0.0, %v1323_v20  ;;  %vm4047_vm3 = vcmp.eq.s32.totalorder %v16679_v60, 1  ;;  %vm4048_vm11 = vcmp.eq.s32.totalorder %v19367_v28, 1  ;;  %v19375_v58 = vld [vmem:[#allocation25_spill] sm:$0xff] }
 0x414   :  { %v2367_v19 = vrot.slane %v1455_v13, 1  ;;  %v3531_v21 = vrot.slane %v1455_v13, 7  ;;  %v4303_v4 = vsel %vm4175_vm10, %v1987_v3, %v19369_v49  ;;  %v16793_v43 = vunpack.c.2.s8 %v5877_v37 }
 0x415   :  { %v1981_v50 = vrot.slane %v16798_v32, 1  ;;  %v1982_v12 = vrot.slane %v16804_v51, 1  ;;  %vm19371_vm9 = vcmp.eq.s32.totalorder %v19367_v28, 2  ;;  %vm5198_vm5 = vcmp.gt.f32.partialorder %v16592_v63, %v4942_v25 }
 0x416   :  { %v2375_v48 = vsel %vm1983_vm0, %v2367_v19, %v2368_v9  ;;  %v2376_v41 = vsel %vm1983_vm0, %v2366_v30, %v2367_v19  ;;  %v3539_v45 = vsel %vm1594_vm2, %v3531_v21, %v3532_v11  ;;  %v3540_v24 = vsel %vm1594_vm2, %v3530_v26, %v3531_v21  ;;  %v19377_v21 = vld [vmem:[#allocation376_spill] sm:$0xff] }
 0x417   :  { %v4430_v56 = vsel %vm4046_vm14, %v2376_v41, %v19370_v34  ;;  %v4431_v61 = vsel %vm4047_vm3, %v2375_v48, %v4303_v4  ;;  %v4687_v30 = vsel %vm4175_vm10, %v1599_v53, %v3540_v24  ;;  %v4688_v47 = vsel %vm19371_vm9, %v1598_v54, %v3539_v45  ;;  %v1327_v53 = vpop.permute.xlu0 %1326 }
 0x418   :  { %v4558_v15 = vsel %vm3918_vm13, %v16571_v5, %v4430_v56  ;;  %v4559_v26 = vsel %vm3919_vm6, %v1455_v13, %v4431_v61  ;;  %v4815_v14 = vsel %vm4047_vm3, %v19372_v42, %v4687_v30  ;;  %v4816_v1 = vsel %vm4048_vm11, %v19373_v35, %v4688_v47  ;;  %v1329_v5 = vpop.permute.xlu1 %1328  ;;  %v19380_v42 = vld [vmem:[#allocation27_spill] sm:$0xff] }
 0x419   :  { %v4943_v20 = vsel %vm3919_vm6, %v19374_v39, %v4815_v14  ;;  %vm5070_vm14 = vcmp.gt.f32.partialorder %v16592_v63, %v4558_v15  ;;  %vm5071_vm4 = vcmp.gt.f32.partialorder %v16684_v10, %v4559_v26  ;;  %v16850_v33 = vunpack.c.3.s8 %v5877_v37  ;;  %vm19376_vm6 = vmmov %vm19368_vm12 }
 0x41a   :  { %vm5199_vm13 = vcmp.gt.f32.partialorder %v16684_v10, %v4943_v20  ;;  %vm5326_vm7 = vmand %vm5070_vm14, %vm5198_vm5  ;;  %v1592_v38 = vrot.slane %v16798_v32, 7  ;;  %v1593_v25 = vrot.slane %v16804_v51, 7  ;;  %v1984_v60 = vsel %vm1983_vm0, %v1981_v50, %v1982_v12 }
 0x41b   :  { %vm5327_vm1 = vmand %vm5071_vm4, %vm5199_vm13  ;;  %v5454_v31 = vsel %vm5326_vm7, %v16592_v63, 0.0  ;;  %vm3922_vm15 = vcmp.eq.s32.totalorder %v16793_v43, 0  ;;  %vm4178_vm10 = vcmp.eq.s32.totalorder %v16793_v43, 2  ;;  %v4944_v54 = vsel %vm3920_vm8, %v19375_v58, %v4816_v1  ;;  %v5881_v58 = vld [vmem:[%s17060_s2] sm:$0xff] }
 0x41c   :  { %v5455_v8 = vsel %vm5327_vm1, %v16684_v10, 0.0  ;;  %5582 = vst [vmem:[%s17059_s3 + $0x3d0] sm:$0xff] %v5454_v31  ;;  %v1458_v63 = vsel %vm19376_vm6, 0.0, %v1329_v5  ;;  %v299_v29 = vunpack.c.1.s8 %v5877_v37  ;;  %vm4050_vm12 = vcmp.eq.s32.totalorder %v16793_v43, 1  ;;  %v16877_v10 = vld [vmem:[%s17057_s0 + $0x3e8] sm:$0xff]  ;;  %vm19379_vm13 = vmmov %vm19376_vm6  ;;  %v1464_v20 = vpop.permute.xlu1 %1463  ;;  %v19381_v5 = vld [vmem:[#allocation249_spill] sm:$0xff]  ;;  %v1461_v43 = vpop.permute.xlu0 %1460 }
 0x41d   :  { %5583 = vst [vmem:[%s17059_s3 + $0x3d8] sm:$0xff] %v5455_v8  ;;  %v2370_v27 = vrot.slane %v1458_v63, 1  ;;  %v3534_v2 = vrot.slane %v1458_v63, 7  ;;  %v1591_v3 = vrot.slane %v16877_v10, 7  ;;  %v1595_v13 = vsel %vm1594_vm2, %v1592_v38, %v1593_v25  ;;  %v19383_v8 = vld [vmem:[#allocation398_spill] sm:$0xff] }
 0x41e   :  { %vm4179_vm3 = vcmp.eq.s32.totalorder %v16850_v33, 2  ;;  %v4306_v19 = vsel %vm4178_vm10, %v1984_v60, %v15397_v6  ;;  %v19378_v49 = vrot.slane %v19377_v21, 1  ;;  %vm3921_vm9 = vcmp.eq.s32.totalorder %v299_v29, 0 }
 0x41f   :  { %v2372_v37 = vsel %vm1983_vm0, %v2370_v27, %v2371_v36  ;;  %v3536_v48 = vsel %vm1594_vm2, %v3534_v2, %v3535_v7  ;;  %vm4177_vm5 = vcmp.eq.s32.totalorder %v299_v29, 2  ;;  %vm4049_vm14 = vcmp.eq.s32.totalorder %v299_v29, 1 }
 0x420   :  { %v1985_v4 = vsel %vm1983_vm0, %v19378_v49, %v1981_v50  ;;  %v4434_v6 = vsel %vm4050_vm12, %v2372_v37, %v4306_v19  ;;  %vm5200_vm4 = vcmp.gt.f32.partialorder %v16690_v18, %v4944_v54  ;;  %v1457_v50 = vsel %vm19379_vm13, 0.0, %v1327_v53  ;;  %v19391_v37 = vld [vmem:[#allocation139_spill] sm:$0xff] }
 0x421   :  { %v4562_v41 = vsel %vm3922_vm15, %v1458_v63, %v4434_v6  ;;  %v1596_v45 = vsel %vm1594_vm2, %v1591_v3, %v1592_v38  ;;  %v2369_v24 = vrot.slane %v1457_v50, 1  ;;  %v3533_v34 = vrot.slane %v1457_v50, 7 }
 0x422   :  { %vm4051_vm7 = vcmp.eq.s32.totalorder %v16850_v33, 1  ;;  %v4691_v7 = vsel %vm4179_vm3, %v1595_v13, %v3536_v48  ;;  %vm5074_vm1 = vcmp.gt.f32.partialorder %v16798_v32, %v4562_v41  ;;  %v1597_v56 = vsel %vm1594_vm2, %v1590_v52, %v1591_v3 }
 0x423   :  { %v4305_v61 = vsel %vm4177_vm5, %v1985_v4, %v16741_v17  ;;  %v2373_v30 = vsel %vm1983_vm0, %v2369_v24, %v2370_v27  ;;  %v2374_v47 = vsel %vm1983_vm0, %v2368_v9, %v2369_v24  ;;  %v3537_v15 = vsel %vm1594_vm2, %v3533_v34, %v3534_v2 }
 0x424   :  { %v431_v26 = vadd.s32 1016, %v6293_v57  ;;  %v3538_v52 = vsel %vm1594_vm2, %v3532_v11, %v3533_v34  ;;  %v4432_v17 = vsel %vm4048_vm11, %v2374_v47, %v19380_v42  ;;  %v4433_v14 = vsel %vm4049_vm14, %v2373_v30, %v4305_v61 }
 0x425   :  { %v4690_v35 = vsel %vm4178_vm10, %v1596_v45, %v3537_v15  ;;  %v4560_v9 = vsel %vm3920_vm8, %v16677_v23, %v4432_v17  ;;  %v4561_v1 = vsel %vm3921_vm9, %v1457_v50, %v4433_v14  ;;  %v4689_v39 = vsel %vm4177_vm5, %v1597_v56, %v3538_v52  ;;  %v19398_v15 = vld [vmem:[#allocation405_spill] sm:$0xff] }
 0x426   :  { %v4818_v11 = vsel %vm4050_vm12, %v15196_v59, %v4690_v35  ;;  %v4817_v38 = vsel %vm4049_vm14, %v19381_v5, %v4689_v39  ;;  %vm5072_vm11 = vcmp.gt.f32.partialorder %v16690_v18, %v4560_v9  ;;  %vm5073_vm8 = vcmp.gt.f32.partialorder %v16877_v10, %v4561_v1 }
 0x427   :  { %v4946_v31 = vsel %vm3922_vm15, %v10650_v0, %v4818_v11  ;;  %v4945_v23 = vsel %vm3921_vm9, %v10522_v46, %v4817_v38  ;;  %vm5328_vm6 = vmand %vm5072_vm11, %vm5200_vm4  ;;  %vm434_vm12 = vcmp.eq.s32.totalorder %v6293_v57, 0  ;;  %v1725_v59 = vsub.s32 0, %v6293_v57 }
 0x428   :  { %vm5202_vm10 = vcmp.gt.f32.partialorder %v16798_v32, %v4946_v31  ;;  %vm5201_vm5 = vcmp.gt.f32.partialorder %v16877_v10, %v4945_v23  ;;  %v5456_v0 = vsel %vm5328_vm6, %v16690_v18, 0.0  ;;  %v2114_v28 = vsub.s32 1, %v6293_v57  ;;  %vm19382_vm9 = vmmov %vm19379_vm13  ;;  %v5882_v57 = vld [vmem:[%s17057_s0] sm:$0xff] }
 0x429   :  { %vm5330_vm15 = vmand %vm5074_vm1, %vm5202_vm10  ;;  %v1465_v46 = vsel %vm19382_vm9, 0.0, %v1464_v20  ;;  %5584 = vst [vmem:[%s17059_s3 + $0x3e0] sm:$0xff] %v5456_v0  ;;  %v1726_v54 = vrot.slane %v5881_v58, %v1725_v59  ;;  %v19384_v18 = vrot.slane %v19383_v8, 7  ;;  %vm689_vm4 = vcmp.eq.s32.totalorder %v431_v26, 1023 }
 0x42a   :  { %vm5329_vm14 = vmand %vm5073_vm8, %vm5201_vm5  ;;  %v5458_v60 = vsel %vm5330_vm15, %v16798_v32, 0.0  ;;  %v3667_v29 = vrot.slane %v1465_v46, %v1725_v59  ;;  %v2115_v32 = vrot.slane %v5881_v58, %v2114_v28  ;;  %v2503_v2 = vrot.slane %v1465_v46, %v2114_v28 }
 0x42b   :  { %v1722_v63 = vsel %vm1594_vm2, %v1593_v25, %v19384_v18  ;;  %v5457_v27 = vsel %vm5329_vm14, %v16877_v10, 0.0  ;;  %5586 = vst [vmem:[%s17059_s3 + $0x3f0] sm:$0xff] %v5458_v60  ;;  %v19385_v3 = vrot.slane %v19360_v22, 1  ;;  %vm19386_vm13 = vcmp.eq.s32.totalorder %v6314_v55, 0  ;;  %v19387_v22 = vld [vmem:[#allocation74_spill] sm:$0xff] }
 0x42c   :  { %5585 = vst [vmem:[%s17059_s3 + $0x3e8] sm:$0xff] %v5457_v27  ;;  %v1727_v25 = vsel %vm434_vm12, %v1726_v54, %v1722_v63  ;;  %v3668_v10 = vsel %vm434_vm12, %v3667_v29, %v16750_v44  ;;  %v1462_v13 = vsel %vm19386_vm13, 0.0, %v1461_v43  ;;  %vm3923_vm1 = vcmp.eq.s32.totalorder %v16850_v33, 0 }
 0x42d   :  { %v2499_v53 = vsel %vm1983_vm0, %v2371_v36, %v19385_v3  ;;  %vm19388_vm11 = vcmp.eq.s32.totalorder %v19387_v22, 2  ;;  %v19389_v36 = vld [vmem:[#allocation3_spill] sm:$0xff]  ;;  %v2891_v4 = vrot.slane %v1462_v13, %v1725_v59  ;;  %v4819_v44 = vsel %vm4051_vm7, %v15188_v62, %v4691_v7 }
 0x42e   :  { %v4564_v19 = vsel %vm19388_vm11, %v1727_v25, %v3668_v10  ;;  %v19390_v21 = vrot.slane %v19389_v36, 1  ;;  %v19392_v55 = vrot.slane %v19391_v37, 7  ;;  %v19393_v48 = vrot.slane %v10644_v40, 7 }
 0x42f   :  { %v3279_v41 = vrot.slane %v1462_v13, %v2114_v28  ;;  %v2631_v45 = vsel %vm689_vm4, %v2503_v2, %v2499_v53  ;;  %v19394_v24 = vrot.slane %v19391_v37, 1  ;;  %vm19396_vm8 = vcmp.eq.s32.totalorder %v19387_v22, 1 }
 0x430   :  { %v2111_v49 = vsel %vm1983_vm0, %v1982_v12, %v19390_v21  ;;  %v2887_v6 = vsel %vm1594_vm2, %v19393_v48, %v19392_v55  ;;  %v19395_v12 = vrot.slane %v10644_v40, 1  ;;  %v4947_v61 = vsel %vm3923_vm1, %v10644_v40, %v4819_v44 }
 0x431   :  { %v2243_v50 = vsel %vm689_vm4, %v2115_v32, %v2111_v49  ;;  %v2892_v62 = vsel %vm434_vm12, %v2891_v4, %v2887_v6  ;;  %vm19397_vm2 = vcmp.eq.s32.totalorder %v19387_v22, 0 }
 0x432   :  { %v3275_v34 = vsel %vm1983_vm0, %v19395_v12, %v19394_v24  ;;  %v4692_v56 = vsel %vm19396_vm8, %v2892_v62, %v4564_v19  ;;  %vm4948_vm0 = vcmp.gt.f32.partialorder %v5882_v57, %v19398_v15 }
 0x433   :  { %v3407_v7 = vsel %vm689_vm4, %v3279_v41, %v3275_v34  ;;  %v4820_v47 = vsel %vm19397_vm2, %v19391_v37, %v4692_v56 }
 0x434   :  { %v4307_v30 = vsel %vm4179_vm3, %v2243_v50, %v3407_v7  ;;  %vm5076_vm10 = vcmp.gt.f32.partialorder %v5882_v57, %v4820_v47  ;;  %vm5203_vm3 = vcmp.gt.f32.partialorder %v16804_v51, %v4947_v61 }
 0x435   :  { %v4435_v26 = vsel %vm4051_vm7, %v2631_v45, %v4307_v30  ;;  %vm5204_vm6 = vmand %vm4948_vm0, %vm5076_vm10 }
 0x436   :  { %v4563_v40 = vsel %vm3923_vm1, %v15414_v16, %v4435_v26  ;;  %v5332_v52 = vsel %vm5204_vm6, %v5882_v57, 0.0 }
 0x437   :  { %vm5075_vm12 = vcmp.gt.f32.partialorder %v16804_v51, %v4563_v40  ;;  %5460 = vst [vmem:[%s17059_s3] sm:$0xff] %v5332_v52 }
 0x438   :  { %vm5331_vm5 = vmand %vm5075_vm12, %vm5203_vm3 }
 0x439   :  { %v5459_v42 = vsel %vm5331_vm5, %v16804_v51, 0.0 }
 0x43a   :  { %5587 = vst [vmem:[%s17059_s3 + $0x3f8] sm:$0xff] %v5459_v42 }

</bundles_post_ra>
